<compile_context>
chip_gen: v7x
topology: tpu7x:2x2x1
jax: 0.10.0
libtpu: 0.0.40
codegen_flags: <defaults>
</compile_context>

<pallas_src>
import jax
import jax.numpy as jnp
import numpy as np
from jax.experimental import pallas as pl
from jax.experimental.pallas import tpu as pltpu


_SLOPE = 0.2          # LeakyReLU negative_slope used by every conv block
_BN_EPS = 1e-5


def _leaky(v):
    return jnp.where(v > 0, v, _SLOPE * v)


def _pick_tile(n):
    """Largest 128-multiple lane tile dividing n (capped for v7x VMEM)."""
    for t in (512, 256, 128):
        if n % t == 0:
            return t
    # TODO(synk): pad the point axis to a multiple of 128 for large unaligned N
    return n


# ----------------------------------------------------------------------------
# Kernel: pairwise scores for knn.
# torch: pd[n,m] = -|x_n|^2 + 2 x_n.x_m - |x_m|^2 ; top-k over m.  The -|x_n|^2
# term is a per-row constant and cannot change the top-k result, so it is
# dropped (identical indices, no in-kernel transpose needed).
# ----------------------------------------------------------------------------
def _pdist_kernel(xq_ref, xa_ref, o_ref):
    xq = xq_ref[0]                         # (TL, C)  query points (transposed)
    xa = xa_ref[0]                         # (C, N)   all points
    inner = jnp.dot(xq, xa, preferred_element_type=jnp.float32)   # (TL, N)
    sq_a = jnp.sum(xa * xa, axis=0, keepdims=True)                # (1, N)
    o_ref[0] = 2.0 * inner - sq_a


def knn_indices(feat, k, tl):
    """feat: (B, C, N) -> (B, N, k) int32 nearest-neighbour indices."""
    B, C, N = feat.shape
    feat_t = jnp.transpose(feat, (0, 2, 1))                        # (B, N, C)
    scores = pl.pallas_call(
        _pdist_kernel,
        grid=(B, N // tl),
        in_specs=[pl.BlockSpec((1, tl, C), lambda b, q: (b, q, 0)),
                  pl.BlockSpec((1, C, N), lambda b, q: (b, 0, 0))],
        out_specs=pl.BlockSpec((1, tl, N), lambda b, q: (b, q, 0)),
        out_shape=jax.ShapeDtypeStruct((B, N, N), jnp.float32),
        compiler_params=pltpu.CompilerParams(
            dimension_semantics=("parallel", "parallel")),
    )(feat_t, feat)
    # TODO(synk): top-k selection has no clean Pallas TPU equivalent; XLA glue.
    return jax.lax.top_k(scores, k)[1]


# ----------------------------------------------------------------------------
# Kernel: per-point pre-transform for an edge-conv stage (single merged matmul
# producing G = W_d @ f  (gathered by neighbour index) and
#           S = (W_c - W_d) @ f + folded-BN bias (self term)).
# ----------------------------------------------------------------------------
def _pointwise_split_kernel(x_ref, w_ref, b_ref, g_ref, s_ref):
    h = jnp.dot(w_ref[...], x_ref[0],
                preferred_element_type=jnp.float32) + b_ref[...]
    half = g_ref.shape[1]
    g_ref[0] = h[:half]
    s_ref[0] = h[half:]


def pointwise_split(feat, w_p, b_p, tl):
    B, c_in, N = feat.shape
    half = w_p.shape[0] // 2
    return pl.pallas_call(
        _pointwise_split_kernel,
        grid=(B, N // tl),
        in_specs=[pl.BlockSpec((1, c_in, tl), lambda b, t: (b, 0, t)),
                  pl.BlockSpec(w_p.shape, lambda b, t: (0, 0)),
                  pl.BlockSpec(b_p.shape, lambda b, t: (0, 0))],
        out_specs=[pl.BlockSpec((1, half, tl), lambda b, t: (b, 0, t)),
                   pl.BlockSpec((1, half, tl), lambda b, t: (b, 0, t))],
        out_shape=[jax.ShapeDtypeStruct((B, half, N), jnp.float32),
                   jax.ShapeDtypeStruct((B, half, N), jnp.float32)],
        compiler_params=pltpu.CompilerParams(
            dimension_semantics=("parallel", "parallel")),
    )(feat, w_p, b_p)


def gather_edge_pre(G, S, idx):
    """pre[b, j, c, n] = G[b, c, idx[b, n, j]] + S[b, c, n]  (XLA glue gather).

    # TODO(synk): move this gather in-kernel (scalar-prefetch / DMA gather) so
    # the (B, k, 64, N) tensor is never materialised in HBM.
    """
    B, C, N = G.shape
    k = idx.shape[-1]
    g_t = jnp.transpose(G, (0, 2, 1))                              # (B, N, C)
    flat = idx.reshape(B, N * k)
    g = jnp.take_along_axis(g_t, flat[:, :, None], axis=1)         # (B,N*k,C)
    g = jnp.transpose(g.reshape(B, N, k, C), (0, 2, 3, 1))         # (B,k,C,N)
    return g + S[:, None, :, :]


# ----------------------------------------------------------------------------
# Kernel: fused edge reduction:  leaky -> [1x1 conv + BN + leaky] -> max over k
# ----------------------------------------------------------------------------
def _make_edge_conv_kernel(k):
    def kernel(pre_ref, w_ref, b_ref, o_ref):
        w = w_ref[...]
        b = b_ref[...]
        acc = None
        for j in range(k):                    # k is small & static: unrolled
            h = _leaky(pre_ref[0, j])
            h = _leaky(jnp.dot(w, h, preferred_element_type=jnp.float32) + b)
            acc = h if acc is None else jnp.maximum(acc, h)
        o_ref[0] = acc
    return kernel


def _edge_max_kernel(pre_ref, o_ref):
    # leaky-relu is monotone, so max_j leaky(x_j) == leaky(max_j x_j).
    o_ref[0] = _leaky(jnp.max(pre_ref[0], axis=0))


def edge_conv_max(pre, w2, b2, tl):
    B, k, C, N = pre.shape
    return pl.pallas_call(
        _make_edge_conv_kernel(k),
        grid=(B, N // tl),
        in_specs=[pl.BlockSpec((1, k, C, tl), lambda b, t: (b, 0, 0, t)),
                  pl.BlockSpec(w2.shape, lambda b, t: (0, 0)),
                  pl.BlockSpec(b2.shape, lambda b, t: (0, 0))],
        out_specs=pl.BlockSpec((1, C, tl), lambda b, t: (b, 0, t)),
        out_shape=jax.ShapeDtypeStruct((B, C, N), jnp.float32),
        compiler_params=pltpu.CompilerParams(
            dimension_semantics=("parallel", "parallel")),
    )(pre, w2, b2)


def edge_max(pre, tl):
    B, k, C, N = pre.shape
    return pl.pallas_call(
        _edge_max_kernel,
        grid=(B, N // tl),
        in_specs=[pl.BlockSpec((1, k, C, tl), lambda b, t: (b, 0, 0, t))],
        out_specs=pl.BlockSpec((1, C, tl), lambda b, t: (b, 0, t)),
        out_shape=jax.ShapeDtypeStruct((B, C, N), jnp.float32),
        compiler_params=pltpu.CompilerParams(
            dimension_semantics=("parallel", "parallel")),
    )(pre)


# ----------------------------------------------------------------------------
# Kernel: conv6 (192 -> emb) + BN + leaky fused with the global max over points
# (accumulator output on the "arbitrary" point-tile axis).
# ----------------------------------------------------------------------------
def _conv6_kernel(x1_ref, x2_ref, x3_ref, w_ref, b_ref, o_ref):
    @pl.when(pl.program_id(1) == 0)
    def _():
        o_ref[...] = jnp.full(o_ref.shape, -jnp.inf, o_ref.dtype)

    xcat = jnp.concatenate([x1_ref[0], x2_ref[0], x3_ref[0]], axis=0)  # (192,T)
    h = _leaky(jnp.dot(w_ref[...], xcat,
                       preferred_element_type=jnp.float32) + b_ref[...])
    o_ref[0] = jnp.maximum(o_ref[0], jnp.max(h, axis=1, keepdims=True))


def conv6_global_max(x1, x2, x3, w6, b6, tl):
    B, C, N = x1.shape
    emb = w6.shape[0]
    xs = pl.BlockSpec((1, C, tl), lambda b, t: (b, 0, t))
    return pl.pallas_call(
        _conv6_kernel,
        grid=(B, N // tl),
        in_specs=[xs, xs, xs,
                  pl.BlockSpec(w6.shape, lambda b, t: (0, 0)),
                  pl.BlockSpec(b6.shape, lambda b, t: (0, 0))],
        out_specs=pl.BlockSpec((1, emb, 1), lambda b, t: (b, 0, 0)),
        out_shape=jax.ShapeDtypeStruct((B, emb, 1), jnp.float32),
        compiler_params=pltpu.CompilerParams(
            dimension_semantics=("parallel", "arbitrary")),
    )(x1, x2, x3, w6, b6)


# ----------------------------------------------------------------------------
# Kernel: fused head  conv7 + conv8 + dropout(eval) + conv9.
# conv7's 1216-channel input is never materialised: the (x1,x2,x3) part is one
# wide-K matmul on an in-register concat and the global-feature part arrives
# pre-folded as a per-batch bias column g7.
# ----------------------------------------------------------------------------
def _head_kernel(x1_ref, x2_ref, x3_ref, g7_ref, w7x_ref,
                 w8_ref, b8_ref, w9_ref, o_ref):
    xcat = jnp.concatenate([x1_ref[0], x2_ref[0], x3_ref[0]], axis=0)  # (192,T)
    h7 = _leaky(jnp.dot(w7x_ref[...], xcat,
                        preferred_element_type=jnp.float32) + g7_ref[0])
    h8 = _leaky(jnp.dot(w8_ref[...], h7,
                        preferred_element_type=jnp.float32) + b8_ref[...])
    # TODO(synk): dropout (dp1) is eval-mode identity; training-mode dropout
    # (PRNG masking) is not implemented.
    o_ref[0] = jnp.dot(w9_ref[...], h8, preferred_element_type=jnp.float32)


def head_convs(x1, x2, x3, g7b, p, tl):
    B, C, N = x1.shape
    ncls = p['w9'].shape[0]
    xs = pl.BlockSpec((1, C, tl), lambda b, t: (b, 0, t))

    def full(a):
        return pl.BlockSpec(a.shape, lambda b, t: (0,) * a.ndim)

    return pl.pallas_call(
        _head_kernel,
        grid=(B, N // tl),
        in_specs=[xs, xs, xs,
                  pl.BlockSpec((1, g7b.shape[1], 1), lambda b, t: (b, 0, 0)),
                  full(p['w7x']), full(p['w8']), full(p['b8']), full(p['w9'])],
        out_specs=pl.BlockSpec((1, ncls, tl), lambda b, t: (b, 0, t)),
        out_shape=jax.ShapeDtypeStruct((B, ncls, N), jnp.float32),
        compiler_params=pltpu.CompilerParams(
            dimension_semantics=("parallel", "parallel")),
    )(x1, x2, x3, g7b, p['w7x'], p['w8'], p['b8'], p['w9'])


# ----------------------------------------------------------------------------
# Kernel: final grouped softmax over the raw (-1, k) view of the class scores
# (reproduces torch.nn.Softmax(dim=-1)(x.view(-1, k)) exactly).
# ----------------------------------------------------------------------------
def _group_softmax_kernel(x_ref, o_ref):
    x = x_ref[...]
    e = jnp.exp(x - jnp.max(x, axis=-1, keepdims=True))
    denom = jnp.sum(e, axis=-1, keepdims=True)
    o_ref[...] = e * pl.reciprocal(denom, approx=True)


def group_softmax(x2d):
    R, kk = x2d.shape
    return pl.pallas_call(
        _group_softmax_kernel,
        grid=(1,),
        in_specs=[pl.BlockSpec((R, kk), lambda i: (0, 0))],
        out_specs=pl.BlockSpec((R, kk), lambda i: (0, 0)),
        out_shape=jax.ShapeDtypeStruct((R, kk), jnp.float32),
    )(x2d)


# ----------------------------------------------------------------------------
# Full forward pass
# ----------------------------------------------------------------------------
def dgcnn_semseg_forward(x, params, *, k, num_classes):
    B, C, N = x.shape
    assert (B * N * num_classes) % k == 0, "final .view(-1, k) must divide"
    tl = _pick_tile(N)
    p = params

    def edge_stage(feat, knn_feat, w_p, b_p, w2=None, b2=None):
        idx = knn_indices(knn_feat, k, tl)
        G, S = pointwise_split(feat, w_p, b_p, tl)
        pre = gather_edge_pre(G, S, idx)
        if w2 is None:
            return edge_max(pre, tl)
        return edge_conv_max(pre, w2, b2, tl)

    # get_graph_feature(x, dim9=True) -> conv1 -> conv2 -> max over k
    x1 = edge_stage(x, x[:, 9:12, :], p['wP1'], p['bP1'], p['w2'], p['b2'])
    # get_graph_feature(x1) -> conv3 -> conv4 -> max over k
    x2 = edge_stage(x1, x1, p['wP2'], p['bP2'], p['w4'], p['b4'])
    # get_graph_feature(x2) -> conv5 -> max over k
    x3 = edge_stage(x2, x2, p['wP3'], p['bP3'])

    # conv6 + global max over points (fused)
    gmax = conv6_global_max(x1, x2, x3, p['w6'], p['b6'], tl)       # (B,emb,1)
    # fold the global-feature contribution of conv7 into a per-batch bias
    g7b = jnp.einsum('oe,bei->boi', p['w7g'], gmax,
                     precision='highest') + p['b7'][None]            # (B,512,1)
    # conv7 + conv8 + dropout(eval) + conv9 (fused)
    logits = head_convs(x1, x2, x3, g7b, p, tl)                      # (B,cls,N)

    y = jnp.transpose(logits, (0, 2, 1)).reshape(-1, k)
    y = group_softmax(y)
    return y.reshape(B, N, num_classes)


# ----------------------------------------------------------------------------
# Parameter construction: raw (torch-layout) params + BN fold / weight split
# ----------------------------------------------------------------------------
def init_raw_params(key, num_channels, num_classes, emb_dims):
    shapes = dict(
        w1=(64, 2 * num_channels), w2=(64, 64), w3=(64, 128), w4=(64, 64),
        w5=(64, 128), w6=(emb_dims, 192), w7=(512, emb_dims + 192),
        w8=(256, 512), w9=(num_classes, 256))
    bn = dict(bn1=64, bn2=64, bn3=64, bn4=64, bn5=64, bn6=emb_dims,
              bn7=512, bn8=256)
    keys = jax.random.split(key, len(shapes) + 2 * len(bn))
    raw, i = {}, 0
    for name, shp in shapes.items():
        raw[name] = 0.1 * jax.random.normal(keys[i], shp, jnp.float32)
        i += 1
    for name, sz in bn.items():
        suffix = name[2:]
        raw['g' + suffix] = 1.0 + 0.1 * jax.random.normal(
            keys[i], (sz,), jnp.float32)
        raw['be' + suffix] = 0.1 * jax.random.normal(
            keys[i + 1], (sz,), jnp.float32)
        i += 2
    return raw


def prepare_params(raw, emb_dims):
    # eval-mode BatchNorm (running mean=0, var=1) folded into conv weights.
    # TODO(synk): training-mode BatchNorm (batch statistics) not implemented.
    def fold(w, g):
        return w * (g / jnp.sqrt(1.0 + _BN_EPS))[:, None]

    def split_edge(w_f, beta):
        c_in = w_f.shape[1] // 2
        w_d, w_c = w_f[:, :c_in], w_f[:, c_in:]
        w_p = jnp.concatenate([w_d, w_c - w_d], axis=0)             # (128,c_in)
        b_p = jnp.concatenate(
            [jnp.zeros((w_f.shape[0],), jnp.float32), beta])[:, None]
        return w_p, b_p

    w1f, w2f = fold(raw['w1'], raw['g1']), fold(raw['w2'], raw['g2'])
    w3f, w4f = fold(raw['w3'], raw['g3']), fold(raw['w4'], raw['g4'])
    w5f, w6f = fold(raw['w5'], raw['g5']), fold(raw['w6'], raw['g6'])
    w7f, w8f = fold(raw['w7'], raw['g7']), fold(raw['w8'], raw['g8'])
    wP1, bP1 = split_edge(w1f, raw['be1'])
    wP2, bP2 = split_edge(w3f, raw['be3'])
    wP3, bP3 = split_edge(w5f, raw['be5'])
    return dict(
        wP1=wP1, bP1=bP1, w2=w2f, b2=raw['be2'][:, None],
        wP2=wP2, bP2=bP2, w4=w4f, b4=raw['be4'][:, None],
        wP3=wP3, bP3=bP3,
        w6=w6f, b6=raw['be6'][:, None],
        w7g=w7f[:, :emb_dims], w7x=w7f[:, emb_dims:], b7=raw['be7'][:, None],
        w8=w8f, b8=raw['be8'][:, None], w9=raw['w9'])


# ----------------------------------------------------------------------------
# Pure-JAX reference mirroring the torch module (high-precision matmuls)
# ----------------------------------------------------------------------------
def reference_forward(x, raw, *, k, num_classes):
    hp = 'highest'

    def fold(w, g):
        return w * (g / jnp.sqrt(1.0 + _BN_EPS))[:, None]

    def leaky(v):
        return jnp.where(v > 0, v, _SLOPE * v)

    def knn(f):
        inner = -2.0 * jnp.einsum('bcn,bcm->bnm', f, f, precision=hp)
        xx = jnp.sum(f * f, axis=1, keepdims=True)
        pd = -jnp.swapaxes(xx, 1, 2) - inner - xx
        return jax.lax.top_k(pd, k)[1]

    def graph_feature(f, idx):
        B, C, N = f.shape
        ft = jnp.swapaxes(f, 1, 2)
        nb = jnp.take_along_axis(
            ft, idx.reshape(B, N * k)[:, :, None], axis=1).reshape(B, N, k, C)
        ctr = jnp.broadcast_to(ft[:, :, None, :], (B, N, k, C))
        feat = jnp.concatenate([nb - ctr, ctr], axis=3)
        return jnp.transpose(feat, (0, 3, 1, 2))                    # (B,2C,N,k)

    def conv_nd(w, g, beta, t):
        wf = fold(w, g)
        if t.ndim == 4:
            out = jnp.einsum('oc,bcnk->bonk', wf, t, precision=hp)
            out = out + beta[None, :, None, None]
        else:
            out = jnp.einsum('oc,bcn->bon', wf, t, precision=hp)
            out = out + beta[None, :, None]
        return leaky(out)

    B, C, N = x.shape
    t = graph_feature(x, knn(x[:, 9:12]))
    t = conv_nd(raw['w1'], raw['g1'], raw['be1'], t)
    t = conv_nd(raw['w2'], raw['g2'], raw['be2'], t)
    x1 = jnp.max(t, axis=-1)
    t = graph_feature(x1, knn(x1))
    t = conv_nd(raw['w3'], raw['g3'], raw['be3'], t)
    t = conv_nd(raw['w4'], raw['g4'], raw['be4'], t)
    x2 = jnp.max(t, axis=-1)
    t = graph_feature(x2, knn(x2))
    t = conv_nd(raw['w5'], raw['g5'], raw['be5'], t)
    x3 = jnp.max(t, axis=-1)
    t = conv_nd(raw['w6'], raw['g6'], raw['be6'],
                jnp.concatenate([x1, x2, x3], axis=1))
    g = jnp.max(t, axis=-1, keepdims=True)
    g = jnp.broadcast_to(g, (B, g.shape[1], N))
    t = jnp.concatenate([g, x1, x2, x3], axis=1)
    t = conv_nd(raw['w7'], raw['g7'], raw['be7'], t)
    t = conv_nd(raw['w8'], raw['g8'], raw['be8'], t)
    t = jnp.einsum('oc,bcn->bon', raw['w9'], t, precision=hp)
    y = jnp.swapaxes(t, 1, 2).reshape(-1, k)
    y = jax.nn.softmax(y, axis=-1)
    return y.reshape(B, N, num_classes)


if __name__ == "__main__":
    B, N = 2, 128
    num_channels = 12        # >= 12 so the dim9 knn over channels 9:12 works
    num_classes = 8
    K = 8
    emb_dims = 1024          # conv7 input = emb_dims + 192 (= 1216 as in spec)

    key = jax.random.PRNGKey(0)
    kx, kp = jax.random.split(key)
    x = jax.random.normal(kx, (B, num_channels, N), jnp.float32)
    raw = init_raw_params(kp, num_channels, num_classes, emb_dims)
    params = prepare_params(raw, emb_dims)

    fwd = jax.jit(lambda xx, pp: dgcnn_semseg_forward(
        xx, pp, k=K, num_classes=num_classes))
    out = jax.block_until_ready(fwd(x, params))
    assert out.shape == (B, N, num_classes)

    ref_fn = jax.jit(lambda xx, rr: reference_forward(
        xx, rr, k=K, num_classes=num_classes))
    ref = jax.block_until_ready(ref_fn(x, raw))

    # tolerance covers the approximate EUP reciprocal in the final softmax
    np.testing.assert_allclose(np.asarray(out), np.asarray(ref),
                               rtol=1e-2, atol=2e-3)
    print("KERNEL_OK")
</pallas_src>

<mosaic_0001>
module attributes {stable_mosaic.version = 11 : i64} {
  func.func @_pdist_kernel(%arg0: i32, %arg1: i32, %arg2: memref<1x128x3xf32, #tpu.memory_space<vmem>>, %arg3: memref<1x3x128xf32, #tpu.memory_space<vmem>>, %arg4: memref<1x128x128xf32, #tpu.memory_space<vmem>>) attributes {dimension_semantics = [#tpu.dimension_semantics<parallel>, #tpu.dimension_semantics<parallel>], iteration_bounds = array<i64: 2, 1>, scalar_prefetch = 0 : i64, scratch_operands = 0 : i64, tpu.core_type = #tpu.core_type<tc>, window_params = [{transform_indices = @transform_0, window_bounds = array<i64: 1, 128, 3>}, {transform_indices = @transform_1, window_bounds = array<i64: 1, 3, 128>}, {transform_indices = @transform_2, window_bounds = array<i64: 1, 128, 128>}]} {
    %c0 = arith.constant 0 : index
    %c0_0 = arith.constant 0 : index
    %c0_1 = arith.constant 0 : index
    %0 = vector.load %arg2[%c0, %c0_0, %c0_1] : memref<1x128x3xf32, #tpu.memory_space<vmem>>, vector<1x128x3xf32>
    %1 = vector.shape_cast %0 : vector<1x128x3xf32> to vector<128x3xf32>
    %c0_2 = arith.constant 0 : index
    %c0_3 = arith.constant 0 : index
    %c0_4 = arith.constant 0 : index
    %2 = vector.load %arg3[%c0_2, %c0_3, %c0_4] : memref<1x3x128xf32, #tpu.memory_space<vmem>>, vector<1x3x128xf32>
    %3 = vector.shape_cast %2 : vector<1x3x128xf32> to vector<3x128xf32>
    %cst = arith.constant dense<0.000000e+00> : vector<128x128xf32>
    %4 = tpu.matmul %1, %3, %cst {dimension_numbers = #tpu.dot_dimension_numbers<[1], [0], [0], [1], [0, 0, 1, 1], [], []>} : vector<128x3xf32>, vector<3x128xf32>, vector<128x128xf32> -> vector<128x128xf32>
    %5 = arith.mulf %3, %3 : vector<3x128xf32>
    %cst_5 = arith.constant dense<0.000000e+00> : vector<128xf32>
    %6 = vector.multi_reduction <add>, %5, %cst_5 [0] : vector<3x128xf32> to vector<128xf32>
    %7 = vector.shape_cast %6 : vector<128xf32> to vector<1x128xf32>
    %cst_6 = arith.constant 2.000000e+00 : f32
    %8 = vector.broadcast %cst_6 : f32 to vector<128x128xf32>
    %9 = arith.mulf %8, %4 : vector<128x128xf32>
    %10 = vector.broadcast %7 : vector<1x128xf32> to vector<128x128xf32>
    %11 = arith.subf %9, %10 : vector<128x128xf32>
    %c0_7 = arith.constant 0 : index
    %c0_8 = arith.constant 0 : index
    %c0_9 = arith.constant 0 : index
    %12 = vector.load %arg4[%c0_7, %c0_8, %c0_9] : memref<1x128x128xf32, #tpu.memory_space<vmem>>, vector<1x128x128xf32>
    %13 = vector.shape_cast %12 : vector<1x128x128xf32> to vector<128x128xf32>
    %14 = vector.shape_cast %11 : vector<128x128xf32> to vector<1x128x128xf32>
    tpu.vector_store %arg4[%c0_7, %c0_8, %c0_9], %14 {strides = array<i32>} : memref<1x128x128xf32, #tpu.memory_space<vmem>>, vector<1x128x128xf32>,
    return
  }
  func.func @transform_0(%arg0: i32, %arg1: i32) -> (i32, i32, i32) {
    %c0_i32 = arith.constant 0 : i32
    %c0_i32_0 = arith.constant 0 : i32
    return %arg0, %arg1, %c0_i32 : i32, i32, i32
  }
  func.func @transform_1(%arg0: i32, %arg1: i32) -> (i32, i32, i32) {
    %c0_i32 = arith.constant 0 : i32
    %c0_i32_0 = arith.constant 0 : i32
    %c0_i32_1 = arith.constant 0 : i32
    return %arg0, %c0_i32, %c0_i32_0 : i32, i32, i32
  }
  func.func @transform_2(%arg0: i32, %arg1: i32) -> (i32, i32, i32) {
    %c0_i32 = arith.constant 0 : i32
    %c0_i32_0 = arith.constant 0 : i32
    return %arg0, %arg1, %c0_i32 : i32, i32, i32
  }
}

module attributes {stable_mosaic.version = 11 : i64} {
  func.func @_pointwise_split_kernel(%arg0: i32, %arg1: i32, %arg2: memref<1x12x128xf32, #tpu.memory_space<vmem>>, %arg3: memref<128x12xf32, #tpu.memory_space<vmem>>, %arg4: memref<128x1xf32, #tpu.memory_space<vmem>>, %arg5: memref<1x64x128xf32, #tpu.memory_space<vmem>>, %arg6: memref<1x64x128xf32, #tpu.memory_space<vmem>>) attributes {dimension_semantics = [#tpu.dimension_semantics<parallel>, #tpu.dimension_semantics<parallel>], iteration_bounds = array<i64: 2, 1>, scalar_prefetch = 0 : i64, scratch_operands = 0 : i64, tpu.core_type = #tpu.core_type<tc>, window_params = [{transform_indices = @transform_0, window_bounds = array<i64: 1, 12, 128>}, {pipeline_mode = #tpu.pipeline_mode<synchronous>, transform_indices = @transform_1, window_bounds = array<i64: 128, 12>}, {pipeline_mode = #tpu.pipeline_mode<synchronous>, transform_indices = @transform_2, window_bounds = array<i64: 128, 1>}, {transform_indices = @transform_3, window_bounds = array<i64: 1, 64, 128>}, {transform_indices = @transform_4, window_bounds = array<i64: 1, 64, 128>}]} {
    %c0 = arith.constant 0 : index
    %c0_0 = arith.constant 0 : index
    %0 = vector.load %arg3[%c0, %c0_0] : memref<128x12xf32, #tpu.memory_space<vmem>>, vector<128x12xf32>
    %c0_1 = arith.constant 0 : index
    %c0_2 = arith.constant 0 : index
    %c0_3 = arith.constant 0 : index
    %1 = vector.load %arg2[%c0_1, %c0_2, %c0_3] : memref<1x12x128xf32, #tpu.memory_space<vmem>>, vector<1x12x128xf32>
    %2 = vector.shape_cast %1 : vector<1x12x128xf32> to vector<12x128xf32>
    %cst = arith.constant dense<0.000000e+00> : vector<128x128xf32>
    %3 = tpu.matmul %0, %2, %cst {dimension_numbers = #tpu.dot_dimension_numbers<[1], [0], [0], [1], [0, 0, 1, 1], [], []>} : vector<128x12xf32>, vector<12x128xf32>, vector<128x128xf32> -> vector<128x128xf32>
    %c0_4 = arith.constant 0 : index
    %c0_5 = arith.constant 0 : index
    %4 = vector.load %arg4[%c0_4, %c0_5] : memref<128x1xf32, #tpu.memory_space<vmem>>, vector<128x1xf32>
    %5 = vector.broadcast %4 : vector<128x1xf32> to vector<128x128xf32>
    %6 = arith.addf %3, %5 : vector<128x128xf32>
    %7 = vector.extract_strided_slice %6 {offsets = [0, 0], sizes = [64, 128], strides = [1, 1]} : vector<128x128xf32> to vector<64x128xf32>
    %c0_6 = arith.constant 0 : index
    %c0_7 = arith.constant 0 : index
    %c0_8 = arith.constant 0 : index
    %8 = vector.load %arg5[%c0_6, %c0_7, %c0_8] : memref<1x64x128xf32, #tpu.memory_space<vmem>>, vector<1x64x128xf32>
    %9 = vector.shape_cast %8 : vector<1x64x128xf32> to vector<64x128xf32>
    %10 = vector.shape_cast %7 : vector<64x128xf32> to vector<1x64x128xf32>
    tpu.vector_store %arg5[%c0_6, %c0_7, %c0_8], %10 {strides = array<i32>} : memref<1x64x128xf32, #tpu.memory_space<vmem>>, vector<1x64x128xf32>,
    %11 = vector.extract_strided_slice %6 {offsets = [64, 0], sizes = [64, 128], strides = [1, 1]} : vector<128x128xf32> to vector<64x128xf32>
    %c0_9 = arith.constant 0 : index
    %c0_10 = arith.constant 0 : index
    %c0_11 = arith.constant 0 : index
    %12 = vector.load %arg6[%c0_9, %c0_10, %c0_11] : memref<1x64x128xf32, #tpu.memory_space<vmem>>, vector<1x64x128xf32>
    %13 = vector.shape_cast %12 : vector<1x64x128xf32> to vector<64x128xf32>
    %14 = vector.shape_cast %11 : vector<64x128xf32> to vector<1x64x128xf32>
    tpu.vector_store %arg6[%c0_9, %c0_10, %c0_11], %14 {strides = array<i32>} : memref<1x64x128xf32, #tpu.memory_space<vmem>>, vector<1x64x128xf32>,
    return
  }
  func.func @transform_0(%arg0: i32, %arg1: i32) -> (i32, i32, i32) {
    %c0_i32 = arith.constant 0 : i32
    %c0_i32_0 = arith.constant 0 : i32
    return %arg0, %c0_i32, %arg1 : i32, i32, i32
  }
  func.func @transform_1(%arg0: i32, %arg1: i32) -> (i32, i32) {
    %c0_i32 = arith.constant 0 : i32
    %c0_i32_0 = arith.constant 0 : i32
    %c0_i32_1 = arith.constant 0 : i32
    return %c0_i32, %c0_i32_0 : i32, i32
  }
  func.func @transform_2(%arg0: i32, %arg1: i32) -> (i32, i32) {
    %c0_i32 = arith.constant 0 : i32
    %c0_i32_0 = arith.constant 0 : i32
    %c0_i32_1 = arith.constant 0 : i32
    return %c0_i32, %c0_i32_0 : i32, i32
  }
  func.func @transform_3(%arg0: i32, %arg1: i32) -> (i32, i32, i32) {
    %c0_i32 = arith.constant 0 : i32
    %c0_i32_0 = arith.constant 0 : i32
    return %arg0, %c0_i32, %arg1 : i32, i32, i32
  }
  func.func @transform_4(%arg0: i32, %arg1: i32) -> (i32, i32, i32) {
    %c0_i32 = arith.constant 0 : i32
    %c0_i32_0 = arith.constant 0 : i32
    return %arg0, %c0_i32, %arg1 : i32, i32, i32
  }
}

module attributes {stable_mosaic.version = 11 : i64} {
  func.func @kernel(%arg0: i32, %arg1: i32, %arg2: memref<1x8x64x128xf32, #tpu.memory_space<vmem>>, %arg3: memref<64x64xf32, #tpu.memory_space<vmem>>, %arg4: memref<64x1xf32, #tpu.memory_space<vmem>>, %arg5: memref<1x64x128xf32, #tpu.memory_space<vmem>>) attributes {dimension_semantics = [#tpu.dimension_semantics<parallel>, #tpu.dimension_semantics<parallel>], iteration_bounds = array<i64: 2, 1>, scalar_prefetch = 0 : i64, scratch_operands = 0 : i64, tpu.core_type = #tpu.core_type<tc>, window_params = [{transform_indices = @transform_0, window_bounds = array<i64: 1, 8, 64, 128>}, {pipeline_mode = #tpu.pipeline_mode<synchronous>, transform_indices = @transform_1, window_bounds = array<i64: 64, 64>}, {pipeline_mode = #tpu.pipeline_mode<synchronous>, transform_indices = @transform_2, window_bounds = array<i64: 64, 1>}, {transform_indices = @transform_3, window_bounds = array<i64: 1, 64, 128>}]} {
    %c0 = arith.constant 0 : index
    %c0_0 = arith.constant 0 : index
    %0 = vector.load %arg3[%c0, %c0_0] : memref<64x64xf32, #tpu.memory_space<vmem>>, vector<64x64xf32>
    %c0_1 = arith.constant 0 : index
    %c0_2 = arith.constant 0 : index
    %1 = vector.load %arg4[%c0_1, %c0_2] : memref<64x1xf32, #tpu.memory_space<vmem>>, vector<64x1xf32>
    %c0_3 = arith.constant 0 : index
    %c0_4 = arith.constant 0 : index
    %c0_5 = arith.constant 0 : index
    %c0_6 = arith.constant 0 : index
    %2 = vector.load %arg2[%c0_3, %c0_4, %c0_5, %c0_6] : memref<1x8x64x128xf32, #tpu.memory_space<vmem>>, vector<1x1x64x128xf32>
    %3 = vector.shape_cast %2 : vector<1x1x64x128xf32> to vector<64x128xf32>
    %cst = arith.constant 0.000000e+00 : f32
    %4 = vector.broadcast %cst : f32 to vector<64x128xf32>
    %5 = arith.cmpf ogt, %3, %4 : vector<64x128xf32>
    %cst_7 = arith.constant 2.000000e-01 : f32
    %6 = vector.broadcast %cst_7 : f32 to vector<64x128xf32>
    %7 = arith.mulf %6, %3 : vector<64x128xf32>
    %8 = arith.select %5, %3, %7 : vector<64x128xi1>, vector<64x128xf32>
    %cst_8 = arith.constant dense<0.000000e+00> : vector<64x128xf32>
    %9 = tpu.matmul %0, %8, %cst_8 {dimension_numbers = #tpu.dot_dimension_numbers<[1], [0], [0], [1], [0, 0, 1, 1], [], []>} : vector<64x64xf32>, vector<64x128xf32>, vector<64x128xf32> -> vector<64x128xf32>
    %10 = vector.broadcast %1 : vector<64x1xf32> to vector<64x128xf32>
    %11 = arith.addf %9, %10 : vector<64x128xf32>
    %cst_9 = arith.constant 0.000000e+00 : f32
    %12 = vector.broadcast %cst_9 : f32 to vector<64x128xf32>
    %13 = arith.cmpf ogt, %11, %12 : vector<64x128xf32>
    %cst_10 = arith.constant 2.000000e-01 : f32
    %14 = vector.broadcast %cst_10 : f32 to vector<64x128xf32>
    %15 = arith.mulf %14, %11 : vector<64x128xf32>
    %16 = arith.select %13, %11, %15 : vector<64x128xi1>, vector<64x128xf32>
    %c0_11 = arith.constant 0 : index
    %c1 = arith.constant 1 : index
    %c0_12 = arith.constant 0 : index
    %c0_13 = arith.constant 0 : index
    %17 = vector.load %arg2[%c0_11, %c1, %c0_12, %c0_13] : memref<1x8x64x128xf32, #tpu.memory_space<vmem>>, vector<1x1x64x128xf32>
    %18 = vector.shape_cast %17 : vector<1x1x64x128xf32> to vector<64x128xf32>
    %cst_14 = arith.constant 0.000000e+00 : f32
    %19 = vector.broadcast %cst_14 : f32 to vector<64x128xf32>
    %20 = arith.cmpf ogt, %18, %19 : vector<64x128xf32>
    %cst_15 = arith.constant 2.000000e-01 : f32
    %21 = vector.broadcast %cst_15 : f32 to vector<64x128xf32>
    %22 = arith.mulf %21, %18 : vector<64x128xf32>
    %23 = arith.select %20, %18, %22 : vector<64x128xi1>, vector<64x128xf32>
    %cst_16 = arith.constant dense<0.000000e+00> : vector<64x128xf32>
    %24 = tpu.matmul %0, %23, %cst_16 {dimension_numbers = #tpu.dot_dimension_numbers<[1], [0], [0], [1], [0, 0, 1, 1], [], []>} : vector<64x64xf32>, vector<64x128xf32>, vector<64x128xf32> -> vector<64x128xf32>
    %25 = vector.broadcast %1 : vector<64x1xf32> to vector<64x128xf32>
    %26 = arith.addf %24, %25 : vector<64x128xf32>
    %cst_17 = arith.constant 0.000000e+00 : f32
    %27 = vector.broadcast %cst_17 : f32 to vector<64x128xf32>
    %28 = arith.cmpf ogt, %26, %27 : vector<64x128xf32>
    %cst_18 = arith.constant 2.000000e-01 : f32
    %29 = vector.broadcast %cst_18 : f32 to vector<64x128xf32>
    %30 = arith.mulf %29, %26 : vector<64x128xf32>
    %31 = arith.select %28, %26, %30 : vector<64x128xi1>, vector<64x128xf32>
    %32 = arith.maximumf %16, %31 : vector<64x128xf32>
    %c0_19 = arith.constant 0 : index
    %c2 = arith.constant 2 : index
    %c0_20 = arith.constant 0 : index
    %c0_21 = arith.constant 0 : index
    %33 = vector.load %arg2[%c0_19, %c2, %c0_20, %c0_21] : memref<1x8x64x128xf32, #tpu.memory_space<vmem>>, vector<1x1x64x128xf32>
    %34 = vector.shape_cast %33 : vector<1x1x64x128xf32> to vector<64x128xf32>
    %cst_22 = arith.constant 0.000000e+00 : f32
    %35 = vector.broadcast %cst_22 : f32 to vector<64x128xf32>
    %36 = arith.cmpf ogt, %34, %35 : vector<64x128xf32>
    %cst_23 = arith.constant 2.000000e-01 : f32
    %37 = vector.broadcast %cst_23 : f32 to vector<64x128xf32>
    %38 = arith.mulf %37, %34 : vector<64x128xf32>
    %39 = arith.select %36, %34, %38 : vector<64x128xi1>, vector<64x128xf32>
    %cst_24 = arith.constant dense<0.000000e+00> : vector<64x128xf32>
    %40 = tpu.matmul %0, %39, %cst_24 {dimension_numbers = #tpu.dot_dimension_numbers<[1], [0], [0], [1], [0, 0, 1, 1], [], []>} : vector<64x64xf32>, vector<64x128xf32>, vector<64x128xf32> -> vector<64x128xf32>
    %41 = vector.broadcast %1 : vector<64x1xf32> to vector<64x128xf32>
    %42 = arith.addf %40, %41 : vector<64x128xf32>
    %cst_25 = arith.constant 0.000000e+00 : f32
    %43 = vector.broadcast %cst_25 : f32 to vector<64x128xf32>
    %44 = arith.cmpf ogt, %42, %43 : vector<64x128xf32>
    %cst_26 = arith.constant 2.000000e-01 : f32
    %45 = vector.broadcast %cst_26 : f32 to vector<64x128xf32>
    %46 = arith.mulf %45, %42 : vector<64x128xf32>
    %47 = arith.select %44, %42, %46 : vector<64x128xi1>, vector<64x128xf32>
    %48 = arith.maximumf %32, %47 : vector<64x128xf32>
    %c0_27 = arith.constant 0 : index
    %c3 = arith.constant 3 : index
    %c0_28 = arith.constant 0 : index
    %c0_29 = arith.constant 0 : index
    %49 = vector.load %arg2[%c0_27, %c3, %c0_28, %c0_29] : memref<1x8x64x128xf32, #tpu.memory_space<vmem>>, vector<1x1x64x128xf32>
    %50 = vector.shape_cast %49 : vector<1x1x64x128xf32> to vector<64x128xf32>
    %cst_30 = arith.constant 0.000000e+00 : f32
    %51 = vector.broadcast %cst_30 : f32 to vector<64x128xf32>
    %52 = arith.cmpf ogt, %50, %51 : vector<64x128xf32>
    %cst_31 = arith.constant 2.000000e-01 : f32
    %53 = vector.broadcast %cst_31 : f32 to vector<64x128xf32>
    %54 = arith.mulf %53, %50 : vector<64x128xf32>
    %55 = arith.select %52, %50, %54 : vector<64x128xi1>, vector<64x128xf32>
    %cst_32 = arith.constant dense<0.000000e+00> : vector<64x128xf32>
    %56 = tpu.matmul %0, %55, %cst_32 {dimension_numbers = #tpu.dot_dimension_numbers<[1], [0], [0], [1], [0, 0, 1, 1], [], []>} : vector<64x64xf32>, vector<64x128xf32>, vector<64x128xf32> -> vector<64x128xf32>
    %57 = vector.broadcast %1 : vector<64x1xf32> to vector<64x128xf32>
    %58 = arith.addf %56, %57 : vector<64x128xf32>
    %cst_33 = arith.constant 0.000000e+00 : f32
    %59 = vector.broadcast %cst_33 : f32 to vector<64x128xf32>
    %60 = arith.cmpf ogt, %58, %59 : vector<64x128xf32>
    %cst_34 = arith.constant 2.000000e-01 : f32
    %61 = vector.broadcast %cst_34 : f32 to vector<64x128xf32>
    %62 = arith.mulf %61, %58 : vector<64x128xf32>
    %63 = arith.select %60, %58, %62 : vector<64x128xi1>, vector<64x128xf32>
    %64 = arith.maximumf %48, %63 : vector<64x128xf32>
    %c0_35 = arith.constant 0 : index
    %c4 = arith.constant 4 : index
    %c0_36 = arith.constant 0 : index
    %c0_37 = arith.constant 0 : index
    %65 = vector.load %arg2[%c0_35, %c4, %c0_36, %c0_37] : memref<1x8x64x128xf32, #tpu.memory_space<vmem>>, vector<1x1x64x128xf32>
    %66 = vector.shape_cast %65 : vector<1x1x64x128xf32> to vector<64x128xf32>
    %cst_38 = arith.constant 0.000000e+00 : f32
    %67 = vector.broadcast %cst_38 : f32 to vector<64x128xf32>
    %68 = arith.cmpf ogt, %66, %67 : vector<64x128xf32>
    %cst_39 = arith.constant 2.000000e-01 : f32
    %69 = vector.broadcast %cst_39 : f32 to vector<64x128xf32>
    %70 = arith.mulf %69, %66 : vector<64x128xf32>
    %71 = arith.select %68, %66, %70 : vector<64x128xi1>, vector<64x128xf32>
    %cst_40 = arith.constant dense<0.000000e+00> : vector<64x128xf32>
    %72 = tpu.matmul %0, %71, %cst_40 {dimension_numbers = #tpu.dot_dimension_numbers<[1], [0], [0], [1], [0, 0, 1, 1], [], []>} : vector<64x64xf32>, vector<64x128xf32>, vector<64x128xf32> -> vector<64x128xf32>
    %73 = vector.broadcast %1 : vector<64x1xf32> to vector<64x128xf32>
    %74 = arith.addf %72, %73 : vector<64x128xf32>
    %cst_41 = arith.constant 0.000000e+00 : f32
    %75 = vector.broadcast %cst_41 : f32 to vector<64x128xf32>
    %76 = arith.cmpf ogt, %74, %75 : vector<64x128xf32>
    %cst_42 = arith.constant 2.000000e-01 : f32
    %77 = vector.broadcast %cst_42 : f32 to vector<64x128xf32>
    %78 = arith.mulf %77, %74 : vector<64x128xf32>
    %79 = arith.select %76, %74, %78 : vector<64x128xi1>, vector<64x128xf32>
    %80 = arith.maximumf %64, %79 : vector<64x128xf32>
    %c0_43 = arith.constant 0 : index
    %c5 = arith.constant 5 : index
    %c0_44 = arith.constant 0 : index
    %c0_45 = arith.constant 0 : index
    %81 = vector.load %arg2[%c0_43, %c5, %c0_44, %c0_45] : memref<1x8x64x128xf32, #tpu.memory_space<vmem>>, vector<1x1x64x128xf32>
    %82 = vector.shape_cast %81 : vector<1x1x64x128xf32> to vector<64x128xf32>
    %cst_46 = arith.constant 0.000000e+00 : f32
    %83 = vector.broadcast %cst_46 : f32 to vector<64x128xf32>
    %84 = arith.cmpf ogt, %82, %83 : vector<64x128xf32>
    %cst_47 = arith.constant 2.000000e-01 : f32
    %85 = vector.broadcast %cst_47 : f32 to vector<64x128xf32>
    %86 = arith.mulf %85, %82 : vector<64x128xf32>
    %87 = arith.select %84, %82, %86 : vector<64x128xi1>, vector<64x128xf32>
    %cst_48 = arith.constant dense<0.000000e+00> : vector<64x128xf32>
    %88 = tpu.matmul %0, %87, %cst_48 {dimension_numbers = #tpu.dot_dimension_numbers<[1], [0], [0], [1], [0, 0, 1, 1], [], []>} : vector<64x64xf32>, vector<64x128xf32>, vector<64x128xf32> -> vector<64x128xf32>
    %89 = vector.broadcast %1 : vector<64x1xf32> to vector<64x128xf32>
    %90 = arith.addf %88, %89 : vector<64x128xf32>
    %cst_49 = arith.constant 0.000000e+00 : f32
    %91 = vector.broadcast %cst_49 : f32 to vector<64x128xf32>
    %92 = arith.cmpf ogt, %90, %91 : vector<64x128xf32>
    %cst_50 = arith.constant 2.000000e-01 : f32
    %93 = vector.broadcast %cst_50 : f32 to vector<64x128xf32>
    %94 = arith.mulf %93, %90 : vector<64x128xf32>
    %95 = arith.select %92, %90, %94 : vector<64x128xi1>, vector<64x128xf32>
    %96 = arith.maximumf %80, %95 : vector<64x128xf32>
    %c0_51 = arith.constant 0 : index
    %c6 = arith.constant 6 : index
    %c0_52 = arith.constant 0 : index
    %c0_53 = arith.constant 0 : index
    %97 = vector.load %arg2[%c0_51, %c6, %c0_52, %c0_53] : memref<1x8x64x128xf32, #tpu.memory_space<vmem>>, vector<1x1x64x128xf32>
    %98 = vector.shape_cast %97 : vector<1x1x64x128xf32> to vector<64x128xf32>
    %cst_54 = arith.constant 0.000000e+00 : f32
    %99 = vector.broadcast %cst_54 : f32 to vector<64x128xf32>
    %100 = arith.cmpf ogt, %98, %99 : vector<64x128xf32>
    %cst_55 = arith.constant 2.000000e-01 : f32
    %101 = vector.broadcast %cst_55 : f32 to vector<64x128xf32>
    %102 = arith.mulf %101, %98 : vector<64x128xf32>
    %103 = arith.select %100, %98, %102 : vector<64x128xi1>, vector<64x128xf32>
    %cst_56 = arith.constant dense<0.000000e+00> : vector<64x128xf32>
    %104 = tpu.matmul %0, %103, %cst_56 {dimension_numbers = #tpu.dot_dimension_numbers<[1], [0], [0], [1], [0, 0, 1, 1], [], []>} : vector<64x64xf32>, vector<64x128xf32>, vector<64x128xf32> -> vector<64x128xf32>
    %105 = vector.broadcast %1 : vector<64x1xf32> to vector<64x128xf32>
    %106 = arith.addf %104, %105 : vector<64x128xf32>
    %cst_57 = arith.constant 0.000000e+00 : f32
    %107 = vector.broadcast %cst_57 : f32 to vector<64x128xf32>
    %108 = arith.cmpf ogt, %106, %107 : vector<64x128xf32>
    %cst_58 = arith.constant 2.000000e-01 : f32
    %109 = vector.broadcast %cst_58 : f32 to vector<64x128xf32>
    %110 = arith.mulf %109, %106 : vector<64x128xf32>
    %111 = arith.select %108, %106, %110 : vector<64x128xi1>, vector<64x128xf32>
    %112 = arith.maximumf %96, %111 : vector<64x128xf32>
    %c0_59 = arith.constant 0 : index
    %c7 = arith.constant 7 : index
    %c0_60 = arith.constant 0 : index
    %c0_61 = arith.constant 0 : index
    %113 = vector.load %arg2[%c0_59, %c7, %c0_60, %c0_61] : memref<1x8x64x128xf32, #tpu.memory_space<vmem>>, vector<1x1x64x128xf32>
    %114 = vector.shape_cast %113 : vector<1x1x64x128xf32> to vector<64x128xf32>
    %cst_62 = arith.constant 0.000000e+00 : f32
    %115 = vector.broadcast %cst_62 : f32 to vector<64x128xf32>
    %116 = arith.cmpf ogt, %114, %115 : vector<64x128xf32>
    %cst_63 = arith.constant 2.000000e-01 : f32
    %117 = vector.broadcast %cst_63 : f32 to vector<64x128xf32>
    %118 = arith.mulf %117, %114 : vector<64x128xf32>
    %119 = arith.select %116, %114, %118 : vector<64x128xi1>, vector<64x128xf32>
    %cst_64 = arith.constant dense<0.000000e+00> : vector<64x128xf32>
    %120 = tpu.matmul %0, %119, %cst_64 {dimension_numbers = #tpu.dot_dimension_numbers<[1], [0], [0], [1], [0, 0, 1, 1], [], []>} : vector<64x64xf32>, vector<64x128xf32>, vector<64x128xf32> -> vector<64x128xf32>
    %121 = vector.broadcast %1 : vector<64x1xf32> to vector<64x128xf32>
    %122 = arith.addf %120, %121 : vector<64x128xf32>
    %cst_65 = arith.constant 0.000000e+00 : f32
    %123 = vector.broadcast %cst_65 : f32 to vector<64x128xf32>
    %124 = arith.cmpf ogt, %122, %123 : vector<64x128xf32>
    %cst_66 = arith.constant 2.000000e-01 : f32
    %125 = vector.broadcast %cst_66 : f32 to vector<64x128xf32>
    %126 = arith.mulf %125, %122 : vector<64x128xf32>
    %127 = arith.select %124, %122, %126 : vector<64x128xi1>, vector<64x128xf32>
    %128 = arith.maximumf %112, %127 : vector<64x128xf32>
    %c0_67 = arith.constant 0 : index
    %c0_68 = arith.constant 0 : index
    %c0_69 = arith.constant 0 : index
    %129 = vector.load %arg5[%c0_67, %c0_68, %c0_69] : memref<1x64x128xf32, #tpu.memory_space<vmem>>, vector<1x64x128xf32>
    %130 = vector.shape_cast %129 : vector<1x64x128xf32> to vector<64x128xf32>
    %131 = vector.shape_cast %128 : vector<64x128xf32> to vector<1x64x128xf32>
    tpu.vector_store %arg5[%c0_67, %c0_68, %c0_69], %131 {strides = array<i32>} : memref<1x64x128xf32, #tpu.memory_space<vmem>>, vector<1x64x128xf32>,
    return
  }
  func.func @transform_0(%arg0: i32, %arg1: i32) -> (i32, i32, i32, i32) {
    %c0_i32 = arith.constant 0 : i32
    %c0_i32_0 = arith.constant 0 : i32
    %c0_i32_1 = arith.constant 0 : i32
    return %arg0, %c0_i32, %c0_i32_0, %arg1 : i32, i32, i32, i32
  }
  func.func @transform_1(%arg0: i32, %arg1: i32) -> (i32, i32) {
    %c0_i32 = arith.constant 0 : i32
    %c0_i32_0 = arith.constant 0 : i32
    %c0_i32_1 = arith.constant 0 : i32
    return %c0_i32, %c0_i32_0 : i32, i32
  }
  func.func @transform_2(%arg0: i32, %arg1: i32) -> (i32, i32) {
    %c0_i32 = arith.constant 0 : i32
    %c0_i32_0 = arith.constant 0 : i32
    %c0_i32_1 = arith.constant 0 : i32
    return %c0_i32, %c0_i32_0 : i32, i32
  }
  func.func @transform_3(%arg0: i32, %arg1: i32) -> (i32, i32, i32) {
    %c0_i32 = arith.constant 0 : i32
    %c0_i32_0 = arith.constant 0 : i32
    return %arg0, %c0_i32, %arg1 : i32, i32, i32
  }
}

module attributes {stable_mosaic.version = 11 : i64} {
  func.func @_pdist_kernel(%arg0: i32, %arg1: i32, %arg2: memref<1x128x64xf32, #tpu.memory_space<vmem>>, %arg3: memref<1x64x128xf32, #tpu.memory_space<vmem>>, %arg4: memref<1x128x128xf32, #tpu.memory_space<vmem>>) attributes {dimension_semantics = [#tpu.dimension_semantics<parallel>, #tpu.dimension_semantics<parallel>], iteration_bounds = array<i64: 2, 1>, scalar_prefetch = 0 : i64, scratch_operands = 0 : i64, tpu.core_type = #tpu.core_type<tc>, window_params = [{transform_indices = @transform_0, window_bounds = array<i64: 1, 128, 64>}, {transform_indices = @transform_1, window_bounds = array<i64: 1, 64, 128>}, {transform_indices = @transform_2, window_bounds = array<i64: 1, 128, 128>}]} {
    %c0 = arith.constant 0 : index
    %c0_0 = arith.constant 0 : index
    %c0_1 = arith.constant 0 : index
    %0 = vector.load %arg2[%c0, %c0_0, %c0_1] : memref<1x128x64xf32, #tpu.memory_space<vmem>>, vector<1x128x64xf32>
    %1 = vector.shape_cast %0 : vector<1x128x64xf32> to vector<128x64xf32>
    %c0_2 = arith.constant 0 : index
    %c0_3 = arith.constant 0 : index
    %c0_4 = arith.constant 0 : index
    %2 = vector.load %arg3[%c0_2, %c0_3, %c0_4] : memref<1x64x128xf32, #tpu.memory_space<vmem>>, vector<1x64x128xf32>
    %3 = vector.shape_cast %2 : vector<1x64x128xf32> to vector<64x128xf32>
    %cst = arith.constant dense<0.000000e+00> : vector<128x128xf32>
    %4 = tpu.matmul %1, %3, %cst {dimension_numbers = #tpu.dot_dimension_numbers<[1], [0], [0], [1], [0, 0, 1, 1], [], []>} : vector<128x64xf32>, vector<64x128xf32>, vector<128x128xf32> -> vector<128x128xf32>
    %5 = arith.mulf %3, %3 : vector<64x128xf32>
    %cst_5 = arith.constant dense<0.000000e+00> : vector<128xf32>
    %6 = vector.multi_reduction <add>, %5, %cst_5 [0] : vector<64x128xf32> to vector<128xf32>
    %7 = vector.shape_cast %6 : vector<128xf32> to vector<1x128xf32>
    %cst_6 = arith.constant 2.000000e+00 : f32
    %8 = vector.broadcast %cst_6 : f32 to vector<128x128xf32>
    %9 = arith.mulf %8, %4 : vector<128x128xf32>
    %10 = vector.broadcast %7 : vector<1x128xf32> to vector<128x128xf32>
    %11 = arith.subf %9, %10 : vector<128x128xf32>
    %c0_7 = arith.constant 0 : index
    %c0_8 = arith.constant 0 : index
    %c0_9 = arith.constant 0 : index
    %12 = vector.load %arg4[%c0_7, %c0_8, %c0_9] : memref<1x128x128xf32, #tpu.memory_space<vmem>>, vector<1x128x128xf32>
    %13 = vector.shape_cast %12 : vector<1x128x128xf32> to vector<128x128xf32>
    %14 = vector.shape_cast %11 : vector<128x128xf32> to vector<1x128x128xf32>
    tpu.vector_store %arg4[%c0_7, %c0_8, %c0_9], %14 {strides = array<i32>} : memref<1x128x128xf32, #tpu.memory_space<vmem>>, vector<1x128x128xf32>,
    return
  }
  func.func @transform_0(%arg0: i32, %arg1: i32) -> (i32, i32, i32) {
    %c0_i32 = arith.constant 0 : i32
    %c0_i32_0 = arith.constant 0 : i32
    return %arg0, %arg1, %c0_i32 : i32, i32, i32
  }
  func.func @transform_1(%arg0: i32, %arg1: i32) -> (i32, i32, i32) {
    %c0_i32 = arith.constant 0 : i32
    %c0_i32_0 = arith.constant 0 : i32
    %c0_i32_1 = arith.constant 0 : i32
    return %arg0, %c0_i32, %c0_i32_0 : i32, i32, i32
  }
  func.func @transform_2(%arg0: i32, %arg1: i32) -> (i32, i32, i32) {
    %c0_i32 = arith.constant 0 : i32
    %c0_i32_0 = arith.constant 0 : i32
    return %arg0, %arg1, %c0_i32 : i32, i32, i32
  }
}

module attributes {stable_mosaic.version = 11 : i64} {
  func.func @_edge_max_kernel(%arg0: i32, %arg1: i32, %arg2: memref<1x8x64x128xf32, #tpu.memory_space<vmem>>, %arg3: memref<1x64x128xf32, #tpu.memory_space<vmem>>) attributes {dimension_semantics = [#tpu.dimension_semantics<parallel>, #tpu.dimension_semantics<parallel>], iteration_bounds = array<i64: 2, 1>, scalar_prefetch = 0 : i64, scratch_operands = 0 : i64, tpu.core_type = #tpu.core_type<tc>, window_params = [{transform_indices = @transform_0, window_bounds = array<i64: 1, 8, 64, 128>}, {transform_indices = @transform_1, window_bounds = array<i64: 1, 64, 128>}]} {
    %c0 = arith.constant 0 : index
    %c0_0 = arith.constant 0 : index
    %c0_1 = arith.constant 0 : index
    %c0_2 = arith.constant 0 : index
    %0 = vector.load %arg2[%c0, %c0_0, %c0_1, %c0_2] : memref<1x8x64x128xf32, #tpu.memory_space<vmem>>, vector<1x8x64x128xf32>
    %1 = vector.shape_cast %0 : vector<1x8x64x128xf32> to vector<8x64x128xf32>
    %cst = arith.constant dense<0xFF800000> : vector<64x128xf32>
    %2 = vector.multi_reduction <maximumf>, %1, %cst [0] : vector<8x64x128xf32> to vector<64x128xf32>
    %cst_3 = arith.constant 0.000000e+00 : f32
    %3 = vector.broadcast %cst_3 : f32 to vector<64x128xf32>
    %4 = arith.cmpf ogt, %2, %3 : vector<64x128xf32>
    %cst_4 = arith.constant 2.000000e-01 : f32
    %5 = vector.broadcast %cst_4 : f32 to vector<64x128xf32>
    %6 = arith.mulf %5, %2 : vector<64x128xf32>
    %7 = arith.select %4, %2, %6 : vector<64x128xi1>, vector<64x128xf32>
    %c0_5 = arith.constant 0 : index
    %c0_6 = arith.constant 0 : index
    %c0_7 = arith.constant 0 : index
    %8 = vector.load %arg3[%c0_5, %c0_6, %c0_7] : memref<1x64x128xf32, #tpu.memory_space<vmem>>, vector<1x64x128xf32>
    %9 = vector.shape_cast %8 : vector<1x64x128xf32> to vector<64x128xf32>
    %10 = vector.shape_cast %7 : vector<64x128xf32> to vector<1x64x128xf32>
    tpu.vector_store %arg3[%c0_5, %c0_6, %c0_7], %10 {strides = array<i32>} : memref<1x64x128xf32, #tpu.memory_space<vmem>>, vector<1x64x128xf32>,
    return
  }
  func.func @transform_0(%arg0: i32, %arg1: i32) -> (i32, i32, i32, i32) {
    %c0_i32 = arith.constant 0 : i32
    %c0_i32_0 = arith.constant 0 : i32
    %c0_i32_1 = arith.constant 0 : i32
    return %arg0, %c0_i32, %c0_i32_0, %arg1 : i32, i32, i32, i32
  }
  func.func @transform_1(%arg0: i32, %arg1: i32) -> (i32, i32, i32) {
    %c0_i32 = arith.constant 0 : i32
    %c0_i32_0 = arith.constant 0 : i32
    return %arg0, %c0_i32, %arg1 : i32, i32, i32
  }
}

module attributes {stable_mosaic.version = 11 : i64} {
  func.func @_pointwise_split_kernel(%arg0: i32, %arg1: i32, %arg2: memref<1x64x128xf32, #tpu.memory_space<vmem>>, %arg3: memref<128x64xf32, #tpu.memory_space<vmem>>, %arg4: memref<128x1xf32, #tpu.memory_space<vmem>>, %arg5: memref<1x64x128xf32, #tpu.memory_space<vmem>>, %arg6: memref<1x64x128xf32, #tpu.memory_space<vmem>>) attributes {dimension_semantics = [#tpu.dimension_semantics<parallel>, #tpu.dimension_semantics<parallel>], iteration_bounds = array<i64: 2, 1>, scalar_prefetch = 0 : i64, scratch_operands = 0 : i64, tpu.core_type = #tpu.core_type<tc>, window_params = [{transform_indices = @transform_0, window_bounds = array<i64: 1, 64, 128>}, {pipeline_mode = #tpu.pipeline_mode<synchronous>, transform_indices = @transform_1, window_bounds = array<i64: 128, 64>}, {pipeline_mode = #tpu.pipeline_mode<synchronous>, transform_indices = @transform_2, window_bounds = array<i64: 128, 1>}, {transform_indices = @transform_3, window_bounds = array<i64: 1, 64, 128>}, {transform_indices = @transform_4, window_bounds = array<i64: 1, 64, 128>}]} {
    %c0 = arith.constant 0 : index
    %c0_0 = arith.constant 0 : index
    %0 = vector.load %arg3[%c0, %c0_0] : memref<128x64xf32, #tpu.memory_space<vmem>>, vector<128x64xf32>
    %c0_1 = arith.constant 0 : index
    %c0_2 = arith.constant 0 : index
    %c0_3 = arith.constant 0 : index
    %1 = vector.load %arg2[%c0_1, %c0_2, %c0_3] : memref<1x64x128xf32, #tpu.memory_space<vmem>>, vector<1x64x128xf32>
    %2 = vector.shape_cast %1 : vector<1x64x128xf32> to vector<64x128xf32>
    %cst = arith.constant dense<0.000000e+00> : vector<128x128xf32>
    %3 = tpu.matmul %0, %2, %cst {dimension_numbers = #tpu.dot_dimension_numbers<[1], [0], [0], [1], [0, 0, 1, 1], [], []>} : vector<128x64xf32>, vector<64x128xf32>, vector<128x128xf32> -> vector<128x128xf32>
    %c0_4 = arith.constant 0 : index
    %c0_5 = arith.constant 0 : index
    %4 = vector.load %arg4[%c0_4, %c0_5] : memref<128x1xf32, #tpu.memory_space<vmem>>, vector<128x1xf32>
    %5 = vector.broadcast %4 : vector<128x1xf32> to vector<128x128xf32>
    %6 = arith.addf %3, %5 : vector<128x128xf32>
    %7 = vector.extract_strided_slice %6 {offsets = [0, 0], sizes = [64, 128], strides = [1, 1]} : vector<128x128xf32> to vector<64x128xf32>
    %c0_6 = arith.constant 0 : index
    %c0_7 = arith.constant 0 : index
    %c0_8 = arith.constant 0 : index
    %8 = vector.load %arg5[%c0_6, %c0_7, %c0_8] : memref<1x64x128xf32, #tpu.memory_space<vmem>>, vector<1x64x128xf32>
    %9 = vector.shape_cast %8 : vector<1x64x128xf32> to vector<64x128xf32>
    %10 = vector.shape_cast %7 : vector<64x128xf32> to vector<1x64x128xf32>
    tpu.vector_store %arg5[%c0_6, %c0_7, %c0_8], %10 {strides = array<i32>} : memref<1x64x128xf32, #tpu.memory_space<vmem>>, vector<1x64x128xf32>,
    %11 = vector.extract_strided_slice %6 {offsets = [64, 0], sizes = [64, 128], strides = [1, 1]} : vector<128x128xf32> to vector<64x128xf32>
    %c0_9 = arith.constant 0 : index
    %c0_10 = arith.constant 0 : index
    %c0_11 = arith.constant 0 : index
    %12 = vector.load %arg6[%c0_9, %c0_10, %c0_11] : memref<1x64x128xf32, #tpu.memory_space<vmem>>, vector<1x64x128xf32>
    %13 = vector.shape_cast %12 : vector<1x64x128xf32> to vector<64x128xf32>
    %14 = vector.shape_cast %11 : vector<64x128xf32> to vector<1x64x128xf32>
    tpu.vector_store %arg6[%c0_9, %c0_10, %c0_11], %14 {strides = array<i32>} : memref<1x64x128xf32, #tpu.memory_space<vmem>>, vector<1x64x128xf32>,
    return
  }
  func.func @transform_0(%arg0: i32, %arg1: i32) -> (i32, i32, i32) {
    %c0_i32 = arith.constant 0 : i32
    %c0_i32_0 = arith.constant 0 : i32
    return %arg0, %c0_i32, %arg1 : i32, i32, i32
  }
  func.func @transform_1(%arg0: i32, %arg1: i32) -> (i32, i32) {
    %c0_i32 = arith.constant 0 : i32
    %c0_i32_0 = arith.constant 0 : i32
    %c0_i32_1 = arith.constant 0 : i32
    return %c0_i32, %c0_i32_0 : i32, i32
  }
  func.func @transform_2(%arg0: i32, %arg1: i32) -> (i32, i32) {
    %c0_i32 = arith.constant 0 : i32
    %c0_i32_0 = arith.constant 0 : i32
    %c0_i32_1 = arith.constant 0 : i32
    return %c0_i32, %c0_i32_0 : i32, i32
  }
  func.func @transform_3(%arg0: i32, %arg1: i32) -> (i32, i32, i32) {
    %c0_i32 = arith.constant 0 : i32
    %c0_i32_0 = arith.constant 0 : i32
    return %arg0, %c0_i32, %arg1 : i32, i32, i32
  }
  func.func @transform_4(%arg0: i32, %arg1: i32) -> (i32, i32, i32) {
    %c0_i32 = arith.constant 0 : i32
    %c0_i32_0 = arith.constant 0 : i32
    return %arg0, %c0_i32, %arg1 : i32, i32, i32
  }
}

module attributes {stable_mosaic.version = 11 : i64} {
  func.func @_conv6_kernel(%arg0: i32, %arg1: i32, %arg2: memref<1x64x128xf32, #tpu.memory_space<vmem>>, %arg3: memref<1x64x128xf32, #tpu.memory_space<vmem>>, %arg4: memref<1x64x128xf32, #tpu.memory_space<vmem>>, %arg5: memref<1024x192xf32, #tpu.memory_space<vmem>>, %arg6: memref<1024x1xf32, #tpu.memory_space<vmem>>, %arg7: memref<1x1024x1xf32, #tpu.memory_space<vmem>>) attributes {dimension_semantics = [#tpu.dimension_semantics<parallel>, #tpu.dimension_semantics<arbitrary>], iteration_bounds = array<i64: 2, 1>, scalar_prefetch = 0 : i64, scratch_operands = 0 : i64, tpu.core_type = #tpu.core_type<tc>, window_params = [{transform_indices = @transform_0, window_bounds = array<i64: 1, 64, 128>}, {transform_indices = @transform_1, window_bounds = array<i64: 1, 64, 128>}, {transform_indices = @transform_2, window_bounds = array<i64: 1, 64, 128>}, {pipeline_mode = #tpu.pipeline_mode<synchronous>, transform_indices = @transform_3, window_bounds = array<i64: 1024, 192>}, {pipeline_mode = #tpu.pipeline_mode<synchronous>, transform_indices = @transform_4, window_bounds = array<i64: 1024, 1>}, {transform_indices = @transform_5, window_bounds = array<i64: 1, 1024, 1>}]} {
    %c0_i32 = arith.constant 0 : i32
    %0 = arith.cmpi eq, %arg1, %c0_i32 : i32
    %1 = arith.extui %0 : i1 to i32
    %c0_i32_0 = arith.constant 0 : i32
    %2 = arith.cmpi ne, %1, %c0_i32_0 : i32
    scf.if %2 {
      %cst_22 = arith.constant 0xFF800000 : f32
      %28 = vector.broadcast %cst_22 : f32 to vector<1x1024x1xf32>
      %c0_23 = arith.constant 0 : index
      %c0_24 = arith.constant 0 : index
      %c0_25 = arith.constant 0 : index
      %29 = vector.load %arg7[%c0_23, %c0_24, %c0_25] : memref<1x1024x1xf32, #tpu.memory_space<vmem>>, vector<1x1024x1xf32>
      tpu.vector_store %arg7[%c0_23, %c0_24, %c0_25], %28 {strides = array<i32>} : memref<1x1024x1xf32, #tpu.memory_space<vmem>>, vector<1x1024x1xf32>,
    } else {
    }
    %c0 = arith.constant 0 : index
    %c0_1 = arith.constant 0 : index
    %c0_2 = arith.constant 0 : index
    %3 = vector.load %arg2[%c0, %c0_1, %c0_2] : memref<1x64x128xf32, #tpu.memory_space<vmem>>, vector<1x64x128xf32>
    %4 = vector.shape_cast %3 : vector<1x64x128xf32> to vector<64x128xf32>
    %c0_3 = arith.constant 0 : index
    %c0_4 = arith.constant 0 : index
    %c0_5 = arith.constant 0 : index
    %5 = vector.load %arg3[%c0_3, %c0_4, %c0_5] : memref<1x64x128xf32, #tpu.memory_space<vmem>>, vector<1x64x128xf32>
    %6 = vector.shape_cast %5 : vector<1x64x128xf32> to vector<64x128xf32>
    %c0_6 = arith.constant 0 : index
    %c0_7 = arith.constant 0 : index
    %c0_8 = arith.constant 0 : index
    %7 = vector.load %arg4[%c0_6, %c0_7, %c0_8] : memref<1x64x128xf32, #tpu.memory_space<vmem>>, vector<1x64x128xf32>
    %8 = vector.shape_cast %7 : vector<1x64x128xf32> to vector<64x128xf32>
    %9 = tpu.concatenate %4, %6, %8 in 0 : vector<64x128xf32>, vector<64x128xf32>, vector<64x128xf32> -> vector<192x128xf32>
    %c0_9 = arith.constant 0 : index
    %c0_10 = arith.constant 0 : index
    %10 = vector.load %arg5[%c0_9, %c0_10] : memref<1024x192xf32, #tpu.memory_space<vmem>>, vector<1024x192xf32>
    %cst = arith.constant dense<0.000000e+00> : vector<1024x128xf32>
    %11 = tpu.matmul %10, %9, %cst {dimension_numbers = #tpu.dot_dimension_numbers<[1], [0], [0], [1], [0, 0, 1, 1], [], []>} : vector<1024x192xf32>, vector<192x128xf32>, vector<1024x128xf32> -> vector<1024x128xf32>
    %c0_11 = arith.constant 0 : index
    %c0_12 = arith.constant 0 : index
    %12 = vector.load %arg6[%c0_11, %c0_12] : memref<1024x1xf32, #tpu.memory_space<vmem>>, vector<1024x1xf32>
    %13 = vector.broadcast %12 : vector<1024x1xf32> to vector<1024x128xf32>
    %14 = arith.addf %11, %13 : vector<1024x128xf32>
    %cst_13 = arith.constant 0.000000e+00 : f32
    %15 = vector.broadcast %cst_13 : f32 to vector<1024x128xf32>
    %16 = arith.cmpf ogt, %14, %15 : vector<1024x128xf32>
    %cst_14 = arith.constant 2.000000e-01 : f32
    %17 = vector.broadcast %cst_14 : f32 to vector<1024x128xf32>
    %18 = arith.mulf %17, %14 : vector<1024x128xf32>
    %19 = arith.select %16, %14, %18 : vector<1024x128xi1>, vector<1024x128xf32>
    %c0_15 = arith.constant 0 : index
    %c0_16 = arith.constant 0 : index
    %c0_17 = arith.constant 0 : index
    %20 = vector.load %arg7[%c0_15, %c0_16, %c0_17] : memref<1x1024x1xf32, #tpu.memory_space<vmem>>, vector<1x1024x1xf32>
    %21 = vector.shape_cast %20 : vector<1x1024x1xf32> to vector<1024x1xf32>
    %cst_18 = arith.constant dense<0xFF800000> : vector<1024xf32>
    %22 = vector.multi_reduction <maximumf>, %19, %cst_18 [1] : vector<1024x128xf32> to vector<1024xf32>
    %23 = vector.shape_cast %22 : vector<1024xf32> to vector<1024x1xf32>
    %24 = arith.maximumf %21, %23 : vector<1024x1xf32>
    %c0_19 = arith.constant 0 : index
    %c0_20 = arith.constant 0 : index
    %c0_21 = arith.constant 0 : index
    %25 = vector.load %arg7[%c0_19, %c0_20, %c0_21] : memref<1x1024x1xf32, #tpu.memory_space<vmem>>, vector<1x1024x1xf32>
    %26 = vector.shape_cast %25 : vector<1x1024x1xf32> to vector<1024x1xf32>
    %27 = vector.shape_cast %24 : vector<1024x1xf32> to vector<1x1024x1xf32>
    tpu.vector_store %arg7[%c0_19, %c0_20, %c0_21], %27 {strides = array<i32>} : memref<1x1024x1xf32, #tpu.memory_space<vmem>>, vector<1x1024x1xf32>,
    return
  }
  func.func @transform_0(%arg0: i32, %arg1: i32) -> (i32, i32, i32) {
    %c0_i32 = arith.constant 0 : i32
    %c0_i32_0 = arith.constant 0 : i32
    return %arg0, %c0_i32, %arg1 : i32, i32, i32
  }
  func.func @transform_1(%arg0: i32, %arg1: i32) -> (i32, i32, i32) {
    %c0_i32 = arith.constant 0 : i32
    %c0_i32_0 = arith.constant 0 : i32
    return %arg0, %c0_i32, %arg1 : i32, i32, i32
  }
  func.func @transform_2(%arg0: i32, %arg1: i32) -> (i32, i32, i32) {
    %c0_i32 = arith.constant 0 : i32
    %c0_i32_0 = arith.constant 0 : i32
    return %arg0, %c0_i32, %arg1 : i32, i32, i32
  }
  func.func @transform_3(%arg0: i32, %arg1: i32) -> (i32, i32) {
    %c0_i32 = arith.constant 0 : i32
    %c0_i32_0 = arith.constant 0 : i32
    %c0_i32_1 = arith.constant 0 : i32
    return %c0_i32, %c0_i32_0 : i32, i32
  }
  func.func @transform_4(%arg0: i32, %arg1: i32) -> (i32, i32) {
    %c0_i32 = arith.constant 0 : i32
    %c0_i32_0 = arith.constant 0 : i32
    %c0_i32_1 = arith.constant 0 : i32
    return %c0_i32, %c0_i32_0 : i32, i32
  }
  func.func @transform_5(%arg0: i32, %arg1: i32) -> (i32, i32, i32) {
    %c0_i32 = arith.constant 0 : i32
    %c0_i32_0 = arith.constant 0 : i32
    %c0_i32_1 = arith.constant 0 : i32
    return %arg0, %c0_i32, %c0_i32_0 : i32, i32, i32
  }
}

module attributes {stable_mosaic.version = 11 : i64} {
  func.func @_head_kernel(%arg0: i32, %arg1: i32, %arg2: memref<1x64x128xf32, #tpu.memory_space<vmem>>, %arg3: memref<1x64x128xf32, #tpu.memory_space<vmem>>, %arg4: memref<1x64x128xf32, #tpu.memory_space<vmem>>, %arg5: memref<1x512x1xf32, #tpu.memory_space<vmem>>, %arg6: memref<512x192xf32, #tpu.memory_space<vmem>>, %arg7: memref<256x512xf32, #tpu.memory_space<vmem>>, %arg8: memref<256x1xf32, #tpu.memory_space<vmem>>, %arg9: memref<8x256xf32, #tpu.memory_space<vmem>>, %arg10: memref<1x8x128xf32, #tpu.memory_space<vmem>>) attributes {dimension_semantics = [#tpu.dimension_semantics<parallel>, #tpu.dimension_semantics<parallel>], iteration_bounds = array<i64: 2, 1>, scalar_prefetch = 0 : i64, scratch_operands = 0 : i64, tpu.core_type = #tpu.core_type<tc>, window_params = [{transform_indices = @transform_0, window_bounds = array<i64: 1, 64, 128>}, {transform_indices = @transform_1, window_bounds = array<i64: 1, 64, 128>}, {transform_indices = @transform_2, window_bounds = array<i64: 1, 64, 128>}, {transform_indices = @transform_3, window_bounds = array<i64: 1, 512, 1>}, {pipeline_mode = #tpu.pipeline_mode<synchronous>, transform_indices = @transform_4, window_bounds = array<i64: 512, 192>}, {pipeline_mode = #tpu.pipeline_mode<synchronous>, transform_indices = @transform_5, window_bounds = array<i64: 256, 512>}, {pipeline_mode = #tpu.pipeline_mode<synchronous>, transform_indices = @transform_6, window_bounds = array<i64: 256, 1>}, {pipeline_mode = #tpu.pipeline_mode<synchronous>, transform_indices = @transform_7, window_bounds = array<i64: 8, 256>}, {transform_indices = @transform_8, window_bounds = array<i64: 1, 8, 128>}]} {
    %c0 = arith.constant 0 : index
    %c0_0 = arith.constant 0 : index
    %c0_1 = arith.constant 0 : index
    %0 = vector.load %arg2[%c0, %c0_0, %c0_1] : memref<1x64x128xf32, #tpu.memory_space<vmem>>, vector<1x64x128xf32>
    %1 = vector.shape_cast %0 : vector<1x64x128xf32> to vector<64x128xf32>
    %c0_2 = arith.constant 0 : index
    %c0_3 = arith.constant 0 : index
    %c0_4 = arith.constant 0 : index
    %2 = vector.load %arg3[%c0_2, %c0_3, %c0_4] : memref<1x64x128xf32, #tpu.memory_space<vmem>>, vector<1x64x128xf32>
    %3 = vector.shape_cast %2 : vector<1x64x128xf32> to vector<64x128xf32>
    %c0_5 = arith.constant 0 : index
    %c0_6 = arith.constant 0 : index
    %c0_7 = arith.constant 0 : index
    %4 = vector.load %arg4[%c0_5, %c0_6, %c0_7] : memref<1x64x128xf32, #tpu.memory_space<vmem>>, vector<1x64x128xf32>
    %5 = vector.shape_cast %4 : vector<1x64x128xf32> to vector<64x128xf32>
    %6 = tpu.concatenate %1, %3, %5 in 0 : vector<64x128xf32>, vector<64x128xf32>, vector<64x128xf32> -> vector<192x128xf32>
    %c0_8 = arith.constant 0 : index
    %c0_9 = arith.constant 0 : index
    %7 = vector.load %arg6[%c0_8, %c0_9] : memref<512x192xf32, #tpu.memory_space<vmem>>, vector<512x192xf32>
    %cst = arith.constant dense<0.000000e+00> : vector<512x128xf32>
    %8 = tpu.matmul %7, %6, %cst {dimension_numbers = #tpu.dot_dimension_numbers<[1], [0], [0], [1], [0, 0, 1, 1], [], []>} : vector<512x192xf32>, vector<192x128xf32>, vector<512x128xf32> -> vector<512x128xf32>
    %c0_10 = arith.constant 0 : index
    %c0_11 = arith.constant 0 : index
    %c0_12 = arith.constant 0 : index
    %9 = vector.load %arg5[%c0_10, %c0_11, %c0_12] : memref<1x512x1xf32, #tpu.memory_space<vmem>>, vector<1x512x1xf32>
    %10 = vector.shape_cast %9 : vector<1x512x1xf32> to vector<512x1xf32>
    %11 = vector.broadcast %10 : vector<512x1xf32> to vector<512x128xf32>
    %12 = arith.addf %8, %11 : vector<512x128xf32>
    %cst_13 = arith.constant 0.000000e+00 : f32
    %13 = vector.broadcast %cst_13 : f32 to vector<512x128xf32>
    %14 = arith.cmpf ogt, %12, %13 : vector<512x128xf32>
    %cst_14 = arith.constant 2.000000e-01 : f32
    %15 = vector.broadcast %cst_14 : f32 to vector<512x128xf32>
    %16 = arith.mulf %15, %12 : vector<512x128xf32>
    %17 = arith.select %14, %12, %16 : vector<512x128xi1>, vector<512x128xf32>
    %c0_15 = arith.constant 0 : index
    %c0_16 = arith.constant 0 : index
    %18 = vector.load %arg7[%c0_15, %c0_16] : memref<256x512xf32, #tpu.memory_space<vmem>>, vector<256x512xf32>
    %cst_17 = arith.constant dense<0.000000e+00> : vector<256x128xf32>
    %19 = tpu.matmul %18, %17, %cst_17 {dimension_numbers = #tpu.dot_dimension_numbers<[1], [0], [0], [1], [0, 0, 1, 1], [], []>} : vector<256x512xf32>, vector<512x128xf32>, vector<256x128xf32> -> vector<256x128xf32>
    %c0_18 = arith.constant 0 : index
    %c0_19 = arith.constant 0 : index
    %20 = vector.load %arg8[%c0_18, %c0_19] : memref<256x1xf32, #tpu.memory_space<vmem>>, vector<256x1xf32>
    %21 = vector.broadcast %20 : vector<256x1xf32> to vector<256x128xf32>
    %22 = arith.addf %19, %21 : vector<256x128xf32>
    %cst_20 = arith.constant 0.000000e+00 : f32
    %23 = vector.broadcast %cst_20 : f32 to vector<256x128xf32>
    %24 = arith.cmpf ogt, %22, %23 : vector<256x128xf32>
    %cst_21 = arith.constant 2.000000e-01 : f32
    %25 = vector.broadcast %cst_21 : f32 to vector<256x128xf32>
    %26 = arith.mulf %25, %22 : vector<256x128xf32>
    %27 = arith.select %24, %22, %26 : vector<256x128xi1>, vector<256x128xf32>
    %c0_22 = arith.constant 0 : index
    %c0_23 = arith.constant 0 : index
    %28 = vector.load %arg9[%c0_22, %c0_23] : memref<8x256xf32, #tpu.memory_space<vmem>>, vector<8x256xf32>
    %cst_24 = arith.constant dense<0.000000e+00> : vector<8x128xf32>
    %29 = tpu.matmul %28, %27, %cst_24 {dimension_numbers = #tpu.dot_dimension_numbers<[1], [0], [0], [1], [0, 0, 1, 1], [], []>} : vector<8x256xf32>, vector<256x128xf32>, vector<8x128xf32> -> vector<8x128xf32>
    %c0_25 = arith.constant 0 : index
    %c0_26 = arith.constant 0 : index
    %c0_27 = arith.constant 0 : index
    %30 = vector.load %arg10[%c0_25, %c0_26, %c0_27] : memref<1x8x128xf32, #tpu.memory_space<vmem>>, vector<1x8x128xf32>
    %31 = vector.shape_cast %30 : vector<1x8x128xf32> to vector<8x128xf32>
    %32 = vector.shape_cast %29 : vector<8x128xf32> to vector<1x8x128xf32>
    tpu.vector_store %arg10[%c0_25, %c0_26, %c0_27], %32 {strides = array<i32>} : memref<1x8x128xf32, #tpu.memory_space<vmem>>, vector<1x8x128xf32>,
    return
  }
  func.func @transform_0(%arg0: i32, %arg1: i32) -> (i32, i32, i32) {
    %c0_i32 = arith.constant 0 : i32
    %c0_i32_0 = arith.constant 0 : i32
    return %arg0, %c0_i32, %arg1 : i32, i32, i32
  }
  func.func @transform_1(%arg0: i32, %arg1: i32) -> (i32, i32, i32) {
    %c0_i32 = arith.constant 0 : i32
    %c0_i32_0 = arith.constant 0 : i32
    return %arg0, %c0_i32, %arg1 : i32, i32, i32
  }
  func.func @transform_2(%arg0: i32, %arg1: i32) -> (i32, i32, i32) {
    %c0_i32 = arith.constant 0 : i32
    %c0_i32_0 = arith.constant 0 : i32
    return %arg0, %c0_i32, %arg1 : i32, i32, i32
  }
  func.func @transform_3(%arg0: i32, %arg1: i32) -> (i32, i32, i32) {
    %c0_i32 = arith.constant 0 : i32
    %c0_i32_0 = arith.constant 0 : i32
    %c0_i32_1 = arith.constant 0 : i32
    return %arg0, %c0_i32, %c0_i32_0 : i32, i32, i32
  }
  func.func @transform_4(%arg0: i32, %arg1: i32) -> (i32, i32) {
    %c0_i32 = arith.constant 0 : i32
    %c0_i32_0 = arith.constant 0 : i32
    %c0_i32_1 = arith.constant 0 : i32
    return %c0_i32, %c0_i32_0 : i32, i32
  }
  func.func @transform_5(%arg0: i32, %arg1: i32) -> (i32, i32) {
    %c0_i32 = arith.constant 0 : i32
    %c0_i32_0 = arith.constant 0 : i32
    %c0_i32_1 = arith.constant 0 : i32
    return %c0_i32, %c0_i32_0 : i32, i32
  }
  func.func @transform_6(%arg0: i32, %arg1: i32) -> (i32, i32) {
    %c0_i32 = arith.constant 0 : i32
    %c0_i32_0 = arith.constant 0 : i32
    %c0_i32_1 = arith.constant 0 : i32
    return %c0_i32, %c0_i32_0 : i32, i32
  }
  func.func @transform_7(%arg0: i32, %arg1: i32) -> (i32, i32) {
    %c0_i32 = arith.constant 0 : i32
    %c0_i32_0 = arith.constant 0 : i32
    %c0_i32_1 = arith.constant 0 : i32
    return %c0_i32, %c0_i32_0 : i32, i32
  }
  func.func @transform_8(%arg0: i32, %arg1: i32) -> (i32, i32, i32) {
    %c0_i32 = arith.constant 0 : i32
    %c0_i32_0 = arith.constant 0 : i32
    return %arg0, %c0_i32, %arg1 : i32, i32, i32
  }
}

module attributes {stable_mosaic.version = 11 : i64} {
  func.func @_group_softmax_kernel(%arg0: i32, %arg1: memref<256x8xf32, #tpu.memory_space<vmem>>, %arg2: memref<256x8xf32, #tpu.memory_space<vmem>>) attributes {dimension_semantics = [#tpu.dimension_semantics<arbitrary>], iteration_bounds = array<i64: 1>, scalar_prefetch = 0 : i64, scratch_operands = 0 : i64, tpu.core_type = #tpu.core_type<tc>, window_params = [{pipeline_mode = #tpu.pipeline_mode<synchronous>, transform_indices = @transform_0, window_bounds = array<i64: 256, 8>}, {pipeline_mode = #tpu.pipeline_mode<synchronous>, transform_indices = @transform_1, window_bounds = array<i64: 256, 8>}]} {
    %c0 = arith.constant 0 : index
    %c0_0 = arith.constant 0 : index
    %0 = vector.load %arg1[%c0, %c0_0] : memref<256x8xf32, #tpu.memory_space<vmem>>, vector<256x8xf32>
    %cst = arith.constant dense<0xFF800000> : vector<256xf32>
    %1 = vector.multi_reduction <maximumf>, %0, %cst [1] : vector<256x8xf32> to vector<256xf32>
    %2 = vector.shape_cast %1 : vector<256xf32> to vector<256x1xf32>
    %3 = vector.broadcast %2 : vector<256x1xf32> to vector<256x8xf32>
    %4 = arith.subf %0, %3 : vector<256x8xf32>
    %5 = math.exp %4 : vector<256x8xf32>
    %cst_1 = arith.constant dense<0.000000e+00> : vector<256xf32>
    %6 = vector.multi_reduction <add>, %5, %cst_1 [1] : vector<256x8xf32> to vector<256xf32>
    %7 = vector.shape_cast %6 : vector<256xf32> to vector<256x1xf32>
    %8 = tpu.reciprocal %7 {approx = true} : vector<256x1xf32> -> vector<256x1xf32>
    %9 = vector.broadcast %8 : vector<256x1xf32> to vector<256x8xf32>
    %10 = arith.mulf %5, %9 : vector<256x8xf32>
    %c0_2 = arith.constant 0 : index
    %c0_3 = arith.constant 0 : index
    %11 = vector.load %arg2[%c0_2, %c0_3] : memref<256x8xf32, #tpu.memory_space<vmem>>, vector<256x8xf32>
    tpu.vector_store %arg2[%c0_2, %c0_3], %10 {strides = array<i32>} : memref<256x8xf32, #tpu.memory_space<vmem>>, vector<256x8xf32>,
    return
  }
  func.func @transform_0(%arg0: i32) -> (i32, i32) {
    %c0_i32 = arith.constant 0 : i32
    %c0_i32_0 = arith.constant 0 : i32
    %c0_i32_1 = arith.constant 0 : i32
    return %c0_i32, %c0_i32_0 : i32, i32
  }
  func.func @transform_1(%arg0: i32) -> (i32, i32) {
    %c0_i32 = arith.constant 0 : i32
    %c0_i32_0 = arith.constant 0 : i32
    %c0_i32_1 = arith.constant 0 : i32
    return %c0_i32, %c0_i32_0 : i32, i32
  }
}

</mosaic_0001>

<bundles_post_ra>
// kernel: _lambda_.12
= control target key start
LH: loop header
LB: loop body
LE: loop exit
PB: predicated region body
PF: predicated region fallthrough
CT: control target
= control target key end

     0   :  { %s709_s9 = smov 0   ;;  %s711_s10 = smov 0   ;;  %s828_s0 = inlined_call_operand.vmem [shape: f32[2,128,3], index: 0, kind: input, shape index: {}]   ;;  %s829_s1 = inlined_call_operand.vmem [shape: f32[2,3,128], index: 1, kind: input, shape index: {}]   ;;  %s830_s2 = inlined_call_operand.vmem [shape: f32[2,128,128], index: 2, kind: output, shape index: {}]  }
   0x1   :  { %s713_s11 = smov 0  }
   0x2 LB: > { %s24_s12 = sadd.s32 1, %s688_s10  ;;  %p574_p0 = scmp.ge.s32.totalorder %s692_s11, 1  ;;  %s692_s11 = sphi %s713_s11, %s12_s11   ;;  %s688_s10 = sphi %s711_s10, %s832_s10   ;;  %s684_s9 = sphi %s709_s9, %s831_s9  }
   0x3   : > { %p26_p1 = scmp.ge.s32.totalorder %s24_s12, 2  ;;  %p142_p2 = scmp.lt.s32.totalorder %s692_s11, 3 }
   0x5   : > { %s834_s12 = smov (%p26_p1, %s24_s12), 0  ;;  %p143_p3 = pnand %p574_p0, %p142_p2 }
   0x6   : > { %p177_p4 = scmp.lt.s32.totalorder (!%p143_p3), %s684_s9, 1  ;;  %vm266_vm0 = vcmask (!%p143_p3), 1042432   ;;  %vm217_vm1 = vcmask (!%p143_p3), 23552  }
   0x7   : > { %146 = sbr.rel (%p143_p3) target bundleno = 251 (0xfb), region = 28 }
   0xe   : > { %s836_s9 = smov (!%p177_p4, %s684_s9), 1 }
   0xf   : > { %s599_s13 = sshll.u32 %s836_s9, 7  ;;  %s577_s14 = sshll.u32 %s836_s9, 2 }
  0x10   : > { %s736_s17 = scalar_lea.vmem %s828_s0, %s599_s13  ;;  %s189_s20 = scalar_lea.vmem %s829_s1, %s577_s14 }
  0x11   : > { %v216_v0 = vld [vmem:[%s189_s20] sm:$0x7]  ;;  %v201_v4 = vld [vmem:[%s736_s17 + $0x8] sm:$0xff]  ;;  %v202_v6 = vld [vmem:[%s736_s17 + $0x10] sm:$0xff]  ;;  %s785_s23 = scalar_lea.vmem %s830_s2, %s599_s13 }
  0x12   : > { %v200_v1 = vld [vmem:[%s736_s17] sm:$0xff]  ;;  %618 = vmatprep.subr.msk.mxu0 %vm266_vm0, %v216_v0  ;;  %v415_v3 = vmul.f32 %v216_v0, %v216_v0  ;;  %644 = vmatprep.subr.msk.mxu1 %vm266_vm0, %v216_v0  ;;  %v209_v5 = vld [vmem:[%s736_s17 + $0x48] sm:$0xff]  ;;  %v210_v7 = vld [vmem:[%s736_s17 + $0x50] sm:$0xff] }
  0x13   : > { %v208_v2 = vld [vmem:[%s736_s17 + $0x40] sm:$0xff]  ;;  %619 = vmatpush3.msk.msra.mxu0 %vm266_vm0, %v216_v0  ;;  %645 = vmatpush3.msk.msra.mxu1 %vm266_vm0, %v216_v0  ;;  %v203_v9 = vld [vmem:[%s736_s17 + $0x18] sm:$0xff]  ;;  %v205_v13 = vld [vmem:[%s736_s17 + $0x28] sm:$0xff] }
  0x14   : > { %v416_v8 = vsel %vm266_vm0, %v415_v3, 0.0  ;;  %620 = vmatprep.mubr.msk.f32.mxu0 %vm217_vm1, %v200_v1  ;;  %632 = vmatprep.mubr.msk.f32.mxu1 %vm217_vm1, %v208_v2  ;;  %v211_v10 = vld [vmem:[%s736_s17 + $0x58] sm:$0xff]  ;;  %v204_v11 = vld [vmem:[%s736_s17 + $0x20] sm:$0xff]  ;;  %v213_v14 = vld [vmem:[%s736_s17 + $0x68] sm:$0xff] }
  0x15   : > { %621 = vmatmul.mubr.msk.f32.vlgmr.msra.gmra.mrb[0].mxu0 %vm217_vm1, %v201_v4  ;;  %633 = vmatmul.mubr.msk.f32.vlgmr.msra.gmra.mrb[0].mxu1 %vm217_vm1, %v209_v5  ;;  %v212_v12 = vld [vmem:[%s736_s17 + $0x60] sm:$0xff]  ;;  %v206_v15 = vld [vmem:[%s736_s17 + $0x30] sm:$0xff]  ;;  %v207_v17 = vld [vmem:[%s736_s17 + $0x38] sm:$0xff]  ;;  %v417_v19 = vrot.slane %v416_v8, 4 }
  0x16   : > { %623 = vmatprep.mubr.msk.f32.mxu0 %vm217_vm1, %v202_v6  ;;  %635 = vmatprep.mubr.msk.f32.mxu1 %vm217_vm1, %v210_v7  ;;  %v214_v16 = vld [vmem:[%s736_s17 + $0x70] sm:$0xff]  ;;  %v215_v18 = vld [vmem:[%s736_s17 + $0x78] sm:$0xff] }
  0x17   : > { %v418_v20 = vadd.f32 %v417_v19, %v416_v8 }
  0x19   : > { %624 = vmatmul.mubr.msk.f32.gmra.mrb[2].mxu0 %vm217_vm1, %v203_v9  ;;  %636 = vmatmul.mubr.msk.f32.gmra.mrb[2].mxu1 %vm217_vm1, %v211_v10  ;;  %v419_v21 = vrot.slane %v418_v20, 2 }
  0x1a   : > { %626 = vmatprep.mubr.msk.f32.mxu0 %vm217_vm1, %v204_v11  ;;  %638 = vmatprep.mubr.msk.f32.mxu1 %vm217_vm1, %v212_v12 }
  0x1b   : > { %v420_v22 = vadd.f32 %v419_v21, %v418_v20 }
  0x1d   : > { %627 = vmatmul.mubr.msk.f32.gmra.mrb[4].mxu0 %vm217_vm1, %v205_v13  ;;  %639 = vmatmul.mubr.msk.f32.gmra.mrb[4].mxu1 %vm217_vm1, %v213_v14  ;;  %v421_v23 = vrot.slane %v420_v22, 1 }
  0x1e   : > { %629 = vmatprep.mubr.msk.f32.mxu0 %vm217_vm1, %v206_v15  ;;  %641 = vmatprep.mubr.msk.f32.mxu1 %vm217_vm1, %v214_v16 }
  0x1f   : > { %v778_v24 = vadd.f32 %v421_v23, %v420_v22 }
  0x21   : > { %630 = vmatmul.mubr.msk.f32.gmra.mrb[6].mxu0 %vm217_vm1, %v207_v17  ;;  %642 = vmatmul.mubr.msk.f32.gmra.mrb[6].mxu1 %vm217_vm1, %v215_v18 }
  0xe8   : > { %v622_v25 = vpop.f32.mrb[0].mxu0  ;;  %v634_v26 = vpop.f32.mrb[0].mxu1 }
  0xe9   : > { %v424_v27 = vmul.f32 2.0, %v622_v25  ;;  %v432_v28 = vmul.f32 2.0, %v634_v26  ;;  %v336_v29 = vpop.f32.mrb[1].mxu0  ;;  %v376_v30 = vpop.f32.mrb[1].mxu1 }
  0xea   : > { %v423_v31 = vmul.f32 2.0, %v336_v29  ;;  %v431_v32 = vmul.f32 2.0, %v376_v30 }
  0xeb   : > { %v440_v33 = vsub.f32 %v424_v27, %v778_v24  ;;  %v448_v34 = vsub.f32 %v432_v28, %v778_v24 }
  0xec   : > { %v439_v35 = vsub.f32 %v423_v31, %v778_v24  ;;  %v447_v36 = vsub.f32 %v431_v32, %v778_v24  ;;  %v625_v37 = vpop.f32.mrb[2].mxu0  ;;  %v637_v38 = vpop.f32.mrb[2].mxu1 }
  0xed   : > { %456 = vst [vmem:[%s785_s23 + $0x8] sm:$0xff] %v440_v33  ;;  %464 = vst [vmem:[%s785_s23 + $0x48] sm:$0xff] %v448_v34  ;;  %v426_v39 = vmul.f32 2.0, %v625_v37  ;;  %v434_v40 = vmul.f32 2.0, %v637_v38  ;;  %v346_v41 = vpop.f32.mrb[3].mxu0  ;;  %v386_v42 = vpop.f32.mrb[3].mxu1 }
  0xee   : > { %455 = vst [vmem:[%s785_s23] sm:$0xff] %v439_v35  ;;  %463 = vst [vmem:[%s785_s23 + $0x40] sm:$0xff] %v447_v36  ;;  %v425_v43 = vmul.f32 2.0, %v346_v41  ;;  %v433_v44 = vmul.f32 2.0, %v386_v42 }
  0xef   : > { %v442_v45 = vsub.f32 %v426_v39, %v778_v24  ;;  %v450_v46 = vsub.f32 %v434_v40, %v778_v24 }
  0xf0   : > { %v441_v47 = vsub.f32 %v425_v43, %v778_v24  ;;  %v449_v48 = vsub.f32 %v433_v44, %v778_v24  ;;  %v628_v49 = vpop.f32.mrb[4].mxu0  ;;  %v640_v50 = vpop.f32.mrb[4].mxu1 }
  0xf1   : > { %458 = vst [vmem:[%s785_s23 + $0x18] sm:$0xff] %v442_v45  ;;  %466 = vst [vmem:[%s785_s23 + $0x58] sm:$0xff] %v450_v46  ;;  %v428_v51 = vmul.f32 2.0, %v628_v49  ;;  %v436_v52 = vmul.f32 2.0, %v640_v50  ;;  %v356_v53 = vpop.f32.mrb[5].mxu0  ;;  %v396_v54 = vpop.f32.mrb[5].mxu1 }
  0xf2   : > { %457 = vst [vmem:[%s785_s23 + $0x10] sm:$0xff] %v441_v47  ;;  %465 = vst [vmem:[%s785_s23 + $0x50] sm:$0xff] %v449_v48  ;;  %v427_v55 = vmul.f32 2.0, %v356_v53  ;;  %v435_v56 = vmul.f32 2.0, %v396_v54 }
  0xf3   : > { %v444_v57 = vsub.f32 %v428_v51, %v778_v24  ;;  %v452_v58 = vsub.f32 %v436_v52, %v778_v24 }
  0xf4   : > { %v443_v59 = vsub.f32 %v427_v55, %v778_v24  ;;  %v451_v60 = vsub.f32 %v435_v56, %v778_v24  ;;  %v631_v61 = vpop.f32.mrb[6].mxu0  ;;  %v643_v62 = vpop.f32.mrb[6].mxu1 }
  0xf5   : > { %460 = vst [vmem:[%s785_s23 + $0x28] sm:$0xff] %v444_v57  ;;  %468 = vst [vmem:[%s785_s23 + $0x68] sm:$0xff] %v452_v58  ;;  %v430_v63 = vmul.f32 2.0, %v631_v61  ;;  %v438_v0 = vmul.f32 2.0, %v643_v62  ;;  %v366_v1 = vpop.f32.mrb[7].mxu0  ;;  %v406_v2 = vpop.f32.mrb[7].mxu1 }
  0xf6   : > { %459 = vst [vmem:[%s785_s23 + $0x20] sm:$0xff] %v443_v59  ;;  %467 = vst [vmem:[%s785_s23 + $0x60] sm:$0xff] %v451_v60  ;;  %v429_v3 = vmul.f32 2.0, %v366_v1  ;;  %v437_v4 = vmul.f32 2.0, %v406_v2 }
  0xf7   : > { %v446_v5 = vsub.f32 %v430_v63, %v778_v24  ;;  %v454_v6 = vsub.f32 %v438_v0, %v778_v24 }
  0xf8   : > { %v445_v7 = vsub.f32 %v429_v3, %v778_v24  ;;  %v453_v8 = vsub.f32 %v437_v4, %v778_v24 }
  0xf9   : > { %462 = vst [vmem:[%s785_s23 + $0x38] sm:$0xff] %v446_v5  ;;  %470 = vst [vmem:[%s785_s23 + $0x78] sm:$0xff] %v454_v6 }
  0xfa   : > { %461 = vst [vmem:[%s785_s23 + $0x30] sm:$0xff] %v445_v7  ;;  %469 = vst [vmem:[%s785_s23 + $0x70] sm:$0xff] %v453_v8 }
  0xfb PF: > { %s12_s11 = sadd.s32 1, %s692_s11   ;;  %s831_s9 = smov %s688_s10 }
  0xfc   : > { %p9_p5 = scmp.ge.s32.totalorder %s12_s11, 4   ;;  %s832_s10 = smov %s834_s12 }
  0xfe   :  { %11 = sbr.rel (!%p9_p5) target bundleno = 2 (0x2), region = 61 }

// kernel: _lambda_.13
= control target key start
LH: loop header
LB: loop body
LE: loop exit
PB: predicated region body
PF: predicated region fallthrough
CT: control target
= control target key end

     0   :  { %s874_s15 = smov 0   ;;  %s876_s16 = smov 0   ;;  %s1046_s0 = inlined_call_operand.vmem [shape: f32[2,12,128], index: 0, kind: input, shape index: {}]   ;;  %s1047_s1 = inlined_call_operand.vmem [shape: f32[128,12], index: 1, kind: input, shape index: {}]   ;;  %s1048_s2 = inlined_call_operand.vmem [shape: f32[128,1], index: 2, kind: input, shape index: {}]   ;;  %s1049_s3 = inlined_call_operand.vmem [shape: f32[2,64,128], index: 3, kind: output, shape index: {0}]   ;;  %s1050_s4 = inlined_call_operand.vmem [shape: f32[2,64,128], index: 4, kind: output, shape index: {1}]  }
   0x1   :  { %s878_s17 = smov 0  }
   0x2 LB: > { %s27_s18 = sadd.s32 1, %s841_s16  ;;  %p712_p0 = scmp.ge.s32.totalorder %s845_s17, 1  ;;  %s845_s17 = sphi %s878_s17, %s15_s17   ;;  %s841_s16 = sphi %s876_s16, %s1052_s16   ;;  %s837_s15 = sphi %s874_s15, %s1051_s15  }
   0x3   : > { %p29_p1 = scmp.ge.s32.totalorder %s27_s18, 2  ;;  %p186_p2 = scmp.lt.s32.totalorder %s845_s17, 3 }
   0x5   : > { %s1054_s18 = smov (%p29_p1, %s27_s18), 0  ;;  %p187_p3 = pnand %p712_p0, %p186_p2 }
   0x6   : > { %p226_p4 = scmp.lt.s32.totalorder (!%p187_p3), %s837_s15, 1  ;;  %v250_v0 = vld [vmem:[%s1047_s1] sm:$0xff] (!%p187_p3)  ;;  %vm364_vm0 = vcmask (!%p187_p3), 97280   ;;  %vm413_vm1 = vcmask (!%p187_p3), 1043456   ;;  %v847_v2 = vmov (!%p187_p3), 0   ;;  %vm848_vm2 = vmmov (!%p187_p3), 1  }
   0x7   : > { %190 = sbr.rel (%p187_p3) target bundleno = 252 (0xfc), region = 32  ;;  %v258_v1 = vld [vmem:[%s1047_s1 + $0x40] sm:$0xff] (!%p187_p3)  ;;  %763 = vmatprep.mubr.msk.f32.mxu0 (!%p187_p3), %vm364_vm0, %v250_v0  ;;  %822 = vset.pattern.permute.xlu1 (!%p187_p3), %v847_v2  ;;  %vm788_vm3 = vmpackc.low (!%p187_p3), %vm413_vm1, %vm848_vm2  ;;  %v270_v5 = vld [vmem:[%s1048_s2 + $0x10] sm:$0xff] (!%p187_p3) }
   0x8   : > { %775 = vmatprep.mubr.msk.f32.mxu1 (!%p187_p3), %vm364_vm0, %v258_v1  ;;  %821 = vset.pattern.permute.xlu0 (!%p187_p3), %v847_v2  ;;  %v268_v7 = vld [vmem:[%s1048_s2] sm:$0xff] (!%p187_p3)  ;;  %v271_v8 = vld [vmem:[%s1048_s2 + $0x18] sm:$0xff] (!%p187_p3)  ;;  %v269_v9 = vld [vmem:[%s1048_s2 + $0x8] sm:$0xff] (!%p187_p3) }
   0x9   : > { %296 = vperm.xlu1 (!%p187_p3), %822, %v270_v5   ;;  %286 = vperm.xlu0 (!%p187_p3), %821, %v268_v7   ;;  %v251_v10 = vld [vmem:[%s1047_s1 + $0x8] sm:$0xff] (!%p187_p3)  ;;  %v252_v12 = vld [vmem:[%s1047_s1 + $0x10] sm:$0xff] (!%p187_p3)  ;;  %v272_v15 = vld [vmem:[%s1048_s2 + $0x20] sm:$0xff] (!%p187_p3) }
   0xa   : > { %v259_v11 = vld [vmem:[%s1047_s1 + $0x48] sm:$0xff] (!%p187_p3)  ;;  %v260_v13 = vld [vmem:[%s1047_s1 + $0x50] sm:$0xff] (!%p187_p3)  ;;  %v253_v16 = vld [vmem:[%s1047_s1 + $0x18] sm:$0xff] (!%p187_p3) }
   0xb   : > { %v273_v14 = vld [vmem:[%s1048_s2 + $0x28] sm:$0xff] (!%p187_p3)  ;;  %v261_v17 = vld [vmem:[%s1047_s1 + $0x58] sm:$0xff] (!%p187_p3)  ;;  %v254_v18 = vld [vmem:[%s1047_s1 + $0x20] sm:$0xff] (!%p187_p3) }
   0xc   : > { %v262_v19 = vld [vmem:[%s1047_s1 + $0x60] sm:$0xff] (!%p187_p3)  ;;  %v275_v20 = vld [vmem:[%s1048_s2 + $0x38] sm:$0xff] (!%p187_p3)  ;;  %v274_v21 = vld [vmem:[%s1048_s2 + $0x30] sm:$0xff] (!%p187_p3) }
   0xd   : > { %301 = vperm.xlu1 (!%p187_p3), %822, %v271_v8   ;;  %291 = vperm.xlu0 (!%p187_p3), %821, %v269_v9   ;;  %v255_v22 = vld [vmem:[%s1047_s1 + $0x28] sm:$0xff] (!%p187_p3)  ;;  %v256_v24 = vld [vmem:[%s1047_s1 + $0x30] sm:$0xff] (!%p187_p3)  ;;  %v276_v27 = vld [vmem:[%s1048_s2 + $0x40] sm:$0xff] (!%p187_p3) }
   0xe   : > { %s1056_s15 = smov (!%p226_p4, %s837_s15), 1  ;;  %v263_v23 = vld [vmem:[%s1047_s1 + $0x68] sm:$0xff]  ;;  %v264_v25 = vld [vmem:[%s1047_s1 + $0x70] sm:$0xff]  ;;  %v257_v28 = vld [vmem:[%s1047_s1 + $0x38] sm:$0xff] }
   0xf   : > { %s738_s23 = sshll.u32 %s1056_s15, 4  ;;  %v277_v26 = vld [vmem:[%s1048_s2 + $0x48] sm:$0xff]  ;;  %v265_v29 = vld [vmem:[%s1047_s1 + $0x78] sm:$0xff]  ;;  %v278_v31 = vld [vmem:[%s1048_s2 + $0x50] sm:$0xff]  ;;  %s739_s21 = sshll.u32 %s1056_s15, 6 }
  0x10   : > { %s233_s26 = scalar_lea.vmem %s1046_s0, %s738_s23  ;;  %v279_v30 = vld [vmem:[%s1048_s2 + $0x58] sm:$0xff]  ;;  %v281_v32 = vld [vmem:[%s1048_s2 + $0x68] sm:$0xff]  ;;  %v280_v33 = vld [vmem:[%s1048_s2 + $0x60] sm:$0xff]  ;;  %s1014_s24 = scalar_lea.vmem %s1049_s3, %s739_s21 }
  0x11   : > { %v266_v3 = vld [vmem:[%s233_s26] sm:$0xff]  ;;  %v267_v4 = vld [vmem:[%s233_s26 + $0x8] sm:$0xf]  ;;  %311 = vperm.xlu1 %822, %v273_v14   ;;  %306 = vperm.xlu0 %821, %v272_v15   ;;  %v283_v34 = vld [vmem:[%s1048_s2 + $0x78] sm:$0xff]  ;;  %s1019_s27 = scalar_lea.vmem %s1050_s4, %s739_s21 }
  0x12   : > { %v787_v6 = vpack.c.bf16 %v267_v4, %v266_v3  ;;  %v282_v35 = vld [vmem:[%s1048_s2 + $0x70] sm:$0xff] }
  0x14   : > { %789 = vmatprep.subr.msk.bf16.mxu0 %vm788_vm3, %v787_v6  ;;  %793 = vmatprep.subr.msk.bf16.mxu1 %vm788_vm3, %v787_v6 }
  0x15   : > { %792 = vmatpush3.bf16.msk.msra.mxu0 %vm788_vm3, %v787_v6  ;;  %794 = vmatpush3.bf16.msk.msra.mxu1 %vm788_vm3, %v787_v6 }
  0x16   : > { %321 = vperm.xlu1 %822, %v275_v20   ;;  %316 = vperm.xlu0 %821, %v274_v21  }
  0x18   : > { %764 = vmatmul.mubr.msk.f32.vlgmr.msra.gmra.mrb[0].mxu0 %vm364_vm0, %v251_v10  ;;  %776 = vmatmul.mubr.msk.f32.vlgmr.msra.gmra.mrb[0].mxu1 %vm364_vm0, %v259_v11 }
  0x19   : > { %766 = vmatprep.mubr.msk.f32.mxu0 %vm364_vm0, %v252_v12  ;;  %778 = vmatprep.mubr.msk.f32.mxu1 %vm364_vm0, %v260_v13 }
  0x1a   : > { %331 = vperm.xlu1 %822, %v277_v26   ;;  %326 = vperm.xlu0 %821, %v276_v27  }
  0x1c   : > { %767 = vmatmul.mubr.msk.f32.gmra.mrb[2].mxu0 %vm364_vm0, %v253_v16  ;;  %779 = vmatmul.mubr.msk.f32.gmra.mrb[2].mxu1 %vm364_vm0, %v261_v17 }
  0x1d   : > { %769 = vmatprep.mubr.msk.f32.mxu0 %vm364_vm0, %v254_v18  ;;  %781 = vmatprep.mubr.msk.f32.mxu1 %vm364_vm0, %v262_v19 }
  0x1e   : > { %341 = vperm.xlu1 %822, %v279_v30   ;;  %336 = vperm.xlu0 %821, %v278_v31  }
  0x20   : > { %770 = vmatmul.mubr.msk.f32.gmra.mrb[4].mxu0 %vm364_vm0, %v255_v22  ;;  %782 = vmatmul.mubr.msk.f32.gmra.mrb[4].mxu1 %vm364_vm0, %v263_v23 }
  0x21   : > { %772 = vmatprep.mubr.msk.f32.mxu0 %vm364_vm0, %v256_v24  ;;  %784 = vmatprep.mubr.msk.f32.mxu1 %vm364_vm0, %v264_v25 }
  0x22   : > { %351 = vperm.xlu1 %822, %v281_v32   ;;  %346 = vperm.xlu0 %821, %v280_v33  }
  0x24   : > { %773 = vmatmul.mubr.msk.f32.gmra.mrb[6].mxu0 %vm364_vm0, %v257_v28  ;;  %785 = vmatmul.mubr.msk.f32.gmra.mrb[6].mxu1 %vm364_vm0, %v265_v29 }
  0x26   : > { %361 = vperm.xlu1 %822, %v283_v34   ;;  %356 = vperm.xlu0 %821, %v282_v35  }
  0x88   : > { %v297_v36 = vpop.permute.xlu1 %296  ;;  %v287_v37 = vpop.permute.xlu0 %286 }
  0x8c   : > { %v302_v38 = vpop.permute.xlu1 %301  ;;  %v292_v39 = vpop.permute.xlu0 %291 }
  0x90   : > { %v312_v40 = vpop.permute.xlu1 %311  ;;  %v307_v41 = vpop.permute.xlu0 %306 }
  0x95   : > { %v322_v42 = vpop.permute.xlu1 %321  ;;  %v317_v43 = vpop.permute.xlu0 %316 }
  0x99   : > { %v332_v44 = vpop.permute.xlu1 %331  ;;  %v327_v45 = vpop.permute.xlu0 %326 }
  0x9d   : > { %v342_v46 = vpop.permute.xlu1 %341  ;;  %v337_v47 = vpop.permute.xlu0 %336 }
  0xa1   : > { %v352_v56 = vpop.permute.xlu1 %351  ;;  %v347_v57 = vpop.permute.xlu0 %346 }
  0xa5   : > { %v362_v10 = vpop.permute.xlu1 %361  ;;  %v357_v11 = vpop.permute.xlu0 %356 }
  0xeb   : > { %v765_v48 = vpop.f32.mrb[0].mxu0  ;;  %v777_v49 = vpop.f32.mrb[0].mxu1 }
  0xec   : > { %v489_v50 = vadd.f32 %v765_v48, %v292_v39  ;;  %v529_v51 = vadd.f32 %v777_v49, %v332_v44  ;;  %v483_v52 = vpop.f32.mrb[1].mxu0  ;;  %v523_v53 = vpop.f32.mrb[1].mxu1 }
  0xed   : > { %v484_v54 = vadd.f32 %v483_v52, %v287_v37  ;;  %v524_v55 = vadd.f32 %v523_v53, %v327_v45 }
  0xee   : > { %563 = vst [vmem:[%s1014_s24 + $0x8] sm:$0xff] %v489_v50  ;;  %571 = vst [vmem:[%s1019_s27 + $0x8] sm:$0xff] %v529_v51 }
  0xef   : > { %562 = vst [vmem:[%s1014_s24] sm:$0xff] %v484_v54  ;;  %570 = vst [vmem:[%s1019_s27] sm:$0xff] %v524_v55  ;;  %v768_v58 = vpop.f32.mrb[2].mxu0  ;;  %v780_v59 = vpop.f32.mrb[2].mxu1 }
  0xf0   : > { %v499_v60 = vadd.f32 %v768_v58, %v302_v38  ;;  %v539_v61 = vadd.f32 %v780_v59, %v342_v46  ;;  %v493_v62 = vpop.f32.mrb[3].mxu0  ;;  %v533_v63 = vpop.f32.mrb[3].mxu1 }
  0xf1   : > { %v494_v0 = vadd.f32 %v493_v62, %v297_v36  ;;  %v534_v1 = vadd.f32 %v533_v63, %v337_v47 }
  0xf2   : > { %565 = vst [vmem:[%s1014_s24 + $0x18] sm:$0xff] %v499_v60  ;;  %573 = vst [vmem:[%s1019_s27 + $0x18] sm:$0xff] %v539_v61 }
  0xf3   : > { %564 = vst [vmem:[%s1014_s24 + $0x10] sm:$0xff] %v494_v0  ;;  %572 = vst [vmem:[%s1019_s27 + $0x10] sm:$0xff] %v534_v1  ;;  %v771_v2 = vpop.f32.mrb[4].mxu0  ;;  %v783_v3 = vpop.f32.mrb[4].mxu1 }
  0xf4   : > { %v509_v4 = vadd.f32 %v771_v2, %v312_v40  ;;  %v549_v5 = vadd.f32 %v783_v3, %v352_v56  ;;  %v503_v6 = vpop.f32.mrb[5].mxu0  ;;  %v543_v7 = vpop.f32.mrb[5].mxu1 }
  0xf5   : > { %v504_v8 = vadd.f32 %v503_v6, %v307_v41  ;;  %v544_v9 = vadd.f32 %v543_v7, %v347_v57 }
  0xf6   : > { %567 = vst [vmem:[%s1014_s24 + $0x28] sm:$0xff] %v509_v4  ;;  %575 = vst [vmem:[%s1019_s27 + $0x28] sm:$0xff] %v549_v5 }
  0xf7   : > { %566 = vst [vmem:[%s1014_s24 + $0x20] sm:$0xff] %v504_v8  ;;  %574 = vst [vmem:[%s1019_s27 + $0x20] sm:$0xff] %v544_v9  ;;  %v774_v12 = vpop.f32.mrb[6].mxu0  ;;  %v786_v13 = vpop.f32.mrb[6].mxu1 }
  0xf8   : > { %v519_v14 = vadd.f32 %v774_v12, %v322_v42  ;;  %v559_v15 = vadd.f32 %v786_v13, %v362_v10  ;;  %v513_v16 = vpop.f32.mrb[7].mxu0  ;;  %v553_v17 = vpop.f32.mrb[7].mxu1 }
  0xf9   : > { %v514_v18 = vadd.f32 %v513_v16, %v317_v43  ;;  %v554_v19 = vadd.f32 %v553_v17, %v357_v11 }
  0xfa   : > { %569 = vst [vmem:[%s1014_s24 + $0x38] sm:$0xff] %v519_v14  ;;  %577 = vst [vmem:[%s1019_s27 + $0x38] sm:$0xff] %v559_v15 }
  0xfb   : > { %568 = vst [vmem:[%s1014_s24 + $0x30] sm:$0xff] %v514_v18  ;;  %576 = vst [vmem:[%s1019_s27 + $0x30] sm:$0xff] %v554_v19 }
  0xfc PF: > { %s15_s17 = sadd.s32 1, %s845_s17   ;;  %s1051_s15 = smov %s841_s16 }
  0xfd   : > { %p12_p5 = scmp.ge.s32.totalorder %s15_s17, 4   ;;  %s1052_s16 = smov %s1054_s18 }
  0xff   :  { %14 = sbr.rel (!%p12_p5) target bundleno = 2 (0x2), region = 74 }

// kernel: _lambda_.15
= control target key start
LH: loop header
LB: loop body
LE: loop exit
PB: predicated region body
PF: predicated region fallthrough
CT: control target
= control target key end

     0   :  { %s772_s9 = smov 0   ;;  %s774_s10 = smov 0   ;;  %s886_s0 = inlined_call_operand.vmem [shape: f32[2,128,64], index: 0, kind: input, shape index: {}]   ;;  %s887_s1 = inlined_call_operand.vmem [shape: f32[2,64,128], index: 1, kind: input, shape index: {}]   ;;  %s888_s2 = inlined_call_operand.vmem [shape: f32[2,128,128], index: 2, kind: output, shape index: {}]  }
   0x1   :  { %s776_s11 = smov 0  }
   0x2 LB: > { %s24_s12 = sadd.s32 1, %s751_s10  ;;  %p593_p0 = scmp.ge.s32.totalorder %s755_s11, 1  ;;  %s755_s11 = sphi %s776_s11, %s12_s11   ;;  %s751_s10 = sphi %s774_s10, %s890_s10   ;;  %s747_s9 = sphi %s772_s9, %s889_s9  }
   0x3   : > { %p26_p1 = scmp.ge.s32.totalorder %s24_s12, 2  ;;  %p143_p2 = scmp.lt.s32.totalorder %s755_s11, 3 }
   0x5   : > { %s892_s12 = smov (%p26_p1, %s24_s12), 0  ;;  %p144_p3 = pnand %p593_p0, %p143_p2 }
   0x6   : > { %p179_p4 = scmp.lt.s32.totalorder (!%p144_p3), %s747_s9, 1  ;;  %vm227_vm0 = vcmask (!%p144_p3), 523264  }
   0x7   : > { %147 = sbr.rel (%p144_p3) target bundleno = 266 (0x10a), region = 28 }
   0xe   : > { %s894_s9 = smov (!%p179_p4, %s747_s9), 1 }
   0xf   : > { %s618_s13 = sshll.u32 %s894_s9, 7  ;;  %s619_s14 = sshll.u32 %s894_s9, 6 }
  0x10   : > { %s192_s17 = scalar_lea.vmem %s887_s1, %s619_s14  ;;  %s802_s20 = scalar_lea.vmem %s886_s0, %s618_s13 }
  0x11   : > { %v219_v0 = vld [vmem:[%s192_s17] sm:$0xff]  ;;  %v220_v1 = vld [vmem:[%s192_s17 + $0x8] sm:$0xff]  ;;  %v221_v2 = vld [vmem:[%s192_s17 + $0x10] sm:$0xff]  ;;  %s843_s23 = scalar_lea.vmem %s888_s2, %s618_s13 }
  0x12   : > { %v685_v3 = vpack.c.bf16 %v220_v1, %v219_v0  ;;  %v421_v4 = vmul.f32 %v219_v0, %v219_v0  ;;  %v422_v5 = vmul.f32 %v220_v1, %v220_v1  ;;  %v222_v6 = vld [vmem:[%s192_s17 + $0x18] sm:$0xff]  ;;  %v423_v7 = vmul.f32 %v221_v2, %v221_v2  ;;  %v223_v9 = vld [vmem:[%s192_s17 + $0x20] sm:$0xff]  ;;  %v224_v10 = vld [vmem:[%s192_s17 + $0x28] sm:$0xff] }
  0x13   : > { %v689_v8 = vpack.c.bf16 %v222_v6, %v221_v2  ;;  %v424_v12 = vmul.f32 %v222_v6, %v222_v6  ;;  %v203_v13 = vld [vmem:[%s802_s20] sm:$0xff]  ;;  %v693_v16 = vpack.c.bf16 %v224_v10, %v223_v9  ;;  %v425_v17 = vmul.f32 %v223_v9, %v223_v9  ;;  %v225_v18 = vld [vmem:[%s192_s17 + $0x30] sm:$0xff]  ;;  %v226_v19 = vld [vmem:[%s192_s17 + $0x38] sm:$0xff] }
  0x14   : > { %686 = vmatprep.subr.bf16.mxu0 %v685_v3  ;;  %v429_v11 = vadd.f32 %v422_v5, %v421_v4  ;;  %701 = vmatprep.subr.bf16.mxu1 %v685_v3  ;;  %v211_v14 = vld [vmem:[%s802_s20 + $0x40] sm:$0xff]  ;;  %v426_v21 = vmul.f32 %v224_v10, %v224_v10  ;;  %v697_v23 = vpack.c.bf16 %v226_v19, %v225_v18  ;;  %v204_v29 = vld [vmem:[%s802_s20 + $0x8] sm:$0xff]  ;;  %v205_v31 = vld [vmem:[%s802_s20 + $0x10] sm:$0xff] }
  0x15   : > { %688 = vmatpush3.bf16.msra.mxu0 %v685_v3  ;;  %705 = vmatpush3.bf16.msra.mxu1 %v685_v3  ;;  %v427_v24 = vmul.f32 %v225_v18, %v225_v18  ;;  %v428_v26 = vmul.f32 %v226_v19, %v226_v19  ;;  %v212_v30 = vld [vmem:[%s802_s20 + $0x48] sm:$0xff]  ;;  %v213_v32 = vld [vmem:[%s802_s20 + $0x50] sm:$0xff]  ;;  %v206_v33 = vld [vmem:[%s802_s20 + $0x18] sm:$0xff] }
  0x16   : > { %690 = vmatprep.subr.bf16.mxu0 %v689_v8  ;;  %v430_v15 = vadd.f32 %v429_v11, %v423_v7  ;;  %702 = vmatprep.subr.bf16.mxu1 %v689_v8  ;;  %v214_v34 = vld [vmem:[%s802_s20 + $0x58] sm:$0xff]  ;;  %v207_v35 = vld [vmem:[%s802_s20 + $0x20] sm:$0xff]  ;;  %v208_v37 = vld [vmem:[%s802_s20 + $0x28] sm:$0xff] }
  0x17   : > { %661 = vmatprep.mubr.msk.f32.mxu0 %vm227_vm0, %v203_v13  ;;  %673 = vmatprep.mubr.msk.f32.mxu1 %vm227_vm0, %v211_v14  ;;  %v215_v36 = vld [vmem:[%s802_s20 + $0x60] sm:$0xff]  ;;  %v216_v38 = vld [vmem:[%s802_s20 + $0x68] sm:$0xff]  ;;  %v209_v39 = vld [vmem:[%s802_s20 + $0x30] sm:$0xff] }
  0x18   : > { %v431_v20 = vadd.f32 %v430_v15, %v424_v12  ;;  %v217_v40 = vld [vmem:[%s802_s20 + $0x70] sm:$0xff]  ;;  %v210_v41 = vld [vmem:[%s802_s20 + $0x38] sm:$0xff] }
  0x19   : > { %692 = vmatpush3.bf16.msra.mxu0 %v689_v8  ;;  %706 = vmatpush3.bf16.msra.mxu1 %v689_v8  ;;  %v218_v42 = vld [vmem:[%s802_s20 + $0x78] sm:$0xff] }
  0x1a   : > { %694 = vmatprep.subr.bf16.mxu0 %v693_v16  ;;  %v432_v22 = vadd.f32 %v431_v20, %v425_v17  ;;  %703 = vmatprep.subr.bf16.mxu1 %v693_v16 }
  0x1c   : > { %v433_v25 = vadd.f32 %v432_v22, %v426_v21 }
  0x1d   : > { %696 = vmatpush3.bf16.msra.mxu0 %v693_v16  ;;  %707 = vmatpush3.bf16.msra.mxu1 %v693_v16 }
  0x1e   : > { %698 = vmatprep.subr.bf16.mxu0 %v697_v23  ;;  %v434_v27 = vadd.f32 %v433_v25, %v427_v24  ;;  %704 = vmatprep.subr.bf16.mxu1 %v697_v23 }
  0x20   : > { %v435_v28 = vadd.f32 %v434_v27, %v428_v26 }
  0x21   : > { %700 = vmatpush3.bf16.msra.mxu0 %v697_v23  ;;  %708 = vmatpush3.bf16.msra.mxu1 %v697_v23 }
  0x22   : > { %v436_v43 = vrot.slane %v435_v28, 4 }
  0x24   : > { %662 = vmatmul.mubr.msk.f32.vlgmr.msra.gmra.mrb[0].mxu0 %vm227_vm0, %v204_v29  ;;  %674 = vmatmul.mubr.msk.f32.vlgmr.msra.gmra.mrb[0].mxu1 %vm227_vm0, %v212_v30  ;;  %v437_v44 = vadd.f32 %v436_v43, %v435_v28 }
  0x25   : > { %664 = vmatprep.mubr.msk.f32.mxu0 %vm227_vm0, %v205_v31  ;;  %676 = vmatprep.mubr.msk.f32.mxu1 %vm227_vm0, %v213_v32 }
  0x26   : > { %v438_v45 = vrot.slane %v437_v44, 2 }
  0x28   : > { %665 = vmatmul.mubr.msk.f32.gmra.mrb[2].mxu0 %vm227_vm0, %v206_v33  ;;  %677 = vmatmul.mubr.msk.f32.gmra.mrb[2].mxu1 %vm227_vm0, %v214_v34  ;;  %v439_v46 = vadd.f32 %v438_v45, %v437_v44 }
  0x29   : > { %667 = vmatprep.mubr.msk.f32.mxu0 %vm227_vm0, %v207_v35  ;;  %679 = vmatprep.mubr.msk.f32.mxu1 %vm227_vm0, %v215_v36 }
  0x2a   : > { %v440_v47 = vrot.slane %v439_v46, 1 }
  0x2c   : > { %668 = vmatmul.mubr.msk.f32.gmra.mrb[4].mxu0 %vm227_vm0, %v208_v37  ;;  %680 = vmatmul.mubr.msk.f32.gmra.mrb[4].mxu1 %vm227_vm0, %v216_v38  ;;  %v836_v48 = vadd.f32 %v440_v47, %v439_v46 }
  0x2d   : > { %670 = vmatprep.mubr.msk.f32.mxu0 %vm227_vm0, %v209_v39  ;;  %682 = vmatprep.mubr.msk.f32.mxu1 %vm227_vm0, %v217_v40 }
  0x30   : > { %671 = vmatmul.mubr.msk.f32.gmra.mrb[6].mxu0 %vm227_vm0, %v210_v41  ;;  %683 = vmatmul.mubr.msk.f32.gmra.mrb[6].mxu1 %vm227_vm0, %v218_v42 }
  0xf7   : > { %v663_v49 = vpop.f32.mrb[0].mxu0  ;;  %v675_v50 = vpop.f32.mrb[0].mxu1 }
  0xf8   : > { %v443_v51 = vmul.f32 2.0, %v663_v49  ;;  %v451_v52 = vmul.f32 2.0, %v675_v50  ;;  %v342_v53 = vpop.f32.mrb[1].mxu0  ;;  %v382_v54 = vpop.f32.mrb[1].mxu1 }
  0xf9   : > { %v442_v55 = vmul.f32 2.0, %v342_v53  ;;  %v450_v56 = vmul.f32 2.0, %v382_v54 }
  0xfa   : > { %v459_v57 = vsub.f32 %v443_v51, %v836_v48  ;;  %v467_v58 = vsub.f32 %v451_v52, %v836_v48 }
  0xfb   : > { %v458_v59 = vsub.f32 %v442_v55, %v836_v48  ;;  %v466_v60 = vsub.f32 %v450_v56, %v836_v48  ;;  %v666_v61 = vpop.f32.mrb[2].mxu0  ;;  %v678_v62 = vpop.f32.mrb[2].mxu1 }
  0xfc   : > { %475 = vst [vmem:[%s843_s23 + $0x8] sm:$0xff] %v459_v57  ;;  %483 = vst [vmem:[%s843_s23 + $0x48] sm:$0xff] %v467_v58  ;;  %v445_v63 = vmul.f32 2.0, %v666_v61  ;;  %v453_v0 = vmul.f32 2.0, %v678_v62  ;;  %v352_v1 = vpop.f32.mrb[3].mxu0  ;;  %v392_v2 = vpop.f32.mrb[3].mxu1 }
  0xfd   : > { %474 = vst [vmem:[%s843_s23] sm:$0xff] %v458_v59  ;;  %482 = vst [vmem:[%s843_s23 + $0x40] sm:$0xff] %v466_v60  ;;  %v444_v3 = vmul.f32 2.0, %v352_v1  ;;  %v452_v4 = vmul.f32 2.0, %v392_v2 }
  0xfe   : > { %v461_v5 = vsub.f32 %v445_v63, %v836_v48  ;;  %v469_v6 = vsub.f32 %v453_v0, %v836_v48 }
  0xff   : > { %v460_v7 = vsub.f32 %v444_v3, %v836_v48  ;;  %v468_v8 = vsub.f32 %v452_v4, %v836_v48  ;;  %v669_v9 = vpop.f32.mrb[4].mxu0  ;;  %v681_v10 = vpop.f32.mrb[4].mxu1 }
 0x100   : > { %477 = vst [vmem:[%s843_s23 + $0x18] sm:$0xff] %v461_v5  ;;  %485 = vst [vmem:[%s843_s23 + $0x58] sm:$0xff] %v469_v6  ;;  %v447_v11 = vmul.f32 2.0, %v669_v9  ;;  %v455_v12 = vmul.f32 2.0, %v681_v10  ;;  %v362_v13 = vpop.f32.mrb[5].mxu0  ;;  %v402_v14 = vpop.f32.mrb[5].mxu1 }
 0x101   : > { %476 = vst [vmem:[%s843_s23 + $0x10] sm:$0xff] %v460_v7  ;;  %484 = vst [vmem:[%s843_s23 + $0x50] sm:$0xff] %v468_v8  ;;  %v446_v15 = vmul.f32 2.0, %v362_v13  ;;  %v454_v16 = vmul.f32 2.0, %v402_v14 }
 0x102   : > { %v463_v17 = vsub.f32 %v447_v11, %v836_v48  ;;  %v471_v18 = vsub.f32 %v455_v12, %v836_v48 }
 0x103   : > { %v462_v19 = vsub.f32 %v446_v15, %v836_v48  ;;  %v470_v20 = vsub.f32 %v454_v16, %v836_v48  ;;  %v672_v21 = vpop.f32.mrb[6].mxu0  ;;  %v684_v22 = vpop.f32.mrb[6].mxu1 }
 0x104   : > { %479 = vst [vmem:[%s843_s23 + $0x28] sm:$0xff] %v463_v17  ;;  %487 = vst [vmem:[%s843_s23 + $0x68] sm:$0xff] %v471_v18  ;;  %v449_v23 = vmul.f32 2.0, %v672_v21  ;;  %v457_v24 = vmul.f32 2.0, %v684_v22  ;;  %v372_v25 = vpop.f32.mrb[7].mxu0  ;;  %v412_v26 = vpop.f32.mrb[7].mxu1 }
 0x105   : > { %478 = vst [vmem:[%s843_s23 + $0x20] sm:$0xff] %v462_v19  ;;  %486 = vst [vmem:[%s843_s23 + $0x60] sm:$0xff] %v470_v20  ;;  %v448_v27 = vmul.f32 2.0, %v372_v25  ;;  %v456_v28 = vmul.f32 2.0, %v412_v26 }
 0x106   : > { %v465_v29 = vsub.f32 %v449_v23, %v836_v48  ;;  %v473_v30 = vsub.f32 %v457_v24, %v836_v48 }
 0x107   : > { %v464_v31 = vsub.f32 %v448_v27, %v836_v48  ;;  %v472_v32 = vsub.f32 %v456_v28, %v836_v48 }
 0x108   : > { %481 = vst [vmem:[%s843_s23 + $0x38] sm:$0xff] %v465_v29  ;;  %489 = vst [vmem:[%s843_s23 + $0x78] sm:$0xff] %v473_v30 }
 0x109   : > { %480 = vst [vmem:[%s843_s23 + $0x30] sm:$0xff] %v464_v31  ;;  %488 = vst [vmem:[%s843_s23 + $0x70] sm:$0xff] %v472_v32 }
 0x10a PF: > { %s12_s11 = sadd.s32 1, %s755_s11   ;;  %s889_s9 = smov %s751_s10 }
 0x10b   : > { %p9_p5 = scmp.ge.s32.totalorder %s12_s11, 4   ;;  %s890_s10 = smov %s892_s12 }
 0x10d   :  { %11 = sbr.rel (!%p9_p5) target bundleno = 2 (0x2), region = 61 }

// kernel: _lambda_.14
= control target key start
LH: loop header
LB: loop body
LE: loop exit
PB: predicated region body
PF: predicated region fallthrough
CT: control target
= control target key end

     0   :  { %s2410_s12 = smov 0   ;;  %s2412_s13 = smov 0   ;;  %s3072_s0 = inlined_call_operand.vmem [shape: f32[2,8,64,128], index: 0, kind: input, shape index: {}]   ;;  %s3073_s1 = inlined_call_operand.vmem [shape: f32[64,64], index: 1, kind: input, shape index: {}]   ;;  %s3074_s2 = inlined_call_operand.vmem [shape: f32[64,1], index: 2, kind: input, shape index: {}]   ;;  %s3075_s3 = inlined_call_operand.vmem [shape: f32[2,64,128], index: 3, kind: output, shape index: {}]  }
   0x1   :  { %s2414_s14 = smov 0  }
   0x2 LB: > { %s25_s15 = sadd.s32 1, %s2383_s13  ;;  %p1729_p0 = scmp.ge.s32.totalorder %s2387_s14, 1  ;;  %s2387_s14 = sphi %s2414_s14, %s13_s14   ;;  %s2383_s13 = sphi %s2412_s13, %s3077_s13   ;;  %s2379_s12 = sphi %s2410_s12, %s3076_s12  }
   0x3   : > { %p27_p1 = scmp.ge.s32.totalorder %s25_s15, 2  ;;  %p156_p2 = scmp.lt.s32.totalorder %s2387_s14, 3 }
   0x5   : > { %s3079_s15 = smov (%p27_p1, %s25_s15), 0  ;;  %p157_p3 = pnand %p1729_p0, %p156_p2 }
   0x6   : > { %p186_p4 = scmp.lt.s32.totalorder (!%p157_p3), %s2379_s12, 1  ;;  %v2431_v0 = vld [vmem:[%s3073_s1] sm:$0xff] (!%p157_p3)  ;;  %vm290_vm0 = vcmask (!%p157_p3), 523264   ;;  %v2389_v1 = vmov (!%p157_p3), 0   ;;  %v212_v3 = vld [vmem:[%s3074_s2 + $0x10] sm:$0xff] (!%p157_p3)  ;;  %v211_v4 = vld [vmem:[%s3074_s2 + $0x8] sm:$0xff] (!%p157_p3) }
   0x7   : > { %160 = sbr.rel (%p157_p3) target bundleno = 337 (0x151), region = 32  ;;  %2002 = vmatprep.mubr.msk.f32.mxu0 (!%p157_p3), %vm290_vm0, %v2431_v0  ;;  %2030 = vmatprep.mubr.msk.f32.mxu1 (!%p157_p3), %vm290_vm0, %v2431_v0  ;;  %v210_v2 = vld [vmem:[%s3074_s2] sm:$0xff] (!%p157_p3)  ;;  %v213_v5 = vld [vmem:[%s3074_s2 + $0x18] sm:$0xff] (!%p157_p3)  ;;  %v215_v21 = vld [vmem:[%s3074_s2 + $0x28] sm:$0xff] (!%p157_p3) }
   0x8   : > { %2363 = vset.pattern.permute.xlu0 (!%p157_p3), %v2389_v1  ;;  %2364 = vset.pattern.permute.xlu1 (!%p157_p3), %v2389_v1  ;;  %v214_v9 = vld [vmem:[%s3074_s2 + $0x20] sm:$0xff] (!%p157_p3)  ;;  %v216_v26 = vld [vmem:[%s3074_s2 + $0x30] sm:$0xff] (!%p157_p3)  ;;  %v217_v38 = vld [vmem:[%s3074_s2 + $0x38] sm:$0xff] (!%p157_p3) }
   0x9   : > { %252 = vperm.xlu0 (!%p157_p3), %2363, %v210_v2   ;;  %262 = vperm.xlu1 (!%p157_p3), %2364, %v212_v3  }
   0xd   : > { %257 = vperm.xlu0 (!%p157_p3), %2363, %v211_v4   ;;  %267 = vperm.xlu1 (!%p157_p3), %2364, %v213_v5  }
   0xe   : > { %s3081_s12 = smov (!%p186_p4, %s2379_s12), 1 }
   0xf   : > { %s1856_s22 = sshll.u32 %s3081_s12, 9 }
  0x10   : > { %s2452_s27 = scalar_lea.vmem %s3072_s0, %s1856_s22 }
  0x11   : > { %v218_v6 = vld [vmem:[%s2452_s27] sm:$0xff]  ;;  %v219_v7 = vld [vmem:[%s2452_s27 + $0x8] sm:$0xff]  ;;  %v220_v14 = vld [vmem:[%s2452_s27 + $0x10] sm:$0xff]  ;;  %272 = vperm.xlu0 %2363, %v214_v9   ;;  %277 = vperm.xlu1 %2364, %v215_v21  }
  0x12   : > { %v1742_v8 = vld [vmem:[%s2452_s27 + $0x40] sm:$0xff]  ;;  %vm226_vm1 = vcmp.gt.f32.partialorder %v218_v6, 0.0  ;;  %vm227_vm2 = vcmp.gt.f32.partialorder %v219_v7, 0.0  ;;  %v234_v10 = vmul.f32 0.2, %v218_v6  ;;  %v1743_v12 = vld [vmem:[%s2452_s27 + $0x48] sm:$0xff] }
  0x13   : > { %v235_v11 = vmul.f32 0.2, %v219_v7  ;;  %vm453_vm3 = vcmp.gt.f32.partialorder %v1742_v8, 0.0  ;;  %v461_v13 = vmul.f32 0.2, %v1742_v8  ;;  %v221_v15 = vld [vmem:[%s2452_s27 + $0x18] sm:$0xff] }
  0x14   : > { %v242_v16 = vsel %vm226_vm1, %v218_v6, %v234_v10  ;;  %vm454_vm4 = vcmp.gt.f32.partialorder %v1743_v12, 0.0  ;;  %v462_v18 = vmul.f32 0.2, %v1743_v12  ;;  %v1744_v19 = vld [vmem:[%s2452_s27 + $0x50] sm:$0xff]  ;;  %v1745_v20 = vld [vmem:[%s2452_s27 + $0x58] sm:$0xff]  ;;  %vm228_vm5 = vcmp.gt.f32.partialorder %v220_v14, 0.0 }
  0x15   : > { %v243_v17 = vsel %vm227_vm2, %v219_v7, %v235_v11  ;;  %v469_v23 = vsel %vm453_vm3, %v1742_v8, %v461_v13  ;;  %vm229_vm6 = vcmp.gt.f32.partialorder %v221_v15, 0.0  ;;  %v222_v24 = vld [vmem:[%s2452_s27 + $0x20] sm:$0xff]  ;;  %v223_v25 = vld [vmem:[%s2452_s27 + $0x28] sm:$0xff]  ;;  %v236_v28 = vmul.f32 0.2, %v220_v14  ;;  %v224_v37 = vld [vmem:[%s2452_s27 + $0x30] sm:$0xff]  ;;  %282 = vperm.xlu0 %2363, %v216_v26   ;;  %287 = vperm.xlu1 %2364, %v217_v38  }
  0x16   : > { %v2210_v22 = vpack.c.bf16 %v243_v17, %v242_v16  ;;  %v470_v27 = vsel %vm454_vm4, %v1743_v12, %v462_v18  ;;  %v237_v29 = vmul.f32 0.2, %v221_v15  ;;  %vm455_vm7 = vcmp.gt.f32.partialorder %v1744_v19, 0.0  ;;  %v1746_v30 = vld [vmem:[%s2452_s27 + $0x60] sm:$0xff]  ;;  %v1747_v34 = vld [vmem:[%s2452_s27 + $0x68] sm:$0xff]  ;;  %v225_v43 = vld [vmem:[%s2452_s27 + $0x38] sm:$0xff] }
  0x17   : > { %v2226_v31 = vpack.c.bf16 %v470_v27, %v469_v23  ;;  %vm456_vm8 = vcmp.gt.f32.partialorder %v1745_v20, 0.0  ;;  %v463_v32 = vmul.f32 0.2, %v1744_v19  ;;  %v464_v33 = vmul.f32 0.2, %v1745_v20  ;;  %v1748_v46 = vld [vmem:[%s2452_s27 + $0x70] sm:$0xff] }
  0x18   : > { %2211 = vmatprep.subr.bf16.mxu0 %v2210_v22  ;;  %v244_v35 = vsel %vm228_vm5, %v220_v14, %v236_v28  ;;  %v245_v36 = vsel %vm229_vm6, %v221_v15, %v237_v29  ;;  %vm230_vm9 = vcmp.gt.f32.partialorder %v222_v24, 0.0  ;;  %vm231_vm10 = vcmp.gt.f32.partialorder %v223_v25, 0.0  ;;  %v1749_v50 = vld [vmem:[%s2452_s27 + $0x78] sm:$0xff]  ;;  %v1758_v54 = vld [vmem:[%s2452_s27 + $0x80] sm:$0xff]  ;;  %v1759_v58 = vld [vmem:[%s2452_s27 + $0x88] sm:$0xff] }
  0x19   : > { %2213 = vmatpush3.bf16.msra.mxu0 %v2210_v22  ;;  %2227 = vmatprep.subr.bf16.mxu1 %v2226_v31  ;;  %v2214_v39 = vpack.c.bf16 %v245_v36, %v244_v35  ;;  %v471_v40 = vsel %vm455_vm7, %v1744_v19, %v463_v32  ;;  %v472_v41 = vsel %vm456_vm8, %v1745_v20, %v464_v33  ;;  %v238_v42 = vmul.f32 0.2, %v222_v24  ;;  %v1774_v59 = vld [vmem:[%s2452_s27 + $0xc0] sm:$0xff]  ;;  %v1775_v63 = vld [vmem:[%s2452_s27 + $0xc8] sm:$0xff]  ;;  %v1760_v1 = vld [vmem:[%s2452_s27 + $0x90] sm:$0xff] }
  0x1a   : > { %2229 = vmatpush3.bf16.msra.mxu1 %v2226_v31  ;;  %v2230_v44 = vpack.c.bf16 %v472_v41, %v471_v40  ;;  %v239_v45 = vmul.f32 0.2, %v223_v25  ;;  %vm457_vm11 = vcmp.gt.f32.partialorder %v1746_v30, 0.0  ;;  %vm458_vm12 = vcmp.gt.f32.partialorder %v1747_v34, 0.0  ;;  %v1761_v5 = vld [vmem:[%s2452_s27 + $0x98] sm:$0xff]  ;;  %v1776_v11 = vld [vmem:[%s2452_s27 + $0xd0] sm:$0xff] }
  0x1b   : > { %2215 = vmatprep.subr.bf16.mxu0 %v2214_v39  ;;  %v246_v47 = vsel %vm230_vm9, %v222_v24, %v238_v42  ;;  %v465_v48 = vmul.f32 0.2, %v1746_v30  ;;  %v466_v49 = vmul.f32 0.2, %v1747_v34  ;;  %vm232_vm13 = vcmp.gt.f32.partialorder %v224_v37, 0.0  ;;  %v2505_v13 = vld [vmem:[%s3073_s1 + $0x8] sm:$0xff] }
  0x1c   : > { %2231 = vmatprep.subr.bf16.mxu1 %v2230_v44  ;;  %v247_v51 = vsel %vm231_vm10, %v223_v25, %v239_v45  ;;  %vm233_vm14 = vcmp.gt.f32.partialorder %v225_v43, 0.0  ;;  %v240_v52 = vmul.f32 0.2, %v224_v37  ;;  %v241_v53 = vmul.f32 0.2, %v225_v43  ;;  %v1777_v17 = vld [vmem:[%s2452_s27 + $0xd8] sm:$0xff] }
  0x1d   : > { %2217 = vmatpush3.bf16.msra.mxu0 %v2214_v39  ;;  %v2218_v55 = vpack.c.bf16 %v247_v51, %v246_v47  ;;  %v473_v56 = vsel %vm457_vm11, %v1746_v30, %v465_v48  ;;  %v474_v57 = vsel %vm458_vm12, %v1747_v34, %v466_v49  ;;  %vm459_vm15 = vcmp.gt.f32.partialorder %v1748_v46, 0.0  ;;  %v2512_v20 = vld [vmem:[%s3073_s1 + $0x10] sm:$0xff]  ;;  %v1762_v21 = vld [vmem:[%s2452_s27 + $0xa0] sm:$0xff]  ;;  %v1763_v22 = vld [vmem:[%s2452_s27 + $0xa8] sm:$0xff] }
  0x1e   : > { %2233 = vmatpush3.bf16.msra.mxu1 %v2230_v44  ;;  %v2234_v60 = vpack.c.bf16 %v474_v57, %v473_v56  ;;  %v248_v61 = vsel %vm232_vm13, %v224_v37, %v240_v52  ;;  %v249_v62 = vsel %vm233_vm14, %v225_v43, %v241_v53  ;;  %vm460_vm1 = vcmp.gt.f32.partialorder %v1749_v50, 0.0  ;;  %v1778_v26 = vld [vmem:[%s2452_s27 + $0xe0] sm:$0xff]  ;;  %v1779_v30 = vld [vmem:[%s2452_s27 + $0xe8] sm:$0xff]  ;;  %v1764_v33 = vld [vmem:[%s2452_s27 + $0xb0] sm:$0xff] }
  0x1f   : > { %2219 = vmatprep.subr.bf16.mxu0 %v2218_v55  ;;  %v2222_v2 = vpack.c.bf16 %v249_v62, %v248_v61  ;;  %v467_v3 = vmul.f32 0.2, %v1748_v46  ;;  %v468_v4 = vmul.f32 0.2, %v1749_v50  ;;  %vm623_vm2 = vcmp.gt.f32.partialorder %v1758_v54, 0.0  ;;  %v2527_v34 = vld [vmem:[%s3073_s1 + $0x18] sm:$0xff] }
  0x20   : > { %2235 = vmatprep.subr.bf16.mxu1 %v2234_v60  ;;  %vm624_vm3 = vcmp.gt.f32.partialorder %v1759_v58, 0.0  ;;  %v631_v6 = vmul.f32 0.2, %v1758_v54  ;;  %v632_v7 = vmul.f32 0.2, %v1759_v58  ;;  %vm793_vm4 = vcmp.gt.f32.partialorder %v1774_v59, 0.0 }
  0x21   : > { %2221 = vmatpush3.bf16.msra.mxu0 %v2218_v55  ;;  %v475_v8 = vsel %vm459_vm15, %v1748_v46, %v467_v3  ;;  %v476_v9 = vsel %vm460_vm1, %v1749_v50, %v468_v4  ;;  %vm794_vm5 = vcmp.gt.f32.partialorder %v1775_v63, 0.0  ;;  %v801_v10 = vmul.f32 0.2, %v1774_v59  ;;  %v1765_v39 = vld [vmem:[%s2452_s27 + $0xb8] sm:$0xff]  ;;  %v2536_v41 = vld [vmem:[%s3073_s1 + $0x20] sm:$0xff]  ;;  %v1780_v43 = vld [vmem:[%s2452_s27 + $0xf0] sm:$0xff] }
  0x22   : > { %2223 = vmatprep.subr.bf16.mxu0 %v2222_v2  ;;  %2237 = vmatpush3.bf16.msra.mxu1 %v2234_v60  ;;  %v2238_v12 = vpack.c.bf16 %v476_v9, %v475_v8  ;;  %v639_v14 = vsel %vm623_vm2, %v1758_v54, %v631_v6  ;;  %v640_v15 = vsel %vm624_vm3, %v1759_v58, %v632_v7  ;;  %v802_v16 = vmul.f32 0.2, %v1775_v63  ;;  %v1781_v47 = vld [vmem:[%s2452_s27 + $0xf8] sm:$0xff]  ;;  %v1790_v51 = vld [vmem:[%s2452_s27 + $0x100] sm:$0xff]  ;;  %v2552_v52 = vld [vmem:[%s3073_s1 + $0x28] sm:$0xff] }
  0x23   : > { %v2242_v18 = vpack.c.bf16 %v640_v15, %v639_v14  ;;  %v809_v19 = vsel %vm793_vm4, %v1774_v59, %v801_v10  ;;  %vm625_vm6 = vcmp.gt.f32.partialorder %v1760_v1, 0.0  ;;  %vm626_vm7 = vcmp.gt.f32.partialorder %v1761_v5, 0.0  ;;  %v1791_v56 = vld [vmem:[%s2452_s27 + $0x108] sm:$0xff]  ;;  %v1806_v57 = vld [vmem:[%s2452_s27 + $0x140] sm:$0xff]  ;;  %v2563_v59 = vld [vmem:[%s3073_s1 + $0x30] sm:$0xff] }
  0x24   : > { %2239 = vmatprep.subr.bf16.mxu1 %v2238_v12  ;;  %v810_v23 = vsel %vm794_vm5, %v1775_v63, %v802_v16  ;;  %v633_v24 = vmul.f32 0.2, %v1760_v1  ;;  %v634_v25 = vmul.f32 0.2, %v1761_v5  ;;  %vm795_vm8 = vcmp.gt.f32.partialorder %v1776_v11, 0.0  ;;  %v1807_v62 = vld [vmem:[%s2452_s27 + $0x148] sm:$0xff] }
  0x25   : > { %2225 = vmatpush3.bf16.msra.mxu0 %v2222_v2  ;;  %v2258_v27 = vpack.c.bf16 %v810_v23, %v809_v19  ;;  %vm796_vm9 = vcmp.gt.f32.partialorder %v1777_v17, 0.0  ;;  %v803_v28 = vmul.f32 0.2, %v1776_v11  ;;  %v804_v29 = vmul.f32 0.2, %v1777_v17  ;;  %v1792_v63 = vld [vmem:[%s2452_s27 + $0x110] sm:$0xff] }
  0x26   : > { %2243 = vmatprep.subr.bf16.mxu0 %v2242_v18  ;;  %2241 = vmatpush3.bf16.msra.mxu1 %v2238_v12  ;;  %v641_v31 = vsel %vm625_vm6, %v1760_v1, %v633_v24  ;;  %v642_v32 = vsel %vm626_vm7, %v1761_v5, %v634_v25  ;;  %vm627_vm10 = vcmp.gt.f32.partialorder %v1762_v21, 0.0  ;;  %vm628_vm11 = vcmp.gt.f32.partialorder %v1763_v22, 0.0  ;;  %v1793_v4 = vld [vmem:[%s2452_s27 + $0x118] sm:$0xff]  ;;  %v1808_v10 = vld [vmem:[%s2452_s27 + $0x150] sm:$0xff] }
  0x27   : > { %2259 = vmatprep.subr.bf16.mxu1 %v2258_v27  ;;  %v2246_v35 = vpack.c.bf16 %v642_v32, %v641_v31  ;;  %v811_v36 = vsel %vm795_vm8, %v1776_v11, %v803_v28  ;;  %v812_v37 = vsel %vm796_vm9, %v1777_v17, %v804_v29  ;;  %v635_v38 = vmul.f32 0.2, %v1762_v21  ;;  %v2584_v11 = vld [vmem:[%s3073_s1 + $0x38] sm:$0xff] }
  0x28   : > { %2003 = vmatmul.mubr.msk.f32.vlgmr.msra.gmra.mrb[0].mxu0 %vm290_vm0, %v2505_v13  ;;  %v2262_v40 = vpack.c.bf16 %v812_v37, %v811_v36  ;;  %v636_v42 = vmul.f32 0.2, %v1763_v22  ;;  %vm797_vm12 = vcmp.gt.f32.partialorder %v1778_v26, 0.0  ;;  %vm798_vm13 = vcmp.gt.f32.partialorder %v1779_v30, 0.0  ;;  %v1809_v17 = vld [vmem:[%s2452_s27 + $0x158] sm:$0xff] }
  0x29   : > { %2245 = vmatpush3.bf16.msra.mxu0 %v2242_v18  ;;  %2005 = vmatprep.mubr.msk.f32.mxu0 %vm290_vm0, %v2512_v20  ;;  %v643_v44 = vsel %vm627_vm10, %v1762_v21, %v635_v38  ;;  %v805_v45 = vmul.f32 0.2, %v1778_v26  ;;  %v806_v46 = vmul.f32 0.2, %v1779_v30  ;;  %vm629_vm14 = vcmp.gt.f32.partialorder %v1764_v33, 0.0  ;;  %v1794_v21 = vld [vmem:[%s2452_s27 + $0x120] sm:$0xff] }
  0x2a   : > { %2031 = vmatmul.mubr.msk.f32.vlgmr.msra.gmra.mrb[0].mxu1 %vm290_vm0, %v2505_v13  ;;  %2247 = vmatprep.subr.bf16.mxu0 %v2246_v35  ;;  %v644_v48 = vsel %vm628_vm11, %v1763_v22, %v636_v42  ;;  %vm630_vm15 = vcmp.gt.f32.partialorder %v1765_v39, 0.0  ;;  %v637_v49 = vmul.f32 0.2, %v1764_v33  ;;  %v638_v50 = vmul.f32 0.2, %v1765_v39  ;;  %v1795_v22 = vld [vmem:[%s2452_s27 + $0x128] sm:$0xff] }
  0x2b   : > { %2261 = vmatpush3.bf16.msra.mxu1 %v2258_v27  ;;  %2033 = vmatprep.mubr.msk.f32.mxu1 %vm290_vm0, %v2512_v20  ;;  %v2250_v53 = vpack.c.bf16 %v644_v48, %v643_v44  ;;  %v813_v54 = vsel %vm797_vm12, %v1778_v26, %v805_v45  ;;  %v814_v55 = vsel %vm798_vm13, %v1779_v30, %v806_v46  ;;  %vm799_vm1 = vcmp.gt.f32.partialorder %v1780_v43, 0.0  ;;  %v1810_v26 = vld [vmem:[%s2452_s27 + $0x160] sm:$0xff]  ;;  %v1811_v30 = vld [vmem:[%s2452_s27 + $0x168] sm:$0xff] }
  0x2c   : > { %2006 = vmatmul.mubr.msk.f32.gmra.mrb[2].mxu0 %vm290_vm0, %v2527_v34  ;;  %2263 = vmatprep.subr.bf16.mxu1 %v2262_v40  ;;  %v2266_v58 = vpack.c.bf16 %v814_v55, %v813_v54  ;;  %v645_v60 = vsel %vm629_vm14, %v1764_v33, %v637_v49  ;;  %v646_v61 = vsel %vm630_vm15, %v1765_v39, %v638_v50  ;;  %vm800_vm2 = vcmp.gt.f32.partialorder %v1781_v47, 0.0  ;;  %v1796_v33 = vld [vmem:[%s2452_s27 + $0x130] sm:$0xff]  ;;  %v1797_v39 = vld [vmem:[%s2452_s27 + $0x138] sm:$0xff] }
  0x2d   : > { %2249 = vmatpush3.bf16.msra.mxu0 %v2246_v35  ;;  %2008 = vmatprep.mubr.msk.f32.mxu0 %vm290_vm0, %v2536_v41  ;;  %v2254_v1 = vpack.c.bf16 %v646_v61, %v645_v60  ;;  %v807_v2 = vmul.f32 0.2, %v1780_v43  ;;  %v808_v3 = vmul.f32 0.2, %v1781_v47  ;;  %vm963_vm3 = vcmp.gt.f32.partialorder %v1790_v51, 0.0 }
  0x2e   : > { %2034 = vmatmul.mubr.msk.f32.gmra.mrb[2].mxu1 %vm290_vm0, %v2527_v34  ;;  %2251 = vmatprep.subr.bf16.mxu0 %v2250_v53  ;;  %vm964_vm4 = vcmp.gt.f32.partialorder %v1791_v56, 0.0  ;;  %v971_v5 = vmul.f32 0.2, %v1790_v51  ;;  %v972_v6 = vmul.f32 0.2, %v1791_v56  ;;  %vm1133_vm5 = vcmp.gt.f32.partialorder %v1806_v57, 0.0 }
  0x2f   : > { %2265 = vmatpush3.bf16.msra.mxu1 %v2262_v40  ;;  %2036 = vmatprep.mubr.msk.f32.mxu1 %vm290_vm0, %v2536_v41  ;;  %v815_v7 = vsel %vm799_vm1, %v1780_v43, %v807_v2  ;;  %v816_v8 = vsel %vm800_vm2, %v1781_v47, %v808_v3  ;;  %vm1134_vm6 = vcmp.gt.f32.partialorder %v1807_v62, 0.0  ;;  %v1141_v9 = vmul.f32 0.2, %v1806_v57  ;;  %v1812_v43 = vld [vmem:[%s2452_s27 + $0x170] sm:$0xff]  ;;  %v1813_v47 = vld [vmem:[%s2452_s27 + $0x178] sm:$0xff] }
  0x30   : > { %2009 = vmatmul.mubr.msk.f32.gmra.mrb[4].mxu0 %vm290_vm0, %v2552_v52  ;;  %2267 = vmatprep.subr.bf16.mxu1 %v2266_v58  ;;  %v2270_v12 = vpack.c.bf16 %v816_v8, %v815_v7  ;;  %v979_v14 = vsel %vm963_vm3, %v1790_v51, %v971_v5  ;;  %v980_v15 = vsel %vm964_vm4, %v1791_v56, %v972_v6  ;;  %v1142_v16 = vmul.f32 0.2, %v1807_v62  ;;  %v1822_v51 = vld [vmem:[%s2452_s27 + $0x180] sm:$0xff]  ;;  %v1823_v56 = vld [vmem:[%s2452_s27 + $0x188] sm:$0xff] }
  0x31   : > { %2253 = vmatpush3.bf16.msra.mxu0 %v2250_v53  ;;  %2011 = vmatprep.mubr.msk.f32.mxu0 %vm290_vm0, %v2563_v59  ;;  %v2274_v18 = vpack.c.bf16 %v980_v15, %v979_v14  ;;  %v1149_v19 = vsel %vm1133_vm5, %v1806_v57, %v1141_v9  ;;  %vm965_vm7 = vcmp.gt.f32.partialorder %v1792_v63, 0.0  ;;  %vm966_vm8 = vcmp.gt.f32.partialorder %v1793_v4, 0.0  ;;  %v1838_v57 = vld [vmem:[%s2452_s27 + $0x1c0] sm:$0xff]  ;;  %v1840_v15 = vld [vmem:[%s2452_s27 + $0x1d0] sm:$0xff] }
  0x32   : > { %2037 = vmatmul.mubr.msk.f32.gmra.mrb[4].mxu1 %vm290_vm0, %v2552_v52  ;;  %2255 = vmatprep.subr.bf16.mxu0 %v2254_v1  ;;  %v1150_v23 = vsel %vm1134_vm6, %v1807_v62, %v1142_v16  ;;  %v973_v24 = vmul.f32 0.2, %v1792_v63  ;;  %v974_v25 = vmul.f32 0.2, %v1793_v4  ;;  %vm1135_vm9 = vcmp.gt.f32.partialorder %v1808_v10, 0.0  ;;  %v1839_v62 = vld [vmem:[%s2452_s27 + $0x1c8] sm:$0xff] }
  0x33   : > { %2269 = vmatpush3.bf16.msra.mxu1 %v2266_v58  ;;  %2039 = vmatprep.mubr.msk.f32.mxu1 %vm290_vm0, %v2563_v59  ;;  %v2290_v27 = vpack.c.bf16 %v1150_v23, %v1149_v19  ;;  %vm1136_vm10 = vcmp.gt.f32.partialorder %v1809_v17, 0.0  ;;  %v1143_v28 = vmul.f32 0.2, %v1808_v10  ;;  %v1144_v29 = vmul.f32 0.2, %v1809_v17  ;;  %v1841_v16 = vld [vmem:[%s2452_s27 + $0x1d8] sm:$0xff] }
  0x34   : > { %2012 = vmatmul.mubr.msk.f32.gmra.mrb[6].mxu0 %vm290_vm0, %v2584_v11  ;;  %2271 = vmatprep.subr.bf16.mxu1 %v2270_v12  ;;  %v981_v31 = vsel %vm965_vm7, %v1792_v63, %v973_v24  ;;  %v982_v32 = vsel %vm966_vm8, %v1793_v4, %v974_v25  ;;  %vm967_vm11 = vcmp.gt.f32.partialorder %v1794_v21, 0.0  ;;  %vm968_vm12 = vcmp.gt.f32.partialorder %v1795_v22, 0.0  ;;  %v1824_v63 = vld [vmem:[%s2452_s27 + $0x190] sm:$0xff]  ;;  %v1825_v4 = vld [vmem:[%s2452_s27 + $0x198] sm:$0xff]  ;;  %v1826_v19 = vld [vmem:[%s2452_s27 + $0x1a0] sm:$0xff] }
  0x35   : > { %2257 = vmatpush3.bf16.msra.mxu0 %v2254_v1  ;;  %2058 = vmatprep.mubr.msk.f32.mxu0 %vm290_vm0, %v2431_v0  ;;  %v2278_v35 = vpack.c.bf16 %v982_v32, %v981_v31  ;;  %v1151_v36 = vsel %vm1135_vm9, %v1808_v10, %v1143_v28  ;;  %v1152_v37 = vsel %vm1136_vm10, %v1809_v17, %v1144_v29  ;;  %v975_v38 = vmul.f32 0.2, %v1794_v21  ;;  %v1827_v25 = vld [vmem:[%s2452_s27 + $0x1a8] sm:$0xff] }
  0x36   : > { %2040 = vmatmul.mubr.msk.f32.gmra.mrb[6].mxu1 %vm290_vm0, %v2584_v11  ;;  %2275 = vmatprep.subr.bf16.mxu0 %v2274_v18  ;;  %v2294_v40 = vpack.c.bf16 %v1152_v37, %v1151_v36  ;;  %v976_v42 = vmul.f32 0.2, %v1795_v22  ;;  %vm1137_vm13 = vcmp.gt.f32.partialorder %v1810_v26, 0.0  ;;  %vm1138_vm14 = vcmp.gt.f32.partialorder %v1811_v30, 0.0  ;;  %v1843_v31 = vld [vmem:[%s2452_s27 + $0x1e8] sm:$0xff]  ;;  %v1828_v36 = vld [vmem:[%s2452_s27 + $0x1b0] sm:$0xff] }
  0x37   : > { %2273 = vmatpush3.bf16.msra.mxu1 %v2270_v12  ;;  %2086 = vmatprep.mubr.msk.f32.mxu1 %vm290_vm0, %v2431_v0  ;;  %v983_v44 = vsel %vm967_vm11, %v1794_v21, %v975_v38  ;;  %v1145_v45 = vmul.f32 0.2, %v1810_v26  ;;  %v1146_v46 = vmul.f32 0.2, %v1811_v30  ;;  %vm969_vm15 = vcmp.gt.f32.partialorder %v1796_v33, 0.0  ;;  %v1829_v37 = vld [vmem:[%s2452_s27 + $0x1b8] sm:$0xff] }
  0x38   : > { %2059 = vmatmul.mubr.msk.f32.vlgmr.msra.gmra.mrb[8].mxu0 %vm290_vm0, %v2505_v13  ;;  %2291 = vmatprep.subr.bf16.mxu1 %v2290_v27  ;;  %v984_v48 = vsel %vm968_vm12, %v1795_v22, %v976_v42  ;;  %vm970_vm1 = vcmp.gt.f32.partialorder %v1797_v39, 0.0  ;;  %v977_v49 = vmul.f32 0.2, %v1796_v33  ;;  %v978_v50 = vmul.f32 0.2, %v1797_v39 }
  0x39   : > { %2277 = vmatpush3.bf16.msra.mxu0 %v2274_v18  ;;  %2061 = vmatprep.mubr.msk.f32.mxu0 %vm290_vm0, %v2512_v20  ;;  %v2282_v53 = vpack.c.bf16 %v984_v48, %v983_v44  ;;  %v1153_v54 = vsel %vm1137_vm13, %v1810_v26, %v1145_v45  ;;  %v1154_v55 = vsel %vm1138_vm14, %v1811_v30, %v1146_v46  ;;  %vm1139_vm2 = vcmp.gt.f32.partialorder %v1812_v43, 0.0  ;;  %v1842_v26 = vld [vmem:[%s2452_s27 + $0x1e0] sm:$0xff]  ;;  %v1844_v48 = vld [vmem:[%s2452_s27 + $0x1f0] sm:$0xff] }
  0x3a   : > { %2087 = vmatmul.mubr.msk.f32.vlgmr.msra.gmra.mrb[8].mxu1 %vm290_vm0, %v2505_v13  ;;  %2279 = vmatprep.subr.bf16.mxu0 %v2278_v35  ;;  %v2298_v58 = vpack.c.bf16 %v1154_v55, %v1153_v54  ;;  %v985_v60 = vsel %vm969_vm15, %v1796_v33, %v977_v49  ;;  %v986_v61 = vsel %vm970_vm1, %v1797_v39, %v978_v50  ;;  %vm1140_vm3 = vcmp.gt.f32.partialorder %v1813_v47, 0.0  ;;  %v1845_v49 = vld [vmem:[%s2452_s27 + $0x1f8] sm:$0xff]  ;;  %s1857_s27 = sshll.u32 %s3081_s12, 6 }
  0x3b   : > { %2293 = vmatpush3.bf16.msra.mxu1 %v2290_v27  ;;  %2089 = vmatprep.mubr.msk.f32.mxu1 %vm290_vm0, %v2512_v20  ;;  %v2286_v1 = vpack.c.bf16 %v986_v61, %v985_v60  ;;  %v1147_v2 = vmul.f32 0.2, %v1812_v43  ;;  %v1148_v3 = vmul.f32 0.2, %v1813_v47  ;;  %vm1303_vm4 = vcmp.gt.f32.partialorder %v1822_v51, 0.0  ;;  %s3016_s4 = scalar_lea.vmem %s3075_s3, %s1857_s27 }
  0x3c   : > { %2062 = vmatmul.mubr.msk.f32.gmra.mrb[10].mxu0 %vm290_vm0, %v2527_v34  ;;  %2295 = vmatprep.subr.bf16.mxu1 %v2294_v40  ;;  %vm1304_vm5 = vcmp.gt.f32.partialorder %v1823_v56, 0.0  ;;  %v1311_v5 = vmul.f32 0.2, %v1822_v51  ;;  %v1312_v6 = vmul.f32 0.2, %v1823_v56  ;;  %vm1473_vm6 = vcmp.gt.f32.partialorder %v1838_v57, 0.0 }
  0x3d   : > { %2281 = vmatpush3.bf16.msra.mxu0 %v2278_v35  ;;  %2064 = vmatprep.mubr.msk.f32.mxu0 %vm290_vm0, %v2536_v41  ;;  %v1155_v7 = vsel %vm1139_vm2, %v1812_v43, %v1147_v2  ;;  %v1156_v8 = vsel %vm1140_vm3, %v1813_v47, %v1148_v3  ;;  %vm1474_vm7 = vcmp.gt.f32.partialorder %v1839_v62, 0.0  ;;  %v1481_v9 = vmul.f32 0.2, %v1838_v57 }
  0x3e   : > { %2090 = vmatmul.mubr.msk.f32.gmra.mrb[10].mxu1 %vm290_vm0, %v2527_v34  ;;  %2283 = vmatprep.subr.bf16.mxu0 %v2282_v53  ;;  %v1319_v10 = vsel %vm1303_vm4, %v1822_v51, %v1311_v5  ;;  %v1320_v12 = vsel %vm1304_vm5, %v1823_v56, %v1312_v6  ;;  %v1482_v14 = vmul.f32 0.2, %v1839_v62  ;;  %v2302_v17 = vpack.c.bf16 %v1156_v8, %v1155_v7 }
  0x3f   : > { %2297 = vmatpush3.bf16.msra.mxu1 %v2294_v40  ;;  %2092 = vmatprep.mubr.msk.f32.mxu1 %vm290_vm0, %v2536_v41  ;;  %v2306_v18 = vpack.c.bf16 %v1320_v12, %v1319_v10  ;;  %vm1305_vm8 = vcmp.gt.f32.partialorder %v1824_v63, 0.0  ;;  %vm1306_vm9 = vcmp.gt.f32.partialorder %v1825_v4, 0.0  ;;  %v1489_v21 = vsel %vm1473_vm6, %v1838_v57, %v1481_v9 }
  0x40   : > { %2065 = vmatmul.mubr.msk.f32.gmra.mrb[12].mxu0 %vm290_vm0, %v2552_v52  ;;  %2299 = vmatprep.subr.bf16.mxu1 %v2298_v58  ;;  %v1490_v22 = vsel %vm1474_vm7, %v1839_v62, %v1482_v14  ;;  %v1313_v23 = vmul.f32 0.2, %v1824_v63  ;;  %v1314_v24 = vmul.f32 0.2, %v1825_v4  ;;  %vm1475_vm10 = vcmp.gt.f32.partialorder %v1840_v15, 0.0 }
  0x41   : > { %2285 = vmatpush3.bf16.msra.mxu0 %v2282_v53  ;;  %2067 = vmatprep.mubr.msk.f32.mxu0 %vm290_vm0, %v2563_v59  ;;  %vm1476_vm11 = vcmp.gt.f32.partialorder %v1841_v16, 0.0  ;;  %v1483_v27 = vmul.f32 0.2, %v1840_v15  ;;  %v1484_v28 = vmul.f32 0.2, %v1841_v16  ;;  %vm1307_vm12 = vcmp.gt.f32.partialorder %v1826_v19, 0.0 }
  0x42   : > { %2093 = vmatmul.mubr.msk.f32.gmra.mrb[12].mxu1 %vm290_vm0, %v2552_v52  ;;  %2287 = vmatprep.subr.bf16.mxu0 %v2286_v1  ;;  %v1321_v29 = vsel %vm1305_vm8, %v1824_v63, %v1313_v23  ;;  %v1322_v30 = vsel %vm1306_vm9, %v1825_v4, %v1314_v24  ;;  %v2322_v32 = vpack.c.bf16 %v1490_v22, %v1489_v21  ;;  %vm1308_vm13 = vcmp.gt.f32.partialorder %v1827_v25, 0.0 }
  0x43   : > { %2301 = vmatpush3.bf16.msra.mxu1 %v2298_v58  ;;  %2095 = vmatprep.mubr.msk.f32.mxu1 %vm290_vm0, %v2563_v59  ;;  %v2310_v33 = vpack.c.bf16 %v1322_v30, %v1321_v29  ;;  %v1315_v35 = vmul.f32 0.2, %v1826_v19  ;;  %v1491_v38 = vsel %vm1475_vm10, %v1840_v15, %v1483_v27  ;;  %v1492_v39 = vsel %vm1476_vm11, %v1841_v16, %v1484_v28 }
  0x44   : > { %2068 = vmatmul.mubr.msk.f32.gmra.mrb[14].mxu0 %vm290_vm0, %v2584_v11  ;;  %2303 = vmatprep.subr.bf16.mxu1 %v2302_v17  ;;  %v1316_v40 = vmul.f32 0.2, %v1827_v25  ;;  %vm1477_vm14 = vcmp.gt.f32.partialorder %v1842_v26, 0.0  ;;  %vm1478_vm15 = vcmp.gt.f32.partialorder %v1843_v31, 0.0  ;;  %v1485_v43 = vmul.f32 0.2, %v1842_v26 }
  0x45   : > { %2289 = vmatpush3.bf16.msra.mxu0 %v2286_v1  ;;  %2114 = vmatprep.mubr.msk.f32.mxu0 %vm290_vm0, %v2431_v0  ;;  %v1323_v42 = vsel %vm1307_vm12, %v1826_v19, %v1315_v35  ;;  %v1486_v44 = vmul.f32 0.2, %v1843_v31  ;;  %v1317_v46 = vmul.f32 0.2, %v1828_v36  ;;  %v1318_v47 = vmul.f32 0.2, %v1829_v37 }
  0x46   : > { %2096 = vmatmul.mubr.msk.f32.gmra.mrb[14].mxu1 %vm290_vm0, %v2584_v11  ;;  %2307 = vmatprep.subr.bf16.mxu0 %v2306_v18  ;;  %v1324_v45 = vsel %vm1308_vm13, %v1827_v25, %v1316_v40  ;;  %v2326_v50 = vpack.c.bf16 %v1492_v39, %v1491_v38  ;;  %vm1309_vm1 = vcmp.gt.f32.partialorder %v1828_v36, 0.0  ;;  %vm1310_vm2 = vcmp.gt.f32.partialorder %v1829_v37, 0.0 }
  0x47   : > { %2305 = vmatpush3.bf16.msra.mxu1 %v2302_v17  ;;  %2142 = vmatprep.mubr.msk.f32.mxu1 %vm290_vm0, %v2431_v0  ;;  %v2314_v51 = vpack.c.bf16 %v1324_v45, %v1323_v42  ;;  %v1493_v53 = vsel %vm1477_vm14, %v1842_v26, %v1485_v43  ;;  %v1494_v54 = vsel %vm1478_vm15, %v1843_v31, %v1486_v44  ;;  %vm1479_vm3 = vcmp.gt.f32.partialorder %v1844_v48, 0.0 }
  0x48   : > { %2115 = vmatmul.mubr.msk.f32.vlgmr.msra.gmra.mrb[16].mxu0 %vm290_vm0, %v2505_v13  ;;  %2323 = vmatprep.subr.bf16.mxu1 %v2322_v32  ;;  %vm1480_vm4 = vcmp.gt.f32.partialorder %v1845_v49, 0.0  ;;  %v1487_v55 = vmul.f32 0.2, %v1844_v48  ;;  %v1488_v56 = vmul.f32 0.2, %v1845_v49  ;;  %v1325_v57 = vsel %vm1309_vm1, %v1828_v36, %v1317_v46 }
  0x49   : > { %2309 = vmatpush3.bf16.msra.mxu0 %v2306_v18  ;;  %2117 = vmatprep.mubr.msk.f32.mxu0 %vm290_vm0, %v2512_v20  ;;  %v1326_v58 = vsel %vm1310_vm2, %v1829_v37, %v1318_v47  ;;  %v2330_v60 = vpack.c.bf16 %v1494_v54, %v1493_v53 }
  0x4a   : > { %2143 = vmatmul.mubr.msk.f32.vlgmr.msra.gmra.mrb[16].mxu1 %vm290_vm0, %v2505_v13  ;;  %2311 = vmatprep.subr.bf16.mxu0 %v2310_v33  ;;  %v1495_v61 = vsel %vm1479_vm3, %v1844_v48, %v1487_v55  ;;  %v1496_v62 = vsel %vm1480_vm4, %v1845_v49, %v1488_v56  ;;  %v2318_v63 = vpack.c.bf16 %v1326_v58, %v1325_v57 }
  0x4b   : > { %2325 = vmatpush3.bf16.msra.mxu1 %v2322_v32  ;;  %2145 = vmatprep.mubr.msk.f32.mxu1 %vm290_vm0, %v2512_v20  ;;  %v2334_v1 = vpack.c.bf16 %v1496_v62, %v1495_v61 }
  0x4c   : > { %2118 = vmatmul.mubr.msk.f32.gmra.mrb[18].mxu0 %vm290_vm0, %v2527_v34  ;;  %2327 = vmatprep.subr.bf16.mxu1 %v2326_v50 }
  0x4d   : > { %2313 = vmatpush3.bf16.msra.mxu0 %v2310_v33  ;;  %2120 = vmatprep.mubr.msk.f32.mxu0 %vm290_vm0, %v2536_v41 }
  0x4e   : > { %2146 = vmatmul.mubr.msk.f32.gmra.mrb[18].mxu1 %vm290_vm0, %v2527_v34  ;;  %2315 = vmatprep.subr.bf16.mxu0 %v2314_v51 }
  0x4f   : > { %2329 = vmatpush3.bf16.msra.mxu1 %v2326_v50  ;;  %2148 = vmatprep.mubr.msk.f32.mxu1 %vm290_vm0, %v2536_v41 }
  0x50   : > { %2121 = vmatmul.mubr.msk.f32.gmra.mrb[20].mxu0 %vm290_vm0, %v2552_v52  ;;  %2331 = vmatprep.subr.bf16.mxu1 %v2330_v60 }
  0x51   : > { %2317 = vmatpush3.bf16.msra.mxu0 %v2314_v51  ;;  %2123 = vmatprep.mubr.msk.f32.mxu0 %vm290_vm0, %v2563_v59 }
  0x52   : > { %2149 = vmatmul.mubr.msk.f32.gmra.mrb[20].mxu1 %vm290_vm0, %v2552_v52  ;;  %2319 = vmatprep.subr.bf16.mxu0 %v2318_v63 }
  0x53   : > { %2333 = vmatpush3.bf16.msra.mxu1 %v2330_v60  ;;  %2151 = vmatprep.mubr.msk.f32.mxu1 %vm290_vm0, %v2563_v59 }
  0x54   : > { %2124 = vmatmul.mubr.msk.f32.gmra.mrb[22].mxu0 %vm290_vm0, %v2584_v11  ;;  %2335 = vmatprep.subr.bf16.mxu1 %v2334_v1 }
  0x55   : > { %2321 = vmatpush3.bf16.msra.mxu0 %v2318_v63  ;;  %2170 = vmatprep.mubr.msk.f32.mxu0 %vm290_vm0, %v2431_v0 }
  0x56   : > { %2152 = vmatmul.mubr.msk.f32.gmra.mrb[22].mxu1 %vm290_vm0, %v2584_v11 }
  0x57   : > { %2337 = vmatpush3.bf16.msra.mxu1 %v2334_v1  ;;  %2198 = vmatprep.mubr.msk.f32.mxu1 %vm290_vm0, %v2431_v0 }
  0x58   : > { %2171 = vmatmul.mubr.msk.f32.vlgmr.msra.gmra.mrb[24].mxu0 %vm290_vm0, %v2505_v13 }
  0x59   : > { %2173 = vmatprep.mubr.msk.f32.mxu0 %vm290_vm0, %v2512_v20 }
  0x5a   : > { %2199 = vmatmul.mubr.msk.f32.vlgmr.msra.gmra.mrb[24].mxu1 %vm290_vm0, %v2505_v13 }
  0x5b   : > { %2201 = vmatprep.mubr.msk.f32.mxu1 %vm290_vm0, %v2512_v20 }
  0x5c   : > { %2174 = vmatmul.mubr.msk.f32.gmra.mrb[26].mxu0 %vm290_vm0, %v2527_v34 }
  0x5d   : > { %2176 = vmatprep.mubr.msk.f32.mxu0 %vm290_vm0, %v2536_v41 }
  0x5e   : > { %2202 = vmatmul.mubr.msk.f32.gmra.mrb[26].mxu1 %vm290_vm0, %v2527_v34 }
  0x5f   : > { %2204 = vmatprep.mubr.msk.f32.mxu1 %vm290_vm0, %v2536_v41 }
  0x60   : > { %2177 = vmatmul.mubr.msk.f32.gmra.mrb[28].mxu0 %vm290_vm0, %v2552_v52 }
  0x61   : > { %2179 = vmatprep.mubr.msk.f32.mxu0 %vm290_vm0, %v2563_v59 }
  0x62   : > { %2205 = vmatmul.mubr.msk.f32.gmra.mrb[28].mxu1 %vm290_vm0, %v2552_v52 }
  0x63   : > { %2207 = vmatprep.mubr.msk.f32.mxu1 %vm290_vm0, %v2563_v59 }
  0x64   : > { %2180 = vmatmul.mubr.msk.f32.gmra.mrb[30].mxu0 %vm290_vm0, %v2584_v11 }
  0x66   : > { %2208 = vmatmul.mubr.msk.f32.gmra.mrb[30].mxu1 %vm290_vm0, %v2584_v11 }
  0x88   : > { %v2741_v0 = vpop.permute.xlu0 %252  ;;  %v2743_v13 = vpop.permute.xlu1 %262 }
  0x8c   : > { %v2745_v20 = vpop.permute.xlu0 %257  ;;  %v2747_v34 = vpop.permute.xlu1 %267 }
  0x90   : > { %v2756_v15 = vpop.permute.xlu1 %277  ;;  %v2764_v25 = vpop.permute.xlu0 %272 }
  0x94   : > { %v2782_v44 = vpop.permute.xlu1 %287  ;;  %v2797_v62 = vpop.permute.xlu0 %282 }
  0xfb   : > { %v2004_v41 = vpop.f32.mrb[0].mxu0 }
  0xfc   : > { %v387_v52 = vadd.f32 %v2004_v41, %v2745_v20  ;;  %v381_v2 = vpop.f32.mrb[1].mxu0 }
  0xfd   : > { %v2032_v3 = vpop.f32.mrb[0].mxu1  ;;  %v382_v59 = vadd.f32 %v381_v2, %v2741_v0 }
  0xfe   : > { %vm421_vm5 = vcmp.gt.f32.partialorder %v387_v52, 0.0  ;;  %v429_v4 = vmul.f32 0.2, %v387_v52  ;;  %v549_v5 = vadd.f32 %v2032_v3, %v2745_v20  ;;  %v543_v11 = vpop.f32.mrb[1].mxu1 }
  0xff   : > { %vm420_vm0 = vcmp.gt.f32.partialorder %v382_v59, 0.0  ;;  %v428_v6 = vmul.f32 0.2, %v382_v59  ;;  %v544_v7 = vadd.f32 %v543_v11, %v2741_v0  ;;  %v2007_v8 = vpop.f32.mrb[2].mxu0 }
 0x100   : > { %v2753_v9 = vsel %vm421_vm5, %v387_v52, %v429_v4  ;;  %vm583_vm6 = vcmp.gt.f32.partialorder %v549_v5, 0.0  ;;  %v591_v10 = vmul.f32 0.2, %v549_v5  ;;  %v397_v12 = vadd.f32 %v2007_v8, %v2747_v34  ;;  %v391_v14 = vpop.f32.mrb[3].mxu0 }
 0x101   : > { %v2758_v16 = vsel %vm420_vm0, %v382_v59, %v428_v6  ;;  %vm582_vm7 = vcmp.gt.f32.partialorder %v544_v7, 0.0  ;;  %v590_v17 = vmul.f32 0.2, %v544_v7  ;;  %v2035_v18 = vpop.f32.mrb[2].mxu1  ;;  %v392_v19 = vadd.f32 %v391_v14, %v2743_v13 }
 0x102   : > { %v2761_v21 = vsel %vm583_vm6, %v549_v5, %v591_v10  ;;  %vm423_vm8 = vcmp.gt.f32.partialorder %v397_v12, 0.0  ;;  %v431_v22 = vmul.f32 0.2, %v397_v12  ;;  %v559_v23 = vadd.f32 %v2035_v18, %v2747_v34  ;;  %v553_v24 = vpop.f32.mrb[3].mxu1 }
 0x103   : > { %v607_v26 = vmax.f32 %v2753_v9, %v2761_v21  ;;  %v2768_v27 = vsel %vm582_vm7, %v544_v7, %v590_v17  ;;  %vm422_vm9 = vcmp.gt.f32.partialorder %v392_v19, 0.0  ;;  %v430_v28 = vmul.f32 0.2, %v392_v19  ;;  %v2010_v29 = vpop.f32.mrb[4].mxu0 }
 0x104   : > { %v606_v30 = vmax.f32 %v2758_v16, %v2768_v27  ;;  %v2772_v31 = vsel %vm423_vm8, %v397_v12, %v431_v22  ;;  %vm585_vm10 = vcmp.gt.f32.partialorder %v559_v23, 0.0  ;;  %v593_v32 = vmul.f32 0.2, %v559_v23  ;;  %v401_v33 = vpop.f32.mrb[5].mxu0 }
 0x105   : > { %v554_v35 = vadd.f32 %v553_v24, %v2743_v13  ;;  %v407_v36 = vadd.f32 %v2010_v29, %v2756_v15  ;;  %v2038_v37 = vpop.f32.mrb[4].mxu1  ;;  %v402_v38 = vadd.f32 %v401_v33, %v2764_v25  ;;  %v2779_v40 = vsel %vm422_vm9, %v392_v19, %v430_v28 }
 0x106   : > { %v2777_v39 = vsel %vm585_vm10, %v559_v23, %v593_v32  ;;  %v569_v42 = vadd.f32 %v2038_v37, %v2756_v15  ;;  %v563_v43 = vpop.f32.mrb[5].mxu1 }
 0x107   : > { %v609_v45 = vmax.f32 %v2772_v31, %v2777_v39  ;;  %vm584_vm11 = vcmp.gt.f32.partialorder %v554_v35, 0.0  ;;  %v592_v46 = vmul.f32 0.2, %v554_v35  ;;  %vm425_vm12 = vcmp.gt.f32.partialorder %v407_v36, 0.0  ;;  %v2013_v47 = vpop.f32.mrb[6].mxu0 }
 0x108   : > { %v433_v48 = vmul.f32 0.2, %v407_v36  ;;  %vm587_vm13 = vcmp.gt.f32.partialorder %v569_v42, 0.0  ;;  %v595_v49 = vmul.f32 0.2, %v569_v42  ;;  %vm424_vm14 = vcmp.gt.f32.partialorder %v402_v38, 0.0 }
 0x109   : > { %v2786_v50 = vsel %vm584_vm11, %v554_v35, %v592_v46  ;;  %v432_v51 = vmul.f32 0.2, %v402_v38  ;;  %v564_v53 = vadd.f32 %v563_v43, %v2764_v25  ;;  %v417_v54 = vadd.f32 %v2013_v47, %v2782_v44  ;;  %v2041_v55 = vpop.f32.mrb[6].mxu1  ;;  %v411_v56 = vpop.f32.mrb[7].mxu0 }
 0x10a   : > { %v608_v57 = vmax.f32 %v2779_v40, %v2786_v50  ;;  %v2792_v58 = vsel %vm425_vm12, %v407_v36, %v433_v48  ;;  %v2794_v60 = vsel %vm587_vm13, %v569_v42, %v595_v49  ;;  %v579_v61 = vadd.f32 %v2041_v55, %v2782_v44  ;;  %v573_v63 = vpop.f32.mrb[7].mxu1 }
 0x10b   : > { %v611_v1 = vmax.f32 %v2792_v58, %v2794_v60  ;;  %v2801_v41 = vsel %vm424_vm14, %v402_v38, %v432_v51  ;;  %vm586_vm15 = vcmp.gt.f32.partialorder %v564_v53, 0.0  ;;  %v594_v52 = vmul.f32 0.2, %v564_v53  ;;  %v2060_v2 = vpop.f32.mrb[8].mxu0 }
 0x10c   : > { %vm427_vm1 = vcmp.gt.f32.partialorder %v417_v54, 0.0  ;;  %v435_v3 = vmul.f32 0.2, %v417_v54  ;;  %vm589_vm2 = vcmp.gt.f32.partialorder %v579_v61, 0.0  ;;  %v597_v59 = vmul.f32 0.2, %v579_v61 }
 0x10d   : > { %v2803_v4 = vsel %vm586_vm15, %v564_v53, %v594_v52  ;;  %v412_v5 = vadd.f32 %v411_v56, %v2797_v62  ;;  %v574_v11 = vadd.f32 %v573_v63, %v2797_v62  ;;  %v719_v6 = vadd.f32 %v2060_v2, %v2745_v20  ;;  %v2088_v7 = vpop.f32.mrb[8].mxu1  ;;  %v713_v8 = vpop.f32.mrb[9].mxu0 }
 0x10e   : > { %v610_v10 = vmax.f32 %v2801_v41, %v2803_v4  ;;  %v2810_v12 = vsel %vm427_vm1, %v417_v54, %v435_v3  ;;  %v2812_v14 = vsel %vm589_vm2, %v579_v61, %v597_v59  ;;  %v889_v17 = vadd.f32 %v2088_v7, %v2745_v20  ;;  %v883_v18 = vpop.f32.mrb[9].mxu1 }
 0x10f   : > { %v613_v19 = vmax.f32 %v2810_v12, %v2812_v14  ;;  %vm426_vm3 = vcmp.gt.f32.partialorder %v412_v5, 0.0  ;;  %v434_v22 = vmul.f32 0.2, %v412_v5  ;;  %vm588_vm4 = vcmp.gt.f32.partialorder %v574_v11, 0.0  ;;  %v2063_v23 = vpop.f32.mrb[10].mxu0 }
 0x110   : > { %v596_v24 = vmul.f32 0.2, %v574_v11  ;;  %vm753_vm5 = vcmp.gt.f32.partialorder %v719_v6, 0.0  ;;  %v761_v28 = vmul.f32 0.2, %v719_v6  ;;  %vm923_vm0 = vcmp.gt.f32.partialorder %v889_v17, 0.0 }
 0x111   : > { %v2817_v29 = vsel %vm426_vm3, %v412_v5, %v434_v22  ;;  %v931_v32 = vmul.f32 0.2, %v889_v17  ;;  %v714_v33 = vadd.f32 %v713_v8, %v2741_v0  ;;  %v884_v35 = vadd.f32 %v883_v18, %v2741_v0  ;;  %v2091_v36 = vpop.f32.mrb[10].mxu1  ;;  %v723_v37 = vpop.f32.mrb[11].mxu0 }
 0x112   : > { %v2821_v38 = vsel %vm588_vm4, %v574_v11, %v596_v24  ;;  %v769_v42 = vsel %vm753_vm5, %v719_v6, %v761_v28  ;;  %v729_v43 = vadd.f32 %v2063_v23, %v2747_v34  ;;  %v899_v46 = vadd.f32 %v2091_v36, %v2747_v34  ;;  %v893_v47 = vpop.f32.mrb[11].mxu1 }
 0x113   : > { %v612_v48 = vmax.f32 %v2817_v29, %v2821_v38  ;;  %v2830_v49 = vmax.f32 %v607_v26, %v769_v42  ;;  %v2832_v51 = vsel %vm923_vm0, %v889_v17, %v931_v32  ;;  %vm752_vm6 = vcmp.gt.f32.partialorder %v714_v33, 0.0  ;;  %v2066_v53 = vpop.f32.mrb[12].mxu0 }
 0x114   : > { %v760_v54 = vmul.f32 0.2, %v714_v33  ;;  %vm922_vm7 = vcmp.gt.f32.partialorder %v884_v35, 0.0  ;;  %v930_v55 = vmul.f32 0.2, %v884_v35  ;;  %vm755_vm8 = vcmp.gt.f32.partialorder %v729_v43, 0.0 }
 0x115   : > { %v947_v56 = vmax.f32 %v2830_v49, %v2832_v51  ;;  %v763_v61 = vmul.f32 0.2, %v729_v43  ;;  %vm925_vm9 = vcmp.gt.f32.partialorder %v899_v46, 0.0  ;;  %v933_v63 = vmul.f32 0.2, %v899_v46  ;;  %v2094_v52 = vpop.f32.mrb[12].mxu1 }
 0x116   : > { %v768_v2 = vsel %vm752_vm6, %v714_v33, %v760_v54  ;;  %v2836_v3 = vsel %vm922_vm7, %v884_v35, %v930_v55  ;;  %v724_v9 = vadd.f32 %v723_v37, %v2743_v13  ;;  %v894_v21 = vadd.f32 %v893_v47, %v2743_v13  ;;  %v733_v26 = vpop.f32.mrb[13].mxu0  ;;  %v903_v59 = vpop.f32.mrb[13].mxu1 }
 0x117   : > { %v2843_v5 = vmax.f32 %v606_v30, %v768_v2  ;;  %v771_v11 = vsel %vm755_vm8, %v729_v43, %v763_v61  ;;  %v2845_v6 = vsel %vm925_vm9, %v899_v46, %v933_v63  ;;  %v739_v7 = vadd.f32 %v2066_v53, %v2756_v15  ;;  %v2069_v8 = vpop.f32.mrb[14].mxu0 }
 0x118   : > { %v2851_v17 = vmax.f32 %v609_v45, %v771_v11  ;;  %vm754_vm10 = vcmp.gt.f32.partialorder %v724_v9, 0.0  ;;  %v762_v18 = vmul.f32 0.2, %v724_v9  ;;  %vm924_vm11 = vcmp.gt.f32.partialorder %v894_v21, 0.0  ;;  %v743_v22 = vpop.f32.mrb[15].mxu0 }
 0x119   : > { %v946_v16 = vmax.f32 %v2843_v5, %v2836_v3  ;;  %v932_v27 = vmul.f32 0.2, %v894_v21  ;;  %vm757_vm12 = vcmp.gt.f32.partialorder %v739_v7, 0.0  ;;  %v765_v30 = vmul.f32 0.2, %v739_v7  ;;  %v2097_v23 = vpop.f32.mrb[14].mxu1 }
 0x11a   : > { %v949_v24 = vmax.f32 %v2851_v17, %v2845_v6  ;;  %v770_v28 = vsel %vm754_vm10, %v724_v9, %v762_v18  ;;  %v909_v32 = vadd.f32 %v2094_v52, %v2756_v15  ;;  %v734_v31 = vadd.f32 %v733_v26, %v2764_v25  ;;  %v913_v39 = vpop.f32.mrb[15].mxu1 }
 0x11b   : > { %v2862_v45 = vmax.f32 %v608_v57, %v770_v28  ;;  %v2864_v33 = vsel %vm924_vm11, %v894_v21, %v932_v27  ;;  %v773_v35 = vsel %vm757_vm12, %v739_v7, %v765_v30  ;;  %v904_v36 = vadd.f32 %v903_v59, %v2764_v25  ;;  %v2116_v37 = vpop.f32.mrb[16].mxu0 }
 0x11c   : > { %v2870_v42 = vmax.f32 %v611_v1, %v773_v35  ;;  %vm927_vm13 = vcmp.gt.f32.partialorder %v909_v32, 0.0  ;;  %v935_v43 = vmul.f32 0.2, %v909_v32  ;;  %vm756_vm14 = vcmp.gt.f32.partialorder %v734_v31, 0.0  ;;  %v1053_v46 = vpop.f32.mrb[17].mxu0 }
 0x11d   : > { %v948_v40 = vmax.f32 %v2862_v45, %v2864_v33  ;;  %v764_v50 = vmul.f32 0.2, %v734_v31  ;;  %vm926_vm15 = vcmp.gt.f32.partialorder %v904_v36, 0.0  ;;  %v934_v57 = vmul.f32 0.2, %v904_v36  ;;  %v2144_v47 = vpop.f32.mrb[16].mxu1 }
 0x11e   : > { %v2874_v53 = vsel %vm927_vm13, %v909_v32, %v935_v43  ;;  %v749_v54 = vadd.f32 %v2069_v8, %v2782_v44  ;;  %v919_v55 = vadd.f32 %v2097_v23, %v2782_v44  ;;  %v744_v58 = vadd.f32 %v743_v22, %v2797_v62  ;;  %v1223_v60 = vpop.f32.mrb[17].mxu1 }
 0x11f   : > { %v951_v1 = vmax.f32 %v2870_v42, %v2874_v53  ;;  %v772_v61 = vsel %vm756_vm14, %v734_v31, %v764_v50  ;;  %v2881_v63 = vsel %vm926_vm15, %v904_v36, %v934_v57  ;;  %v914_v52 = vadd.f32 %v913_v39, %v2797_v62  ;;  %v2119_v2 = vpop.f32.mrb[18].mxu0 }
 0x120   : > { %v2887_v9 = vmax.f32 %v610_v10, %v772_v61  ;;  %vm759_vm1 = vcmp.gt.f32.partialorder %v749_v54, 0.0  ;;  %v767_v21 = vmul.f32 0.2, %v749_v54  ;;  %vm929_vm2 = vcmp.gt.f32.partialorder %v919_v55, 0.0  ;;  %v1063_v26 = vpop.f32.mrb[19].mxu0 }
 0x121   : > { %v937_v59 = vmul.f32 0.2, %v919_v55  ;;  %vm758_vm3 = vcmp.gt.f32.partialorder %v744_v58, 0.0  ;;  %v766_v11 = vmul.f32 0.2, %v744_v58  ;;  %vm928_vm4 = vcmp.gt.f32.partialorder %v914_v52, 0.0 }
 0x122   : > { %v950_v7 = vmax.f32 %v2887_v9, %v2881_v63  ;;  %v775_v8 = vsel %vm759_vm1, %v749_v54, %v767_v21  ;;  %v936_v18 = vmul.f32 0.2, %v914_v52  ;;  %v1059_v22 = vadd.f32 %v2116_v37, %v2745_v20  ;;  %v2147_v27 = vpop.f32.mrb[18].mxu1 }
 0x123   : > { %v2895_v41 = vmax.f32 %v613_v19, %v775_v8  ;;  %v2897_v4 = vsel %vm929_vm2, %v919_v55, %v937_v59  ;;  %v774_v10 = vsel %vm758_vm3, %v744_v58, %v766_v11  ;;  %v1229_v30 = vadd.f32 %v2144_v47, %v2745_v20  ;;  %v1233_v23 = vpop.f32.mrb[19].mxu1  ;;  %v2122_v28 = vpop.f32.mrb[20].mxu0 }
 0x124   : > { %v2903_v32 = vmax.f32 %v612_v48, %v774_v10  ;;  %v2905_v31 = vsel %vm928_vm4, %v914_v52, %v936_v18  ;;  %vm1093_vm5 = vcmp.gt.f32.partialorder %v1059_v22, 0.0  ;;  %v1101_v39 = vmul.f32 0.2, %v1059_v22  ;;  %v1073_v35 = vpop.f32.mrb[21].mxu0 }
 0x125   : > { %v953_v12 = vmax.f32 %v2895_v41, %v2897_v4  ;;  %vm1263_vm0 = vcmp.gt.f32.partialorder %v1229_v30, 0.0  ;;  %v1271_v14 = vmul.f32 0.2, %v1229_v30  ;;  %v1054_v19 = vadd.f32 %v1053_v46, %v2741_v0  ;;  %v2150_v36 = vpop.f32.mrb[20].mxu1 }
 0x126   : > { %v952_v37 = vmax.f32 %v2903_v32, %v2905_v31  ;;  %v1109_v43 = vsel %vm1093_vm5, %v1059_v22, %v1101_v39  ;;  %v1224_v29 = vadd.f32 %v1223_v60, %v2741_v0  ;;  %v1069_v38 = vadd.f32 %v2119_v2, %v2747_v34  ;;  %v1243_v48 = vpop.f32.mrb[21].mxu1 }
 0x127   : > { %v2917_v50 = vmax.f32 %v947_v56, %v1109_v43  ;;  %v2919_v57 = vsel %vm1263_vm0, %v1229_v30, %v1271_v14  ;;  %vm1092_vm6 = vcmp.gt.f32.partialorder %v1054_v19, 0.0  ;;  %v1100_v47 = vmul.f32 0.2, %v1054_v19  ;;  %v2125_v46 = vpop.f32.mrb[22].mxu0 }
 0x128   : > { %vm1262_vm7 = vcmp.gt.f32.partialorder %v1224_v29, 0.0  ;;  %v1270_v54 = vmul.f32 0.2, %v1224_v29  ;;  %vm1095_vm8 = vcmp.gt.f32.partialorder %v1069_v38, 0.0  ;;  %v1103_v55 = vmul.f32 0.2, %v1069_v38 }
 0x129   : > { %v1287_v58 = vmax.f32 %v2917_v50, %v2919_v57  ;;  %v1108_v60 = vsel %vm1092_vm6, %v1054_v19, %v1100_v47  ;;  %v1239_v61 = vadd.f32 %v2147_v27, %v2747_v34  ;;  %v1064_v52 = vadd.f32 %v1063_v26, %v2743_v13  ;;  %v2153_v49 = vpop.f32.mrb[22].mxu1  ;;  %v1083_v51 = vpop.f32.mrb[23].mxu0 }
 0x12a   : > { %v2928_v56 = vmax.f32 %v946_v16, %v1108_v60  ;;  %v2930_v2 = vsel %vm1262_vm7, %v1224_v29, %v1270_v54  ;;  %v1111_v21 = vsel %vm1095_vm8, %v1069_v38, %v1103_v55  ;;  %v1234_v59 = vadd.f32 %v1233_v23, %v2743_v13  ;;  %v1253_v11 = vpop.f32.mrb[23].mxu1 }
 0x12b   : > { %v2936_v8 = vmax.f32 %v949_v24, %v1111_v21  ;;  %vm1265_vm9 = vcmp.gt.f32.partialorder %v1239_v61, 0.0  ;;  %v1273_v26 = vmul.f32 0.2, %v1239_v61  ;;  %vm1094_vm10 = vcmp.gt.f32.partialorder %v1064_v52, 0.0  ;;  %v2172_v18 = vpop.f32.mrb[24].mxu0 }
 0x12c   : > { %v1286_v3 = vmax.f32 %v2928_v56, %v2930_v2  ;;  %v1102_v5 = vmul.f32 0.2, %v1064_v52  ;;  %vm1264_vm11 = vcmp.gt.f32.partialorder %v1234_v59, 0.0  ;;  %v1272_v16 = vmul.f32 0.2, %v1234_v59  ;;  %v1393_v22 = vpop.f32.mrb[25].mxu0 }
 0x12d   : > { %v2940_v27 = vsel %vm1265_vm9, %v1239_v61, %v1273_v26  ;;  %v1079_v10 = vadd.f32 %v2122_v28, %v2756_v15  ;;  %v1249_v30 = vadd.f32 %v2150_v36, %v2756_v15  ;;  %v1074_v6 = vadd.f32 %v1073_v35, %v2764_v25  ;;  %v2200_v17 = vpop.f32.mrb[24].mxu1 }
 0x12e   : > { %v1289_v24 = vmax.f32 %v2936_v8, %v2940_v27  ;;  %v1110_v23 = vsel %vm1094_vm10, %v1064_v52, %v1102_v5  ;;  %v2947_v39 = vsel %vm1264_vm11, %v1234_v59, %v1272_v16  ;;  %v1244_v14 = vadd.f32 %v1243_v48, %v2764_v25  ;;  %v1563_v19 = vpop.f32.mrb[25].mxu1 }
 0x12f   : > { %v2953_v43 = vmax.f32 %v948_v40, %v1110_v23  ;;  %vm1097_vm12 = vcmp.gt.f32.partialorder %v1079_v10, 0.0  ;;  %v1105_v28 = vmul.f32 0.2, %v1079_v10  ;;  %vm1267_vm13 = vcmp.gt.f32.partialorder %v1249_v30, 0.0  ;;  %v2955_v36 = vpop.f32.mrb[26].mxu0 }
 0x130   : > { %v1275_v35 = vmul.f32 0.2, %v1249_v30  ;;  %vm1096_vm14 = vcmp.gt.f32.partialorder %v1074_v6, 0.0  ;;  %v1104_v29 = vmul.f32 0.2, %v1074_v6  ;;  %vm1266_vm15 = vcmp.gt.f32.partialorder %v1244_v14, 0.0 }
 0x131   : > { %v1288_v38 = vmax.f32 %v2953_v43, %v2947_v39  ;;  %v1113_v47 = vsel %vm1097_vm12, %v1079_v10, %v1105_v28  ;;  %v1274_v48 = vmul.f32 0.2, %v1244_v14  ;;  %v1089_v54 = vadd.f32 %v2125_v46, %v2782_v44  ;;  %v2203_v55 = vpop.f32.mrb[26].mxu1  ;;  %v1403_v45 = vpop.f32.mrb[27].mxu0 }
 0x132   : > { %v2963_v33 = vmax.f32 %v951_v1, %v1113_v47  ;;  %v2965_v40 = vsel %vm1267_vm13, %v1249_v30, %v1275_v35  ;;  %v1112_v60 = vsel %vm1096_vm14, %v1074_v6, %v1104_v29  ;;  %v1259_v61 = vadd.f32 %v2153_v49, %v2782_v44  ;;  %v1573_v52 = vpop.f32.mrb[27].mxu1 }
 0x133   : > { %v2971_v21 = vmax.f32 %v950_v7, %v1112_v60  ;;  %v2973_v59 = vsel %vm1266_vm15, %v1244_v14, %v1274_v48  ;;  %vm1099_vm1 = vcmp.gt.f32.partialorder %v1089_v54, 0.0  ;;  %v1107_v46 = vmul.f32 0.2, %v1089_v54  ;;  %v2178_v26 = vpop.f32.mrb[28].mxu0 }
 0x134   : > { %v1291_v42 = vmax.f32 %v2963_v33, %v2965_v40  ;;  %vm1269_vm2 = vcmp.gt.f32.partialorder %v1259_v61, 0.0  ;;  %v1277_v53 = vmul.f32 0.2, %v1259_v61  ;;  %v1084_v1 = vadd.f32 %v1083_v51, %v2797_v62  ;;  %v2978_v5 = vpop.f32.mrb[29].mxu0 }
 0x135   : > { %v1290_v49 = vmax.f32 %v2971_v21, %v2973_v59  ;;  %v1115_v63 = vsel %vm1099_vm1, %v1089_v54, %v1107_v46  ;;  %v1254_v9 = vadd.f32 %v1253_v11, %v2797_v62  ;;  %v1399_v7 = vadd.f32 %v2172_v18, %v2745_v20  ;;  %v2206_v16 = vpop.f32.mrb[28].mxu1 }
 0x136   : > { %v2987_v10 = vmax.f32 %v953_v12, %v1115_v63  ;;  %v2989_v30 = vsel %vm1269_vm2, %v1259_v61, %v1277_v53  ;;  %vm1098_vm3 = vcmp.gt.f32.partialorder %v1084_v1, 0.0  ;;  %v1106_v51 = vmul.f32 0.2, %v1084_v1  ;;  %v2991_v6 = vpop.f32.mrb[29].mxu1 }
 0x137   : > { %vm1268_vm4 = vcmp.gt.f32.partialorder %v1254_v9, 0.0  ;;  %v1276_v23 = vmul.f32 0.2, %v1254_v9  ;;  %vm1433_vm5 = vcmp.gt.f32.partialorder %v1399_v7, 0.0  ;;  %v1441_v14 = vmul.f32 0.2, %v1399_v7 }
 0x138   : > { %v1293_v11 = vmax.f32 %v2987_v10, %v2989_v30  ;;  %v1114_v18 = vsel %vm1098_vm3, %v1084_v1, %v1106_v51  ;;  %v1569_v28 = vadd.f32 %v2200_v17, %v2745_v20  ;;  %v1394_v41 = vadd.f32 %v1393_v22, %v2741_v0  ;;  %v2181_v4 = vpop.f32.mrb[30].mxu0 }
 0x139   : > { %v3000_v12 = vmax.f32 %v952_v37, %v1114_v18  ;;  %v3002_v35 = vsel %vm1268_vm4, %v1254_v9, %v1276_v23  ;;  %v1449_v29 = vsel %vm1433_vm5, %v1399_v7, %v1441_v14  ;;  %v1564_v47 = vadd.f32 %v1563_v19, %v2741_v0  ;;  %v3006_v48 = vpop.f32.mrb[30].mxu1  ;;  %v1423_v54 = vpop.f32.mrb[31].mxu0 }
 0x13a   : > { %v1457_v20 = vmax.f32 %v1287_v58, %v1449_v29  ;;  %vm1603_vm0 = vcmp.gt.f32.partialorder %v1569_v28, 0.0  ;;  %v1611_v22 = vmul.f32 0.2, %v1569_v28  ;;  %vm1432_vm6 = vcmp.gt.f32.partialorder %v1394_v41, 0.0  ;;  %v1593_v17 = vpop.f32.mrb[31].mxu1 }
 0x13b   : > { %v1292_v32 = vmax.f32 %v3000_v12, %v3002_v35  ;;  %v1440_v31 = vmul.f32 0.2, %v1394_v41  ;;  %vm1602_vm7 = vcmp.gt.f32.partialorder %v1564_v47, 0.0  ;;  %v1610_v37 = vmul.f32 0.2, %v1564_v47 }
 0x13c   : > { %v1619_v0 = vsel %vm1603_vm0, %v1569_v28, %v1611_v22  ;;  %v1409_v50 = vadd.f32 %v2955_v36, %v2747_v34  ;;  %v1579_v57 = vadd.f32 %v2203_v55, %v2747_v34  ;;  %v1404_v58 = vadd.f32 %v1403_v45, %v2743_v13 }
 0x13d   : > { %v1627_v19 = vmax.f32 %v1457_v20, %v1619_v0  ;;  %v1448_v60 = vsel %vm1432_vm6, %v1394_v41, %v1440_v31  ;;  %v1618_v61 = vsel %vm1602_vm7, %v1564_v47, %v1610_v37  ;;  %v1574_v46 = vadd.f32 %v1573_v52, %v2743_v13 }
 0x13e   : > { %v1456_v53 = vmax.f32 %v1286_v3, %v1448_v60  ;;  %vm1435_vm8 = vcmp.gt.f32.partialorder %v1409_v50, 0.0  ;;  %v1443_v1 = vmul.f32 0.2, %v1409_v50  ;;  %vm1605_vm9 = vcmp.gt.f32.partialorder %v1579_v57, 0.0 }
 0x13f   : > { %1635 = vst [vmem:[%s3016_s4 + $0x8] sm:$0xff] %v1627_v19  ;;  %v1613_v63 = vmul.f32 0.2, %v1579_v57  ;;  %vm1434_vm10 = vcmp.gt.f32.partialorder %v1404_v58, 0.0  ;;  %v1442_v36 = vmul.f32 0.2, %v1404_v58  ;;  %v1419_v9 = vadd.f32 %v2178_v26, %v2756_v15 }
 0x140   : > { %vm1604_vm11 = vcmp.gt.f32.partialorder %v1574_v46, 0.0  ;;  %v1626_v34 = vmax.f32 %v1456_v53, %v1618_v61  ;;  %v1451_v55 = vsel %vm1435_vm8, %v1409_v50, %v1443_v1  ;;  %v1612_v45 = vmul.f32 0.2, %v1574_v46 }
 0x141   : > { %v1459_v13 = vmax.f32 %v1289_v24, %v1451_v55  ;;  %v1621_v56 = vsel %vm1605_vm9, %v1579_v57, %v1613_v63  ;;  %v1450_v2 = vsel %vm1434_vm10, %v1404_v58, %v1442_v36  ;;  %v1589_v3 = vadd.f32 %v2206_v16, %v2756_v15 }
 0x142   : > { %1634 = vst [vmem:[%s3016_s4] sm:$0xff] %v1626_v34  ;;  %v1458_v52 = vmax.f32 %v1288_v38, %v1450_v2  ;;  %v1620_v7 = vsel %vm1604_vm11, %v1574_v46, %v1612_v45  ;;  %vm1437_vm12 = vcmp.gt.f32.partialorder %v1419_v9, 0.0  ;;  %v1445_v51 = vmul.f32 0.2, %v1419_v9 }
 0x143   : > { %v1629_v23 = vmax.f32 %v1459_v13, %v1621_v56  ;;  %vm1607_vm13 = vcmp.gt.f32.partialorder %v1589_v3, 0.0  ;;  %v1615_v26 = vmul.f32 0.2, %v1589_v3  ;;  %v1414_v8 = vadd.f32 %v2978_v5, %v2764_v25 }
 0x144   : > { %v1628_v27 = vmax.f32 %v1458_v52, %v1620_v7  ;;  %v1453_v24 = vsel %vm1437_vm12, %v1419_v9, %v1445_v51  ;;  %v1584_v15 = vadd.f32 %v2991_v6, %v2764_v25  ;;  %v1429_v16 = vadd.f32 %v2181_v4, %v2782_v44 }
 0x145   : > { %1637 = vst [vmem:[%s3016_s4 + $0x18] sm:$0xff] %v1629_v23  ;;  %v1461_v39 = vmax.f32 %v1291_v42, %v1453_v24  ;;  %v1623_v43 = vsel %vm1607_vm13, %v1589_v3, %v1615_v26  ;;  %vm1436_vm14 = vcmp.gt.f32.partialorder %v1414_v8, 0.0  ;;  %v1444_v38 = vmul.f32 0.2, %v1414_v8 }
 0x146   : > { %1636 = vst [vmem:[%s3016_s4 + $0x10] sm:$0xff] %v1628_v27  ;;  %vm1606_vm15 = vcmp.gt.f32.partialorder %v1584_v15, 0.0  ;;  %v1614_v14 = vmul.f32 0.2, %v1584_v15  ;;  %vm1439_vm1 = vcmp.gt.f32.partialorder %v1429_v16, 0.0  ;;  %v1599_v25 = vadd.f32 %v3006_v48, %v2782_v44 }
 0x147   : > { %v1447_v5 = vmul.f32 0.2, %v1429_v16  ;;  %v1631_v18 = vmax.f32 %v1461_v39, %v1623_v43  ;;  %v1452_v28 = vsel %vm1436_vm14, %v1414_v8, %v1444_v38  ;;  %v1424_v6 = vadd.f32 %v1423_v54, %v2797_v62 }
 0x148   : > { %v1460_v33 = vmax.f32 %v1290_v49, %v1452_v28  ;;  %v1622_v40 = vsel %vm1606_vm15, %v1584_v15, %v1614_v14  ;;  %v1594_v41 = vadd.f32 %v1593_v17, %v2797_v62  ;;  %vm1609_vm2 = vcmp.gt.f32.partialorder %v1599_v25, 0.0 }
 0x149   : > { %v1455_v42 = vsel %vm1439_vm1, %v1429_v16, %v1447_v5  ;;  %1639 = vst [vmem:[%s3016_s4 + $0x28] sm:$0xff] %v1631_v18  ;;  %v1617_v44 = vmul.f32 0.2, %v1599_v25  ;;  %vm1438_vm3 = vcmp.gt.f32.partialorder %v1424_v6, 0.0  ;;  %v1446_v47 = vmul.f32 0.2, %v1424_v6 }
 0x14a   : > { %v1463_v4 = vmax.f32 %v1293_v11, %v1455_v42  ;;  %v1630_v29 = vmax.f32 %v1460_v33, %v1622_v40  ;;  %v1616_v48 = vmul.f32 0.2, %v1594_v41  ;;  %vm1608_vm4 = vcmp.gt.f32.partialorder %v1594_v41, 0.0 }
 0x14b   : > { %v1625_v54 = vsel %vm1609_vm2, %v1599_v25, %v1617_v44  ;;  %v1454_v59 = vsel %vm1438_vm3, %v1424_v6, %v1446_v47 }
 0x14c   : > { %1638 = vst [vmem:[%s3016_s4 + $0x20] sm:$0xff] %v1630_v29  ;;  %v1633_v21 = vmax.f32 %v1463_v4, %v1625_v54  ;;  %v1462_v62 = vmax.f32 %v1292_v32, %v1454_v59  ;;  %v1624_v49 = vsel %vm1608_vm4, %v1594_v41, %v1616_v48 }
 0x14e   : > { %1641 = vst [vmem:[%s3016_s4 + $0x38] sm:$0xff] %v1633_v21  ;;  %v1632_v10 = vmax.f32 %v1462_v62, %v1624_v49 }
 0x150   : > { %1640 = vst [vmem:[%s3016_s4 + $0x30] sm:$0xff] %v1632_v10 }
 0x151 PF: > { %s13_s14 = sadd.s32 1, %s2387_s14   ;;  %s3076_s12 = smov %s2383_s13 }
 0x152   : > { %p10_p5 = scmp.ge.s32.totalorder %s13_s14, 4   ;;  %s3077_s13 = smov %s3079_s15 }
 0x154   :  { %12 = sbr.rel (!%p10_p5) target bundleno = 2 (0x2), region = 69 }

// kernel: _lambda_.20
= control target key start
LH: loop header
LB: loop body
LE: loop exit
PB: predicated region body
PF: predicated region fallthrough
CT: control target
= control target key end

     0   :  { %s454_s6 = smov 0   ;;  %s456_s7 = smov 0   ;;  %s567_s0 = inlined_call_operand.vmem [shape: f32[2,8,64,128], index: 0, kind: input, shape index: {}]   ;;  %s568_s1 = inlined_call_operand.vmem [shape: f32[2,64,128], index: 1, kind: output, shape index: {}]  }
   0x1   :  { %s458_s8 = smov 0  }
   0x2 LB: > { %s23_s9 = sadd.s32 1, %s438_s7  ;;  %p387_p0 = scmp.ge.s32.totalorder %s442_s8, 1  ;;  %s442_s8 = sphi %s458_s8, %s11_s8   ;;  %s438_s7 = sphi %s456_s7, %s570_s7   ;;  %s434_s6 = sphi %s454_s6, %s569_s6  }
   0x3   : > { %p25_p1 = scmp.ge.s32.totalorder %s23_s9, 2  ;;  %p106_p2 = scmp.lt.s32.totalorder %s442_s8, 3 }
   0x5   : > { %s572_s9 = smov (%p25_p1, %s23_s9), 0  ;;  %p107_p3 = pnand %p387_p0, %p106_p2 }
   0x6   : > { %p132_p4 = scmp.lt.s32.totalorder (!%p107_p3), %s434_s6, 1 }
   0x7   : > { %110 = sbr.rel (%p107_p3) target bundleno = 55 (0x37), region = 24 }
   0xe   : > { %s574_s6 = smov (!%p132_p4, %s434_s6), 1 }
   0xf   : > { %s394_s10 = sshll.u32 %s574_s6, 9  ;;  %s395_s14 = sshll.u32 %s574_s6, 6 }
  0x10   : > { %s478_s13 = scalar_lea.vmem %s567_s0, %s394_s10  ;;  %s521_s17 = scalar_lea.vmem %s568_s1, %s395_s14 }
  0x11   : > { %v148_v0 = vld [vmem:[%s478_s13] sm:$0xff]  ;;  %v149_v5 = vld [vmem:[%s478_s13 + $0x8] sm:$0xff]  ;;  %v150_v13 = vld [vmem:[%s478_s13 + $0x10] sm:$0xff] }
  0x12   : > { %v156_v1 = vld [vmem:[%s478_s13 + $0x40] sm:$0xff]  ;;  %v157_v7 = vld [vmem:[%s478_s13 + $0x48] sm:$0xff]  ;;  %v158_v14 = vld [vmem:[%s478_s13 + $0x50] sm:$0xff] }
  0x13   : > { %v164_v2 = vld [vmem:[%s478_s13 + $0x80] sm:$0xff]  ;;  %v212_v3 = vmax.f32 %v148_v0, %v156_v1  ;;  %v165_v8 = vld [vmem:[%s478_s13 + $0x88] sm:$0xff]  ;;  %v219_v10 = vmax.f32 %v149_v5, %v157_v7  ;;  %v166_v17 = vld [vmem:[%s478_s13 + $0x90] sm:$0xff]  ;;  %v226_v18 = vmax.f32 %v150_v13, %v158_v14 }
  0x14   : > { %v172_v4 = vld [vmem:[%s478_s13 + $0xc0] sm:$0xff]  ;;  %v173_v12 = vld [vmem:[%s478_s13 + $0xc8] sm:$0xff]  ;;  %v174_v22 = vld [vmem:[%s478_s13 + $0xd0] sm:$0xff] }
  0x15   : > { %v213_v6 = vmax.f32 %v212_v3, %v164_v2  ;;  %v180_v9 = vld [vmem:[%s478_s13 + $0x100] sm:$0xff]  ;;  %v220_v16 = vmax.f32 %v219_v10, %v165_v8  ;;  %v181_v21 = vld [vmem:[%s478_s13 + $0x108] sm:$0xff]  ;;  %v227_v24 = vmax.f32 %v226_v18, %v166_v17  ;;  %v151_v25 = vld [vmem:[%s478_s13 + $0x18] sm:$0xff] }
  0x16   : > { %v188_v15 = vld [vmem:[%s478_s13 + $0x140] sm:$0xff]  ;;  %v159_v26 = vld [vmem:[%s478_s13 + $0x58] sm:$0xff]  ;;  %v189_v30 = vld [vmem:[%s478_s13 + $0x148] sm:$0xff] }
  0x17   : > { %v214_v11 = vmax.f32 %v213_v6, %v172_v4  ;;  %v196_v19 = vld [vmem:[%s478_s13 + $0x180] sm:$0xff]  ;;  %v221_v23 = vmax.f32 %v220_v16, %v173_v12  ;;  %v167_v27 = vld [vmem:[%s478_s13 + $0x98] sm:$0xff]  ;;  %v182_v31 = vld [vmem:[%s478_s13 + $0x110] sm:$0xff]  ;;  %v233_v32 = vmax.f32 %v151_v25, %v159_v26  ;;  %v228_v35 = vmax.f32 %v227_v24, %v174_v22 }
  0x18   : > { %v204_v28 = vld [vmem:[%s478_s13 + $0x1c0] sm:$0xff]  ;;  %v197_v33 = vld [vmem:[%s478_s13 + $0x188] sm:$0xff]  ;;  %v175_v36 = vld [vmem:[%s478_s13 + $0xd8] sm:$0xff] }
  0x19   : > { %v215_v20 = vmax.f32 %v214_v11, %v180_v9  ;;  %v222_v34 = vmax.f32 %v221_v23, %v181_v21  ;;  %v152_v37 = vld [vmem:[%s478_s13 + $0x20] sm:$0xff]  ;;  %v190_v39 = vld [vmem:[%s478_s13 + $0x150] sm:$0xff]  ;;  %v234_v40 = vmax.f32 %v233_v32, %v167_v27  ;;  %v205_v43 = vld [vmem:[%s478_s13 + $0x1c8] sm:$0xff]  ;;  %v229_v46 = vmax.f32 %v228_v35, %v182_v31 }
  0x1a   : > { %v160_v41 = vld [vmem:[%s478_s13 + $0x60] sm:$0xff]  ;;  %v198_v45 = vld [vmem:[%s478_s13 + $0x190] sm:$0xff]  ;;  %v183_v47 = vld [vmem:[%s478_s13 + $0x118] sm:$0xff] }
  0x1b   : > { %v216_v29 = vmax.f32 %v215_v20, %v188_v15  ;;  %v168_v42 = vld [vmem:[%s478_s13 + $0xa0] sm:$0xff]  ;;  %v223_v44 = vmax.f32 %v222_v34, %v189_v30  ;;  %v240_v48 = vmax.f32 %v152_v37, %v160_v41  ;;  %v235_v50 = vmax.f32 %v234_v40, %v175_v36  ;;  %v153_v52 = vld [vmem:[%s478_s13 + $0x28] sm:$0xff]  ;;  %v206_v55 = vld [vmem:[%s478_s13 + $0x1d0] sm:$0xff] }
  0x1c   : > { %v176_v51 = vld [vmem:[%s478_s13 + $0xe0] sm:$0xff]  ;;  %v161_v53 = vld [vmem:[%s478_s13 + $0x68] sm:$0xff]  ;;  %v230_v56 = vmax.f32 %v229_v46, %v190_v39  ;;  %v191_v57 = vld [vmem:[%s478_s13 + $0x158] sm:$0xff] }
  0x1d   : > { %v217_v38 = vmax.f32 %v216_v29, %v196_v19  ;;  %v224_v54 = vmax.f32 %v223_v44, %v197_v33  ;;  %v241_v58 = vmax.f32 %v240_v48, %v168_v42  ;;  %v169_v59 = vld [vmem:[%s478_s13 + $0xa8] sm:$0xff]  ;;  %v247_v60 = vmax.f32 %v153_v52, %v161_v53  ;;  %v199_v62 = vld [vmem:[%s478_s13 + $0x198] sm:$0xff]  ;;  %v184_v0 = vld [vmem:[%s478_s13 + $0x120] sm:$0xff] }
  0x1e   : > { %v236_v63 = vmax.f32 %v235_v50, %v183_v47  ;;  %v177_v1 = vld [vmem:[%s478_s13 + $0xe8] sm:$0xff]  ;;  %v231_v3 = vmax.f32 %v230_v56, %v198_v45  ;;  %v154_v6 = vld [vmem:[%s478_s13 + $0x30] sm:$0xff]  ;;  %v207_v10 = vld [vmem:[%s478_s13 + $0x1d8] sm:$0xff] }
  0x1f   : > { %v218_v49 = vmax.f32 %v217_v38, %v204_v28  ;;  %v225_v2 = vmax.f32 %v224_v54, %v205_v43  ;;  %v242_v4 = vmax.f32 %v241_v58, %v176_v51  ;;  %v248_v5 = vmax.f32 %v247_v60, %v169_v59  ;;  %v162_v7 = vld [vmem:[%s478_s13 + $0x70] sm:$0xff]  ;;  %v192_v12 = vld [vmem:[%s478_s13 + $0x160] sm:$0xff]  ;;  %v185_v17 = vld [vmem:[%s478_s13 + $0x128] sm:$0xff] }
  0x20   : > { %v170_v8 = vld [vmem:[%s478_s13 + $0xb0] sm:$0xff]  ;;  %v237_v11 = vmax.f32 %v236_v63, %v191_v57  ;;  %v254_v13 = vmax.f32 %v154_v6, %v162_v7  ;;  %v232_v15 = vmax.f32 %v231_v3, %v206_v55  ;;  %v155_v19 = vld [vmem:[%s478_s13 + $0x38] sm:$0xff]  ;;  %v200_v21 = vld [vmem:[%s478_s13 + $0x1a0] sm:$0xff] }
  0x21   : > { %vm268_vm0 = vcmp.gt.f32.partialorder %v218_v49, 0.0  ;;  %v276_v61 = vmul.f32 0.2, %v218_v49  ;;  %vm269_vm1 = vcmp.gt.f32.partialorder %v225_v2, 0.0  ;;  %v277_v14 = vmul.f32 0.2, %v225_v2 }
  0x22   : > { %v243_v16 = vmax.f32 %v242_v4, %v184_v0  ;;  %v178_v18 = vld [vmem:[%s478_s13 + $0xf0] sm:$0xff]  ;;  %v238_v20 = vmax.f32 %v237_v11, %v199_v62  ;;  %v249_v22 = vmax.f32 %v248_v5, %v177_v1  ;;  %v255_v23 = vmax.f32 %v254_v13, %v170_v8  ;;  %v163_v24 = vld [vmem:[%s478_s13 + $0x78] sm:$0xff]  ;;  %v193_v28 = vld [vmem:[%s478_s13 + $0x168] sm:$0xff] }
  0x23   : > { %v284_v9 = vsel %vm268_vm0, %v218_v49, %v276_v61  ;;  %v285_v25 = vsel %vm269_vm1, %v225_v2, %v277_v14  ;;  %vm270_vm2 = vcmp.gt.f32.partialorder %v232_v15, 0.0  ;;  %v278_v26 = vmul.f32 0.2, %v232_v15  ;;  %v186_v29 = vld [vmem:[%s478_s13 + $0x130] sm:$0xff]  ;;  %v208_v31 = vld [vmem:[%s478_s13 + $0x1e0] sm:$0xff]  ;;  %v171_v34 = vld [vmem:[%s478_s13 + $0xb8] sm:$0xff] }
  0x24   : > { %292 = vst [vmem:[%s521_s17] sm:$0xff] %v284_v9  ;;  %v244_v27 = vmax.f32 %v243_v16, %v192_v12  ;;  %293 = vst [vmem:[%s521_s17 + $0x8] sm:$0xff] %v285_v25  ;;  %v239_v30 = vmax.f32 %v238_v20, %v207_v10  ;;  %v250_v32 = vmax.f32 %v249_v22, %v185_v17  ;;  %v201_v38 = vld [vmem:[%s478_s13 + $0x1a8] sm:$0xff]  ;;  %v194_v39 = vld [vmem:[%s478_s13 + $0x170] sm:$0xff] }
  0x25   : > { %v256_v33 = vmax.f32 %v255_v23, %v178_v18  ;;  %v261_v35 = vmax.f32 %v155_v19, %v163_v24  ;;  %v286_v36 = vsel %vm270_vm2, %v232_v15, %v278_v26  ;;  %v179_v43 = vld [vmem:[%s478_s13 + $0xf8] sm:$0xff]  ;;  %v209_v45 = vld [vmem:[%s478_s13 + $0x1e8] sm:$0xff]  ;;  %v202_v46 = vld [vmem:[%s478_s13 + $0x1b0] sm:$0xff] }
  0x26   : > { %v245_v37 = vmax.f32 %v244_v27, %v200_v21  ;;  %294 = vst [vmem:[%s521_s17 + $0x10] sm:$0xff] %v286_v36  ;;  %vm271_vm3 = vcmp.gt.f32.partialorder %v239_v30, 0.0  ;;  %v279_v40 = vmul.f32 0.2, %v239_v30  ;;  %v251_v41 = vmax.f32 %v250_v32, %v193_v28  ;;  %v187_v51 = vld [vmem:[%s478_s13 + $0x138] sm:$0xff]  ;;  %v210_v53 = vld [vmem:[%s478_s13 + $0x1f0] sm:$0xff] }
  0x27   : > { %v257_v42 = vmax.f32 %v256_v33, %v186_v29  ;;  %v262_v47 = vmax.f32 %v261_v35, %v171_v34  ;;  %v195_v57 = vld [vmem:[%s478_s13 + $0x178] sm:$0xff] }
  0x28   : > { %v246_v44 = vmax.f32 %v245_v37, %v208_v31  ;;  %v287_v48 = vsel %vm271_vm3, %v239_v30, %v279_v40  ;;  %v252_v49 = vmax.f32 %v251_v41, %v201_v38  ;;  %v203_v62 = vld [vmem:[%s478_s13 + $0x1b8] sm:$0xff] }
  0x29   : > { %v258_v50 = vmax.f32 %v257_v42, %v194_v39  ;;  %295 = vst [vmem:[%s521_s17 + $0x18] sm:$0xff] %v287_v48  ;;  %v263_v54 = vmax.f32 %v262_v47, %v179_v43  ;;  %v211_v2 = vld [vmem:[%s478_s13 + $0x1f8] sm:$0xff] }
  0x2a   : > { %vm272_vm4 = vcmp.gt.f32.partialorder %v246_v44, 0.0  ;;  %v280_v52 = vmul.f32 0.2, %v246_v44  ;;  %v253_v55 = vmax.f32 %v252_v49, %v209_v45 }
  0x2b   : > { %v259_v56 = vmax.f32 %v258_v50, %v202_v46  ;;  %v264_v59 = vmax.f32 %v263_v54, %v187_v51 }
  0x2c   : > { %v288_v58 = vsel %vm272_vm4, %v246_v44, %v280_v52  ;;  %vm273_vm5 = vcmp.gt.f32.partialorder %v253_v55, 0.0  ;;  %v281_v60 = vmul.f32 0.2, %v253_v55 }
  0x2d   : > { %296 = vst [vmem:[%s521_s17 + $0x20] sm:$0xff] %v288_v58  ;;  %v260_v61 = vmax.f32 %v259_v56, %v210_v53  ;;  %v265_v63 = vmax.f32 %v264_v59, %v195_v57 }
  0x2e   : > { %v289_v0 = vsel %vm273_vm5, %v253_v55, %v281_v60 }
  0x2f   : > { %vm274_vm6 = vcmp.gt.f32.partialorder %v260_v61, 0.0  ;;  %v282_v1 = vmul.f32 0.2, %v260_v61  ;;  %297 = vst [vmem:[%s521_s17 + $0x28] sm:$0xff] %v289_v0  ;;  %v266_v3 = vmax.f32 %v265_v63, %v203_v62 }
  0x31   : > { %v290_v4 = vsel %vm274_vm6, %v260_v61, %v282_v1  ;;  %v267_v5 = vmax.f32 %v266_v3, %v211_v2 }
  0x32   : > { %298 = vst [vmem:[%s521_s17 + $0x30] sm:$0xff] %v290_v4 }
  0x33   : > { %vm275_vm7 = vcmp.gt.f32.partialorder %v267_v5, 0.0  ;;  %v283_v6 = vmul.f32 0.2, %v267_v5 }
  0x35   : > { %v291_v7 = vsel %vm275_vm7, %v267_v5, %v283_v6 }
  0x36   : > { %299 = vst [vmem:[%s521_s17 + $0x38] sm:$0xff] %v291_v7 }
  0x37 PF: > { %s11_s8 = sadd.s32 1, %s442_s8   ;;  %s569_s6 = smov %s438_s7 }
  0x38   : > { %p8_p5 = scmp.ge.s32.totalorder %s11_s8, 4   ;;  %s570_s7 = smov %s572_s9 }
  0x3a   :  { %10 = sbr.rel (!%p8_p5) target bundleno = 2 (0x2), region = 54 }

// kernel: _lambda_.16
= control target key start
LH: loop header
LB: loop body
LE: loop exit
PB: predicated region body
PF: predicated region fallthrough
CT: control target
= control target key end

     0   :  { %s907_s15 = smov 0   ;;  %s909_s16 = smov 0   ;;  %s1080_s0 = inlined_call_operand.vmem [shape: f32[2,64,128], index: 0, kind: input, shape index: {}]   ;;  %s1081_s1 = inlined_call_operand.vmem [shape: f32[128,64], index: 1, kind: input, shape index: {}]   ;;  %s1082_s2 = inlined_call_operand.vmem [shape: f32[128,1], index: 2, kind: input, shape index: {}]   ;;  %s1083_s3 = inlined_call_operand.vmem [shape: f32[2,64,128], index: 3, kind: output, shape index: {0}]   ;;  %s1084_s4 = inlined_call_operand.vmem [shape: f32[2,64,128], index: 4, kind: output, shape index: {1}]  }
   0x1   :  { %s911_s17 = smov 0  }
   0x2 LB: > { %s27_s18 = sadd.s32 1, %s875_s16  ;;  %p714_p0 = scmp.ge.s32.totalorder %s879_s17, 1  ;;  %s879_s17 = sphi %s911_s17, %s15_s17   ;;  %s875_s16 = sphi %s909_s16, %s1086_s16   ;;  %s871_s15 = sphi %s907_s15, %s1085_s15  }
   0x3   : > { %p29_p1 = scmp.ge.s32.totalorder %s27_s18, 2  ;;  %p186_p2 = scmp.lt.s32.totalorder %s879_s17, 3 }
   0x5   : > { %s1088_s18 = smov (%p29_p1, %s27_s18), 0  ;;  %p187_p3 = pnand %p714_p0, %p186_p2 }
   0x6   : > { %p226_p4 = scmp.lt.s32.totalorder (!%p187_p3), %s871_s15, 1  ;;  %v250_v0 = vld [vmem:[%s1081_s1] sm:$0xff] (!%p187_p3)  ;;  %vm370_vm0 = vcmask (!%p187_p3), 523264   ;;  %v881_v2 = vmov (!%p187_p3), 0   ;;  %v276_v3 = vld [vmem:[%s1082_s2 + $0x10] sm:$0xff] (!%p187_p3)  ;;  %v277_v13 = vld [vmem:[%s1082_s2 + $0x18] sm:$0xff] (!%p187_p3) }
   0x7   : > { %190 = sbr.rel (%p187_p3) target bundleno = 264 (0x108), region = 32  ;;  %v258_v1 = vld [vmem:[%s1081_s1 + $0x40] sm:$0xff] (!%p187_p3)  ;;  %782 = vmatprep.mubr.msk.f32.mxu0 (!%p187_p3), %vm370_vm0, %v250_v0  ;;  %856 = vset.pattern.permute.xlu1 (!%p187_p3), %v881_v2  ;;  %v275_v14 = vld [vmem:[%s1082_s2 + $0x8] sm:$0xff] (!%p187_p3)  ;;  %v281_v21 = vld [vmem:[%s1082_s2 + $0x38] sm:$0xff] (!%p187_p3) }
   0x8   : > { %794 = vmatprep.mubr.msk.f32.mxu1 (!%p187_p3), %vm370_vm0, %v258_v1  ;;  %855 = vset.pattern.permute.xlu0 (!%p187_p3), %v881_v2  ;;  %v274_v4 = vld [vmem:[%s1082_s2] sm:$0xff] (!%p187_p3)  ;;  %v279_v18 = vld [vmem:[%s1082_s2 + $0x28] sm:$0xff] (!%p187_p3)  ;;  %v280_v22 = vld [vmem:[%s1082_s2 + $0x30] sm:$0xff] (!%p187_p3) }
   0x9   : > { %302 = vperm.xlu1 (!%p187_p3), %856, %v276_v3   ;;  %292 = vperm.xlu0 (!%p187_p3), %855, %v274_v4   ;;  %v278_v19 = vld [vmem:[%s1082_s2 + $0x20] sm:$0xff] (!%p187_p3)  ;;  %v283_v23 = vld [vmem:[%s1082_s2 + $0x48] sm:$0xff] (!%p187_p3)  ;;  %v252_v27 = vld [vmem:[%s1081_s1 + $0x10] sm:$0xff] (!%p187_p3) }
   0xa   : > { %v282_v24 = vld [vmem:[%s1082_s2 + $0x40] sm:$0xff] (!%p187_p3)  ;;  %v251_v25 = vld [vmem:[%s1081_s1 + $0x8] sm:$0xff] (!%p187_p3)  ;;  %v260_v28 = vld [vmem:[%s1081_s1 + $0x50] sm:$0xff] (!%p187_p3) }
   0xb   : > { %v259_v26 = vld [vmem:[%s1081_s1 + $0x48] sm:$0xff] (!%p187_p3)  ;;  %v285_v29 = vld [vmem:[%s1082_s2 + $0x58] sm:$0xff] (!%p187_p3)  ;;  %v284_v30 = vld [vmem:[%s1082_s2 + $0x50] sm:$0xff] (!%p187_p3) }
   0xc   : > { %v253_v31 = vld [vmem:[%s1081_s1 + $0x18] sm:$0xff] (!%p187_p3)  ;;  %v254_v33 = vld [vmem:[%s1081_s1 + $0x20] sm:$0xff] (!%p187_p3)  ;;  %v287_v35 = vld [vmem:[%s1082_s2 + $0x68] sm:$0xff] (!%p187_p3) }
   0xd   : > { %307 = vperm.xlu1 (!%p187_p3), %856, %v277_v13   ;;  %297 = vperm.xlu0 (!%p187_p3), %855, %v275_v14   ;;  %v261_v32 = vld [vmem:[%s1081_s1 + $0x58] sm:$0xff] (!%p187_p3)  ;;  %v262_v34 = vld [vmem:[%s1081_s1 + $0x60] sm:$0xff] (!%p187_p3)  ;;  %v255_v37 = vld [vmem:[%s1081_s1 + $0x28] sm:$0xff] (!%p187_p3) }
   0xe   : > { %s1090_s15 = smov (!%p226_p4, %s871_s15), 1  ;;  %v286_v36 = vld [vmem:[%s1082_s2 + $0x60] sm:$0xff]  ;;  %v263_v38 = vld [vmem:[%s1081_s1 + $0x68] sm:$0xff]  ;;  %v256_v39 = vld [vmem:[%s1081_s1 + $0x30] sm:$0xff] }
   0xf   : > { %s933_s23 = sshll.u32 %s1090_s15, 6  ;;  %v264_v40 = vld [vmem:[%s1081_s1 + $0x70] sm:$0xff]  ;;  %v289_v41 = vld [vmem:[%s1082_s2 + $0x78] sm:$0xff] }
  0x10   : > { %s233_s26 = scalar_lea.vmem %s1080_s0, %s933_s23  ;;  %v288_v42 = vld [vmem:[%s1082_s2 + $0x70] sm:$0xff]  ;;  %v257_v43 = vld [vmem:[%s1081_s1 + $0x38] sm:$0xff]  ;;  %s1047_s22 = scalar_lea.vmem %s1083_s3, %s933_s23 }
  0x11   : > { %v266_v5 = vld [vmem:[%s233_s26] sm:$0xff]  ;;  %v267_v6 = vld [vmem:[%s233_s26 + $0x8] sm:$0xff]  ;;  %v268_v7 = vld [vmem:[%s233_s26 + $0x10] sm:$0xff]  ;;  %317 = vperm.xlu1 %856, %v279_v18   ;;  %312 = vperm.xlu0 %855, %v278_v19  }
  0x12   : > { %v806_v8 = vpack.c.bf16 %v267_v6, %v266_v5  ;;  %v269_v9 = vld [vmem:[%s233_s26 + $0x18] sm:$0xff]  ;;  %v270_v11 = vld [vmem:[%s233_s26 + $0x20] sm:$0xff]  ;;  %v271_v12 = vld [vmem:[%s233_s26 + $0x28] sm:$0xff] }
  0x13   : > { %v810_v10 = vpack.c.bf16 %v269_v9, %v268_v7  ;;  %v814_v15 = vpack.c.bf16 %v271_v12, %v270_v11  ;;  %v272_v16 = vld [vmem:[%s233_s26 + $0x30] sm:$0xff]  ;;  %v273_v17 = vld [vmem:[%s233_s26 + $0x38] sm:$0xff]  ;;  %s1053_s26 = scalar_lea.vmem %s1084_s4, %s933_s23 }
  0x14   : > { %807 = vmatprep.subr.bf16.mxu0 %v806_v8  ;;  %822 = vmatprep.subr.bf16.mxu1 %v806_v8  ;;  %v818_v20 = vpack.c.bf16 %v273_v17, %v272_v16  ;;  %v265_v44 = vld [vmem:[%s1081_s1 + $0x78] sm:$0xff] }
  0x15   : > { %809 = vmatpush3.bf16.msra.mxu0 %v806_v8  ;;  %826 = vmatpush3.bf16.msra.mxu1 %v806_v8 }
  0x16   : > { %811 = vmatprep.subr.bf16.mxu0 %v810_v10  ;;  %823 = vmatprep.subr.bf16.mxu1 %v810_v10 }
  0x17   : > { %327 = vperm.xlu1 %856, %v281_v21   ;;  %322 = vperm.xlu0 %855, %v280_v22  }
  0x19   : > { %813 = vmatpush3.bf16.msra.mxu0 %v810_v10  ;;  %827 = vmatpush3.bf16.msra.mxu1 %v810_v10 }
  0x1a   : > { %815 = vmatprep.subr.bf16.mxu0 %v814_v15  ;;  %824 = vmatprep.subr.bf16.mxu1 %v814_v15 }
  0x1b   : > { %337 = vperm.xlu1 %856, %v283_v23   ;;  %332 = vperm.xlu0 %855, %v282_v24  }
  0x1d   : > { %817 = vmatpush3.bf16.msra.mxu0 %v814_v15  ;;  %828 = vmatpush3.bf16.msra.mxu1 %v814_v15 }
  0x1e   : > { %819 = vmatprep.subr.bf16.mxu0 %v818_v20  ;;  %825 = vmatprep.subr.bf16.mxu1 %v818_v20 }
  0x1f   : > { %347 = vperm.xlu1 %856, %v285_v29   ;;  %342 = vperm.xlu0 %855, %v284_v30  }
  0x21   : > { %821 = vmatpush3.bf16.msra.mxu0 %v818_v20  ;;  %829 = vmatpush3.bf16.msra.mxu1 %v818_v20 }
  0x23   : > { %357 = vperm.xlu1 %856, %v287_v35   ;;  %352 = vperm.xlu0 %855, %v286_v36  }
  0x24   : > { %783 = vmatmul.mubr.msk.f32.vlgmr.msra.gmra.mrb[0].mxu0 %vm370_vm0, %v251_v25  ;;  %795 = vmatmul.mubr.msk.f32.vlgmr.msra.gmra.mrb[0].mxu1 %vm370_vm0, %v259_v26 }
  0x25   : > { %785 = vmatprep.mubr.msk.f32.mxu0 %vm370_vm0, %v252_v27  ;;  %797 = vmatprep.mubr.msk.f32.mxu1 %vm370_vm0, %v260_v28 }
  0x27   : > { %367 = vperm.xlu1 %856, %v289_v41   ;;  %362 = vperm.xlu0 %855, %v288_v42  }
  0x28   : > { %786 = vmatmul.mubr.msk.f32.gmra.mrb[2].mxu0 %vm370_vm0, %v253_v31  ;;  %798 = vmatmul.mubr.msk.f32.gmra.mrb[2].mxu1 %vm370_vm0, %v261_v32 }
  0x29   : > { %788 = vmatprep.mubr.msk.f32.mxu0 %vm370_vm0, %v254_v33  ;;  %800 = vmatprep.mubr.msk.f32.mxu1 %vm370_vm0, %v262_v34 }
  0x2c   : > { %789 = vmatmul.mubr.msk.f32.gmra.mrb[4].mxu0 %vm370_vm0, %v255_v37  ;;  %801 = vmatmul.mubr.msk.f32.gmra.mrb[4].mxu1 %vm370_vm0, %v263_v38 }
  0x2d   : > { %791 = vmatprep.mubr.msk.f32.mxu0 %vm370_vm0, %v256_v39  ;;  %803 = vmatprep.mubr.msk.f32.mxu1 %vm370_vm0, %v264_v40 }
  0x30   : > { %792 = vmatmul.mubr.msk.f32.gmra.mrb[6].mxu0 %vm370_vm0, %v257_v43  ;;  %804 = vmatmul.mubr.msk.f32.gmra.mrb[6].mxu1 %vm370_vm0, %v265_v44 }
  0x88   : > { %v303_v45 = vpop.permute.xlu1 %302  ;;  %v293_v46 = vpop.permute.xlu0 %292 }
  0x8c   : > { %v308_v47 = vpop.permute.xlu1 %307  ;;  %v298_v48 = vpop.permute.xlu0 %297 }
  0x90   : > { %v318_v49 = vpop.permute.xlu1 %317  ;;  %v313_v50 = vpop.permute.xlu0 %312 }
  0x96   : > { %v328_v51 = vpop.permute.xlu1 %327  ;;  %v323_v52 = vpop.permute.xlu0 %322 }
  0x9a   : > { %v338_v53 = vpop.permute.xlu1 %337  ;;  %v333_v54 = vpop.permute.xlu0 %332 }
  0x9e   : > { %v348_v55 = vpop.permute.xlu1 %347  ;;  %v343_v56 = vpop.permute.xlu0 %342 }
  0xa2   : > { %v358_v1 = vpop.permute.xlu1 %357  ;;  %v353_v2 = vpop.permute.xlu0 %352 }
  0xa6   : > { %v368_v19 = vpop.permute.xlu1 %367  ;;  %v363_v20 = vpop.permute.xlu0 %362 }
  0xf7   : > { %v784_v57 = vpop.f32.mrb[0].mxu0  ;;  %v796_v58 = vpop.f32.mrb[0].mxu1 }
  0xf8   : > { %v491_v59 = vadd.f32 %v784_v57, %v298_v48  ;;  %v531_v60 = vadd.f32 %v796_v58, %v338_v53  ;;  %v485_v61 = vpop.f32.mrb[1].mxu0  ;;  %v525_v62 = vpop.f32.mrb[1].mxu1 }
  0xf9   : > { %v486_v63 = vadd.f32 %v485_v61, %v293_v46  ;;  %v526_v0 = vadd.f32 %v525_v62, %v333_v54 }
  0xfa   : > { %565 = vst [vmem:[%s1047_s22 + $0x8] sm:$0xff] %v491_v59  ;;  %573 = vst [vmem:[%s1053_s26 + $0x8] sm:$0xff] %v531_v60 }
  0xfb   : > { %564 = vst [vmem:[%s1047_s22] sm:$0xff] %v486_v63  ;;  %572 = vst [vmem:[%s1053_s26] sm:$0xff] %v526_v0  ;;  %v787_v3 = vpop.f32.mrb[2].mxu0  ;;  %v799_v4 = vpop.f32.mrb[2].mxu1 }
  0xfc   : > { %v501_v5 = vadd.f32 %v787_v3, %v308_v47  ;;  %v541_v6 = vadd.f32 %v799_v4, %v348_v55  ;;  %v495_v7 = vpop.f32.mrb[3].mxu0  ;;  %v535_v8 = vpop.f32.mrb[3].mxu1 }
  0xfd   : > { %v496_v9 = vadd.f32 %v495_v7, %v303_v45  ;;  %v536_v10 = vadd.f32 %v535_v8, %v343_v56 }
  0xfe   : > { %567 = vst [vmem:[%s1047_s22 + $0x18] sm:$0xff] %v501_v5  ;;  %575 = vst [vmem:[%s1053_s26 + $0x18] sm:$0xff] %v541_v6 }
  0xff   : > { %566 = vst [vmem:[%s1047_s22 + $0x10] sm:$0xff] %v496_v9  ;;  %574 = vst [vmem:[%s1053_s26 + $0x10] sm:$0xff] %v536_v10  ;;  %v790_v11 = vpop.f32.mrb[4].mxu0  ;;  %v802_v12 = vpop.f32.mrb[4].mxu1 }
 0x100   : > { %v511_v13 = vadd.f32 %v790_v11, %v318_v49  ;;  %v551_v14 = vadd.f32 %v802_v12, %v358_v1  ;;  %v505_v15 = vpop.f32.mrb[5].mxu0  ;;  %v545_v16 = vpop.f32.mrb[5].mxu1 }
 0x101   : > { %v506_v17 = vadd.f32 %v505_v15, %v313_v50  ;;  %v546_v18 = vadd.f32 %v545_v16, %v353_v2 }
 0x102   : > { %569 = vst [vmem:[%s1047_s22 + $0x28] sm:$0xff] %v511_v13  ;;  %577 = vst [vmem:[%s1053_s26 + $0x28] sm:$0xff] %v551_v14 }
 0x103   : > { %568 = vst [vmem:[%s1047_s22 + $0x20] sm:$0xff] %v506_v17  ;;  %576 = vst [vmem:[%s1053_s26 + $0x20] sm:$0xff] %v546_v18  ;;  %v793_v21 = vpop.f32.mrb[6].mxu0  ;;  %v805_v22 = vpop.f32.mrb[6].mxu1 }
 0x104   : > { %v521_v23 = vadd.f32 %v793_v21, %v328_v51  ;;  %v561_v24 = vadd.f32 %v805_v22, %v368_v19  ;;  %v515_v25 = vpop.f32.mrb[7].mxu0  ;;  %v555_v26 = vpop.f32.mrb[7].mxu1 }
 0x105   : > { %v516_v27 = vadd.f32 %v515_v25, %v323_v52  ;;  %v556_v28 = vadd.f32 %v555_v26, %v363_v20 }
 0x106   : > { %571 = vst [vmem:[%s1047_s22 + $0x38] sm:$0xff] %v521_v23  ;;  %579 = vst [vmem:[%s1053_s26 + $0x38] sm:$0xff] %v561_v24 }
 0x107   : > { %570 = vst [vmem:[%s1047_s22 + $0x30] sm:$0xff] %v516_v27  ;;  %578 = vst [vmem:[%s1053_s26 + $0x30] sm:$0xff] %v556_v28 }
 0x108 PF: > { %s15_s17 = sadd.s32 1, %s879_s17   ;;  %s1085_s15 = smov %s875_s16 }
 0x109   : > { %p12_p5 = scmp.ge.s32.totalorder %s15_s17, 4   ;;  %s1086_s16 = smov %s1088_s18 }
 0x10b   :  { %14 = sbr.rel (!%p12_p5) target bundleno = 2 (0x2), region = 74 }

// kernel: _lambda_.21
= control target key start
LH: loop header
LB: loop body
LE: loop exit
PB: predicated region body
PF: predicated region fallthrough
CT: control target
= control target key end

     0   :  { %s4004_s18 = smov 0   ;;  %s4006_s19 = smov 0   ;;  %s6772_s0 = inlined_call_operand.vmem [shape: f32[2,64,128], index: 0, kind: input, shape index: {}]   ;;  %s6773_s1 = inlined_call_operand.vmem [shape: f32[2,64,128], index: 1, kind: input, shape index: {}]   ;;  %s6774_s2 = inlined_call_operand.vmem [shape: f32[2,64,128], index: 2, kind: input, shape index: {}]   ;;  %s6775_s3 = inlined_call_operand.vmem [shape: f32[1024,192], index: 3, kind: input, shape index: {}]   ;;  %s6776_s4 = inlined_call_operand.vmem [shape: f32[1024,1], index: 4, kind: input, shape index: {}]   ;;  %s6777_s5 = inlined_call_operand.vmem [shape: f32[2,1024,1], index: 5, kind: output, shape index: {}]  }
   0x1   :  { %s4008_s20 = smov 0  }
   0x2 LB: > { %s27_s21 = sadd.s32 1, %s3965_s19  ;;  %p3715_p0 = scmp.ge.s32.totalorder %s3969_s20, 1  ;;  %s3969_s20 = sphi %s4008_s20, %s15_s20   ;;  %s3965_s19 = sphi %s4006_s19, %s6855_s19   ;;  %s3961_s18 = sphi %s4004_s18, %s6854_s18  }
   0x3   : > { %p29_p1 = scmp.ge.s32.totalorder %s27_s21, 2  ;;  %p234_p2 = scmp.lt.s32.totalorder %s3969_s20, 3 }
   0x5   : > { %s6857_s21 = smov (%p29_p1, %s27_s21), 0  ;;  %p235_p3 = pnand %p3715_p0, %p234_p2 }
   0x7   : > { %238 = sbr.rel (%p235_p3) target bundleno = 753 (0x2f1), region = 40 }
   0xe   : > { %v725_v0 = vld [vmem:[%s6776_s4 + $0x10] sm:$0xff]  ;;  %v723_v1 = vld [vmem:[%s6776_s4] sm:$0xff]  ;;  %p281_p4 = scmp.lt.s32.totalorder %s3961_s18, 1  ;;  %v3971_v2 = vmov 0   ;;  %v726_v3 = vld [vmem:[%s6776_s4 + $0x18] sm:$0xff]  ;;  %v3972_v5 = vmov 0.0|0.0  }
   0xf   : > { %3946 = vset.pattern.permute.xlu1 %v3971_v2  ;;  %3945 = vset.pattern.permute.xlu0 %v3971_v2  ;;  %v724_v4 = vld [vmem:[%s6776_s4 + $0x8] sm:$0xff]  ;;  %v727_v11 = vld [vmem:[%s6776_s4 + $0x20] sm:$0xff]  ;;  %v730_v16 = vld [vmem:[%s6776_s4 + $0x38] sm:$0xff]  ;;  %vm1491_vm0 = vcmask 523264   ;;  %vm314_vm6 = vcmask 7168  }
  0x10   : > { %863 = vperm.xlu1 %3946, %v725_v0   ;;  %853 = vperm.xlu0 %3945, %v723_v1   ;;  %s6859_s18 = smov (!%p281_p4, %s3961_s18), 1  ;;  %v728_v10 = vld [vmem:[%s6776_s4 + $0x28] sm:$0xff]  ;;  %v729_v17 = vld [vmem:[%s6776_s4 + $0x30] sm:$0xff]  ;;  %v731_v22 = vld [vmem:[%s6776_s4 + $0x40] sm:$0xff] }
  0x11   : > { %3858 = vmatprep.subr.bf16.mxu0 %v3972_v5  ;;  %3894 = vmatprep.subr.bf16.mxu1 %v3972_v5  ;;  %s4039_s30 = sshll.u32 %s6859_s18, 6  ;;  %v732_v21 = vld [vmem:[%s6776_s4 + $0x48] sm:$0xff]  ;;  %v734_v28 = vld [vmem:[%s6776_s4 + $0x58] sm:$0xff]  ;;  %v733_v29 = vld [vmem:[%s6776_s4 + $0x50] sm:$0xff]  ;;  %s3857_s26 = sshll.u32 %s6859_s18, 10 }
  0x12   : > { %s288_s8 = scalar_lea.vmem %s6772_s0, %s4039_s30  ;;  %s4071_s27 = scalar_lea.vmem %s6773_s1, %s4039_s30  ;;  %v468_v24 = vld [vmem:[%s6775_s3 + $0x8] sm:$0xff]  ;;  %v735_v34 = vld [vmem:[%s6776_s4 + $0x60] sm:$0xff]  ;;  %v738_v38 = vld [vmem:[%s6776_s4 + $0x78] sm:$0xff] }
  0x13   : > { %v443_v6 = vld [vmem:[%s288_s8] sm:$0xff]  ;;  %v444_v7 = vld [vmem:[%s288_s8 + $0x8] sm:$0xff]  ;;  %v445_v8 = vld [vmem:[%s288_s8 + $0x10] sm:$0xff]  ;;  %3724 = vmatprep.mubr.msk.f32.mxu0 %vm1491_vm0, %v468_v24  ;;  %s4125_s7 = scalar_lea.vmem %s6774_s2, %s4039_s30 }
  0x14   : > { %868 = vperm.xlu1 %3946, %v726_v3   ;;  %858 = vperm.xlu0 %3945, %v724_v4   ;;  %v3859_v9 = vpack.c.bf16 %v444_v7, %v443_v6  ;;  %v446_v12 = vld [vmem:[%s288_s8 + $0x18] sm:$0xff]  ;;  %v447_v14 = vld [vmem:[%s288_s8 + $0x20] sm:$0xff]  ;;  %v448_v15 = vld [vmem:[%s288_s8 + $0x28] sm:$0xff] }
  0x15   : > { %v3862_v13 = vpack.c.bf16 %v446_v12, %v445_v8  ;;  %v3865_v18 = vpack.c.bf16 %v448_v15, %v447_v14  ;;  %v449_v19 = vld [vmem:[%s288_s8 + $0x30] sm:$0xff]  ;;  %v450_v20 = vld [vmem:[%s288_s8 + $0x38] sm:$0xff]  ;;  %v596_v25 = vld [vmem:[%s6775_s3 + $0x408] sm:$0xff]  ;;  %s5485_s8 = scalar_lea.vmem %s6777_s5, %s3857_s26 }
  0x16   : > { %3860 = vmatpush1.bf16.msra.mxu0 %v3859_v9  ;;  %3906 = vmatpush1.bf16.msra.mxu1 %v3859_v9  ;;  %v3868_v23 = vpack.c.bf16 %v450_v20, %v449_v19  ;;  %v451_v26 = vld [vmem:[%s4071_s27] sm:$0xff]  ;;  %v452_v27 = vld [vmem:[%s4071_s27 + $0x8] sm:$0xff]  ;;  %v453_v31 = vld [vmem:[%s4071_s27 + $0x10] sm:$0xff] }
  0x17   : > { %3861 = vmatprep.subr.bf16.mxu0 %v3972_v5  ;;  %3895 = vmatprep.subr.bf16.mxu1 %v3972_v5  ;;  %v3871_v30 = vpack.c.bf16 %v452_v27, %v451_v26  ;;  %v454_v32 = vld [vmem:[%s4071_s27 + $0x18] sm:$0xff]  ;;  %v736_v33 = vld [vmem:[%s6776_s4 + $0x68] sm:$0xff]  ;;  %v455_v36 = vld [vmem:[%s4071_s27 + $0x20] sm:$0xff] }
  0x18   : > { %878 = vperm.xlu1 %3946, %v728_v10   ;;  %873 = vperm.xlu0 %3945, %v727_v11   ;;  %v3874_v35 = vpack.c.bf16 %v454_v32, %v453_v31  ;;  %v456_v37 = vld [vmem:[%s4071_s27 + $0x28] sm:$0xff]  ;;  %v737_v39 = vld [vmem:[%s6776_s4 + $0x70] sm:$0xff]  ;;  %v458_v42 = vld [vmem:[%s4071_s27 + $0x38] sm:$0xff] }
  0x19   : > { %3788 = vmatprep.mubr.msk.f32.mxu1 %vm1491_vm0, %v596_v25  ;;  %v3877_v40 = vpack.c.bf16 %v456_v37, %v455_v36  ;;  %v457_v41 = vld [vmem:[%s4071_s27 + $0x30] sm:$0xff]  ;;  %v740_v43 = vld [vmem:[%s6776_s4 + $0x88] sm:$0xff]  ;;  %v739_v44 = vld [vmem:[%s6776_s4 + $0x80] sm:$0xff] }
  0x1a   : > { %3863 = vmatpush1.bf16.msra.mxu0 %v3862_v13  ;;  %3907 = vmatpush1.bf16.msra.mxu1 %v3862_v13  ;;  %v3880_v45 = vpack.c.bf16 %v458_v42, %v457_v41  ;;  %v459_v46 = vld [vmem:[%s4125_s7] sm:$0xff]  ;;  %v460_v47 = vld [vmem:[%s4125_s7 + $0x8] sm:$0xff]  ;;  %v742_v48 = vld [vmem:[%s6776_s4 + $0x98] sm:$0xff] }
  0x1b   : > { %3864 = vmatprep.subr.bf16.mxu0 %v3972_v5  ;;  %3896 = vmatprep.subr.bf16.mxu1 %v3972_v5  ;;  %v741_v49 = vld [vmem:[%s6776_s4 + $0x90] sm:$0xff]  ;;  %v3883_v50 = vpack.c.bf16 %v460_v47, %v459_v46  ;;  %v462_v52 = vld [vmem:[%s4125_s7 + $0x18] sm:$0xff]  ;;  %v744_v53 = vld [vmem:[%s6776_s4 + $0xa8] sm:$0xff] }
  0x1c   : > { %888 = vperm.xlu1 %3946, %v730_v16   ;;  %883 = vperm.xlu0 %3945, %v729_v17   ;;  %v461_v51 = vld [vmem:[%s4125_s7 + $0x10] sm:$0xff]  ;;  %v743_v54 = vld [vmem:[%s6776_s4 + $0xa0] sm:$0xff]  ;;  %v464_v57 = vld [vmem:[%s4125_s7 + $0x28] sm:$0xff] }
  0x1d   : > { %v3886_v55 = vpack.c.bf16 %v462_v52, %v461_v51  ;;  %v463_v56 = vld [vmem:[%s4125_s7 + $0x20] sm:$0xff]  ;;  %v746_v58 = vld [vmem:[%s6776_s4 + $0xb8] sm:$0xff]  ;;  %v745_v59 = vld [vmem:[%s6776_s4 + $0xb0] sm:$0xff] }
  0x1e   : > { %3866 = vmatpush1.bf16.msra.mxu0 %v3865_v18  ;;  %3908 = vmatpush1.bf16.msra.mxu1 %v3865_v18  ;;  %v3889_v60 = vpack.c.bf16 %v464_v57, %v463_v56  ;;  %v465_v61 = vld [vmem:[%s4125_s7 + $0x30] sm:$0xff]  ;;  %v466_v62 = vld [vmem:[%s4125_s7 + $0x38] sm:$0xff]  ;;  %v748_v63 = vld [vmem:[%s6776_s4 + $0xc8] sm:$0xff] }
  0x1f   : > { %3867 = vmatprep.subr.bf16.mxu0 %v3972_v5  ;;  %3897 = vmatprep.subr.bf16.mxu1 %v3972_v5  ;;  %v747_v0 = vld [vmem:[%s6776_s4 + $0xc0] sm:$0xff]  ;;  %v3892_v1 = vpack.c.bf16 %v466_v62, %v465_v61  ;;  %v750_v2 = vld [vmem:[%s6776_s4 + $0xd8] sm:$0xff]  ;;  %v749_v3 = vld [vmem:[%s6776_s4 + $0xd0] sm:$0xff] }
  0x20   : > { %898 = vperm.xlu1 %3946, %v732_v21   ;;  %893 = vperm.xlu0 %3945, %v731_v22   ;;  %v467_v4 = vld [vmem:[%s6775_s3] sm:$0xff]  ;;  %v598_v7 = vld [vmem:[%s6775_s3 + $0x418] sm:$0xff]  ;;  %v752_v8 = vld [vmem:[%s6776_s4 + $0xe8] sm:$0xff] }
  0x21   : > { %v595_v6 = vld [vmem:[%s6775_s3 + $0x400] sm:$0xff]  ;;  %v469_v10 = vld [vmem:[%s6775_s3 + $0x10] sm:$0xff]  ;;  %v472_v12 = vld [vmem:[%s6775_s3 + $0x28] sm:$0xff] }
  0x22   : > { %3869 = vmatpush1.bf16.msra.mxu0 %v3868_v23  ;;  %3909 = vmatpush1.bf16.msra.mxu1 %v3868_v23  ;;  %v751_v9 = vld [vmem:[%s6776_s4 + $0xe0] sm:$0xff]  ;;  %v597_v11 = vld [vmem:[%s6775_s3 + $0x410] sm:$0xff]  ;;  %v600_v13 = vld [vmem:[%s6775_s3 + $0x428] sm:$0xff] }
  0x23   : > { %3870 = vmatprep.subr.bf16.mxu0 %v3972_v5  ;;  %3898 = vmatprep.subr.bf16.mxu1 %v3972_v5  ;;  %v754_v14 = vld [vmem:[%s6776_s4 + $0xf8] sm:$0xff]  ;;  %v753_v15 = vld [vmem:[%s6776_s4 + $0xf0] sm:$0xff]  ;;  %v471_v16 = vld [vmem:[%s6775_s3 + $0x20] sm:$0xff] }
  0x24   : > { %908 = vperm.xlu1 %3946, %v734_v28   ;;  %903 = vperm.xlu0 %3945, %v733_v29   ;;  %v599_v17 = vld [vmem:[%s6775_s3 + $0x420] sm:$0xff]  ;;  %v474_v18 = vld [vmem:[%s6775_s3 + $0x38] sm:$0xff]  ;;  %v756_v20 = vld [vmem:[%s6776_s4 + $0x108] sm:$0xff] }
  0x25   : > { %v602_v19 = vld [vmem:[%s6775_s3 + $0x438] sm:$0xff]  ;;  %v755_v21 = vld [vmem:[%s6776_s4 + $0x100] sm:$0xff]  ;;  %v473_v22 = vld [vmem:[%s6775_s3 + $0x30] sm:$0xff] }
  0x26   : > { %3872 = vmatpush1.bf16.msra.mxu0 %v3871_v30  ;;  %3910 = vmatpush1.bf16.msra.mxu1 %v3871_v30  ;;  %v601_v23 = vld [vmem:[%s6775_s3 + $0x430] sm:$0xff]  ;;  %v476_v24 = vld [vmem:[%s6775_s3 + $0x48] sm:$0xff]  ;;  %v758_v26 = vld [vmem:[%s6776_s4 + $0x118] sm:$0xff] }
  0x27   : > { %3873 = vmatprep.subr.bf16.mxu0 %v3972_v5  ;;  %3899 = vmatprep.subr.bf16.mxu1 %v3972_v5  ;;  %v604_v25 = vld [vmem:[%s6775_s3 + $0x448] sm:$0xff]  ;;  %v757_v27 = vld [vmem:[%s6776_s4 + $0x110] sm:$0xff]  ;;  %v475_v28 = vld [vmem:[%s6775_s3 + $0x40] sm:$0xff] }
  0x28   : > { %918 = vperm.xlu1 %3946, %v736_v33   ;;  %913 = vperm.xlu0 %3945, %v735_v34   ;;  %v603_v29 = vld [vmem:[%s6775_s3 + $0x440] sm:$0xff]  ;;  %v478_v30 = vld [vmem:[%s6775_s3 + $0x58] sm:$0xff]  ;;  %v760_v32 = vld [vmem:[%s6776_s4 + $0x128] sm:$0xff] }
  0x29   : > { %v606_v31 = vld [vmem:[%s6775_s3 + $0x458] sm:$0xff]  ;;  %v759_v33 = vld [vmem:[%s6776_s4 + $0x120] sm:$0xff]  ;;  %v477_v34 = vld [vmem:[%s6775_s3 + $0x50] sm:$0xff] }
  0x2a   : > { %3875 = vmatpush1.bf16.msra.mxu0 %v3874_v35  ;;  %3911 = vmatpush1.bf16.msra.mxu1 %v3874_v35  ;;  %v605_v35 = vld [vmem:[%s6775_s3 + $0x450] sm:$0xff]  ;;  %v480_v36 = vld [vmem:[%s6775_s3 + $0x68] sm:$0xff]  ;;  %v607_v41 = vld [vmem:[%s6775_s3 + $0x460] sm:$0xff] }
  0x2b   : > { %3876 = vmatprep.subr.bf16.mxu0 %v3972_v5  ;;  %3900 = vmatprep.subr.bf16.mxu1 %v3972_v5  ;;  %v608_v37 = vld [vmem:[%s6775_s3 + $0x468] sm:$0xff]  ;;  %v482_v42 = vld [vmem:[%s6775_s3 + $0x78] sm:$0xff]  ;;  %v481_v46 = vld [vmem:[%s6775_s3 + $0x70] sm:$0xff] }
  0x2c   : > { %928 = vperm.xlu1 %3946, %v738_v38   ;;  %923 = vperm.xlu0 %3945, %v737_v39   ;;  %v762_v38 = vld [vmem:[%s6776_s4 + $0x138] sm:$0xff]  ;;  %v761_v39 = vld [vmem:[%s6776_s4 + $0x130] sm:$0xff]  ;;  %v483_v52 = vld [vmem:[%s6775_s3 + $0x80] sm:$0xff] }
  0x2d   : > { %v609_v47 = vld [vmem:[%s6775_s3 + $0x470] sm:$0xff]  ;;  %v768_v56 = vld [vmem:[%s6776_s4 + $0x168] sm:$0xff]  ;;  %v767_v57 = vld [vmem:[%s6776_s4 + $0x160] sm:$0xff] }
  0x2e   : > { %3878 = vmatpush1.bf16.msra.mxu0 %v3877_v40  ;;  %3912 = vmatpush1.bf16.msra.mxu1 %v3877_v40  ;;  %v479_v40 = vld [vmem:[%s6775_s3 + $0x60] sm:$0xff]  ;;  %v765_v51 = vld [vmem:[%s6776_s4 + $0x150] sm:$0xff]  ;;  %v616_v61 = vld [vmem:[%s6775_s3 + $0x4a8] sm:$0xff] }
  0x2f   : > { %3879 = vmatprep.subr.bf16.mxu0 %v3972_v5  ;;  %3901 = vmatprep.subr.bf16.mxu1 %v3972_v5  ;;  %v770_v62 = vld [vmem:[%s6776_s4 + $0x178] sm:$0xff] }
  0x30   : > { %938 = vperm.xlu1 %3946, %v740_v43   ;;  %933 = vperm.xlu0 %3945, %v739_v44   ;;  %v610_v43 = vld [vmem:[%s6775_s3 + $0x478] sm:$0xff]  ;;  %v764_v44 = vld [vmem:[%s6776_s4 + $0x148] sm:$0xff] }
  0x32   : > { %3881 = vmatpush1.bf16.msra.mxu0 %v3880_v45  ;;  %3913 = vmatpush1.bf16.msra.mxu1 %v3880_v45  ;;  %v763_v45 = vld [vmem:[%s6776_s4 + $0x140] sm:$0xff] }
  0x33   : > { %3882 = vmatprep.subr.bf16.mxu0 %v3972_v5  ;;  %3902 = vmatprep.subr.bf16.mxu1 %v3972_v5 }
  0x34   : > { %948 = vperm.xlu1 %3946, %v742_v48   ;;  %943 = vperm.xlu0 %3945, %v741_v49   ;;  %v484_v48 = vld [vmem:[%s6775_s3 + $0x88] sm:$0xff] }
  0x35   : > { %v612_v49 = vld [vmem:[%s6775_s3 + $0x488] sm:$0xff] }
  0x36   : > { %3884 = vmatpush1.bf16.msra.mxu0 %v3883_v50  ;;  %3914 = vmatpush1.bf16.msra.mxu1 %v3883_v50  ;;  %v766_v50 = vld [vmem:[%s6776_s4 + $0x158] sm:$0xff] }
  0x37   : > { %3885 = vmatprep.subr.bf16.mxu0 %v3972_v5  ;;  %3903 = vmatprep.subr.bf16.mxu1 %v3972_v5 }
  0x38   : > { %958 = vperm.xlu1 %3946, %v744_v53   ;;  %953 = vperm.xlu0 %3945, %v743_v54   ;;  %v611_v53 = vld [vmem:[%s6775_s3 + $0x480] sm:$0xff]  ;;  %v486_v54 = vld [vmem:[%s6775_s3 + $0x98] sm:$0xff] }
  0x3a   : > { %3887 = vmatpush1.bf16.msra.mxu0 %v3886_v55  ;;  %3915 = vmatpush1.bf16.msra.mxu1 %v3886_v55  ;;  %v614_v55 = vld [vmem:[%s6775_s3 + $0x498] sm:$0xff] }
  0x3b   : > { %3888 = vmatprep.subr.bf16.mxu0 %v3972_v5  ;;  %3904 = vmatprep.subr.bf16.mxu1 %v3972_v5 }
  0x3c   : > { %968 = vperm.xlu1 %3946, %v746_v58   ;;  %963 = vperm.xlu0 %3945, %v745_v59   ;;  %v485_v58 = vld [vmem:[%s6775_s3 + $0x90] sm:$0xff] }
  0x3d   : > { %v613_v59 = vld [vmem:[%s6775_s3 + $0x490] sm:$0xff] }
  0x3e   : > { %3890 = vmatpush1.bf16.msra.mxu0 %v3889_v60  ;;  %3916 = vmatpush1.bf16.msra.mxu1 %v3889_v60  ;;  %v488_v60 = vld [vmem:[%s6775_s3 + $0xa8] sm:$0xff] }
  0x3f   : > { %3891 = vmatprep.subr.bf16.mxu0 %v3972_v5  ;;  %3905 = vmatprep.subr.bf16.mxu1 %v3972_v5  ;;  %v470_v5 = vld [vmem:[%s6775_s3 + $0x18] sm:$0xff] }
  0x40   : > { %978 = vperm.xlu1 %3946, %v748_v63   ;;  %973 = vperm.xlu0 %3945, %v747_v0   ;;  %v769_v63 = vld [vmem:[%s6776_s4 + $0x170] sm:$0xff]  ;;  %v487_v0 = vld [vmem:[%s6775_s3 + $0xa0] sm:$0xff] }
  0x42   : > { %3893 = vmatpush1.bf16.msra.mxu0 %v3892_v1  ;;  %3917 = vmatpush1.bf16.msra.mxu1 %v3892_v1  ;;  %v615_v1 = vld [vmem:[%s6775_s3 + $0x4a0] sm:$0xff] }
  0x44   : > { %988 = vperm.xlu1 %3946, %v750_v2   ;;  %983 = vperm.xlu0 %3945, %v749_v3   ;;  %v490_v2 = vld [vmem:[%s6775_s3 + $0xb8] sm:$0xff] }
  0x45   : > { %1941 = vmatmul.mubr.f32.vlgmr.msra.gmra.mrb[0].mxu0 %v467_v4  ;;  %2261 = vmatmul.mubr.f32.vlgmr.msra.gmra.mrb[0].mxu1 %v595_v6  ;;  %v618_v3 = vld [vmem:[%s6775_s3 + $0x4b8] sm:$0xff]  ;;  %v772_v4 = vld [vmem:[%s6776_s4 + $0x188] sm:$0xff]  ;;  %v771_v6 = vld [vmem:[%s6776_s4 + $0x180] sm:$0xff] }
  0x46   : > { %3725 = vmatprep.mubr.msk.f32.mxu0 %vm1491_vm0, %v470_v5  ;;  %3789 = vmatprep.mubr.msk.f32.mxu1 %vm1491_vm0, %v598_v7  ;;  %v489_v5 = vld [vmem:[%s6775_s3 + $0xb0] sm:$0xff] }
  0x47   : > { %v617_v7 = vld [vmem:[%s6775_s3 + $0x4b0] sm:$0xff] }
  0x48   : > { %998 = vperm.xlu1 %3946, %v752_v8   ;;  %993 = vperm.xlu0 %3945, %v751_v9   ;;  %v492_v8 = vld [vmem:[%s6775_s3 + $0xc8] sm:$0xff] }
  0x49   : > { %1946 = vmatmul.mubr.f32.gmra.mrb[2].mxu0 %v469_v10  ;;  %2266 = vmatmul.mubr.f32.gmra.mrb[2].mxu1 %v597_v11  ;;  %v620_v9 = vld [vmem:[%s6775_s3 + $0x4c8] sm:$0xff]  ;;  %v774_v10 = vld [vmem:[%s6776_s4 + $0x198] sm:$0xff]  ;;  %v773_v11 = vld [vmem:[%s6776_s4 + $0x190] sm:$0xff] }
  0x4a   : > { %3726 = vmatprep.mubr.msk.f32.mxu0 %vm1491_vm0, %v472_v12  ;;  %3790 = vmatprep.mubr.msk.f32.mxu1 %vm1491_vm0, %v600_v13  ;;  %v491_v12 = vld [vmem:[%s6775_s3 + $0xc0] sm:$0xff] }
  0x4b   : > { %v619_v13 = vld [vmem:[%s6775_s3 + $0x4c0] sm:$0xff] }
  0x4c   : > { %1008 = vperm.xlu1 %3946, %v754_v14   ;;  %1003 = vperm.xlu0 %3945, %v753_v15   ;;  %v494_v14 = vld [vmem:[%s6775_s3 + $0xd8] sm:$0xff] }
  0x4d   : > { %1951 = vmatmul.mubr.f32.gmra.mrb[4].mxu0 %v471_v16  ;;  %2271 = vmatmul.mubr.f32.gmra.mrb[4].mxu1 %v599_v17  ;;  %v622_v15 = vld [vmem:[%s6775_s3 + $0x4d8] sm:$0xff]  ;;  %v776_v16 = vld [vmem:[%s6776_s4 + $0x1a8] sm:$0xff]  ;;  %v775_v17 = vld [vmem:[%s6776_s4 + $0x1a0] sm:$0xff] }
  0x4e   : > { %3727 = vmatprep.mubr.msk.f32.mxu0 %vm1491_vm0, %v474_v18  ;;  %3791 = vmatprep.mubr.msk.f32.mxu1 %vm1491_vm0, %v602_v19  ;;  %v493_v18 = vld [vmem:[%s6775_s3 + $0xd0] sm:$0xff] }
  0x4f   : > { %v621_v19 = vld [vmem:[%s6775_s3 + $0x4d0] sm:$0xff] }
  0x50   : > { %1018 = vperm.xlu1 %3946, %v756_v20   ;;  %1013 = vperm.xlu0 %3945, %v755_v21   ;;  %v496_v20 = vld [vmem:[%s6775_s3 + $0xe8] sm:$0xff] }
  0x51   : > { %1956 = vmatmul.mubr.f32.gmra.mrb[6].mxu0 %v473_v22  ;;  %2276 = vmatmul.mubr.f32.gmra.mrb[6].mxu1 %v601_v23  ;;  %v624_v21 = vld [vmem:[%s6775_s3 + $0x4e8] sm:$0xff]  ;;  %v778_v22 = vld [vmem:[%s6776_s4 + $0x1b8] sm:$0xff]  ;;  %v777_v23 = vld [vmem:[%s6776_s4 + $0x1b0] sm:$0xff] }
  0x52   : > { %3728 = vmatprep.mubr.msk.f32.mxu0 %vm1491_vm0, %v476_v24  ;;  %3792 = vmatprep.mubr.msk.f32.mxu1 %vm1491_vm0, %v604_v25  ;;  %v495_v24 = vld [vmem:[%s6775_s3 + $0xe0] sm:$0xff] }
  0x53   : > { %v623_v25 = vld [vmem:[%s6775_s3 + $0x4e0] sm:$0xff] }
  0x54   : > { %1028 = vperm.xlu1 %3946, %v758_v26   ;;  %1023 = vperm.xlu0 %3945, %v757_v27   ;;  %v498_v26 = vld [vmem:[%s6775_s3 + $0xf8] sm:$0xff] }
  0x55   : > { %1961 = vmatmul.mubr.f32.gmra.mrb[8].mxu0 %v475_v28  ;;  %2281 = vmatmul.mubr.f32.gmra.mrb[8].mxu1 %v603_v29  ;;  %v626_v27 = vld [vmem:[%s6775_s3 + $0x4f8] sm:$0xff]  ;;  %v780_v28 = vld [vmem:[%s6776_s4 + $0x1c8] sm:$0xff]  ;;  %v779_v29 = vld [vmem:[%s6776_s4 + $0x1c0] sm:$0xff] }
  0x56   : > { %3729 = vmatprep.mubr.msk.f32.mxu0 %vm1491_vm0, %v478_v30  ;;  %3793 = vmatprep.mubr.msk.f32.mxu1 %vm1491_vm0, %v606_v31  ;;  %v497_v30 = vld [vmem:[%s6775_s3 + $0xf0] sm:$0xff] }
  0x57   : > { %v625_v31 = vld [vmem:[%s6775_s3 + $0x4f0] sm:$0xff] }
  0x58   : > { %1038 = vperm.xlu1 %3946, %v760_v32   ;;  %1033 = vperm.xlu0 %3945, %v759_v33   ;;  %v500_v32 = vld [vmem:[%s6775_s3 + $0x108] sm:$0xff] }
  0x59   : > { %1966 = vmatmul.mubr.f32.gmra.mrb[10].mxu0 %v477_v34  ;;  %2286 = vmatmul.mubr.f32.gmra.mrb[10].mxu1 %v605_v35  ;;  %v628_v33 = vld [vmem:[%s6775_s3 + $0x508] sm:$0xff]  ;;  %v782_v34 = vld [vmem:[%s6776_s4 + $0x1d8] sm:$0xff]  ;;  %v781_v35 = vld [vmem:[%s6776_s4 + $0x1d0] sm:$0xff] }
  0x5a   : > { %3730 = vmatprep.mubr.msk.f32.mxu0 %vm1491_vm0, %v480_v36  ;;  %3794 = vmatprep.mubr.msk.f32.mxu1 %vm1491_vm0, %v608_v37  ;;  %v499_v36 = vld [vmem:[%s6775_s3 + $0x100] sm:$0xff] }
  0x5b   : > { %v627_v37 = vld [vmem:[%s6775_s3 + $0x500] sm:$0xff] }
  0x5c   : > { %1048 = vperm.xlu1 %3946, %v762_v38   ;;  %1043 = vperm.xlu0 %3945, %v761_v39   ;;  %v502_v38 = vld [vmem:[%s6775_s3 + $0x118] sm:$0xff] }
  0x5d   : > { %1971 = vmatmul.mubr.f32.gmra.mrb[12].mxu0 %v479_v40  ;;  %2291 = vmatmul.mubr.f32.gmra.mrb[12].mxu1 %v607_v41  ;;  %v630_v39 = vld [vmem:[%s6775_s3 + $0x518] sm:$0xff]  ;;  %v784_v40 = vld [vmem:[%s6776_s4 + $0x1e8] sm:$0xff]  ;;  %v783_v41 = vld [vmem:[%s6776_s4 + $0x1e0] sm:$0xff] }
  0x5e   : > { %3731 = vmatprep.mubr.msk.f32.mxu0 %vm1491_vm0, %v482_v42  ;;  %3795 = vmatprep.mubr.msk.f32.mxu1 %vm1491_vm0, %v610_v43  ;;  %v501_v42 = vld [vmem:[%s6775_s3 + $0x110] sm:$0xff] }
  0x5f   : > { %v629_v43 = vld [vmem:[%s6775_s3 + $0x510] sm:$0xff] }
  0x60   : > { %1058 = vperm.xlu1 %3946, %v764_v44   ;;  %1053 = vperm.xlu0 %3945, %v763_v45   ;;  %v504_v44 = vld [vmem:[%s6775_s3 + $0x128] sm:$0xff] }
  0x61   : > { %1976 = vmatmul.mubr.f32.gmra.mrb[14].mxu0 %v481_v46  ;;  %2296 = vmatmul.mubr.f32.gmra.mrb[14].mxu1 %v609_v47  ;;  %v632_v45 = vld [vmem:[%s6775_s3 + $0x528] sm:$0xff]  ;;  %v786_v46 = vld [vmem:[%s6776_s4 + $0x1f8] sm:$0xff]  ;;  %v785_v47 = vld [vmem:[%s6776_s4 + $0x1f0] sm:$0xff] }
  0x62   : > { %3732 = vmatprep.mubr.msk.f32.mxu0 %vm1491_vm0, %v484_v48  ;;  %3796 = vmatprep.mubr.msk.f32.mxu1 %vm1491_vm0, %v612_v49  ;;  %v503_v48 = vld [vmem:[%s6775_s3 + $0x120] sm:$0xff] }
  0x63   : > { %v631_v49 = vld [vmem:[%s6775_s3 + $0x520] sm:$0xff] }
  0x64   : > { %1068 = vperm.xlu1 %3946, %v766_v50   ;;  %1063 = vperm.xlu0 %3945, %v765_v51   ;;  %v506_v50 = vld [vmem:[%s6775_s3 + $0x138] sm:$0xff] }
  0x65   : > { %1981 = vmatmul.mubr.f32.gmra.mrb[16].mxu0 %v483_v52  ;;  %2301 = vmatmul.mubr.f32.gmra.mrb[16].mxu1 %v611_v53  ;;  %v634_v51 = vld [vmem:[%s6775_s3 + $0x538] sm:$0xff]  ;;  %v788_v52 = vld [vmem:[%s6776_s4 + $0x208] sm:$0xff]  ;;  %v787_v53 = vld [vmem:[%s6776_s4 + $0x200] sm:$0xff] }
  0x66   : > { %3733 = vmatprep.mubr.msk.f32.mxu0 %vm1491_vm0, %v486_v54  ;;  %3797 = vmatprep.mubr.msk.f32.mxu1 %vm1491_vm0, %v614_v55 }
  0x68   : > { %1078 = vperm.xlu1 %3946, %v768_v56   ;;  %1073 = vperm.xlu0 %3945, %v767_v57   ;;  %v505_v56 = vld [vmem:[%s6775_s3 + $0x130] sm:$0xff] }
  0x69   : > { %1986 = vmatmul.mubr.f32.gmra.mrb[18].mxu0 %v485_v58  ;;  %2306 = vmatmul.mubr.f32.gmra.mrb[18].mxu1 %v613_v59  ;;  %v633_v57 = vld [vmem:[%s6775_s3 + $0x530] sm:$0xff]  ;;  %v508_v58 = vld [vmem:[%s6775_s3 + $0x148] sm:$0xff] }
  0x6a   : > { %3734 = vmatprep.mubr.msk.f32.mxu0 %vm1491_vm0, %v488_v60  ;;  %3798 = vmatprep.mubr.msk.f32.mxu1 %vm1491_vm0, %v616_v61  ;;  %v636_v59 = vld [vmem:[%s6775_s3 + $0x548] sm:$0xff]  ;;  %v790_v60 = vld [vmem:[%s6776_s4 + $0x218] sm:$0xff]  ;;  %v789_v61 = vld [vmem:[%s6776_s4 + $0x210] sm:$0xff] }
  0x6c   : > { %1088 = vperm.xlu1 %3946, %v770_v62   ;;  %1083 = vperm.xlu0 %3945, %v769_v63  }
  0x6d   : > { %1991 = vmatmul.mubr.f32.gmra.mrb[20].mxu0 %v487_v0  ;;  %2311 = vmatmul.mubr.f32.gmra.mrb[20].mxu1 %v615_v1  ;;  %v507_v0 = vld [vmem:[%s6775_s3 + $0x140] sm:$0xff] }
  0x6e   : > { %3735 = vmatprep.mubr.msk.f32.mxu0 %vm1491_vm0, %v490_v2  ;;  %3799 = vmatprep.mubr.msk.f32.mxu1 %vm1491_vm0, %v618_v3  ;;  %v635_v1 = vld [vmem:[%s6775_s3 + $0x540] sm:$0xff]  ;;  %v510_v2 = vld [vmem:[%s6775_s3 + $0x158] sm:$0xff] }
  0x6f   : > { %v638_v3 = vld [vmem:[%s6775_s3 + $0x558] sm:$0xff] }
  0x70   : > { %1098 = vperm.xlu1 %3946, %v772_v4   ;;  %1093 = vperm.xlu0 %3945, %v771_v6   ;;  %v792_v4 = vld [vmem:[%s6776_s4 + $0x228] sm:$0xff]  ;;  %v791_v6 = vld [vmem:[%s6776_s4 + $0x220] sm:$0xff] }
  0x71   : > { %1996 = vmatmul.mubr.f32.gmra.mrb[22].mxu0 %v489_v5  ;;  %2316 = vmatmul.mubr.f32.gmra.mrb[22].mxu1 %v617_v7 }
  0x72   : > { %3736 = vmatprep.mubr.msk.f32.mxu0 %vm1491_vm0, %v492_v8  ;;  %3800 = vmatprep.mubr.msk.f32.mxu1 %vm1491_vm0, %v620_v9  ;;  %v509_v8 = vld [vmem:[%s6775_s3 + $0x150] sm:$0xff] }
  0x73   : > { %v637_v9 = vld [vmem:[%s6775_s3 + $0x550] sm:$0xff] }
  0x74   : > { %1108 = vperm.xlu1 %3946, %v774_v10   ;;  %1103 = vperm.xlu0 %3945, %v773_v11   ;;  %v512_v10 = vld [vmem:[%s6775_s3 + $0x168] sm:$0xff] }
  0x75   : > { %2001 = vmatmul.mubr.f32.gmra.mrb[24].mxu0 %v491_v12  ;;  %2321 = vmatmul.mubr.f32.gmra.mrb[24].mxu1 %v619_v13  ;;  %v640_v11 = vld [vmem:[%s6775_s3 + $0x568] sm:$0xff]  ;;  %v794_v12 = vld [vmem:[%s6776_s4 + $0x238] sm:$0xff]  ;;  %v793_v13 = vld [vmem:[%s6776_s4 + $0x230] sm:$0xff] }
  0x76   : > { %3737 = vmatprep.mubr.msk.f32.mxu0 %vm1491_vm0, %v494_v14  ;;  %3801 = vmatprep.mubr.msk.f32.mxu1 %vm1491_vm0, %v622_v15 }
  0x78   : > { %1118 = vperm.xlu1 %3946, %v776_v16   ;;  %1113 = vperm.xlu0 %3945, %v775_v17   ;;  %v511_v16 = vld [vmem:[%s6775_s3 + $0x160] sm:$0xff] }
  0x79   : > { %2006 = vmatmul.mubr.f32.gmra.mrb[26].mxu0 %v493_v18  ;;  %2326 = vmatmul.mubr.f32.gmra.mrb[26].mxu1 %v621_v19  ;;  %v639_v17 = vld [vmem:[%s6775_s3 + $0x560] sm:$0xff]  ;;  %v514_v18 = vld [vmem:[%s6775_s3 + $0x178] sm:$0xff] }
  0x7a   : > { %3738 = vmatprep.mubr.msk.f32.mxu0 %vm1491_vm0, %v496_v20  ;;  %3802 = vmatprep.mubr.msk.f32.mxu1 %vm1491_vm0, %v624_v21  ;;  %v642_v19 = vld [vmem:[%s6775_s3 + $0x578] sm:$0xff]  ;;  %v796_v20 = vld [vmem:[%s6776_s4 + $0x248] sm:$0xff]  ;;  %v795_v21 = vld [vmem:[%s6776_s4 + $0x240] sm:$0xff] }
  0x7c   : > { %1128 = vperm.xlu1 %3946, %v778_v22   ;;  %1123 = vperm.xlu0 %3945, %v777_v23  }
  0x7d   : > { %2011 = vmatmul.mubr.f32.gmra.mrb[28].mxu0 %v495_v24  ;;  %2331 = vmatmul.mubr.f32.gmra.mrb[28].mxu1 %v623_v25  ;;  %v513_v24 = vld [vmem:[%s6775_s3 + $0x170] sm:$0xff] }
  0x7e   : > { %3739 = vmatprep.mubr.msk.f32.mxu0 %vm1491_vm0, %v498_v26  ;;  %3803 = vmatprep.mubr.msk.f32.mxu1 %vm1491_vm0, %v626_v27  ;;  %v641_v25 = vld [vmem:[%s6775_s3 + $0x570] sm:$0xff]  ;;  %v516_v26 = vld [vmem:[%s6775_s3 + $0x188] sm:$0xff] }
  0x7f   : > { %v644_v27 = vld [vmem:[%s6775_s3 + $0x588] sm:$0xff] }
  0x80   : > { %1138 = vperm.xlu1 %3946, %v780_v28   ;;  %1133 = vperm.xlu0 %3945, %v779_v29   ;;  %v798_v28 = vld [vmem:[%s6776_s4 + $0x258] sm:$0xff]  ;;  %v797_v29 = vld [vmem:[%s6776_s4 + $0x250] sm:$0xff] }
  0x81   : > { %2016 = vmatmul.mubr.f32.gmra.mrb[30].mxu0 %v497_v30  ;;  %2336 = vmatmul.mubr.f32.gmra.mrb[30].mxu1 %v625_v31 }
  0x82   : > { %3740 = vmatprep.mubr.msk.f32.mxu0 %vm1491_vm0, %v500_v32  ;;  %3804 = vmatprep.mubr.msk.f32.mxu1 %vm1491_vm0, %v628_v33  ;;  %v515_v32 = vld [vmem:[%s6775_s3 + $0x180] sm:$0xff] }
  0x83   : > { %v643_v33 = vld [vmem:[%s6775_s3 + $0x580] sm:$0xff] }
  0x84   : > { %1148 = vperm.xlu1 %3946, %v782_v34   ;;  %1143 = vperm.xlu0 %3945, %v781_v35   ;;  %v518_v34 = vld [vmem:[%s6775_s3 + $0x198] sm:$0xff] }
  0x85   : > { %2021 = vmatmul.mubr.f32.gmra.mrb[32].mxu0 %v499_v36  ;;  %2341 = vmatmul.mubr.f32.gmra.mrb[32].mxu1 %v627_v37  ;;  %v646_v35 = vld [vmem:[%s6775_s3 + $0x598] sm:$0xff]  ;;  %v800_v36 = vld [vmem:[%s6776_s4 + $0x268] sm:$0xff]  ;;  %v799_v37 = vld [vmem:[%s6776_s4 + $0x260] sm:$0xff] }
  0x86   : > { %3741 = vmatprep.mubr.msk.f32.mxu0 %vm1491_vm0, %v502_v38  ;;  %3805 = vmatprep.mubr.msk.f32.mxu1 %vm1491_vm0, %v630_v39 }
  0x88   : > { %1158 = vperm.xlu1 %3946, %v784_v40   ;;  %1153 = vperm.xlu0 %3945, %v783_v41   ;;  %v517_v40 = vld [vmem:[%s6775_s3 + $0x190] sm:$0xff] }
  0x89   : > { %2026 = vmatmul.mubr.f32.gmra.mrb[34].mxu0 %v501_v42  ;;  %2346 = vmatmul.mubr.f32.gmra.mrb[34].mxu1 %v629_v43  ;;  %v645_v41 = vld [vmem:[%s6775_s3 + $0x590] sm:$0xff]  ;;  %v520_v42 = vld [vmem:[%s6775_s3 + $0x1a8] sm:$0xff] }
  0x8a   : > { %3742 = vmatprep.mubr.msk.f32.mxu0 %vm1491_vm0, %v504_v44  ;;  %3806 = vmatprep.mubr.msk.f32.mxu1 %vm1491_vm0, %v632_v45  ;;  %v648_v43 = vld [vmem:[%s6775_s3 + $0x5a8] sm:$0xff]  ;;  %v802_v44 = vld [vmem:[%s6776_s4 + $0x278] sm:$0xff]  ;;  %v801_v45 = vld [vmem:[%s6776_s4 + $0x270] sm:$0xff] }
  0x8c   : > { %1168 = vperm.xlu1 %3946, %v786_v46   ;;  %1163 = vperm.xlu0 %3945, %v785_v47  }
  0x8d   : > { %2031 = vmatmul.mubr.f32.gmra.mrb[36].mxu0 %v503_v48  ;;  %2351 = vmatmul.mubr.f32.gmra.mrb[36].mxu1 %v631_v49  ;;  %v519_v48 = vld [vmem:[%s6775_s3 + $0x1a0] sm:$0xff] }
  0x8e   : > { %3743 = vmatprep.mubr.msk.f32.mxu0 %vm1491_vm0, %v506_v50  ;;  %3807 = vmatprep.mubr.msk.f32.mxu1 %vm1491_vm0, %v634_v51  ;;  %v647_v49 = vld [vmem:[%s6775_s3 + $0x5a0] sm:$0xff]  ;;  %v522_v50 = vld [vmem:[%s6775_s3 + $0x1b8] sm:$0xff] }
  0x8f   : > { %v4553_v54 = vpop.permute.xlu1 %863  ;;  %v4555_v55 = vpop.permute.xlu0 %853  ;;  %v650_v51 = vld [vmem:[%s6775_s3 + $0x5b8] sm:$0xff] }
  0x90   : > { %1178 = vperm.xlu1 %3946, %v788_v52   ;;  %1173 = vperm.xlu0 %3945, %v787_v53   ;;  %v804_v52 = vld [vmem:[%s6776_s4 + $0x288] sm:$0xff]  ;;  %v803_v53 = vld [vmem:[%s6776_s4 + $0x280] sm:$0xff] }
  0x91   : > { %2036 = vmatmul.mubr.f32.gmra.mrb[38].mxu0 %v505_v56  ;;  %2356 = vmatmul.mubr.f32.gmra.mrb[38].mxu1 %v633_v57 }
  0x92   : > { %3744 = vmatprep.mubr.msk.f32.mxu0 %vm1491_vm0, %v508_v58  ;;  %3808 = vmatprep.mubr.msk.f32.mxu1 %vm1491_vm0, %v636_v59  ;;  %v521_v58 = vld [vmem:[%s6775_s3 + $0x1b0] sm:$0xff] }
  0x93   : > { %v4577_v62 = vpop.permute.xlu1 %868  ;;  %v4579_v63 = vpop.permute.xlu0 %858  ;;  %v649_v59 = vld [vmem:[%s6775_s3 + $0x5b0] sm:$0xff] }
  0x94   : > { %1188 = vperm.xlu1 %3946, %v790_v60   ;;  %1183 = vperm.xlu0 %3945, %v789_v61   ;;  %v524_v60 = vld [vmem:[%s6775_s3 + $0x1c8] sm:$0xff] }
  0x95   : > { %2041 = vmatmul.mubr.f32.gmra.mrb[40].mxu0 %v507_v0  ;;  %2361 = vmatmul.mubr.f32.gmra.mrb[40].mxu1 %v635_v1  ;;  %v652_v61 = vld [vmem:[%s6775_s3 + $0x5c8] sm:$0xff]  ;;  %v806_v0 = vld [vmem:[%s6776_s4 + $0x298] sm:$0xff]  ;;  %v805_v1 = vld [vmem:[%s6776_s4 + $0x290] sm:$0xff] }
  0x96   : > { %3745 = vmatprep.mubr.msk.f32.mxu0 %vm1491_vm0, %v510_v2  ;;  %3809 = vmatprep.mubr.msk.f32.mxu1 %vm1491_vm0, %v638_v3 }
  0x97   : > { %v4601_v5 = vpop.permute.xlu1 %878  ;;  %v4603_v7 = vpop.permute.xlu0 %873 }
  0x98   : > { %1198 = vperm.xlu1 %3946, %v792_v4   ;;  %1193 = vperm.xlu0 %3945, %v791_v6   ;;  %v523_v4 = vld [vmem:[%s6775_s3 + $0x1c0] sm:$0xff] }
  0x99   : > { %2046 = vmatmul.mubr.f32.gmra.mrb[42].mxu0 %v509_v8  ;;  %2366 = vmatmul.mubr.f32.gmra.mrb[42].mxu1 %v637_v9  ;;  %v651_v6 = vld [vmem:[%s6775_s3 + $0x5c0] sm:$0xff]  ;;  %v526_v8 = vld [vmem:[%s6775_s3 + $0x1d8] sm:$0xff] }
  0x9a   : > { %3746 = vmatprep.mubr.msk.f32.mxu0 %vm1491_vm0, %v512_v10  ;;  %3810 = vmatprep.mubr.msk.f32.mxu1 %vm1491_vm0, %v640_v11  ;;  %v654_v9 = vld [vmem:[%s6775_s3 + $0x5d8] sm:$0xff]  ;;  %v808_v10 = vld [vmem:[%s6776_s4 + $0x2a8] sm:$0xff]  ;;  %v807_v11 = vld [vmem:[%s6776_s4 + $0x2a0] sm:$0xff] }
  0x9b   : > { %v4625_v14 = vpop.permute.xlu1 %888  ;;  %v4627_v15 = vpop.permute.xlu0 %883 }
  0x9c   : > { %1208 = vperm.xlu1 %3946, %v794_v12   ;;  %1203 = vperm.xlu0 %3945, %v793_v13  }
  0x9d   : > { %2051 = vmatmul.mubr.f32.gmra.mrb[44].mxu0 %v511_v16  ;;  %2371 = vmatmul.mubr.f32.gmra.mrb[44].mxu1 %v639_v17  ;;  %v525_v16 = vld [vmem:[%s6775_s3 + $0x1d0] sm:$0xff] }
  0x9e   : > { %3747 = vmatprep.mubr.msk.f32.mxu0 %vm1491_vm0, %v514_v18  ;;  %3811 = vmatprep.mubr.msk.f32.mxu1 %vm1491_vm0, %v642_v19  ;;  %v653_v17 = vld [vmem:[%s6775_s3 + $0x5d0] sm:$0xff]  ;;  %v528_v18 = vld [vmem:[%s6775_s3 + $0x1e8] sm:$0xff] }
  0x9f   : > { %v4649_v22 = vpop.permute.xlu1 %898  ;;  %v4651_v23 = vpop.permute.xlu0 %893  ;;  %v656_v19 = vld [vmem:[%s6775_s3 + $0x5e8] sm:$0xff] }
  0xa0   : > { %1218 = vperm.xlu1 %3946, %v796_v20   ;;  %1213 = vperm.xlu0 %3945, %v795_v21   ;;  %v810_v20 = vld [vmem:[%s6776_s4 + $0x2b8] sm:$0xff]  ;;  %v809_v21 = vld [vmem:[%s6776_s4 + $0x2b0] sm:$0xff] }
  0xa1   : > { %2056 = vmatmul.mubr.f32.gmra.mrb[46].mxu0 %v513_v24  ;;  %2376 = vmatmul.mubr.f32.gmra.mrb[46].mxu1 %v641_v25 }
  0xa2   : > { %3748 = vmatprep.mubr.msk.f32.mxu0 %vm1491_vm0, %v516_v26  ;;  %3812 = vmatprep.mubr.msk.f32.mxu1 %vm1491_vm0, %v644_v27  ;;  %v527_v26 = vld [vmem:[%s6775_s3 + $0x1e0] sm:$0xff] }
  0xa3   : > { %v4673_v30 = vpop.permute.xlu1 %908  ;;  %v4675_v31 = vpop.permute.xlu0 %903  ;;  %v655_v27 = vld [vmem:[%s6775_s3 + $0x5e0] sm:$0xff] }
  0xa4   : > { %1228 = vperm.xlu1 %3946, %v798_v28   ;;  %1223 = vperm.xlu0 %3945, %v797_v29   ;;  %v530_v28 = vld [vmem:[%s6775_s3 + $0x1f8] sm:$0xff] }
  0xa5   : > { %2061 = vmatmul.mubr.f32.gmra.mrb[48].mxu0 %v515_v32  ;;  %2381 = vmatmul.mubr.f32.gmra.mrb[48].mxu1 %v643_v33  ;;  %v658_v29 = vld [vmem:[%s6775_s3 + $0x5f8] sm:$0xff]  ;;  %v812_v32 = vld [vmem:[%s6776_s4 + $0x2c8] sm:$0xff]  ;;  %v811_v33 = vld [vmem:[%s6776_s4 + $0x2c0] sm:$0xff] }
  0xa6   : > { %3749 = vmatprep.mubr.msk.f32.mxu0 %vm1491_vm0, %v518_v34  ;;  %3813 = vmatprep.mubr.msk.f32.mxu1 %vm1491_vm0, %v646_v35 }
  0xa7   : > { %v4697_v38 = vpop.permute.xlu1 %918  ;;  %v4699_v39 = vpop.permute.xlu0 %913 }
  0xa8   : > { %1238 = vperm.xlu1 %3946, %v800_v36   ;;  %1233 = vperm.xlu0 %3945, %v799_v37   ;;  %v529_v36 = vld [vmem:[%s6775_s3 + $0x1f0] sm:$0xff] }
  0xa9   : > { %2066 = vmatmul.mubr.f32.gmra.mrb[50].mxu0 %v517_v40  ;;  %2386 = vmatmul.mubr.f32.gmra.mrb[50].mxu1 %v645_v41  ;;  %v657_v37 = vld [vmem:[%s6775_s3 + $0x5f0] sm:$0xff]  ;;  %v532_v40 = vld [vmem:[%s6775_s3 + $0x208] sm:$0xff] }
  0xaa   : > { %3750 = vmatprep.mubr.msk.f32.mxu0 %vm1491_vm0, %v520_v42  ;;  %3814 = vmatprep.mubr.msk.f32.mxu1 %vm1491_vm0, %v648_v43  ;;  %v660_v41 = vld [vmem:[%s6775_s3 + $0x608] sm:$0xff]  ;;  %v814_v42 = vld [vmem:[%s6776_s4 + $0x2d8] sm:$0xff]  ;;  %v813_v43 = vld [vmem:[%s6776_s4 + $0x2d0] sm:$0xff] }
  0xab   : > { %v4721_v46 = vpop.permute.xlu1 %928  ;;  %v4723_v47 = vpop.permute.xlu0 %923 }
  0xac   : > { %1248 = vperm.xlu1 %3946, %v802_v44   ;;  %1243 = vperm.xlu0 %3945, %v801_v45  }
  0xad   : > { %2071 = vmatmul.mubr.f32.gmra.mrb[52].mxu0 %v519_v48  ;;  %2391 = vmatmul.mubr.f32.gmra.mrb[52].mxu1 %v647_v49  ;;  %v531_v48 = vld [vmem:[%s6775_s3 + $0x200] sm:$0xff] }
  0xae   : > { %3751 = vmatprep.mubr.msk.f32.mxu0 %vm1491_vm0, %v522_v50  ;;  %3815 = vmatprep.mubr.msk.f32.mxu1 %vm1491_vm0, %v650_v51  ;;  %v659_v49 = vld [vmem:[%s6775_s3 + $0x600] sm:$0xff]  ;;  %v534_v50 = vld [vmem:[%s6775_s3 + $0x218] sm:$0xff] }
  0xaf   : > { %v4745_v56 = vpop.permute.xlu1 %938  ;;  %v4747_v57 = vpop.permute.xlu0 %933  ;;  %v662_v51 = vld [vmem:[%s6775_s3 + $0x618] sm:$0xff] }
  0xb0   : > { %1258 = vperm.xlu1 %3946, %v804_v52   ;;  %1253 = vperm.xlu0 %3945, %v803_v53   ;;  %v816_v52 = vld [vmem:[%s6776_s4 + $0x2e8] sm:$0xff]  ;;  %v815_v53 = vld [vmem:[%s6776_s4 + $0x2e0] sm:$0xff] }
  0xb1   : > { %2076 = vmatmul.mubr.f32.gmra.mrb[54].mxu0 %v521_v58  ;;  %2396 = vmatmul.mubr.f32.gmra.mrb[54].mxu1 %v649_v59 }
  0xb2   : > { %3752 = vmatprep.mubr.msk.f32.mxu0 %vm1491_vm0, %v524_v60  ;;  %3816 = vmatprep.mubr.msk.f32.mxu1 %vm1491_vm0, %v652_v61  ;;  %v533_v60 = vld [vmem:[%s6775_s3 + $0x210] sm:$0xff] }
  0xb3   : > { %v4769_v2 = vpop.permute.xlu1 %948  ;;  %v4771_v3 = vpop.permute.xlu0 %943  ;;  %v661_v61 = vld [vmem:[%s6775_s3 + $0x610] sm:$0xff] }
  0xb4   : > { %1268 = vperm.xlu1 %3946, %v806_v0   ;;  %1263 = vperm.xlu0 %3945, %v805_v1   ;;  %v536_v0 = vld [vmem:[%s6775_s3 + $0x228] sm:$0xff] }
  0xb5   : > { %2081 = vmatmul.mubr.f32.gmra.mrb[56].mxu0 %v523_v4  ;;  %2401 = vmatmul.mubr.f32.gmra.mrb[56].mxu1 %v651_v6  ;;  %v664_v1 = vld [vmem:[%s6775_s3 + $0x628] sm:$0xff]  ;;  %v818_v4 = vld [vmem:[%s6776_s4 + $0x2f8] sm:$0xff]  ;;  %v817_v6 = vld [vmem:[%s6776_s4 + $0x2f0] sm:$0xff] }
  0xb6   : > { %3753 = vmatprep.mubr.msk.f32.mxu0 %vm1491_vm0, %v526_v8  ;;  %3817 = vmatprep.mubr.msk.f32.mxu1 %vm1491_vm0, %v654_v9 }
  0xb7   : > { %v4793_v12 = vpop.permute.xlu1 %958  ;;  %v4795_v13 = vpop.permute.xlu0 %953 }
  0xb8   : > { %1278 = vperm.xlu1 %3946, %v808_v10   ;;  %1273 = vperm.xlu0 %3945, %v807_v11   ;;  %v535_v10 = vld [vmem:[%s6775_s3 + $0x220] sm:$0xff] }
  0xb9   : > { %2086 = vmatmul.mubr.f32.gmra.mrb[58].mxu0 %v525_v16  ;;  %2406 = vmatmul.mubr.f32.gmra.mrb[58].mxu1 %v653_v17  ;;  %v663_v11 = vld [vmem:[%s6775_s3 + $0x620] sm:$0xff]  ;;  %v538_v16 = vld [vmem:[%s6775_s3 + $0x238] sm:$0xff] }
  0xba   : > { %3754 = vmatprep.mubr.msk.f32.mxu0 %vm1491_vm0, %v528_v18  ;;  %3818 = vmatprep.mubr.msk.f32.mxu1 %vm1491_vm0, %v656_v19  ;;  %v666_v17 = vld [vmem:[%s6775_s3 + $0x638] sm:$0xff]  ;;  %v820_v18 = vld [vmem:[%s6776_s4 + $0x308] sm:$0xff]  ;;  %v819_v19 = vld [vmem:[%s6776_s4 + $0x300] sm:$0xff] }
  0xbb   : > { %v4817_v24 = vpop.permute.xlu1 %968  ;;  %v4819_v25 = vpop.permute.xlu0 %963 }
  0xbc   : > { %1288 = vperm.xlu1 %3946, %v810_v20   ;;  %1283 = vperm.xlu0 %3945, %v809_v21  }
  0xbd   : > { %2091 = vmatmul.mubr.f32.gmra.mrb[60].mxu0 %v527_v26  ;;  %2411 = vmatmul.mubr.f32.gmra.mrb[60].mxu1 %v655_v27  ;;  %v537_v26 = vld [vmem:[%s6775_s3 + $0x230] sm:$0xff] }
  0xbe   : > { %3755 = vmatprep.mubr.msk.f32.mxu0 %vm1491_vm0, %v530_v28  ;;  %3819 = vmatprep.mubr.msk.f32.mxu1 %vm1491_vm0, %v658_v29  ;;  %v665_v27 = vld [vmem:[%s6775_s3 + $0x630] sm:$0xff]  ;;  %v540_v28 = vld [vmem:[%s6775_s3 + $0x248] sm:$0xff] }
  0xbf   : > { %v4841_v34 = vpop.permute.xlu1 %978  ;;  %v4843_v35 = vpop.permute.xlu0 %973  ;;  %v668_v29 = vld [vmem:[%s6775_s3 + $0x648] sm:$0xff] }
  0xc0   : > { %1298 = vperm.xlu1 %3946, %v812_v32   ;;  %1293 = vperm.xlu0 %3945, %v811_v33   ;;  %v822_v32 = vld [vmem:[%s6776_s4 + $0x318] sm:$0xff]  ;;  %v821_v33 = vld [vmem:[%s6776_s4 + $0x310] sm:$0xff] }
  0xc1   : > { %2096 = vmatmul.mubr.f32.gmra.mrb[62].mxu0 %v529_v36  ;;  %2416 = vmatmul.mubr.f32.gmra.mrb[62].mxu1 %v657_v37 }
  0xc2   : > { %3756 = vmatprep.mubr.msk.f32.mxu0 %vm1491_vm0, %v532_v40  ;;  %3820 = vmatprep.mubr.msk.f32.mxu1 %vm1491_vm0, %v660_v41  ;;  %v539_v40 = vld [vmem:[%s6775_s3 + $0x240] sm:$0xff] }
  0xc3   : > { %v4865_v44 = vpop.permute.xlu1 %988  ;;  %v4867_v45 = vpop.permute.xlu0 %983  ;;  %v667_v41 = vld [vmem:[%s6775_s3 + $0x640] sm:$0xff] }
  0xc4   : > { %6778 = vst [vmem:[#allocation2_spill] sm:$0xff] %v4865_v44  ;;  %1308 = vperm.xlu1 %3946, %v814_v42   ;;  %1303 = vperm.xlu0 %3945, %v813_v43   ;;  %v542_v42 = vld [vmem:[%s6775_s3 + $0x258] sm:$0xff] }
  0xc5   : > { %2101 = vmatmul.mubr.f32.gmra.mrb[64].mxu0 %v531_v48  ;;  %2421 = vmatmul.mubr.f32.gmra.mrb[64].mxu1 %v659_v49  ;;  %v670_v43 = vld [vmem:[%s6775_s3 + $0x658] sm:$0xff]  ;;  %v824_v48 = vld [vmem:[%s6776_s4 + $0x328] sm:$0xff]  ;;  %v823_v49 = vld [vmem:[%s6776_s4 + $0x320] sm:$0xff] }
  0xc6   : > { %3757 = vmatprep.mubr.msk.f32.mxu0 %vm1491_vm0, %v534_v50  ;;  %3821 = vmatprep.mubr.msk.f32.mxu1 %vm1491_vm0, %v662_v51 }
  0xc7   : > { %v4889_v58 = vpop.permute.xlu1 %998  ;;  %v4891_v59 = vpop.permute.xlu0 %993 }
  0xc8   : > { %6779 = vst [vmem:[#allocation3_spill] sm:$0xff] %v4889_v58  ;;  %6780 = vst [vmem:[#allocation4_spill] sm:$0xff] %v4891_v59  ;;  %1318 = vperm.xlu1 %3946, %v816_v52   ;;  %1313 = vperm.xlu0 %3945, %v815_v53   ;;  %v541_v52 = vld [vmem:[%s6775_s3 + $0x250] sm:$0xff] }
  0xc9   : > { %2106 = vmatmul.mubr.f32.gmra.mrb[66].mxu0 %v533_v60  ;;  %2426 = vmatmul.mubr.f32.gmra.mrb[66].mxu1 %v661_v61  ;;  %v669_v53 = vld [vmem:[%s6775_s3 + $0x650] sm:$0xff]  ;;  %v544_v60 = vld [vmem:[%s6775_s3 + $0x268] sm:$0xff] }
  0xca   : > { %3758 = vmatprep.mubr.msk.f32.mxu0 %vm1491_vm0, %v536_v0  ;;  %3822 = vmatprep.mubr.msk.f32.mxu1 %vm1491_vm0, %v664_v1  ;;  %v672_v61 = vld [vmem:[%s6775_s3 + $0x668] sm:$0xff]  ;;  %v826_v0 = vld [vmem:[%s6776_s4 + $0x338] sm:$0xff]  ;;  %v825_v1 = vld [vmem:[%s6776_s4 + $0x330] sm:$0xff] }
  0xcb   : > { %v4913_v8 = vpop.permute.xlu1 %1008  ;;  %v4915_v9 = vpop.permute.xlu0 %1003 }
  0xcc   : > { %6781 = vst [vmem:[#allocation5_spill] sm:$0xff] %v4913_v8  ;;  %6782 = vst [vmem:[#allocation6_spill] sm:$0xff] %v4915_v9  ;;  %1328 = vperm.xlu1 %3946, %v818_v4   ;;  %1323 = vperm.xlu0 %3945, %v817_v6  }
  0xcd   : > { %2111 = vmatmul.mubr.f32.gmra.mrb[68].mxu0 %v535_v10  ;;  %2431 = vmatmul.mubr.f32.gmra.mrb[68].mxu1 %v663_v11  ;;  %v543_v10 = vld [vmem:[%s6775_s3 + $0x260] sm:$0xff] }
  0xce   : > { %3759 = vmatprep.mubr.msk.f32.mxu0 %vm1491_vm0, %v538_v16  ;;  %3823 = vmatprep.mubr.msk.f32.mxu1 %vm1491_vm0, %v666_v17  ;;  %v671_v11 = vld [vmem:[%s6775_s3 + $0x660] sm:$0xff]  ;;  %v546_v16 = vld [vmem:[%s6775_s3 + $0x278] sm:$0xff] }
  0xcf   : > { %v4937_v20 = vpop.permute.xlu1 %1018  ;;  %v4939_v21 = vpop.permute.xlu0 %1013  ;;  %v674_v17 = vld [vmem:[%s6775_s3 + $0x678] sm:$0xff] }
  0xd0   : > { %6783 = vst [vmem:[#allocation7_spill] sm:$0xff] %v4937_v20  ;;  %6784 = vst [vmem:[#allocation8_spill] sm:$0xff] %v4939_v21  ;;  %1338 = vperm.xlu1 %3946, %v820_v18   ;;  %1333 = vperm.xlu0 %3945, %v819_v19   ;;  %v828_v18 = vld [vmem:[%s6776_s4 + $0x348] sm:$0xff]  ;;  %v827_v19 = vld [vmem:[%s6776_s4 + $0x340] sm:$0xff] }
  0xd1   : > { %2116 = vmatmul.mubr.f32.gmra.mrb[70].mxu0 %v537_v26  ;;  %2436 = vmatmul.mubr.f32.gmra.mrb[70].mxu1 %v665_v27  ;;  %v581_v20 = vld [vmem:[%s6775_s3 + $0x390] sm:$0xff] }
  0xd2   : > { %3760 = vmatprep.mubr.msk.f32.mxu0 %vm1491_vm0, %v540_v28  ;;  %3824 = vmatprep.mubr.msk.f32.mxu1 %vm1491_vm0, %v668_v29  ;;  %v545_v28 = vld [vmem:[%s6775_s3 + $0x270] sm:$0xff] }
  0xd3   : > { %v4961_v36 = vpop.permute.xlu1 %1028  ;;  %v4963_v37 = vpop.permute.xlu0 %1023  ;;  %v673_v29 = vld [vmem:[%s6775_s3 + $0x670] sm:$0xff] }
  0xd4   : > { %6785 = vst [vmem:[#allocation9_spill] sm:$0xff] %v4961_v36  ;;  %6786 = vst [vmem:[#allocation10_spill] sm:$0xff] %v4963_v37  ;;  %1348 = vperm.xlu1 %3946, %v822_v32   ;;  %1343 = vperm.xlu0 %3945, %v821_v33   ;;  %v548_v32 = vld [vmem:[%s6775_s3 + $0x288] sm:$0xff] }
  0xd5   : > { %2121 = vmatmul.mubr.f32.gmra.mrb[72].mxu0 %v539_v40  ;;  %2441 = vmatmul.mubr.f32.gmra.mrb[72].mxu1 %v667_v41  ;;  %v676_v33 = vld [vmem:[%s6775_s3 + $0x688] sm:$0xff]  ;;  %v830_v40 = vld [vmem:[%s6776_s4 + $0x358] sm:$0xff]  ;;  %v829_v41 = vld [vmem:[%s6776_s4 + $0x350] sm:$0xff] }
  0xd6   : > { %3761 = vmatprep.mubr.msk.f32.mxu0 %vm1491_vm0, %v542_v42  ;;  %3825 = vmatprep.mubr.msk.f32.mxu1 %vm1491_vm0, %v670_v43 }
  0xd7   : > { %v4985_v50 = vpop.permute.xlu1 %1038  ;;  %v4987_v51 = vpop.permute.xlu0 %1033 }
  0xd8   : > { %6787 = vst [vmem:[#allocation11_spill] sm:$0xff] %v4985_v50  ;;  %6788 = vst [vmem:[#allocation12_spill] sm:$0xff] %v4987_v51  ;;  %1358 = vperm.xlu1 %3946, %v824_v48   ;;  %1353 = vperm.xlu0 %3945, %v823_v49   ;;  %v547_v48 = vld [vmem:[%s6775_s3 + $0x280] sm:$0xff] }
  0xd9   : > { %2126 = vmatmul.mubr.f32.gmra.mrb[74].mxu0 %v541_v52  ;;  %2446 = vmatmul.mubr.f32.gmra.mrb[74].mxu1 %v669_v53  ;;  %v675_v49 = vld [vmem:[%s6775_s3 + $0x680] sm:$0xff]  ;;  %v550_v52 = vld [vmem:[%s6775_s3 + $0x298] sm:$0xff] }
  0xda   : > { %3762 = vmatprep.mubr.msk.f32.mxu0 %vm1491_vm0, %v544_v60  ;;  %3826 = vmatprep.mubr.msk.f32.mxu1 %vm1491_vm0, %v672_v61  ;;  %v678_v53 = vld [vmem:[%s6775_s3 + $0x698] sm:$0xff]  ;;  %v832_v60 = vld [vmem:[%s6776_s4 + $0x368] sm:$0xff]  ;;  %v831_v61 = vld [vmem:[%s6776_s4 + $0x360] sm:$0xff] }
  0xdb   : > { %v5009_v4 = vpop.permute.xlu1 %1048  ;;  %v5011_v6 = vpop.permute.xlu0 %1043 }
  0xdc   : > { %6789 = vst [vmem:[#allocation13_spill] sm:$0xff] %v5009_v4  ;;  %6790 = vst [vmem:[#allocation14_spill] sm:$0xff] %v5011_v6  ;;  %1368 = vperm.xlu1 %3946, %v826_v0   ;;  %1363 = vperm.xlu0 %3945, %v825_v1   ;;  %v579_v6 = vld [vmem:[%s6775_s3 + $0x380] sm:$0xff] }
  0xdd   : > { %2131 = vmatmul.mubr.f32.gmra.mrb[76].mxu0 %v543_v10  ;;  %2451 = vmatmul.mubr.f32.gmra.mrb[76].mxu1 %v671_v11  ;;  %v549_v10 = vld [vmem:[%s6775_s3 + $0x290] sm:$0xff] }
  0xde   : > { %3763 = vmatprep.mubr.msk.f32.mxu0 %vm1491_vm0, %v546_v16  ;;  %3827 = vmatprep.mubr.msk.f32.mxu1 %vm1491_vm0, %v674_v17  ;;  %v677_v11 = vld [vmem:[%s6775_s3 + $0x690] sm:$0xff]  ;;  %v552_v16 = vld [vmem:[%s6775_s3 + $0x2a8] sm:$0xff] }
  0xdf   : > { %v5033_v26 = vpop.permute.xlu1 %1058  ;;  %v5035_v27 = vpop.permute.xlu0 %1053  ;;  %v680_v17 = vld [vmem:[%s6775_s3 + $0x6a8] sm:$0xff] }
  0xe0   : > { %6791 = vst [vmem:[#allocation15_spill] sm:$0xff] %v5033_v26  ;;  %6792 = vst [vmem:[#allocation16_spill] sm:$0xff] %v5035_v27  ;;  %1378 = vperm.xlu1 %3946, %v828_v18   ;;  %1373 = vperm.xlu0 %3945, %v827_v19   ;;  %v834_v18 = vld [vmem:[%s6776_s4 + $0x378] sm:$0xff]  ;;  %v833_v19 = vld [vmem:[%s6776_s4 + $0x370] sm:$0xff] }
  0xe1   : > { %2136 = vmatmul.mubr.f32.gmra.mrb[78].mxu0 %v545_v28  ;;  %2456 = vmatmul.mubr.f32.gmra.mrb[78].mxu1 %v673_v29 }
  0xe2   : > { %3764 = vmatprep.mubr.msk.f32.mxu0 %vm1491_vm0, %v548_v32  ;;  %3828 = vmatprep.mubr.msk.f32.mxu1 %vm1491_vm0, %v676_v33  ;;  %v551_v32 = vld [vmem:[%s6775_s3 + $0x2a0] sm:$0xff] }
  0xe3   : > { %v5057_v42 = vpop.permute.xlu1 %1068  ;;  %v5059_v43 = vpop.permute.xlu0 %1063  ;;  %v679_v33 = vld [vmem:[%s6775_s3 + $0x6a0] sm:$0xff] }
  0xe4   : > { %6793 = vst [vmem:[#allocation17_spill] sm:$0xff] %v5057_v42  ;;  %6794 = vst [vmem:[#allocation18_spill] sm:$0xff] %v5059_v43  ;;  %1388 = vperm.xlu1 %3946, %v830_v40   ;;  %1383 = vperm.xlu0 %3945, %v829_v41   ;;  %v554_v40 = vld [vmem:[%s6775_s3 + $0x2b8] sm:$0xff]  ;;  %v577_v42 = vld [vmem:[%s6775_s3 + $0x370] sm:$0xff] }
  0xe5   : > { %2141 = vmatmul.mubr.f32.gmra.mrb[80].mxu0 %v547_v48  ;;  %2461 = vmatmul.mubr.f32.gmra.mrb[80].mxu1 %v675_v49  ;;  %v682_v41 = vld [vmem:[%s6775_s3 + $0x6b8] sm:$0xff]  ;;  %v836_v48 = vld [vmem:[%s6776_s4 + $0x388] sm:$0xff]  ;;  %v835_v49 = vld [vmem:[%s6776_s4 + $0x380] sm:$0xff] }
  0xe6   : > { %3765 = vmatprep.mubr.msk.f32.mxu0 %vm1491_vm0, %v550_v52  ;;  %3829 = vmatprep.mubr.msk.f32.mxu1 %vm1491_vm0, %v678_v53  ;;  %v705_v43 = vld [vmem:[%s6775_s3 + $0x770] sm:$0xff] }
  0xe7   : > { %v5081_v0 = vpop.permute.xlu1 %1078  ;;  %v5083_v1 = vpop.permute.xlu0 %1073 }
  0xe8   : > { %6795 = vst [vmem:[#allocation19_spill] sm:$0xff] %v5081_v0  ;;  %6796 = vst [vmem:[#allocation20_spill] sm:$0xff] %v5083_v1  ;;  %1398 = vperm.xlu1 %3946, %v832_v60   ;;  %1393 = vperm.xlu0 %3945, %v831_v61   ;;  %v553_v60 = vld [vmem:[%s6775_s3 + $0x2b0] sm:$0xff] }
  0xe9   : > { %2146 = vmatmul.mubr.f32.gmra.mrb[82].mxu0 %v549_v10  ;;  %2466 = vmatmul.mubr.f32.gmra.mrb[82].mxu1 %v677_v11  ;;  %v681_v61 = vld [vmem:[%s6775_s3 + $0x6b0] sm:$0xff]  ;;  %v556_v10 = vld [vmem:[%s6775_s3 + $0x2c8] sm:$0xff] }
  0xea   : > { %3766 = vmatprep.mubr.msk.f32.mxu0 %vm1491_vm0, %v552_v16  ;;  %3830 = vmatprep.mubr.msk.f32.mxu1 %vm1491_vm0, %v680_v17  ;;  %v684_v11 = vld [vmem:[%s6775_s3 + $0x6c8] sm:$0xff]  ;;  %v838_v16 = vld [vmem:[%s6776_s4 + $0x398] sm:$0xff]  ;;  %v837_v17 = vld [vmem:[%s6776_s4 + $0x390] sm:$0xff] }
  0xeb   : > { %v5105_v28 = vpop.permute.xlu1 %1088  ;;  %v5107_v29 = vpop.permute.xlu0 %1083 }
  0xec   : > { %6797 = vst [vmem:[#allocation21_spill] sm:$0xff] %v5105_v28  ;;  %6798 = vst [vmem:[#allocation22_spill] sm:$0xff] %v5107_v29  ;;  %1408 = vperm.xlu1 %3946, %v834_v18   ;;  %1403 = vperm.xlu0 %3945, %v833_v19   ;;  %v575_v28 = vld [vmem:[%s6775_s3 + $0x360] sm:$0xff] }
  0xed   : > { %2151 = vmatmul.mubr.f32.gmra.mrb[84].mxu0 %v551_v32  ;;  %2471 = vmatmul.mubr.f32.gmra.mrb[84].mxu1 %v679_v33  ;;  %v555_v32 = vld [vmem:[%s6775_s3 + $0x2c0] sm:$0xff] }
  0xee   : > { %3767 = vmatprep.mubr.msk.f32.mxu0 %vm1491_vm0, %v554_v40  ;;  %3831 = vmatprep.mubr.msk.f32.mxu1 %vm1491_vm0, %v682_v41  ;;  %v683_v33 = vld [vmem:[%s6775_s3 + $0x6c0] sm:$0xff]  ;;  %v558_v40 = vld [vmem:[%s6775_s3 + $0x2d8] sm:$0xff] }
  0xef   : > { %v5129_v52 = vpop.permute.xlu1 %1098  ;;  %v5131_v53 = vpop.permute.xlu0 %1093  ;;  %v686_v41 = vld [vmem:[%s6775_s3 + $0x6d8] sm:$0xff]  ;;  %v703_v29 = vld [vmem:[%s6775_s3 + $0x760] sm:$0xff] }
  0xf0   : > { %6799 = vst [vmem:[#allocation23_spill] sm:$0xff] %v5129_v52  ;;  %6800 = vst [vmem:[#allocation24_spill] sm:$0xff] %v5131_v53  ;;  %1418 = vperm.xlu1 %3946, %v836_v48   ;;  %1413 = vperm.xlu0 %3945, %v835_v49   ;;  %v840_v48 = vld [vmem:[%s6776_s4 + $0x3a8] sm:$0xff]  ;;  %v839_v49 = vld [vmem:[%s6776_s4 + $0x3a0] sm:$0xff] }
  0xf1   : > { %2156 = vmatmul.mubr.f32.gmra.mrb[86].mxu0 %v553_v60  ;;  %2476 = vmatmul.mubr.f32.gmra.mrb[86].mxu1 %v681_v61 }
  0xf2   : > { %3768 = vmatprep.mubr.msk.f32.mxu0 %vm1491_vm0, %v556_v10  ;;  %3832 = vmatprep.mubr.msk.f32.mxu1 %vm1491_vm0, %v684_v11  ;;  %v557_v10 = vld [vmem:[%s6775_s3 + $0x2d0] sm:$0xff] }
  0xf3   : > { %v5153_v18 = vpop.permute.xlu1 %1108  ;;  %v5155_v19 = vpop.permute.xlu0 %1103  ;;  %v685_v11 = vld [vmem:[%s6775_s3 + $0x6d0] sm:$0xff] }
  0xf4   : > { %6801 = vst [vmem:[#allocation25_spill] sm:$0xff] %v5153_v18  ;;  %6802 = vst [vmem:[#allocation26_spill] sm:$0xff] %v5155_v19  ;;  %1428 = vperm.xlu1 %3946, %v838_v16   ;;  %1423 = vperm.xlu0 %3945, %v837_v17   ;;  %v560_v16 = vld [vmem:[%s6775_s3 + $0x2e8] sm:$0xff] }
  0xf5   : > { %2161 = vmatmul.mubr.f32.gmra.mrb[88].mxu0 %v555_v32  ;;  %2481 = vmatmul.mubr.f32.gmra.mrb[88].mxu1 %v683_v33  ;;  %v688_v17 = vld [vmem:[%s6775_s3 + $0x6e8] sm:$0xff]  ;;  %v842_v32 = vld [vmem:[%s6776_s4 + $0x3b8] sm:$0xff]  ;;  %v841_v33 = vld [vmem:[%s6776_s4 + $0x3b0] sm:$0xff] }
  0xf6   : > { %3769 = vmatprep.mubr.msk.f32.mxu0 %vm1491_vm0, %v558_v40  ;;  %3833 = vmatprep.mubr.msk.f32.mxu1 %vm1491_vm0, %v686_v41 }
  0xf7   : > { %v5177_v60 = vpop.permute.xlu1 %1118  ;;  %v5179_v61 = vpop.permute.xlu0 %1113 }
  0xf8   : > { %6803 = vst [vmem:[#allocation27_spill] sm:$0xff] %v5177_v60  ;;  %6804 = vst [vmem:[#allocation28_spill] sm:$0xff] %v5179_v61  ;;  %1438 = vperm.xlu1 %3946, %v840_v48   ;;  %1433 = vperm.xlu0 %3945, %v839_v49   ;;  %v559_v48 = vld [vmem:[%s6775_s3 + $0x2e0] sm:$0xff]  ;;  %v573_v60 = vld [vmem:[%s6775_s3 + $0x350] sm:$0xff] }
  0xf9   : > { %2166 = vmatmul.mubr.f32.gmra.mrb[90].mxu0 %v557_v10  ;;  %2486 = vmatmul.mubr.f32.gmra.mrb[90].mxu1 %v685_v11  ;;  %v687_v49 = vld [vmem:[%s6775_s3 + $0x6e0] sm:$0xff]  ;;  %v562_v10 = vld [vmem:[%s6775_s3 + $0x2f8] sm:$0xff]  ;;  %v701_v61 = vld [vmem:[%s6775_s3 + $0x750] sm:$0xff] }
  0xfa   : > { %3770 = vmatprep.mubr.msk.f32.mxu0 %vm1491_vm0, %v560_v16  ;;  %3834 = vmatprep.mubr.msk.f32.mxu1 %vm1491_vm0, %v688_v17  ;;  %v690_v11 = vld [vmem:[%s6775_s3 + $0x6f8] sm:$0xff]  ;;  %v844_v16 = vld [vmem:[%s6776_s4 + $0x3c8] sm:$0xff]  ;;  %v843_v17 = vld [vmem:[%s6776_s4 + $0x3c0] sm:$0xff] }
  0xfb   : > { %v5201_v40 = vpop.permute.xlu1 %1128  ;;  %v5203_v41 = vpop.permute.xlu0 %1123 }
  0xfc   : > { %6805 = vst [vmem:[#allocation29_spill] sm:$0xff] %v5201_v40  ;;  %6806 = vst [vmem:[#allocation30_spill] sm:$0xff] %v5203_v41  ;;  %1448 = vperm.xlu1 %3946, %v842_v32   ;;  %1443 = vperm.xlu0 %3945, %v841_v33   ;;  %v561_v40 = vld [vmem:[%s6775_s3 + $0x2f0] sm:$0xff] }
  0xfd   : > { %2171 = vmatmul.mubr.f32.gmra.mrb[92].mxu0 %v559_v48  ;;  %2491 = vmatmul.mubr.f32.gmra.mrb[92].mxu1 %v687_v49  ;;  %v689_v41 = vld [vmem:[%s6775_s3 + $0x6f0] sm:$0xff]  ;;  %v564_v48 = vld [vmem:[%s6775_s3 + $0x308] sm:$0xff] }
  0xfe   : > { %3771 = vmatprep.mubr.msk.f32.mxu0 %vm1491_vm0, %v562_v10  ;;  %3835 = vmatprep.mubr.msk.f32.mxu1 %vm1491_vm0, %v690_v11  ;;  %v692_v49 = vld [vmem:[%s6775_s3 + $0x708] sm:$0xff]  ;;  %v846_v10 = vld [vmem:[%s6776_s4 + $0x3d8] sm:$0xff]  ;;  %v845_v11 = vld [vmem:[%s6776_s4 + $0x3d0] sm:$0xff] }
  0xff   : > { %v5225_v32 = vpop.permute.xlu1 %1138  ;;  %v5227_v33 = vpop.permute.xlu0 %1133 }
 0x100   : > { %6807 = vst [vmem:[#allocation31_spill] sm:$0xff] %v5225_v32  ;;  %6808 = vst [vmem:[#allocation32_spill] sm:$0xff] %v5227_v33  ;;  %1458 = vperm.xlu1 %3946, %v844_v16   ;;  %1453 = vperm.xlu0 %3945, %v843_v17   ;;  %v563_v32 = vld [vmem:[%s6775_s3 + $0x300] sm:$0xff] }
 0x101   : > { %2176 = vmatmul.mubr.f32.gmra.mrb[94].mxu0 %v561_v40  ;;  %2496 = vmatmul.mubr.f32.gmra.mrb[94].mxu1 %v689_v41  ;;  %v691_v33 = vld [vmem:[%s6775_s3 + $0x700] sm:$0xff]  ;;  %v566_v40 = vld [vmem:[%s6775_s3 + $0x318] sm:$0xff] }
 0x102   : > { %3772 = vmatprep.mubr.msk.f32.mxu0 %vm1491_vm0, %v564_v48  ;;  %3836 = vmatprep.mubr.msk.f32.mxu1 %vm1491_vm0, %v692_v49  ;;  %v694_v41 = vld [vmem:[%s6775_s3 + $0x718] sm:$0xff]  ;;  %v848_v48 = vld [vmem:[%s6776_s4 + $0x3e8] sm:$0xff]  ;;  %v847_v49 = vld [vmem:[%s6776_s4 + $0x3e0] sm:$0xff] }
 0x103   : > { %v5249_v16 = vpop.permute.xlu1 %1148  ;;  %v5251_v17 = vpop.permute.xlu0 %1143 }
 0x104   : > { %6809 = vst [vmem:[#allocation33_spill] sm:$0xff] %v5249_v16  ;;  %6810 = vst [vmem:[#allocation34_spill] sm:$0xff] %v5251_v17  ;;  %1468 = vperm.xlu1 %3946, %v846_v10   ;;  %1463 = vperm.xlu0 %3945, %v845_v11   ;;  %v565_v16 = vld [vmem:[%s6775_s3 + $0x310] sm:$0xff] }
 0x105   : > { %2181 = vmatmul.mubr.f32.gmra.mrb[96].mxu0 %v563_v32  ;;  %2501 = vmatmul.mubr.f32.gmra.mrb[96].mxu1 %v691_v33  ;;  %v693_v17 = vld [vmem:[%s6775_s3 + $0x710] sm:$0xff]  ;;  %v568_v32 = vld [vmem:[%s6775_s3 + $0x328] sm:$0xff] }
 0x106   : > { %3773 = vmatprep.mubr.msk.f32.mxu0 %vm1491_vm0, %v566_v40  ;;  %3837 = vmatprep.mubr.msk.f32.mxu1 %vm1491_vm0, %v694_v41  ;;  %v696_v33 = vld [vmem:[%s6775_s3 + $0x728] sm:$0xff]  ;;  %v850_v40 = vld [vmem:[%s6776_s4 + $0x3f8] sm:$0xff]  ;;  %v849_v41 = vld [vmem:[%s6776_s4 + $0x3f0] sm:$0xff] }
 0x107   : > { %v5273_v10 = vpop.permute.xlu1 %1158  ;;  %v5275_v11 = vpop.permute.xlu0 %1153 }
 0x108   : > { %6811 = vst [vmem:[#allocation35_spill] sm:$0xff] %v5273_v10  ;;  %6812 = vst [vmem:[#allocation36_spill] sm:$0xff] %v5275_v11  ;;  %1478 = vperm.xlu1 %3946, %v848_v48   ;;  %1473 = vperm.xlu0 %3945, %v847_v49   ;;  %v567_v10 = vld [vmem:[%s6775_s3 + $0x320] sm:$0xff] }
 0x109   : > { %2186 = vmatmul.mubr.f32.gmra.mrb[98].mxu0 %v565_v16  ;;  %2506 = vmatmul.mubr.f32.gmra.mrb[98].mxu1 %v693_v17  ;;  %v695_v11 = vld [vmem:[%s6775_s3 + $0x720] sm:$0xff]  ;;  %v570_v16 = vld [vmem:[%s6775_s3 + $0x338] sm:$0xff] }
 0x10a   : > { %3774 = vmatprep.mubr.msk.f32.mxu0 %vm1491_vm0, %v568_v32  ;;  %3838 = vmatprep.mubr.msk.f32.mxu1 %vm1491_vm0, %v696_v33  ;;  %v698_v17 = vld [vmem:[%s6775_s3 + $0x738] sm:$0xff] }
 0x10b   : > { %v5297_v48 = vpop.permute.xlu1 %1168  ;;  %v5299_v49 = vpop.permute.xlu0 %1163 }
 0x10c   : > { %6813 = vst [vmem:[#allocation37_spill] sm:$0xff] %v5297_v48  ;;  %6814 = vst [vmem:[#allocation38_spill] sm:$0xff] %v5299_v49  ;;  %1488 = vperm.xlu1 %3946, %v850_v40   ;;  %1483 = vperm.xlu0 %3945, %v849_v41   ;;  %v569_v40 = vld [vmem:[%s6775_s3 + $0x330] sm:$0xff]  ;;  %v571_v48 = vld [vmem:[%s6775_s3 + $0x340] sm:$0xff] }
 0x10d   : > { %2191 = vmatmul.mubr.f32.gmra.mrb[100].mxu0 %v567_v10  ;;  %2511 = vmatmul.mubr.f32.gmra.mrb[100].mxu1 %v695_v11  ;;  %v697_v41 = vld [vmem:[%s6775_s3 + $0x730] sm:$0xff]  ;;  %v572_v10 = vld [vmem:[%s6775_s3 + $0x348] sm:$0xff]  ;;  %v699_v49 = vld [vmem:[%s6775_s3 + $0x740] sm:$0xff] }
 0x10e   : > { %3775 = vmatprep.mubr.msk.f32.mxu0 %vm1491_vm0, %v570_v16  ;;  %3839 = vmatprep.mubr.msk.f32.mxu1 %vm1491_vm0, %v698_v17  ;;  %v700_v11 = vld [vmem:[%s6775_s3 + $0x748] sm:$0xff] }
 0x10f   : > { %v5315_v32 = vpop.permute.xlu1 %1178  ;;  %v5317_v33 = vpop.permute.xlu0 %1173 }
 0x111   : > { %2196 = vmatmul.mubr.f32.gmra.mrb[102].mxu0 %v569_v40  ;;  %2516 = vmatmul.mubr.f32.gmra.mrb[102].mxu1 %v697_v41  ;;  %v574_v40 = vld [vmem:[%s6775_s3 + $0x358] sm:$0xff] }
 0x112   : > { %3776 = vmatprep.mubr.msk.f32.mxu0 %vm1491_vm0, %v572_v10  ;;  %3840 = vmatprep.mubr.msk.f32.mxu1 %vm1491_vm0, %v700_v11  ;;  %v702_v41 = vld [vmem:[%s6775_s3 + $0x758] sm:$0xff] }
 0x113   : > { %v5333_v16 = vpop.permute.xlu1 %1188  ;;  %v5335_v17 = vpop.permute.xlu0 %1183 }
 0x115   : > { %2201 = vmatmul.mubr.f32.gmra.mrb[104].mxu0 %v571_v48  ;;  %2521 = vmatmul.mubr.f32.gmra.mrb[104].mxu1 %v699_v49  ;;  %v576_v48 = vld [vmem:[%s6775_s3 + $0x368] sm:$0xff] }
 0x116   : > { %3777 = vmatprep.mubr.msk.f32.mxu0 %vm1491_vm0, %v574_v40  ;;  %3841 = vmatprep.mubr.msk.f32.mxu1 %vm1491_vm0, %v702_v41  ;;  %v704_v49 = vld [vmem:[%s6775_s3 + $0x768] sm:$0xff] }
 0x117   : > { %v5351_v10 = vpop.permute.xlu1 %1198  ;;  %v5353_v11 = vpop.permute.xlu0 %1193 }
 0x118   : > { %v1942_v18 = vpop.f32.mrb[0].mxu0  ;;  %v5369_v40 = vpop.f32.mrb[0].mxu1 }
 0x119   : > { %v1944_v41 = vpop.f32.mrb[1].mxu0  ;;  %2206 = vmatmul.mubr.f32.gmra.mrb[106].mxu0 %v573_v60  ;;  %2526 = vmatmul.mubr.f32.gmra.mrb[106].mxu1 %v701_v61  ;;  %v2264_v19 = vpop.f32.mrb[1].mxu1  ;;  %v706_v60 = vld [vmem:[%s6775_s3 + $0x778] sm:$0xff] }
 0x11a   : > { %3778 = vmatprep.mubr.msk.f32.mxu0 %vm1491_vm0, %v576_v48  ;;  %3842 = vmatprep.mubr.msk.f32.mxu1 %vm1491_vm0, %v704_v49  ;;  %v578_v19 = vld [vmem:[%s6775_s3 + $0x378] sm:$0xff] }
 0x11b   : > { %v5371_v52 = vpop.permute.xlu1 %1208  ;;  %v5373_v53 = vpop.permute.xlu0 %1203 }
 0x11c   : > { %v1947_v61 = vpop.f32.mrb[2].mxu0  ;;  %v5389_v48 = vpop.f32.mrb[2].mxu1 }
 0x11d   : > { %v1949_v49 = vpop.f32.mrb[3].mxu0  ;;  %2211 = vmatmul.mubr.f32.gmra.mrb[108].mxu0 %v575_v28  ;;  %2531 = vmatmul.mubr.f32.gmra.mrb[108].mxu1 %v703_v29  ;;  %v2269_v41 = vpop.f32.mrb[3].mxu1  ;;  %v580_v28 = vld [vmem:[%s6775_s3 + $0x388] sm:$0xff]  ;;  %v1948_v51 = vadd.f32 %v1947_v61, %v4579_v63 }
 0x11e   : > { %3779 = vmatprep.mubr.msk.f32.mxu0 %vm1491_vm0, %v578_v19  ;;  %3843 = vmatprep.mubr.msk.f32.mxu1 %vm1491_vm0, %v706_v60  ;;  %v708_v29 = vld [vmem:[%s6775_s3 + $0x788] sm:$0xff]  ;;  %v1943_v60 = vadd.f32 %v1942_v18, %v4555_v55  ;;  %v707_v55 = vld [vmem:[%s6775_s3 + $0x780] sm:$0xff] }
 0x11f   : > { %v5391_v0 = vpop.permute.xlu1 %1218  ;;  %v5393_v1 = vpop.permute.xlu0 %1213  ;;  %v584_v63 = vld [vmem:[%s6775_s3 + $0x3a8] sm:$0xff]  ;;  %v2710_v21 = vmul.f32 0.2, %v1948_v51  ;;  %vm2582_vm3 = vcmp.gt.f32.partialorder %v1948_v51, 0.0 }
 0x120   : > { %v1952_v49 = vpop.f32.mrb[4].mxu0  ;;  %v5409_v19 = vpop.f32.mrb[4].mxu1  ;;  %vm2581_vm1 = vcmp.gt.f32.partialorder %v1943_v60, 0.0  ;;  %v712_v61 = vld [vmem:[%s6775_s3 + $0x7a8] sm:$0xff] }
 0x121   : > { %v1954_v41 = vpop.f32.mrb[5].mxu0  ;;  %2216 = vmatmul.mubr.f32.gmra.mrb[110].mxu0 %v577_v42  ;;  %2536 = vmatmul.mubr.f32.gmra.mrb[110].mxu1 %v705_v43  ;;  %v2274_v26 = vpop.f32.mrb[5].mxu1  ;;  %v710_v42 = vld [vmem:[%s6775_s3 + $0x798] sm:$0xff] }
 0x122   : > { %3780 = vmatprep.mubr.msk.f32.mxu0 %vm1491_vm0, %v580_v28  ;;  %3844 = vmatprep.mubr.msk.f32.mxu1 %vm1491_vm0, %v708_v29  ;;  %v582_v26 = vld [vmem:[%s6775_s3 + $0x398] sm:$0xff]  ;;  %v2709_v28 = vmul.f32 0.2, %v1943_v60  ;;  %v1953_v29 = vadd.f32 %v1952_v49, %v4553_v54  ;;  %v709_v54 = vld [vmem:[%s6775_s3 + $0x790] sm:$0xff] }
 0x123   : > { %v5412_v27 = vpop.permute.xlu1 %1228  ;;  %v5414_v4 = vpop.permute.xlu0 %1223 }
 0x124   : > { %v1957_v43 = vpop.f32.mrb[6].mxu0  ;;  %v5430_v18 = vpop.f32.mrb[6].mxu1  ;;  %v2711_v49 = vmul.f32 0.2, %v1953_v29  ;;  %vm2583_vm2 = vcmp.gt.f32.partialorder %v1953_v29, 0.0 }
 0x125   : > { %v1959_v41 = vpop.f32.mrb[7].mxu0  ;;  %2221 = vmatmul.mubr.f32.gmra.mrb[112].mxu0 %v579_v6  ;;  %2541 = vmatmul.mubr.f32.gmra.mrb[112].mxu1 %v707_v55  ;;  %v2279_v50 = vpop.f32.mrb[7].mxu1  ;;  %v1958_v55 = vadd.f32 %v1957_v43, %v4577_v62  ;;  %v583_v62 = vld [vmem:[%s6775_s3 + $0x3a0] sm:$0xff] }
 0x126   : > { %3781 = vmatprep.mubr.msk.f32.mxu0 %vm1491_vm0, %v582_v26  ;;  %3845 = vmatprep.mubr.msk.f32.mxu1 %vm1491_vm0, %v710_v42  ;;  %v2837_v42 = vsel %vm2581_vm1, %v1943_v60, %v2709_v28  ;;  %v714_v28 = vld [vmem:[%s6775_s3 + $0x7b8] sm:$0xff] }
 0x127   : > { %v5434_v36 = vpop.permute.xlu1 %1238  ;;  %v5436_v37 = vpop.permute.xlu0 %1233  ;;  %vm2584_vm4 = vcmp.gt.f32.partialorder %v1958_v55, 0.0 }
 0x128   : > { %v1962_v50 = vpop.f32.mrb[8].mxu0  ;;  %v5449_v6 = vpop.f32.mrb[8].mxu1 }
 0x129   : > { %v1964_v26 = vpop.f32.mrb[9].mxu0  ;;  %2226 = vmatmul.mubr.f32.gmra.mrb[114].mxu0 %v581_v20  ;;  %2546 = vmatmul.mubr.f32.gmra.mrb[114].mxu1 %v709_v54  ;;  %v2284_v41 = vpop.f32.mrb[9].mxu1  ;;  %v5456_v8 = vadd.f32 %v1962_v50, %v4603_v7  ;;  %v711_v20 = vld [vmem:[%s6775_s3 + $0x7a0] sm:$0xff]  ;;  %v586_v7 = vld [vmem:[%s6775_s3 + $0x3b8] sm:$0xff]  ;;  %v2712_v54 = vmul.f32 0.2, %v1958_v55 }
 0x12a   : > { %3782 = vmatprep.mubr.msk.f32.mxu0 %vm1491_vm0, %v584_v63  ;;  %3846 = vmatprep.mubr.msk.f32.mxu1 %vm1491_vm0, %v712_v61  ;;  %v2839_v61 = vsel %vm2583_vm2, %v1953_v29, %v2711_v49  ;;  %v585_v29 = vld [vmem:[%s6775_s3 + $0x3b0] sm:$0xff] }
 0x12b   : > { %v5458_v9 = vpop.permute.xlu1 %1248  ;;  %v5460_v58 = vpop.permute.xlu0 %1243  ;;  %3093 = vmax.xlane.f32.xlu0 %v2837_v42  ;;  %v5488_v42 = vmul.f32 0.2, %v5456_v8  ;;  %v713_v49 = vld [vmem:[%s6775_s3 + $0x7b0] sm:$0xff]  ;;  %vm2585_vm5 = vcmp.gt.f32.partialorder %v5456_v8, 0.0 }
 0x12c   : > { %v1967_v60 = vpop.f32.mrb[10].mxu0  ;;  %v5474_v43 = vpop.f32.mrb[10].mxu1 }
 0x12d   : > { %v5480_v63 = vadd.f32 %v1967_v60, %v4601_v5  ;;  %v1969_v50 = vpop.f32.mrb[11].mxu0  ;;  %2231 = vmatmul.mubr.f32.gmra.mrb[116].mxu0 %v583_v62  ;;  %2551 = vmatmul.mubr.f32.gmra.mrb[116].mxu1 %v711_v20  ;;  %v2289_v26 = vpop.f32.mrb[11].mxu1  ;;  %v2838_v5 = vsel %vm2582_vm3, %v1948_v51, %v2710_v21  ;;  %v5507_v21 = vld [vmem:[%s6775_s3 + $0x3c8] sm:$0xff] }
 0x12e   : > { %3783 = vmatprep.mubr.msk.f32.mxu0 %vm1491_vm0, %v586_v7  ;;  %3847 = vmatprep.mubr.msk.f32.mxu1 %vm1491_vm0, %v714_v28  ;;  %v5514_v20 = vld [vmem:[%s6775_s3 + $0x7c8] sm:$0xff]  ;;  %v5522_v50 = vsel %vm2584_vm4, %v1958_v55, %v2712_v54  ;;  %v3973_v26 = vmov -inf  }
 0x12f   : > { %v5490_v41 = vpop.permute.xlu1 %1258  ;;  %v5492_v59 = vpop.permute.xlu0 %1253  ;;  %3097 = vmax.xlane.f32.xlu0 %v2839_v61  ;;  %v5517_v7 = vmul.f32 0.2, %v5480_v63  ;;  %315 = vst.msk [vmem:[%s5485_s8] sm:$0xff] %vm314_vm6, %v3973_v26  ;;  %316 = vst.msk [vmem:[%s5485_s8 + $0x8] sm:$0xff] %vm314_vm6, %v3973_v26  ;;  %vm2586_vm7 = vcmp.gt.f32.partialorder %v5480_v63, 0.0 }
 0x130   : > { %3095 = vmax.xlane.f32.xlu1 %v2838_v5  ;;  %v1972_v51 = vpop.f32.mrb[12].mxu0  ;;  %v5509_v62 = vpop.f32.mrb[12].mxu1  ;;  %317 = vst.msk [vmem:[%s5485_s8 + $0x10] sm:$0xff] %vm314_vm6, %v3973_v26  ;;  %318 = vst.msk [vmem:[%s5485_s8 + $0x18] sm:$0xff] %vm314_vm6, %v3973_v26  ;;  %v2841_v5 = vsel %vm2585_vm5, %v5456_v8, %v5488_v42  ;;  %v590_v8 = vld [vmem:[%s6775_s3 + $0x3d8] sm:$0xff]  ;;  %v2268_v42 = vadd.f32 %v5389_v48, %v5315_v32 }
 0x131   : > { %v5520_v60 = vadd.f32 %v1972_v51, %v4627_v15  ;;  %v1974_v28 = vpop.f32.mrb[13].mxu0  ;;  %2236 = vmatmul.mubr.f32.gmra.mrb[118].mxu0 %v585_v29  ;;  %2556 = vmatmul.mubr.f32.gmra.mrb[118].mxu1 %v713_v49  ;;  %v2294_v61 = vpop.f32.mrb[13].mxu1  ;;  %319 = vst.msk [vmem:[%s5485_s8 + $0x20] sm:$0xff] %vm314_vm6, %v3973_v26  ;;  %320 = vst.msk [vmem:[%s5485_s8 + $0x28] sm:$0xff] %vm314_vm6, %v3973_v26  ;;  %v2263_v15 = vadd.f32 %v5369_v40, %v5317_v33  ;;  %v587_v29 = vld [vmem:[%s6775_s3 + $0x3c0] sm:$0xff]  ;;  %v718_v51 = vld [vmem:[%s6775_s3 + $0x7d8] sm:$0xff] }
 0x132   : > { %321 = vst.msk [vmem:[%s5485_s8 + $0x30] sm:$0xff] %vm314_vm6, %v3973_v26  ;;  %322 = vst.msk [vmem:[%s5485_s8 + $0x38] sm:$0xff] %vm314_vm6, %v3973_v26  ;;  %3784 = vmatprep.mubr.msk.f32.mxu0 %vm1491_vm0, %v5507_v21  ;;  %v715_v33 = vld [vmem:[%s6775_s3 + $0x7c0] sm:$0xff]  ;;  %3848 = vmatprep.mubr.msk.f32.mxu1 %vm1491_vm0, %v5514_v20  ;;  %v2842_v20 = vsel %vm2586_vm7, %v5480_v63, %v5517_v7  ;;  %v592_v7 = vld [vmem:[%s6775_s3 + $0x3e8] sm:$0xff]  ;;  %vm2646_vm11 = vcmp.gt.f32.partialorder %v2268_v42, 0.0 }
 0x133   : > { %323 = vst.msk [vmem:[%s5485_s8 + $0x40] sm:$0xff] %vm314_vm6, %v3973_v26  ;;  %324 = vst.msk [vmem:[%s5485_s8 + $0x48] sm:$0xff] %vm314_vm6, %v3973_v26  ;;  %v5910_v55 = vpop.permute.xlu1 %1268  ;;  %v5912_v54 = vpop.permute.xlu0 %1263  ;;  %3099 = vmax.xlane.f32.xlu0 %v5522_v50  ;;  %v2715_v40 = vmul.f32 0.2, %v5520_v60  ;;  %vm2587_vm8 = vcmp.gt.f32.partialorder %v5520_v60, 0.0  ;;  %vm2645_vm10 = vcmp.gt.f32.partialorder %v2263_v15, 0.0 }
 0x134   : > { %325 = vst.msk [vmem:[%s5485_s8 + $0x50] sm:$0xff] %vm314_vm6, %v3973_v26  ;;  %326 = vst.msk [vmem:[%s5485_s8 + $0x58] sm:$0xff] %vm314_vm6, %v3973_v26  ;;  %3101 = vmax.xlane.f32.xlu1 %v2841_v5  ;;  %v1977_v49 = vpop.f32.mrb[14].mxu0  ;;  %v5937_v21 = vpop.f32.mrb[14].mxu1  ;;  %v2773_v5 = vmul.f32 0.2, %v2263_v15 }
 0x135   : > { %327 = vst.msk [vmem:[%s5485_s8 + $0x60] sm:$0xff] %vm314_vm6, %v3973_v26  ;;  %328 = vst.msk [vmem:[%s5485_s8 + $0x68] sm:$0xff] %vm314_vm6, %v3973_v26  ;;  %v1978_v28 = vadd.f32 %v1977_v49, %v4625_v14  ;;  %v1979_v50 = vpop.f32.mrb[15].mxu0  ;;  %2241 = vmatmul.mubr.f32.gmra.mrb[120].mxu0 %v587_v29  ;;  %2561 = vmatmul.mubr.f32.gmra.mrb[120].mxu1 %v715_v33  ;;  %v2299_v61 = vpop.f32.mrb[15].mxu1  ;;  %v589_v14 = vld [vmem:[%s6775_s3 + $0x3d0] sm:$0xff] }
 0x136   : > { %329 = vst.msk [vmem:[%s5485_s8 + $0x70] sm:$0xff] %vm314_vm6, %v3973_v26  ;;  %330 = vst.msk [vmem:[%s5485_s8 + $0x78] sm:$0xff] %vm314_vm6, %v3973_v26  ;;  %3785 = vmatprep.mubr.msk.f32.mxu0 %vm1491_vm0, %v590_v8  ;;  %v717_v29 = vld [vmem:[%s6775_s3 + $0x7d0] sm:$0xff]  ;;  %3849 = vmatprep.mubr.msk.f32.mxu1 %vm1491_vm0, %v718_v51  ;;  %v720_v8 = vld [vmem:[%s6775_s3 + $0x7e8] sm:$0xff]  ;;  %v2273_v61 = vadd.f32 %v5409_v19, %v5335_v17 }
 0x137   : > { %331 = vst.msk [vmem:[%s5485_s8 + $0x80] sm:$0xff] %vm314_vm6, %v3973_v26  ;;  %332 = vst.msk [vmem:[%s5485_s8 + $0x88] sm:$0xff] %vm314_vm6, %v3973_v26  ;;  %v5946_v32 = vpop.permute.xlu1 %1278  ;;  %v5948_v48 = vpop.permute.xlu0 %1273  ;;  %3103 = vmax.xlane.f32.xlu0 %v2842_v20  ;;  %v2716_v63 = vmul.f32 0.2, %v1978_v28  ;;  %vm2588_vm9 = vcmp.gt.f32.partialorder %v1978_v28, 0.0  ;;  %v594_v17 = vld [vmem:[%s6775_s3 + $0x3f8] sm:$0xff] }
 0x138   : > { %333 = vst.msk [vmem:[%s5485_s8 + $0x90] sm:$0xff] %vm314_vm6, %v3973_v26  ;;  %334 = vst.msk [vmem:[%s5485_s8 + $0x98] sm:$0xff] %vm314_vm6, %v3973_v26  ;;  %v1982_v33 = vpop.f32.mrb[16].mxu0  ;;  %vm2647_vm14 = vcmp.gt.f32.partialorder %v2273_v61, 0.0 }
 0x139   : > { %335 = vst.msk [vmem:[%s5485_s8 + $0xa0] sm:$0xff] %vm314_vm6, %v3973_v26  ;;  %336 = vst.msk [vmem:[%s5485_s8 + $0xa8] sm:$0xff] %vm314_vm6, %v3973_v26  ;;  %v1983_v49 = vadd.f32 %v1982_v33, %v4651_v23  ;;  %v1984_v50 = vpop.f32.mrb[17].mxu0  ;;  %2246 = vmatmul.mubr.f32.gmra.mrb[122].mxu0 %v589_v14  ;;  %2566 = vmatmul.mubr.f32.gmra.mrb[122].mxu1 %v717_v29  ;;  %v2844_v51 = vsel %vm2588_vm9, %v1978_v28, %v2716_v63  ;;  %v591_v23 = vld [vmem:[%s6775_s3 + $0x3e0] sm:$0xff]  ;;  %v722_v29 = vld [vmem:[%s6775_s3 + $0x7f8] sm:$0xff] }
 0x13a   : > { %337 = vst.msk [vmem:[%s5485_s8 + $0xb0] sm:$0xff] %vm314_vm6, %v3973_v26  ;;  %338 = vst.msk [vmem:[%s5485_s8 + $0xb8] sm:$0xff] %vm314_vm6, %v3973_v26  ;;  %3786 = vmatprep.mubr.msk.f32.mxu0 %vm1491_vm0, %v592_v7  ;;  %v719_v28 = vld [vmem:[%s6775_s3 + $0x7e0] sm:$0xff]  ;;  %3850 = vmatprep.mubr.msk.f32.mxu1 %vm1491_vm0, %v720_v8  ;;  %v2278_v63 = vadd.f32 %v5430_v18, %v5333_v16  ;;  %v2775_v50 = vmul.f32 0.2, %v2273_v61 }
 0x13b   : > { %339 = vst.msk [vmem:[%s5485_s8 + $0xc0] sm:$0xff] %vm314_vm6, %v3973_v26  ;;  %340 = vst.msk [vmem:[%s5485_s8 + $0xc8] sm:$0xff] %vm314_vm6, %v3973_v26  ;;  %v5971_v44 = vpop.permute.xlu0 %1283  ;;  %3107 = vmax.xlane.f32.xlu0 %v2844_v51  ;;  %v2717_v14 = vmul.f32 0.2, %v1983_v49  ;;  %vm2589_vm12 = vcmp.gt.f32.partialorder %v1983_v49, 0.0 }
 0x13c   : > { %341 = vst.msk [vmem:[%s5485_s8 + $0xd0] sm:$0xff] %vm314_vm6, %v3973_v26  ;;  %342 = vst.msk [vmem:[%s5485_s8 + $0xd8] sm:$0xff] %vm314_vm6, %v3973_v26  ;;  %v1987_v19 = vpop.f32.mrb[18].mxu0  ;;  %vm2648_vm15 = vcmp.gt.f32.partialorder %v2278_v63, 0.0 }
 0x13d   : > { %343 = vst.msk [vmem:[%s5485_s8 + $0xe0] sm:$0xff] %vm314_vm6, %v3973_v26  ;;  %344 = vst.msk [vmem:[%s5485_s8 + $0xe8] sm:$0xff] %vm314_vm6, %v3973_v26  ;;  %v1989_v7 = vpop.f32.mrb[19].mxu0  ;;  %2251 = vmatmul.mubr.f32.gmra.mrb[124].mxu0 %v591_v23  ;;  %2571 = vmatmul.mubr.f32.gmra.mrb[124].mxu1 %v719_v28  ;;  %v2845_v8 = vsel %vm2589_vm12, %v1983_v49, %v2717_v14  ;;  %v2776_v49 = vmul.f32 0.2, %v2278_v63 }
 0x13e   : > { %345 = vst.msk [vmem:[%s5485_s8 + $0xf0] sm:$0xff] %vm314_vm6, %v3973_v26  ;;  %346 = vst.msk [vmem:[%s5485_s8 + $0xf8] sm:$0xff] %vm314_vm6, %v3973_v26  ;;  %3787 = vmatprep.mubr.msk.f32.mxu0 %vm1491_vm0, %v594_v17  ;;  %3851 = vmatprep.mubr.msk.f32.mxu1 %vm1491_vm0, %v722_v29  ;;  %v2903_v29 = vsel %vm2647_vm14, %v2273_v61, %v2775_v50 }
 0x13f   : > { %347 = vst.msk [vmem:[%s5485_s8 + $0x100] sm:$0xff] %vm314_vm6, %v3973_v26  ;;  %348 = vst.msk [vmem:[%s5485_s8 + $0x108] sm:$0xff] %vm314_vm6, %v3973_v26 }
 0x140   : > { %349 = vst.msk [vmem:[%s5485_s8 + $0x110] sm:$0xff] %vm314_vm6, %v3973_v26  ;;  %350 = vst.msk [vmem:[%s5485_s8 + $0x118] sm:$0xff] %vm314_vm6, %v3973_v26  ;;  %v1992_v18 = vpop.f32.mrb[20].mxu0 }
 0x141   : > { %351 = vst.msk [vmem:[%s5485_s8 + $0x120] sm:$0xff] %vm314_vm6, %v3973_v26  ;;  %352 = vst.msk [vmem:[%s5485_s8 + $0x128] sm:$0xff] %vm314_vm6, %v3973_v26  ;;  %v1993_v23 = vadd.f32 %v1992_v18, %v4675_v31  ;;  %v1994_v28 = vpop.f32.mrb[21].mxu0 }
 0x142   : > { %353 = vst.msk [vmem:[%s5485_s8 + $0x130] sm:$0xff] %vm314_vm6, %v3973_v26  ;;  %354 = vst.msk [vmem:[%s5485_s8 + $0x138] sm:$0xff] %vm314_vm6, %v3973_v26 }
 0x143   : > { %355 = vst.msk [vmem:[%s5485_s8 + $0x140] sm:$0xff] %vm314_vm6, %v3973_v26  ;;  %356 = vst.msk [vmem:[%s5485_s8 + $0x148] sm:$0xff] %vm314_vm6, %v3973_v26  ;;  %vm2591_vm0 = vcmp.gt.f32.partialorder %v1993_v23, 0.0 }
 0x144   : > { %357 = vst.msk [vmem:[%s5485_s8 + $0x150] sm:$0xff] %vm314_vm6, %v3973_v26  ;;  %358 = vst.msk [vmem:[%s5485_s8 + $0x158] sm:$0xff] %vm314_vm6, %v3973_v26 }
 0x145   : > { %359 = vst.msk [vmem:[%s5485_s8 + $0x160] sm:$0xff] %vm314_vm6, %v3973_v26  ;;  %360 = vst.msk [vmem:[%s5485_s8 + $0x168] sm:$0xff] %vm314_vm6, %v3973_v26 }
 0x146   : > { %361 = vst.msk [vmem:[%s5485_s8 + $0x170] sm:$0xff] %vm314_vm6, %v3973_v26  ;;  %362 = vst.msk [vmem:[%s5485_s8 + $0x178] sm:$0xff] %vm314_vm6, %v3973_v26 }
 0x147   : > { %363 = vst.msk [vmem:[%s5485_s8 + $0x180] sm:$0xff] %vm314_vm6, %v3973_v26  ;;  %364 = vst.msk [vmem:[%s5485_s8 + $0x188] sm:$0xff] %vm314_vm6, %v3973_v26 }
 0x148   : > { %365 = vst.msk [vmem:[%s5485_s8 + $0x190] sm:$0xff] %vm314_vm6, %v3973_v26  ;;  %366 = vst.msk [vmem:[%s5485_s8 + $0x198] sm:$0xff] %vm314_vm6, %v3973_v26 }
 0x149   : > { %367 = vst.msk [vmem:[%s5485_s8 + $0x1a0] sm:$0xff] %vm314_vm6, %v3973_v26  ;;  %368 = vst.msk [vmem:[%s5485_s8 + $0x1a8] sm:$0xff] %vm314_vm6, %v3973_v26 }
 0x14a   : > { %369 = vst.msk [vmem:[%s5485_s8 + $0x1b0] sm:$0xff] %vm314_vm6, %v3973_v26  ;;  %370 = vst.msk [vmem:[%s5485_s8 + $0x1b8] sm:$0xff] %vm314_vm6, %v3973_v26 }
 0x14b   : > { %371 = vst.msk [vmem:[%s5485_s8 + $0x1c0] sm:$0xff] %vm314_vm6, %v3973_v26  ;;  %372 = vst.msk [vmem:[%s5485_s8 + $0x1c8] sm:$0xff] %vm314_vm6, %v3973_v26 }
 0x14c   : > { %373 = vst.msk [vmem:[%s5485_s8 + $0x1d0] sm:$0xff] %vm314_vm6, %v3973_v26  ;;  %374 = vst.msk [vmem:[%s5485_s8 + $0x1d8] sm:$0xff] %vm314_vm6, %v3973_v26 }
 0x14d   : > { %375 = vst.msk [vmem:[%s5485_s8 + $0x1e0] sm:$0xff] %vm314_vm6, %v3973_v26  ;;  %376 = vst.msk [vmem:[%s5485_s8 + $0x1e8] sm:$0xff] %vm314_vm6, %v3973_v26 }
 0x14e   : > { %377 = vst.msk [vmem:[%s5485_s8 + $0x1f0] sm:$0xff] %vm314_vm6, %v3973_v26  ;;  %378 = vst.msk [vmem:[%s5485_s8 + $0x1f8] sm:$0xff] %vm314_vm6, %v3973_v26 }
 0x14f   : > { %379 = vst.msk [vmem:[%s5485_s8 + $0x200] sm:$0xff] %vm314_vm6, %v3973_v26  ;;  %380 = vst.msk [vmem:[%s5485_s8 + $0x208] sm:$0xff] %vm314_vm6, %v3973_v26 }
 0x150   : > { %381 = vst.msk [vmem:[%s5485_s8 + $0x210] sm:$0xff] %vm314_vm6, %v3973_v26  ;;  %382 = vst.msk [vmem:[%s5485_s8 + $0x218] sm:$0xff] %vm314_vm6, %v3973_v26 }
 0x151   : > { %383 = vst.msk [vmem:[%s5485_s8 + $0x220] sm:$0xff] %vm314_vm6, %v3973_v26  ;;  %384 = vst.msk [vmem:[%s5485_s8 + $0x228] sm:$0xff] %vm314_vm6, %v3973_v26 }
 0x152   : > { %385 = vst.msk [vmem:[%s5485_s8 + $0x230] sm:$0xff] %vm314_vm6, %v3973_v26  ;;  %386 = vst.msk [vmem:[%s5485_s8 + $0x238] sm:$0xff] %vm314_vm6, %v3973_v26 }
 0x153   : > { %387 = vst.msk [vmem:[%s5485_s8 + $0x240] sm:$0xff] %vm314_vm6, %v3973_v26  ;;  %388 = vst.msk [vmem:[%s5485_s8 + $0x248] sm:$0xff] %vm314_vm6, %v3973_v26 }
 0x154   : > { %389 = vst.msk [vmem:[%s5485_s8 + $0x250] sm:$0xff] %vm314_vm6, %v3973_v26  ;;  %390 = vst.msk [vmem:[%s5485_s8 + $0x258] sm:$0xff] %vm314_vm6, %v3973_v26 }
 0x155   : > { %391 = vst.msk [vmem:[%s5485_s8 + $0x260] sm:$0xff] %vm314_vm6, %v3973_v26  ;;  %392 = vst.msk [vmem:[%s5485_s8 + $0x268] sm:$0xff] %vm314_vm6, %v3973_v26 }
 0x156   : > { %393 = vst.msk [vmem:[%s5485_s8 + $0x270] sm:$0xff] %vm314_vm6, %v3973_v26  ;;  %394 = vst.msk [vmem:[%s5485_s8 + $0x278] sm:$0xff] %vm314_vm6, %v3973_v26 }
 0x157   : > { %395 = vst.msk [vmem:[%s5485_s8 + $0x280] sm:$0xff] %vm314_vm6, %v3973_v26  ;;  %396 = vst.msk [vmem:[%s5485_s8 + $0x288] sm:$0xff] %vm314_vm6, %v3973_v26 }
 0x158   : > { %397 = vst.msk [vmem:[%s5485_s8 + $0x290] sm:$0xff] %vm314_vm6, %v3973_v26  ;;  %398 = vst.msk [vmem:[%s5485_s8 + $0x298] sm:$0xff] %vm314_vm6, %v3973_v26 }
 0x159   : > { %399 = vst.msk [vmem:[%s5485_s8 + $0x2a0] sm:$0xff] %vm314_vm6, %v3973_v26  ;;  %400 = vst.msk [vmem:[%s5485_s8 + $0x2a8] sm:$0xff] %vm314_vm6, %v3973_v26 }
 0x15a   : > { %401 = vst.msk [vmem:[%s5485_s8 + $0x2b0] sm:$0xff] %vm314_vm6, %v3973_v26  ;;  %402 = vst.msk [vmem:[%s5485_s8 + $0x2b8] sm:$0xff] %vm314_vm6, %v3973_v26 }
 0x15b   : > { %403 = vst.msk [vmem:[%s5485_s8 + $0x2c0] sm:$0xff] %vm314_vm6, %v3973_v26  ;;  %404 = vst.msk [vmem:[%s5485_s8 + $0x2c8] sm:$0xff] %vm314_vm6, %v3973_v26 }
 0x15c   : > { %405 = vst.msk [vmem:[%s5485_s8 + $0x2d0] sm:$0xff] %vm314_vm6, %v3973_v26  ;;  %406 = vst.msk [vmem:[%s5485_s8 + $0x2d8] sm:$0xff] %vm314_vm6, %v3973_v26 }
 0x15d   : > { %407 = vst.msk [vmem:[%s5485_s8 + $0x2e0] sm:$0xff] %vm314_vm6, %v3973_v26  ;;  %408 = vst.msk [vmem:[%s5485_s8 + $0x2e8] sm:$0xff] %vm314_vm6, %v3973_v26 }
 0x15e   : > { %409 = vst.msk [vmem:[%s5485_s8 + $0x2f0] sm:$0xff] %vm314_vm6, %v3973_v26  ;;  %410 = vst.msk [vmem:[%s5485_s8 + $0x2f8] sm:$0xff] %vm314_vm6, %v3973_v26 }
 0x15f   : > { %411 = vst.msk [vmem:[%s5485_s8 + $0x300] sm:$0xff] %vm314_vm6, %v3973_v26  ;;  %412 = vst.msk [vmem:[%s5485_s8 + $0x308] sm:$0xff] %vm314_vm6, %v3973_v26 }
 0x160   : > { %413 = vst.msk [vmem:[%s5485_s8 + $0x310] sm:$0xff] %vm314_vm6, %v3973_v26  ;;  %414 = vst.msk [vmem:[%s5485_s8 + $0x318] sm:$0xff] %vm314_vm6, %v3973_v26 }
 0x161   : > { %415 = vst.msk [vmem:[%s5485_s8 + $0x320] sm:$0xff] %vm314_vm6, %v3973_v26  ;;  %416 = vst.msk [vmem:[%s5485_s8 + $0x328] sm:$0xff] %vm314_vm6, %v3973_v26 }
 0x162   : > { %417 = vst.msk [vmem:[%s5485_s8 + $0x330] sm:$0xff] %vm314_vm6, %v3973_v26  ;;  %418 = vst.msk [vmem:[%s5485_s8 + $0x338] sm:$0xff] %vm314_vm6, %v3973_v26 }
 0x163   : > { %419 = vst.msk [vmem:[%s5485_s8 + $0x340] sm:$0xff] %vm314_vm6, %v3973_v26  ;;  %420 = vst.msk [vmem:[%s5485_s8 + $0x348] sm:$0xff] %vm314_vm6, %v3973_v26 }
 0x164   : > { %421 = vst.msk [vmem:[%s5485_s8 + $0x350] sm:$0xff] %vm314_vm6, %v3973_v26  ;;  %422 = vst.msk [vmem:[%s5485_s8 + $0x358] sm:$0xff] %vm314_vm6, %v3973_v26 }
 0x165   : > { %423 = vst.msk [vmem:[%s5485_s8 + $0x360] sm:$0xff] %vm314_vm6, %v3973_v26  ;;  %424 = vst.msk [vmem:[%s5485_s8 + $0x368] sm:$0xff] %vm314_vm6, %v3973_v26 }
 0x166   : > { %425 = vst.msk [vmem:[%s5485_s8 + $0x370] sm:$0xff] %vm314_vm6, %v3973_v26  ;;  %426 = vst.msk [vmem:[%s5485_s8 + $0x378] sm:$0xff] %vm314_vm6, %v3973_v26 }
 0x167   : > { %427 = vst.msk [vmem:[%s5485_s8 + $0x380] sm:$0xff] %vm314_vm6, %v3973_v26  ;;  %428 = vst.msk [vmem:[%s5485_s8 + $0x388] sm:$0xff] %vm314_vm6, %v3973_v26 }
 0x168   : > { %429 = vst.msk [vmem:[%s5485_s8 + $0x390] sm:$0xff] %vm314_vm6, %v3973_v26  ;;  %430 = vst.msk [vmem:[%s5485_s8 + $0x398] sm:$0xff] %vm314_vm6, %v3973_v26 }
 0x169   : > { %431 = vst.msk [vmem:[%s5485_s8 + $0x3a0] sm:$0xff] %vm314_vm6, %v3973_v26  ;;  %432 = vst.msk [vmem:[%s5485_s8 + $0x3a8] sm:$0xff] %vm314_vm6, %v3973_v26 }
 0x16a   : > { %433 = vst.msk [vmem:[%s5485_s8 + $0x3b0] sm:$0xff] %vm314_vm6, %v3973_v26  ;;  %434 = vst.msk [vmem:[%s5485_s8 + $0x3b8] sm:$0xff] %vm314_vm6, %v3973_v26 }
 0x16b   : > { %435 = vst.msk [vmem:[%s5485_s8 + $0x3c0] sm:$0xff] %vm314_vm6, %v3973_v26  ;;  %436 = vst.msk [vmem:[%s5485_s8 + $0x3c8] sm:$0xff] %vm314_vm6, %v3973_v26 }
 0x16c   : > { %437 = vst.msk [vmem:[%s5485_s8 + $0x3d0] sm:$0xff] %vm314_vm6, %v3973_v26  ;;  %438 = vst.msk [vmem:[%s5485_s8 + $0x3d8] sm:$0xff] %vm314_vm6, %v3973_v26 }
 0x16d   : > { %439 = vst.msk [vmem:[%s5485_s8 + $0x3e0] sm:$0xff] %vm314_vm6, %v3973_v26  ;;  %440 = vst.msk [vmem:[%s5485_s8 + $0x3e8] sm:$0xff] %vm314_vm6, %v3973_v26 }
 0x16e   : > { %441 = vst.msk [vmem:[%s5485_s8 + $0x3f0] sm:$0xff] %vm314_vm6, %v3973_v26  ;;  %442 = vst.msk [vmem:[%s5485_s8 + $0x3f8] sm:$0xff] %vm314_vm6, %v3973_v26  ;;  %v2843_v26 = vsel %vm2587_vm8, %v5520_v60, %v2715_v40  ;;  %v2774_v60 = vmul.f32 0.2, %v2268_v42  ;;  %v5961_v40 = vpop.f32.mrb[16].mxu1 }
 0x16f   : > { %6815 = vst [vmem:[#allocation39_spill] sm:$0xff] %v5946_v32  ;;  %3105 = vmax.xlane.f32.xlu1 %v2843_v26  ;;  %v2304_v20 = vpop.f32.mrb[17].mxu1  ;;  %v5969_v26 = vpop.permute.xlu1 %1288  ;;  %v2901_v32 = vsel %vm2645_vm10, %v2263_v15, %v2773_v5 }
 0x170   : > { %v5985_v15 = vpop.f32.mrb[18].mxu1  ;;  %v2902_v5 = vsel %vm2646_vm11, %v2268_v42, %v2774_v60  ;;  %v5996_v20 = vpop.permute.xlu0 %1293  ;;  %v593_v42 = vld [vmem:[%s6775_s3 + $0x3f0] sm:$0xff] }
 0x171   : > { %v2309_v33 = vpop.f32.mrb[19].mxu1  ;;  %3223 = vmax.xlane.f32.xlu0 %v2902_v5  ;;  %2256 = vmatmul.mubr.f32.gmra.mrb[126].mxu0 %v593_v42 }
 0x172   : > { %v6006_v60 = vpop.f32.mrb[20].mxu1  ;;  %v2719_v33 = vmul.f32 0.2, %v1993_v23 }
 0x173   : > { %3221 = vmax.xlane.f32.xlu1 %v2901_v32  ;;  %v1988_v32 = vadd.f32 %v1987_v19, %v4649_v22  ;;  %v5994_v51 = vpop.permute.xlu1 %1298  ;;  %v721_v22 = vld [vmem:[%s6775_s3 + $0x7f0] sm:$0xff]  ;;  %v2314_v17 = vpop.f32.mrb[21].mxu1  ;;  %v2283_v19 = vadd.f32 %v5449_v6, %v5353_v11  ;;  %v2904_v11 = vsel %vm2648_vm15, %v2278_v63, %v2776_v49 }
 0x174   : > { %2576 = vmatmul.mubr.f32.gmra.mrb[126].mxu1 %v721_v22  ;;  %v6013_v7 = vpop.permute.xlu0 %1303  ;;  %v6015_v31 = vpop.f32.mrb[22].mxu1 }
 0x175   : > { %v2718_v16 = vmul.f32 0.2, %v1988_v32  ;;  %vm2590_vm13 = vcmp.gt.f32.partialorder %v1988_v32, 0.0  ;;  %v2319_v6 = vpop.f32.mrb[23].mxu1  ;;  %v2777_v18 = vmul.f32 0.2, %v2283_v19 }
 0x176   : > { %vm2649_vm2 = vcmp.gt.f32.partialorder %v2283_v19, 0.0  ;;  %v6024_v17 = vpop.f32.mrb[24].mxu1 }
 0x177   : > { %3109 = vmax.xlane.f32.xlu1 %v2845_v8  ;;  %v2846_v14 = vsel %vm2590_vm13, %v1988_v32, %v2718_v16  ;;  %v6011_v5 = vpop.permute.xlu1 %1308  ;;  %v1997_v8 = vpop.f32.mrb[22].mxu0  ;;  %v2288_v32 = vadd.f32 %v5474_v43, %v5351_v10  ;;  %v2847_v16 = vsel %vm2591_vm0, %v1993_v23, %v2719_v33  ;;  %v2293_v23 = vadd.f32 %v5509_v62, %v5373_v53 }
 0x178   : > { %3111 = vmax.xlane.f32.xlu0 %v2846_v14  ;;  %v1998_v42 = vadd.f32 %v1997_v8, %v4673_v30  ;;  %v1999_v22 = vpop.f32.mrb[23].mxu0  ;;  %v6022_v61 = vpop.permute.xlu0 %1313  ;;  %v2905_v8 = vsel %vm2649_vm2, %v2283_v19, %v2777_v18 }
 0x179   : > { %v2002_v14 = vpop.f32.mrb[24].mxu0  ;;  %v2778_v10 = vmul.f32 0.2, %v2288_v32  ;;  %v2324_v49 = vpop.f32.mrb[25].mxu1  ;;  %vm2650_vm3 = vcmp.gt.f32.partialorder %v2288_v32, 0.0  ;;  %vm2651_vm7 = vcmp.gt.f32.partialorder %v2293_v23, 0.0 }
 0x17a   : > { %v2720_v50 = vmul.f32 0.2, %v1998_v42  ;;  %vm2592_vm1 = vcmp.gt.f32.partialorder %v1998_v42, 0.0  ;;  %v2003_v30 = vadd.f32 %v2002_v14, %v4699_v39  ;;  %v2004_v43 = vpop.f32.mrb[25].mxu0  ;;  %v6033_v6 = vpop.f32.mrb[26].mxu1  ;;  %v2298_v39 = vadd.f32 %v5937_v21, %v5371_v52 }
 0x17b   : > { %3225 = vmax.xlane.f32.xlu1 %v2903_v29  ;;  %v6020_v28 = vpop.permute.xlu1 %1318  ;;  %v2906_v53 = vsel %vm2650_vm3, %v2288_v32, %v2778_v10  ;;  %v2329_v62 = vpop.f32.mrb[27].mxu1  ;;  %v2779_v14 = vmul.f32 0.2, %v2293_v23 }
 0x17c   : > { %3227 = vmax.xlane.f32.xlu0 %v2904_v11  ;;  %v2848_v63 = vsel %vm2592_vm1, %v1998_v42, %v2720_v50  ;;  %v6031_v33 = vpop.permute.xlu0 %1323  ;;  %v2721_v22 = vmul.f32 0.2, %v2003_v30  ;;  %vm2593_vm4 = vcmp.gt.f32.partialorder %v2003_v30, 0.0  ;;  %v2007_v11 = vpop.f32.mrb[26].mxu0  ;;  %v2780_v52 = vmul.f32 0.2, %v2298_v39 }
 0x17d   : > { %v2008_v42 = vadd.f32 %v2007_v11, %v4697_v38  ;;  %v6042_v49 = vpop.f32.mrb[28].mxu1  ;;  %v2907_v11 = vsel %vm2651_vm7, %v2293_v23, %v2779_v14  ;;  %vm2652_vm8 = vcmp.gt.f32.partialorder %v2298_v39, 0.0 }
 0x17e   : > { %v2849_v50 = vsel %vm2593_vm4, %v2003_v30, %v2721_v22  ;;  %v2334_v10 = vpop.f32.mrb[29].mxu1  ;;  %v2303_v30 = vadd.f32 %v5961_v40, %v5393_v1  ;;  %v2908_v1 = vsel %vm2652_vm8, %v2298_v39, %v2780_v52 }
 0x17f   : > { %3113 = vmax.xlane.f32.xlu1 %v2847_v16  ;;  %v6029_v29 = vpop.permute.xlu1 %1328  ;;  %v2009_v16 = vpop.f32.mrb[27].mxu0  ;;  %v2722_v18 = vmul.f32 0.2, %v2008_v42  ;;  %vm2594_vm5 = vcmp.gt.f32.partialorder %v2008_v42, 0.0 }
 0x180   : > { %3115 = vmax.xlane.f32.xlu0 %v2848_v63  ;;  %v6040_v19 = vpop.permute.xlu0 %1333  ;;  %v2012_v63 = vpop.f32.mrb[28].mxu0  ;;  %vm2653_vm11 = vcmp.gt.f32.partialorder %v2303_v30, 0.0 }
 0x181   : > { %v2013_v38 = vadd.f32 %v2012_v63, %v4723_v47  ;;  %v2014_v21 = vpop.f32.mrb[29].mxu0  ;;  %v2850_v32 = vsel %vm2594_vm5, %v2008_v42, %v2722_v18  ;;  %v6051_v62 = vpop.f32.mrb[30].mxu1  ;;  %v2308_v47 = vadd.f32 %v5985_v15, %v5391_v0  ;;  %v2781_v63 = vmul.f32 0.2, %v2303_v30 }
 0x182   : > { %v2339_v40 = vpop.f32.mrb[31].mxu1 }
 0x183   : > { %3229 = vmax.xlane.f32.xlu1 %v2905_v8  ;;  %v6038_v43 = vpop.permute.xlu1 %1338  ;;  %v2723_v16 = vmul.f32 0.2, %v2013_v38  ;;  %vm2595_vm9 = vcmp.gt.f32.partialorder %v2013_v38, 0.0  ;;  %v6060_v10 = vpop.f32.mrb[32].mxu1  ;;  %v2782_v0 = vmul.f32 0.2, %v2308_v47 }
 0x184   : > { %3231 = vmax.xlane.f32.xlu0 %v2906_v53  ;;  %v6049_v22 = vpop.permute.xlu0 %1343  ;;  %v2017_v53 = vpop.f32.mrb[30].mxu0  ;;  %vm2654_vm12 = vcmp.gt.f32.partialorder %v2308_v47, 0.0 }
 0x185   : > { %v2018_v42 = vadd.f32 %v2017_v53, %v4721_v46  ;;  %v2851_v18 = vsel %vm2595_vm9, %v2013_v38, %v2723_v16  ;;  %v2344_v52 = vpop.f32.mrb[33].mxu1  ;;  %v2313_v38 = vadd.f32 %v6006_v60, %v5414_v4  ;;  %v2909_v53 = vsel %vm2653_vm11, %v2303_v30, %v2781_v63 }
 0x186   : > { %v6069_v40 = vpop.f32.mrb[34].mxu1  ;;  %v2910_v4 = vsel %vm2654_vm12, %v2308_v47, %v2782_v0 }
 0x187   : > { %3117 = vmax.xlane.f32.xlu1 %v2849_v50  ;;  %v6047_v8 = vpop.permute.xlu1 %1348  ;;  %v2019_v50 = vpop.f32.mrb[31].mxu0  ;;  %v2724_v14 = vmul.f32 0.2, %v2018_v42  ;;  %vm2596_vm10 = vcmp.gt.f32.partialorder %v2018_v42, 0.0  ;;  %vm2655_vm15 = vcmp.gt.f32.partialorder %v2313_v38, 0.0 }
 0x188   : > { %3119 = vmax.xlane.f32.xlu0 %v2850_v32  ;;  %v6058_v23 = vpop.permute.xlu0 %1353  ;;  %v2022_v32 = vpop.f32.mrb[32].mxu0 }
 0x189   : > { %v2023_v46 = vadd.f32 %v2022_v32, %v4747_v57  ;;  %v2024_v15 = vpop.f32.mrb[33].mxu0  ;;  %v2852_v39 = vsel %vm2596_vm10, %v2018_v42, %v2724_v14  ;;  %v2318_v57 = vadd.f32 %v6015_v31, %v5412_v27  ;;  %v2349_v60 = vpop.f32.mrb[35].mxu1  ;;  %v2783_v32 = vmul.f32 0.2, %v2313_v38 }
 0x18a   : > { %v6078_v52 = vpop.f32.mrb[36].mxu1 }
 0x18b   : > { %3233 = vmax.xlane.f32.xlu1 %v2907_v11  ;;  %v6056_v21 = vpop.permute.xlu1 %1358  ;;  %v2725_v50 = vmul.f32 0.2, %v2023_v46  ;;  %vm2597_vm13 = vcmp.gt.f32.partialorder %v2023_v46, 0.0  ;;  %v2784_v27 = vmul.f32 0.2, %v2318_v57  ;;  %v2354_v0 = vpop.f32.mrb[37].mxu1 }
 0x18c   : > { %3235 = vmax.xlane.f32.xlu0 %v2908_v1  ;;  %v6067_v16 = vpop.permute.xlu0 %1363  ;;  %v2027_v1 = vpop.f32.mrb[34].mxu0  ;;  %vm2656_vm0 = vcmp.gt.f32.partialorder %v2318_v57, 0.0 }
 0x18d   : > { %v2028_v42 = vadd.f32 %v2027_v1, %v4745_v56  ;;  %v2853_v14 = vsel %vm2597_vm13, %v2023_v46, %v2725_v50  ;;  %v2323_v46 = vadd.f32 %v6024_v17, %v5436_v37 }
 0x18f   : > { %3121 = vmax.xlane.f32.xlu1 %v2851_v18  ;;  %v6065_v11 = vpop.permute.xlu1 %1368  ;;  %v2029_v18 = vpop.f32.mrb[35].mxu0  ;;  %v2726_v30 = vmul.f32 0.2, %v2028_v42  ;;  %vm2598_vm14 = vcmp.gt.f32.partialorder %v2028_v42, 0.0  ;;  %v2785_v17 = vmul.f32 0.2, %v2323_v46 }
 0x190   : > { %3123 = vmax.xlane.f32.xlu0 %v2852_v39  ;;  %v6074_v15 = vpop.permute.xlu0 %1373  ;;  %v2032_v39 = vpop.f32.mrb[36].mxu0  ;;  %vm2657_vm3 = vcmp.gt.f32.partialorder %v2323_v46, 0.0 }
 0x191   : > { %v2033_v56 = vadd.f32 %v2032_v39, %v4771_v3  ;;  %v2034_v31 = vpop.f32.mrb[37].mxu0  ;;  %v2854_v47 = vsel %vm2598_vm14, %v2028_v42, %v2726_v30  ;;  %v2328_v3 = vadd.f32 %v6033_v6, %v5434_v36 }
 0x192   : > { %v2037_v18 = vpop.f32.mrb[38].mxu0 }
 0x193   : > { %3237 = vmax.xlane.f32.xlu1 %v2909_v53  ;;  %v6076_v63 = vpop.permute.xlu1 %1378  ;;  %v2911_v53 = vsel %vm2655_vm15, %v2313_v38, %v2783_v32  ;;  %v2727_v50 = vmul.f32 0.2, %v2033_v56  ;;  %vm2599_vm1 = vcmp.gt.f32.partialorder %v2033_v56, 0.0  ;;  %v2038_v42 = vadd.f32 %v2037_v18, %v4769_v2  ;;  %v2039_v60 = vpop.f32.mrb[39].mxu0 }
 0x194   : > { %3239 = vmax.xlane.f32.xlu0 %v2910_v4  ;;  %v6083_v1 = vpop.permute.xlu0 %1383  ;;  %v6085_v4 = vpop.f32.mrb[38].mxu1  ;;  %vm2658_vm4 = vcmp.gt.f32.partialorder %v2328_v3, 0.0 }
 0x195   : > { %v2359_v30 = vpop.f32.mrb[39].mxu1  ;;  %v2855_v37 = vsel %vm2599_vm1, %v2033_v56, %v2727_v50  ;;  %v2728_v32 = vmul.f32 0.2, %v2038_v42  ;;  %vm2600_vm2 = vcmp.gt.f32.partialorder %v2038_v42, 0.0  ;;  %v2042_v39 = vpop.f32.mrb[40].mxu0 }
 0x196   : > { %v6092_v31 = vpop.f32.mrb[40].mxu1  ;;  %v2043_v36 = vadd.f32 %v2042_v39, %v4795_v13  ;;  %v2044_v6 = vpop.f32.mrb[41].mxu0  ;;  %v2338_v13 = vadd.f32 %v6051_v62, %v5458_v9 }
 0x197   : > { %3125 = vmax.xlane.f32.xlu1 %v2853_v14  ;;  %v2912_v14 = vsel %vm2656_vm0, %v2318_v57, %v2784_v27  ;;  %v6090_v38 = vpop.permute.xlu1 %1388  ;;  %v2856_v2 = vsel %vm2600_vm2, %v2038_v42, %v2728_v32  ;;  %v2364_v0 = vpop.f32.mrb[41].mxu1  ;;  %v2333_v57 = vadd.f32 %v6042_v49, %v5460_v58  ;;  %v2913_v27 = vsel %vm2657_vm3, %v2323_v46, %v2785_v17 }
 0x198   : > { %3127 = vmax.xlane.f32.xlu0 %v2854_v47  ;;  %v2786_v47 = vmul.f32 0.2, %v2328_v3  ;;  %v6097_v56 = vpop.permute.xlu0 %1393  ;;  %vm2601_vm5 = vcmp.gt.f32.partialorder %v2043_v36, 0.0  ;;  %v2047_v50 = vpop.f32.mrb[42].mxu0  ;;  %v2788_v39 = vmul.f32 0.2, %v2338_v13 }
 0x199   : > { %v6099_v18 = vpop.f32.mrb[42].mxu1  ;;  %v2048_v42 = vadd.f32 %v2047_v50, %v4793_v12  ;;  %v2049_v60 = vpop.f32.mrb[43].mxu0  ;;  %v2787_v49 = vmul.f32 0.2, %v2333_v57  ;;  %vm2659_vm8 = vcmp.gt.f32.partialorder %v2333_v57, 0.0  ;;  %vm2660_vm9 = vcmp.gt.f32.partialorder %v2338_v13, 0.0 }
 0x19a   : > { %v2369_v30 = vpop.f32.mrb[43].mxu1  ;;  %v2052_v17 = vpop.f32.mrb[44].mxu0 }
 0x19b   : > { %3241 = vmax.xlane.f32.xlu1 %v2911_v53  ;;  %v2729_v53 = vmul.f32 0.2, %v2043_v36  ;;  %v6104_v46 = vpop.permute.xlu1 %1398  ;;  %vm2602_vm7 = vcmp.gt.f32.partialorder %v2048_v42, 0.0  ;;  %v6106_v32 = vpop.f32.mrb[44].mxu1  ;;  %v2053_v9 = vadd.f32 %v2052_v17, %v4819_v25  ;;  %v2348_v25 = vadd.f32 %v6069_v40, %v5490_v41 }
 0x19c   : > { %3243 = vmax.xlane.f32.xlu0 %v2912_v14  ;;  %v2914_v14 = vsel %vm2658_vm4, %v2328_v3, %v2786_v47  ;;  %v2054_v62 = vpop.f32.mrb[45].mxu0  ;;  %v2374_v6 = vpop.f32.mrb[45].mxu1  ;;  %v2343_v3 = vadd.f32 %v6060_v10, %v5492_v59  ;;  %v2915_v47 = vsel %vm2659_vm8, %v2333_v57, %v2787_v49 }
 0x19d   : > { %v2857_v58 = vsel %vm2601_vm5, %v2043_v36, %v2729_v53  ;;  %v6111_v36 = vpop.permute.xlu0 %1403  ;;  %vm2603_vm10 = vcmp.gt.f32.partialorder %v2053_v9, 0.0  ;;  %v2057_v0 = vpop.f32.mrb[46].mxu0  ;;  %v2790_v49 = vmul.f32 0.2, %v2348_v25  ;;  %vm2662_vm13 = vcmp.gt.f32.partialorder %v2348_v25, 0.0 }
 0x19e   : > { %v2058_v53 = vadd.f32 %v2057_v0, %v4817_v24  ;;  %v2059_v50 = vpop.f32.mrb[47].mxu0  ;;  %v2789_v10 = vmul.f32 0.2, %v2343_v3  ;;  %vm2661_vm12 = vcmp.gt.f32.partialorder %v2343_v3, 0.0 }
 0x19f   : > { %3129 = vmax.xlane.f32.xlu1 %v2855_v37  ;;  %v2730_v37 = vmul.f32 0.2, %v2048_v42  ;;  %v6118_v57 = vpop.permute.xlu1 %1408  ;;  %v2062_v30 = vpop.f32.mrb[48].mxu0 }
 0x1a0   : > { %3131 = vmax.xlane.f32.xlu0 %v2856_v2  ;;  %v2731_v2 = vmul.f32 0.2, %v2053_v9  ;;  %vm2604_vm11 = vcmp.gt.f32.partialorder %v2058_v53, 0.0  ;;  %v2063_v41 = vadd.f32 %v2062_v30, %v4843_v35  ;;  %v2064_v40 = vpop.f32.mrb[49].mxu0  ;;  %v2917_v17 = vsel %vm2661_vm12, %v2343_v3, %v2789_v10 }
 0x1a1   : > { %v2858_v12 = vsel %vm2602_vm7, %v2048_v42, %v2730_v37  ;;  %v2916_v42 = vsel %vm2660_vm9, %v2338_v13, %v2788_v39  ;;  %v2353_v13 = vadd.f32 %v6078_v52, %v5912_v54  ;;  %v6125_v39 = vpop.permute.xlu0 %1413  ;;  %v2067_v62 = vpop.f32.mrb[50].mxu0  ;;  %v2358_v35 = vadd.f32 %v6085_v4, %v5910_v55  ;;  %v6816_v40 = vld [vmem:[#allocation39_spill] sm:$0xff] }
 0x1a2   : > { %v2859_v59 = vsel %vm2603_vm10, %v2053_v9, %v2731_v2  ;;  %v2733_v9 = vmul.f32 0.2, %v2063_v41  ;;  %vm2605_vm14 = vcmp.gt.f32.partialorder %v2063_v41, 0.0  ;;  %v2068_v6 = vadd.f32 %v2067_v62, %v4841_v34 }
 0x1a3   : > { %3245 = vmax.xlane.f32.xlu1 %v2913_v27  ;;  %v6113_v27 = vpop.f32.mrb[46].mxu1  ;;  %v2918_v2 = vsel %vm2662_vm13, %v2348_v25, %v2790_v49  ;;  %v2791_v52 = vmul.f32 0.2, %v2353_v13  ;;  %v6132_v3 = vpop.permute.xlu1 %1418  ;;  %vm2663_vm0 = vcmp.gt.f32.partialorder %v2353_v13, 0.0  ;;  %v2363_v25 = vadd.f32 %v6092_v31, %v5948_v48 }
 0x1a4   : > { %3247 = vmax.xlane.f32.xlu0 %v2914_v14  ;;  %v2379_v60 = vpop.f32.mrb[47].mxu1  ;;  %v2732_v14 = vmul.f32 0.2, %v2058_v53  ;;  %v2861_v54 = vsel %vm2605_vm14, %v2063_v41, %v2733_v9  ;;  %vm2606_vm15 = vcmp.gt.f32.partialorder %v2068_v6, 0.0  ;;  %vm2664_vm1 = vcmp.gt.f32.partialorder %v2358_v35, 0.0 }
 0x1a5   : > { %v2792_v60 = vmul.f32 0.2, %v2358_v35  ;;  %v2919_v10 = vsel %vm2663_vm0, %v2353_v13, %v2791_v52  ;;  %v2793_v31 = vmul.f32 0.2, %v2363_v25  ;;  %vm2665_vm4 = vcmp.gt.f32.partialorder %v2363_v25, 0.0 }
 0x1a6   : > { %v2860_v24 = vsel %vm2604_vm11, %v2058_v53, %v2732_v14  ;;  %v2734_v53 = vmul.f32 0.2, %v2068_v6  ;;  %v6139_v14 = vpop.permute.xlu0 %1423 }
 0x1a7   : > { %3133 = vmax.xlane.f32.xlu1 %v2857_v58  ;;  %v6120_v58 = vpop.f32.mrb[48].mxu1  ;;  %v2920_v9 = vsel %vm2664_vm1, %v2358_v35, %v2792_v60  ;;  %v6146_v13 = vpop.permute.xlu1 %1428  ;;  %v2373_v35 = vadd.f32 %v6106_v32, %v5971_v44  ;;  %v2921_v60 = vsel %vm2665_vm4, %v2363_v25, %v2793_v31  ;;  %v6820_v31 = vld [vmem:[#allocation6_spill] sm:$0xff] }
 0x1a8   : > { %3135 = vmax.xlane.f32.xlu0 %v2858_v12  ;;  %v2384_v37 = vpop.f32.mrb[49].mxu1  ;;  %v2862_v34 = vsel %vm2606_vm15, %v2068_v6, %v2734_v53 }
 0x1a9   : > { %v6127_v12 = vpop.f32.mrb[50].mxu1  ;;  %v2795_v32 = vmul.f32 0.2, %v2373_v35  ;;  %vm2667_vm9 = vcmp.gt.f32.partialorder %v2373_v35, 0.0 }
 0x1aa   : > { %v2389_v0 = vpop.f32.mrb[51].mxu1 }
 0x1ab   : > { %3249 = vmax.xlane.f32.xlu1 %v2915_v47  ;;  %v2069_v47 = vpop.f32.mrb[51].mxu0  ;;  %v6160_v25 = vpop.permute.xlu1 %1438 }
 0x1ac   : > { %3251 = vmax.xlane.f32.xlu0 %v2916_v42  ;;  %v2072_v50 = vpop.f32.mrb[52].mxu0  ;;  %v6134_v42 = vpop.f32.mrb[52].mxu1 }
 0x1ad   : > { %v2073_v55 = vadd.f32 %v2072_v50, %v4867_v45  ;;  %v2074_v4 = vpop.f32.mrb[53].mxu0  ;;  %v2368_v45 = vadd.f32 %v6099_v18, %v6816_v40 }
 0x1ae   : > { %v2077_v49 = vpop.f32.mrb[54].mxu0 }
 0x1af   : > { %3137 = vmax.xlane.f32.xlu1 %v2859_v59  ;;  %v2394_v59 = vpop.f32.mrb[53].mxu1  ;;  %v2735_v30 = vmul.f32 0.2, %v2073_v55  ;;  %vm2607_vm2 = vcmp.gt.f32.partialorder %v2073_v55, 0.0  ;;  %v2794_v0 = vmul.f32 0.2, %v2368_v45 }
 0x1b0   : > { %3139 = vmax.xlane.f32.xlu0 %v2860_v24  ;;  %v6141_v41 = vpop.f32.mrb[54].mxu1  ;;  %v6817_v24 = vld [vmem:[#allocation2_spill] sm:$0xff]  ;;  %vm2666_vm5 = vcmp.gt.f32.partialorder %v2368_v45, 0.0 }
 0x1b1   : > { %v2078_v37 = vadd.f32 %v2077_v49, %v6817_v24  ;;  %v2399_v62 = vpop.f32.mrb[55].mxu1  ;;  %v2863_v48 = vsel %vm2607_vm2, %v2073_v55, %v2735_v30  ;;  %v6153_v55 = vpop.permute.xlu0 %1433  ;;  %v6819_v30 = vld [vmem:[#allocation3_spill] sm:$0xff]  ;;  %v2922_v24 = vsel %vm2666_vm5, %v2368_v45, %v2794_v0  ;;  %v2383_v45 = vadd.f32 %v6120_v58, %v5996_v20 }
 0x1b2   : > { %v2923_v0 = vsel %vm2667_vm9, %v2373_v35, %v2795_v32  ;;  %v6174_v35 = vpop.permute.xlu1 %1448  ;;  %v6822_v32 = vld [vmem:[#allocation8_spill] sm:$0xff] }
 0x1b3   : > { %3253 = vmax.xlane.f32.xlu1 %v2917_v17  ;;  %v2079_v17 = vpop.f32.mrb[55].mxu0  ;;  %v2736_v6 = vmul.f32 0.2, %v2078_v37  ;;  %vm2608_vm3 = vcmp.gt.f32.partialorder %v2078_v37, 0.0  ;;  %v2797_v58 = vmul.f32 0.2, %v2383_v45 }
 0x1b4   : > { %3255 = vmax.xlane.f32.xlu0 %v2918_v2  ;;  %v2082_v47 = vpop.f32.mrb[56].mxu0  ;;  %v6148_v2 = vpop.f32.mrb[56].mxu1  ;;  %vm2669_vm13 = vcmp.gt.f32.partialorder %v2383_v45, 0.0 }
 0x1b5   : > { %v2084_v52 = vpop.f32.mrb[57].mxu0  ;;  %v2864_v53 = vsel %vm2608_vm3, %v2078_v37, %v2736_v6  ;;  %v2404_v50 = vpop.f32.mrb[57].mxu1 }
 0x1b6   : > { %v6155_v59 = vpop.f32.mrb[58].mxu1  ;;  %v2388_v50 = vadd.f32 %v6127_v12, %v5994_v51 }
 0x1b7   : > { %3141 = vmax.xlane.f32.xlu1 %v2861_v54  ;;  %v6818_v54 = vld [vmem:[#allocation4_spill] sm:$0xff]  ;;  %v2409_v37 = vpop.f32.mrb[59].mxu1 }
 0x1b8   : > { %3143 = vmax.xlane.f32.xlu0 %v2862_v34  ;;  %v2083_v18 = vadd.f32 %v2082_v47, %v6818_v54  ;;  %v2087_v34 = vpop.f32.mrb[58].mxu0  ;;  %v6162_v62 = vpop.f32.mrb[60].mxu1  ;;  %vm2670_vm14 = vcmp.gt.f32.partialorder %v2388_v50, 0.0 }
 0x1b9   : > { %v2088_v49 = vadd.f32 %v2087_v34, %v6819_v30  ;;  %v2089_v40 = vpop.f32.mrb[59].mxu0  ;;  %v2414_v47 = vpop.f32.mrb[61].mxu1 }
 0x1ba   : > { %v2737_v4 = vmul.f32 0.2, %v2083_v18  ;;  %vm2609_vm7 = vcmp.gt.f32.partialorder %v2083_v18, 0.0  ;;  %v6167_v54 = vpop.permute.xlu0 %1443  ;;  %v2398_v47 = vadd.f32 %v6141_v41, %v6011_v5 }
 0x1bb   : > { %3257 = vmax.xlane.f32.xlu1 %v2919_v10  ;;  %v2378_v10 = vadd.f32 %v6113_v27, %v5969_v26  ;;  %v2738_v17 = vmul.f32 0.2, %v2088_v49  ;;  %vm2610_vm8 = vcmp.gt.f32.partialorder %v2088_v49, 0.0 }
 0x1bc   : > { %3259 = vmax.xlane.f32.xlu0 %v2920_v9  ;;  %v2865_v44 = vsel %vm2609_vm7, %v2083_v18, %v2737_v4  ;;  %v2092_v9 = vpop.f32.mrb[60].mxu0  ;;  %vm2672_vm2 = vcmp.gt.f32.partialorder %v2398_v47, 0.0 }
 0x1bd   : > { %v2093_v26 = vadd.f32 %v2092_v9, %v6820_v31  ;;  %v2094_v27 = vpop.f32.mrb[61].mxu0  ;;  %v2866_v6 = vsel %vm2610_vm8, %v2088_v49, %v2738_v17  ;;  %vm2668_vm10 = vcmp.gt.f32.partialorder %v2378_v10, 0.0 }
 0x1be   : > { %v2097_v52 = vpop.f32.mrb[62].mxu0  ;;  %v6181_v31 = vpop.permute.xlu0 %1453 }
 0x1bf   : > { %3145 = vmax.xlane.f32.xlu1 %v2863_v48  ;;  %v2796_v48 = vmul.f32 0.2, %v2378_v10  ;;  %v2739_v18 = vmul.f32 0.2, %v2093_v26  ;;  %vm2611_vm11 = vcmp.gt.f32.partialorder %v2093_v26, 0.0  ;;  %v2099_v34 = vpop.f32.mrb[63].mxu0 }
 0x1c0   : > { %3147 = vmax.xlane.f32.xlu0 %v2864_v53  ;;  %v6169_v53 = vpop.f32.mrb[62].mxu1 }
 0x1c1   : > { %v2924_v30 = vsel %vm2668_vm10, %v2378_v10, %v2796_v48  ;;  %v2419_v49 = vpop.f32.mrb[63].mxu1  ;;  %v2867_v20 = vsel %vm2611_vm11, %v2093_v26, %v2739_v18  ;;  %v2393_v10 = vadd.f32 %v6134_v42, %v6013_v7  ;;  %v2925_v48 = vsel %vm2669_vm13, %v2383_v45, %v2797_v58  ;;  %v6188_v45 = vpop.permute.xlu1 %1458  ;;  %v6824_v58 = vld [vmem:[#allocation10_spill] sm:$0xff] }
 0x1c2   : > { %v6176_v37 = vpop.f32.mrb[64].mxu1 }
 0x1c3   : > { %3261 = vmax.xlane.f32.xlu1 %v2921_v60  ;;  %v6821_v60 = vld [vmem:[#allocation5_spill] sm:$0xff]  ;;  %v2424_v9 = vpop.f32.mrb[65].mxu1  ;;  %v2799_v42 = vmul.f32 0.2, %v2393_v10  ;;  %vm2671_vm1 = vcmp.gt.f32.partialorder %v2393_v10, 0.0 }
 0x1c4   : > { %3263 = vmax.xlane.f32.xlu0 %v2922_v24  ;;  %v2098_v4 = vadd.f32 %v2097_v52, %v6821_v60  ;;  %v2102_v24 = vpop.f32.mrb[64].mxu0 }
 0x1c5   : > { %v2103_v51 = vadd.f32 %v2102_v24, %v6822_v32  ;;  %v2104_v12 = vpop.f32.mrb[65].mxu0  ;;  %v2927_v32 = vsel %vm2671_vm1, %v2393_v10, %v2799_v42  ;;  %v6203_v10 = vpop.permute.xlu1 %1468 }
 0x1c6   : > { %v2740_v40 = vmul.f32 0.2, %v2098_v4  ;;  %vm2612_vm12 = vcmp.gt.f32.partialorder %v2098_v4, 0.0  ;;  %v2107_v27 = vpop.f32.mrb[66].mxu0 }
 0x1c7   : > { %3149 = vmax.xlane.f32.xlu1 %v2865_v44  ;;  %v2798_v44 = vmul.f32 0.2, %v2388_v50  ;;  %v2741_v26 = vmul.f32 0.2, %v2103_v51  ;;  %vm2613_vm15 = vcmp.gt.f32.partialorder %v2103_v51, 0.0  ;;  %v2109_v52 = vpop.f32.mrb[67].mxu0 }
 0x1c8   : > { %3151 = vmax.xlane.f32.xlu0 %v2866_v6  ;;  %v2868_v17 = vsel %vm2612_vm12, %v2098_v4, %v2740_v40  ;;  %v6183_v6 = vpop.f32.mrb[66].mxu1 }
 0x1c9   : > { %v2926_v60 = vsel %vm2670_vm14, %v2388_v50, %v2798_v44  ;;  %v2429_v4 = vpop.f32.mrb[67].mxu1  ;;  %v2869_v7 = vsel %vm2613_vm15, %v2103_v51, %v2741_v26  ;;  %v2403_v44 = vadd.f32 %v6148_v2, %v6022_v61  ;;  %v6196_v51 = vpop.permute.xlu0 %1463 }
 0x1ca   : > { %v2432_v49 = vpop.f32.mrb[68].mxu1 }
 0x1cb   : > { %3265 = vmax.xlane.f32.xlu1 %v2923_v0  ;;  %v6823_v0 = vld [vmem:[#allocation7_spill] sm:$0xff]  ;;  %v6192_v5 = vadd.f32 %v2432_v49, %v6049_v22  ;;  %v2434_v24 = vpop.f32.mrb[69].mxu1  ;;  %v2801_v2 = vmul.f32 0.2, %v2403_v44  ;;  %vm2673_vm5 = vcmp.gt.f32.partialorder %v2403_v44, 0.0 }
 0x1cc   : > { %3267 = vmax.xlane.f32.xlu0 %v2924_v30  ;;  %v2108_v18 = vadd.f32 %v2107_v27, %v6823_v0  ;;  %v2112_v30 = vpop.f32.mrb[68].mxu0  ;;  %v6200_v22 = vpop.f32.mrb[70].mxu1  ;;  %v2418_v24 = vadd.f32 %v6169_v53, %v6029_v29  ;;  %v6828_v53 = vld [vmem:[#allocation14_spill] sm:$0xff] }
 0x1cd   : > { %v2113_v40 = vadd.f32 %v2112_v30, %v6824_v58  ;;  %v2114_v41 = vpop.f32.mrb[69].mxu0  ;;  %v2929_v49 = vsel %vm2673_vm5, %v2403_v44, %v2801_v2 }
 0x1ce   : > { %v2742_v34 = vmul.f32 0.2, %v2108_v18  ;;  %vm2614_vm0 = vcmp.gt.f32.partialorder %v2108_v18, 0.0  ;;  %v2117_v9 = vpop.f32.mrb[70].mxu0  ;;  %v2804_v29 = vmul.f32 0.2, %v2418_v24 }
 0x1cf   : > { %3153 = vmax.xlane.f32.xlu1 %v2867_v20  ;;  %v2800_v20 = vmul.f32 0.2, %v2398_v47  ;;  %v2743_v12 = vmul.f32 0.2, %v2113_v40  ;;  %vm2615_vm3 = vcmp.gt.f32.partialorder %v2113_v40, 0.0  ;;  %v2119_v27 = vpop.f32.mrb[71].mxu0 }
 0x1d0   : > { %3155 = vmax.xlane.f32.xlu0 %v2868_v17  ;;  %v2870_v50 = vsel %vm2614_vm0, %v2108_v18, %v2742_v34  ;;  %v2408_v17 = vadd.f32 %v6155_v59, %v6020_v28  ;;  %v2439_v18 = vpop.f32.mrb[71].mxu1  ;;  %v2122_v4 = vpop.f32.mrb[72].mxu0  ;;  %v6826_v59 = vld [vmem:[#allocation12_spill] sm:$0xff]  ;;  %vm2676_vm11 = vcmp.gt.f32.partialorder %v2418_v24, 0.0 }
 0x1d1   : > { %v2928_v0 = vsel %vm2672_vm2, %v2398_v47, %v2800_v20  ;;  %v2871_v61 = vsel %vm2615_vm3, %v2113_v40, %v2743_v12  ;;  %v6205_v28 = vpop.f32.mrb[72].mxu1  ;;  %v2124_v42 = vpop.f32.mrb[73].mxu0  ;;  %v2413_v47 = vadd.f32 %v6162_v62, %v6031_v33  ;;  %vm2679_vm2 = vcmp.gt.f32.partialorder %v6192_v5, 0.0 }
 0x1d2   : > { %v2444_v30 = vpop.f32.mrb[73].mxu1  ;;  %vm2674_vm7 = vcmp.gt.f32.partialorder %v2408_v17, 0.0  ;;  %v6210_v20 = vpop.permute.xlu0 %1473 }
 0x1d3   : > { %3269 = vmax.xlane.f32.xlu1 %v2925_v48  ;;  %v6825_v48 = vld [vmem:[#allocation9_spill] sm:$0xff]  ;;  %v2127_v40 = vpop.f32.mrb[74].mxu0  ;;  %v2447_v41 = vpop.f32.mrb[74].mxu1  ;;  %v2803_v44 = vmul.f32 0.2, %v2413_v47  ;;  %vm2675_vm10 = vcmp.gt.f32.partialorder %v2413_v47, 0.0 }
 0x1d4   : > { %3271 = vmax.xlane.f32.xlu0 %v2926_v60  ;;  %v2118_v26 = vadd.f32 %v2117_v9, %v6825_v48  ;;  %v2802_v60 = vmul.f32 0.2, %v2408_v17  ;;  %v6216_v9 = vadd.f32 %v2447_v41, %v6056_v21  ;;  %v2129_v48 = vpop.f32.mrb[75].mxu0  ;;  %v2449_v33 = vpop.f32.mrb[75].mxu1  ;;  %v6829_v30 = vld [vmem:[#allocation13_spill] sm:$0xff]  ;;  %v2965_v41 = vld [vmem:[%s5485_s8] sm:$0xff] }
 0x1d5   : > { %v6830_v33 = vld [vmem:[#allocation16_spill] sm:$0xff] }
 0x1d6   : > { %v2744_v52 = vmul.f32 0.2, %v2118_v26  ;;  %vm2616_vm4 = vcmp.gt.f32.partialorder %v2118_v26, 0.0 }
 0x1d7   : > { %3157 = vmax.xlane.f32.xlu1 %v2869_v7  ;;  %v2123_v7 = vadd.f32 %v2122_v4, %v6826_v59  ;;  %v6225_v4 = vpop.permute.xlu0 %1483 }
 0x1d8   : > { %3159 = vmax.xlane.f32.xlu0 %v2870_v50  ;;  %v2872_v34 = vsel %vm2616_vm4, %v2118_v26, %v2744_v52  ;;  %v2930_v50 = vsel %vm2674_vm7, %v2408_v17, %v2802_v60  ;;  %v6218_v26 = vpop.permute.xlu1 %1478  ;;  %v2132_v17 = vpop.f32.mrb[76].mxu0  ;;  %v2423_v52 = vadd.f32 %v6176_v37, %v6040_v19  ;;  %v2931_v60 = vsel %vm2675_vm10, %v2413_v47, %v2803_v44 }
 0x1d9   : > { %v2745_v58 = vmul.f32 0.2, %v2123_v7  ;;  %vm2617_vm8 = vcmp.gt.f32.partialorder %v2123_v7, 0.0  ;;  %v2133_v18 = vadd.f32 %v2132_v17, %v6828_v53 }
 0x1da   : > { %v2805_v47 = vmul.f32 0.2, %v2423_v52  ;;  %vm2677_vm14 = vcmp.gt.f32.partialorder %v2423_v52, 0.0 }
 0x1db   : > { %3273 = vmax.xlane.f32.xlu1 %v2927_v32  ;;  %v6827_v32 = vld [vmem:[#allocation11_spill] sm:$0xff]  ;;  %v2873_v62 = vsel %vm2617_vm8, %v2123_v7, %v2745_v58  ;;  %v2747_v59 = vmul.f32 0.2, %v2133_v18  ;;  %vm2619_vm12 = vcmp.gt.f32.partialorder %v2133_v18, 0.0  ;;  %vm2682_vm8 = vcmp.gt.f32.partialorder %v6216_v9, 0.0 }
 0x1dc   : > { %3275 = vmax.xlane.f32.xlu0 %v2928_v0  ;;  %v2128_v12 = vadd.f32 %v2127_v40, %v6827_v32  ;;  %v6220_v0 = vpop.f32.mrb[76].mxu1  ;;  %v2932_v40 = vsel %vm2676_vm11, %v2418_v24, %v2804_v29  ;;  %v2967_v29 = vld [vmem:[%s5485_s8 + $0x10] sm:$0xff]  ;;  %v2933_v53 = vsel %vm2677_vm14, %v2423_v52, %v2805_v47 }
 0x1dd   : > { %v2454_v2 = vpop.f32.mrb[77].mxu1  ;;  %v2875_v37 = vsel %vm2619_vm12, %v2133_v18, %v2747_v59 }
 0x1de   : > { %v2746_v27 = vmul.f32 0.2, %v2128_v12  ;;  %vm2618_vm9 = vcmp.gt.f32.partialorder %v2128_v12, 0.0  ;;  %v6227_v42 = vpop.f32.mrb[78].mxu1 }
 0x1df   : > { %3161 = vmax.xlane.f32.xlu1 %v2871_v61  ;;  %v2134_v61 = vpop.f32.mrb[77].mxu0  ;;  %v2459_v19 = vpop.f32.mrb[79].mxu1 }
 0x1e0   : > { %3163 = vmax.xlane.f32.xlu0 %v2872_v34  ;;  %v2874_v21 = vsel %vm2618_vm9, %v2128_v12, %v2746_v27  ;;  %v2137_v7 = vpop.f32.mrb[78].mxu0  ;;  %v2428_v34 = vadd.f32 %v6183_v6, %v6038_v43  ;;  %v3094_v12 = vpop.xlane.xlu0 %3093 }
 0x1e1   : > { %v2139_v58 = vpop.f32.mrb[79].mxu0  ;;  %v3349_v48 = vmax.f32 %v2965_v41, %v3094_v12  ;;  %v6235_v6 = vpop.f32.mrb[80].mxu1  ;;  %v2807_v41 = vmul.f32 0.2, %v6192_v5 }
 0x1e2   : > { %v2142_v43 = vpop.f32.mrb[80].mxu0  ;;  %v2806_v24 = vmul.f32 0.2, %v2428_v34  ;;  %v2464_v17 = vpop.f32.mrb[81].mxu1  ;;  %vm2678_vm15 = vcmp.gt.f32.partialorder %v2428_v34, 0.0 }
 0x1e3   : > { %3277 = vmax.xlane.f32.xlu1 %v2929_v49  ;;  %v2138_v49 = vadd.f32 %v2137_v7, %v6829_v30  ;;  %v2144_v44 = vpop.f32.mrb[81].mxu0  ;;  %3478 = vst.msk [vmem:[%s5485_s8] sm:$0xff] %vm314_vm6, %v3349_v48  ;;  %v6242_v59 = vpop.f32.mrb[82].mxu1  ;;  %v2438_v7 = vadd.f32 %v6200_v22, %v6047_v8  ;;  %v6831_v30 = vld [vmem:[#allocation15_spill] sm:$0xff]  ;;  %v2969_v22 = vld [vmem:[%s5485_s8 + $0x20] sm:$0xff] }
 0x1e4   : > { %3279 = vmax.xlane.f32.xlu0 %v2930_v50  ;;  %v6233_v50 = vpop.permute.xlu1 %1488  ;;  %v3098_v61 = vpop.xlane.xlu0 %3097 }
 0x1e5   : > { %v2748_v32 = vmul.f32 0.2, %v2138_v49  ;;  %vm2620_vm13 = vcmp.gt.f32.partialorder %v2138_v49, 0.0  ;;  %v3351_v2 = vmax.f32 %v2967_v29, %v3098_v61  ;;  %v2970_v29 = vld [vmem:[%s5485_s8 + $0x28] sm:$0xff]  ;;  %vm2680_vm3 = vcmp.gt.f32.partialorder %v2438_v7, 0.0 }
 0x1e7   : > { %3165 = vmax.xlane.f32.xlu1 %v2873_v62  ;;  %v2143_v62 = vadd.f32 %v2142_v43, %v6830_v33  ;;  %v2876_v27 = vsel %vm2620_vm13, %v2138_v49, %v2748_v32  ;;  %3480 = vst.msk [vmem:[%s5485_s8 + $0x10] sm:$0xff] %vm314_vm6, %v3351_v2  ;;  %v2469_v32 = vpop.f32.mrb[83].mxu1  ;;  %v6832_v33 = vld [vmem:[#allocation18_spill] sm:$0xff] }
 0x1e8   : > { %3167 = vmax.xlane.f32.xlu0 %v2874_v21  ;;  %v2966_v21 = vld [vmem:[%s5485_s8 + $0x8] sm:$0xff]  ;;  %v3096_v58 = vpop.xlane.xlu1 %3095  ;;  %v3100_v8 = vpop.xlane.xlu0 %3099 }
 0x1e9   : > { %v2749_v18 = vmul.f32 0.2, %v2143_v62  ;;  %vm2621_vm0 = vcmp.gt.f32.partialorder %v2143_v62, 0.0  ;;  %v3350_v47 = vmax.f32 %v2966_v21, %v3096_v58  ;;  %v6255_v43 = vpop.f32.mrb[84].mxu1  ;;  %v2935_v21 = vsel %vm2679_vm2, %v6192_v5, %v2807_v41  ;;  %v6833_v58 = vld [vmem:[#allocation17_spill] sm:$0xff] }
 0x1ea   : > { %v2474_v61 = vpop.f32.mrb[85].mxu1  ;;  %v2972_v41 = vld [vmem:[%s5485_s8 + $0x38] sm:$0xff] }
 0x1eb   : > { %3281 = vmax.xlane.f32.xlu1 %v2931_v60  ;;  %v2147_v60 = vpop.f32.mrb[82].mxu0  ;;  %v2877_v19 = vsel %vm2621_vm0, %v2143_v62, %v2749_v18  ;;  %3479 = vst.msk [vmem:[%s5485_s8 + $0x8] sm:$0xff] %vm314_vm6, %v3350_v47  ;;  %v2453_v61 = vadd.f32 %v6220_v0, %v6067_v16 }
 0x1ec   : > { %3283 = vmax.xlane.f32.xlu0 %v2932_v40  ;;  %v2148_v49 = vadd.f32 %v2147_v60, %v6831_v30  ;;  %v2149_v52 = vpop.f32.mrb[83].mxu0  ;;  %v2934_v40 = vsel %vm2678_vm15, %v2428_v34, %v2806_v24  ;;  %v2808_v24 = vmul.f32 0.2, %v2438_v7  ;;  %v3102_v44 = vpop.xlane.xlu1 %3101  ;;  %v2971_v30 = vld [vmem:[%s5485_s8 + $0x30] sm:$0xff] }
 0x1ed   : > { %v2152_v48 = vpop.f32.mrb[84].mxu0  ;;  %v3353_v18 = vmax.f32 %v2969_v22, %v3102_v44  ;;  %v3104_v60 = vpop.xlane.xlu0 %3103  ;;  %vm2683_vm11 = vcmp.gt.f32.partialorder %v2453_v61, 0.0 }
 0x1ee   : > { %v2750_v12 = vmul.f32 0.2, %v2148_v49  ;;  %vm2622_vm1 = vcmp.gt.f32.partialorder %v2148_v49, 0.0  ;;  %v2153_v62 = vadd.f32 %v2152_v48, %v6832_v33  ;;  %v2810_v33 = vmul.f32 0.2, %v6216_v9 }
 0x1ef   : > { %3169 = vmax.xlane.f32.xlu1 %v2875_v37  ;;  %v2968_v37 = vld [vmem:[%s5485_s8 + $0x18] sm:$0xff]  ;;  %3482 = vst.msk [vmem:[%s5485_s8 + $0x20] sm:$0xff] %vm314_vm6, %v3353_v18  ;;  %v3030_v18 = vld [vmem:[%s5485_s8 + $0x208] sm:$0xff] }
 0x1f0   : > { %3171 = vmax.xlane.f32.xlu0 %v2876_v27  ;;  %v3352_v34 = vmax.f32 %v2968_v37, %v3100_v8  ;;  %v2154_v27 = vpop.f32.mrb[85].mxu0  ;;  %v2878_v17 = vsel %vm2622_vm1, %v2148_v49, %v2750_v12  ;;  %v2751_v2 = vmul.f32 0.2, %v2153_v62  ;;  %vm2623_vm4 = vcmp.gt.f32.partialorder %v2153_v62, 0.0  ;;  %v6269_v49 = vpop.f32.mrb[86].mxu1 }
 0x1f1   : > { %v2479_v12 = vpop.f32.mrb[87].mxu1  ;;  %v3108_v22 = vpop.xlane.xlu0 %3107 }
 0x1f2   : > { %3481 = vst.msk [vmem:[%s5485_s8 + $0x18] sm:$0xff] %vm314_vm6, %v3352_v34  ;;  %v2879_v37 = vsel %vm2623_vm4, %v2153_v62, %v2751_v2  ;;  %v3029_v34 = vld [vmem:[%s5485_s8 + $0x200] sm:$0xff]  ;;  %v3356_v48 = vmax.f32 %v2972_v41, %v3108_v22  ;;  %v6834_v62 = vld [vmem:[#allocation20_spill] sm:$0xff] }
 0x1f3   : > { %3285 = vmax.xlane.f32.xlu1 %v2933_v53  ;;  %v2443_v53 = vadd.f32 %v6205_v28, %v6058_v23  ;;  %v3354_v23 = vmax.f32 %v2970_v29, %v3104_v60  ;;  %v2157_v28 = vpop.f32.mrb[86].mxu0 }
 0x1f4   : > { %3287 = vmax.xlane.f32.xlu0 %v2934_v40  ;;  %v2158_v52 = vadd.f32 %v2157_v28, %v6833_v58  ;;  %v2159_v5 = vpop.f32.mrb[87].mxu0  ;;  %3485 = vst.msk [vmem:[%s5485_s8 + $0x38] sm:$0xff] %vm314_vm6, %v3356_v48  ;;  %v2973_v28 = vld [vmem:[%s5485_s8 + $0x40] sm:$0xff] }
 0x1f5   : > { %v2809_v47 = vmul.f32 0.2, %v2443_v53  ;;  %3483 = vst.msk [vmem:[%s5485_s8 + $0x28] sm:$0xff] %vm314_vm6, %v3354_v23  ;;  %vm2681_vm7 = vcmp.gt.f32.partialorder %v2443_v53, 0.0 }
 0x1f6   : > { %v2752_v8 = vmul.f32 0.2, %v2158_v52  ;;  %vm2624_vm5 = vcmp.gt.f32.partialorder %v2158_v52, 0.0 }
 0x1f7   : > { %3173 = vmax.xlane.f32.xlu1 %v2877_v19  ;;  %v2936_v19 = vsel %vm2680_vm3, %v2438_v7, %v2808_v24  ;;  %v2162_v7 = vpop.f32.mrb[88].mxu0  ;;  %v6278_v24 = vpop.f32.mrb[88].mxu1  ;;  %v2937_v60 = vsel %vm2681_vm7, %v2443_v53, %v2809_v47  ;;  %v6835_v53 = vld [vmem:[#allocation19_spill] sm:$0xff] }
 0x1f8   : > { %3175 = vmax.xlane.f32.xlu0 %v2878_v17  ;;  %v2163_v44 = vadd.f32 %v2162_v7, %v6834_v62  ;;  %v2164_v17 = vpop.f32.mrb[89].mxu0  ;;  %v2880_v29 = vsel %vm2624_vm5, %v2158_v52, %v2752_v8  ;;  %v2484_v2 = vpop.f32.mrb[89].mxu1  ;;  %v2458_v52 = vadd.f32 %v6227_v42, %v6065_v11  ;;  %v2974_v47 = vld [vmem:[%s5485_s8 + $0x48] sm:$0xff]  ;;  %v3031_v42 = vld [vmem:[%s5485_s8 + $0x210] sm:$0xff] }
 0x1f9   : > { %v2167_v16 = vpop.f32.mrb[90].mxu0  ;;  %v6292_v0 = vpop.f32.mrb[90].mxu1 }
 0x1fa   : > { %vm2625_vm9 = vcmp.gt.f32.partialorder %v2163_v44, 0.0  ;;  %v2489_v8 = vpop.f32.mrb[91].mxu1  ;;  %v2812_v7 = vmul.f32 0.2, %v2458_v52  ;;  %vm2684_vm12 = vcmp.gt.f32.partialorder %v2458_v52, 0.0 }
 0x1fb   : > { %3289 = vmax.xlane.f32.xlu1 %v2935_v21  ;;  %v6304_v48 = vpop.f32.mrb[92].mxu1 }
 0x1fc   : > { %v3106_v40 = vpop.xlane.xlu1 %3105  ;;  %3291 = vmax.xlane.f32.xlu0 %v2936_v19  ;;  %v2169_v19 = vpop.f32.mrb[91].mxu0 }
 0x1fd   : > { %v3355_v32 = vmax.f32 %v2971_v30, %v3106_v40  ;;  %v2753_v30 = vmul.f32 0.2, %v2163_v44  ;;  %v2168_v40 = vadd.f32 %v2167_v16, %v6835_v53  ;;  %v2494_v2 = vpop.f32.mrb[93].mxu1  ;;  %v6837_v53 = vld [vmem:[#allocation21_spill] sm:$0xff]  ;;  %v2940_v19 = vsel %vm2684_vm12, %v2458_v52, %v2812_v7 }
 0x1fe   : > { %v3224_v23 = vpop.xlane.xlu0 %3223 }
 0x1ff   : > { %3177 = vmax.xlane.f32.xlu1 %v2879_v37  ;;  %3484 = vst.msk [vmem:[%s5485_s8 + $0x30] sm:$0xff] %vm314_vm6, %v3355_v32  ;;  %v3414_v58 = vmax.f32 %v3030_v18, %v3224_v23  ;;  %v2938_v37 = vsel %vm2682_vm8, %v6216_v9, %v2810_v33  ;;  %v2881_v41 = vsel %vm2625_vm9, %v2163_v44, %v2753_v30  ;;  %v2811_v32 = vmul.f32 0.2, %v2453_v61  ;;  %v2172_v9 = vpop.f32.mrb[92].mxu0  ;;  %v6836_v33 = vld [vmem:[#allocation22_spill] sm:$0xff] }
 0x200   : > { %v3222_v27 = vpop.xlane.xlu1 %3221  ;;  %3179 = vmax.xlane.f32.xlu0 %v2880_v29  ;;  %v2754_v22 = vmul.f32 0.2, %v2168_v40  ;;  %vm2626_vm10 = vcmp.gt.f32.partialorder %v2168_v40, 0.0  ;;  %v2173_v62 = vadd.f32 %v2172_v9, %v6836_v33  ;;  %v3032_v29 = vld [vmem:[%s5485_s8 + $0x218] sm:$0xff]  ;;  %v2463_v18 = vadd.f32 %v6235_v6, %v6074_v15  ;;  %v6316_v15 = vpop.f32.mrb[94].mxu1 }
 0x201   : > { %v3413_v21 = vmax.f32 %v3029_v34, %v3222_v27  ;;  %3543 = vst.msk [vmem:[%s5485_s8 + $0x208] sm:$0xff] %vm314_vm6, %v3414_v58  ;;  %v2174_v27 = vpop.f32.mrb[93].mxu0  ;;  %v2468_v6 = vadd.f32 %v6242_v59, %v6076_v63  ;;  %v3033_v63 = vld [vmem:[%s5485_s8 + $0x220] sm:$0xff] }
 0x202   : > { %v2882_v17 = vsel %vm2626_vm10, %v2168_v40, %v2754_v22  ;;  %v2755_v30 = vmul.f32 0.2, %v2173_v62  ;;  %vm2627_vm13 = vcmp.gt.f32.partialorder %v2173_v62, 0.0  ;;  %v2177_v16 = vpop.f32.mrb[94].mxu0  ;;  %vm2685_vm15 = vcmp.gt.f32.partialorder %v2463_v18, 0.0 }
 0x203   : > { %3293 = vmax.xlane.f32.xlu1 %v2937_v60  ;;  %3542 = vst.msk [vmem:[%s5485_s8 + $0x200] sm:$0xff] %vm314_vm6, %v3413_v21  ;;  %v2939_v60 = vsel %vm2683_vm11, %v2453_v61, %v2811_v32  ;;  %v2178_v61 = vadd.f32 %v2177_v16, %v6837_v53  ;;  %v2473_v27 = vadd.f32 %v6255_v43, %v6083_v1  ;;  %vm2686_vm0 = vcmp.gt.f32.partialorder %v2468_v6, 0.0 }
 0x204   : > { %v3110_v5 = vpop.xlane.xlu1 %3109  ;;  %3295 = vmax.xlane.f32.xlu0 %v2938_v37  ;;  %v2883_v37 = vsel %vm2627_vm13, %v2173_v62, %v2755_v30  ;;  %v2977_v30 = vld [vmem:[%s5485_s8 + $0x60] sm:$0xff]  ;;  %v2478_v43 = vadd.f32 %v6269_v49, %v6090_v38  ;;  %v3035_v38 = vld [vmem:[%s5485_s8 + $0x230] sm:$0xff] }
 0x205   : > { %v3357_v12 = vmax.f32 %v2973_v28, %v3110_v5  ;;  %v3112_v11 = vpop.xlane.xlu0 %3111  ;;  %v2975_v28 = vld [vmem:[%s5485_s8 + $0x50] sm:$0xff]  ;;  %v2179_v5 = vpop.f32.mrb[95].mxu0  ;;  %v2756_v8 = vmul.f32 0.2, %v2178_v61  ;;  %vm2628_vm14 = vcmp.gt.f32.partialorder %v2178_v61, 0.0  ;;  %vm2687_vm3 = vcmp.gt.f32.partialorder %v2473_v27, 0.0 }
 0x206   : > { %v3358_v34 = vmax.f32 %v2974_v47, %v3112_v11  ;;  %v2813_v47 = vmul.f32 0.2, %v2463_v18  ;;  %v2182_v52 = vpop.f32.mrb[96].mxu0  ;;  %v2978_v5 = vld [vmem:[%s5485_s8 + $0x68] sm:$0xff]  ;;  %vm2688_vm4 = vcmp.gt.f32.partialorder %v2478_v43, 0.0 }
 0x207   : > { %3181 = vmax.xlane.f32.xlu1 %v2881_v41  ;;  %3486 = vst.msk [vmem:[%s5485_s8 + $0x40] sm:$0xff] %vm314_vm6, %v3357_v12  ;;  %v2976_v41 = vld [vmem:[%s5485_s8 + $0x58] sm:$0xff]  ;;  %v2499_v12 = vpop.f32.mrb[95].mxu1  ;;  %v2184_v33 = vpop.f32.mrb[97].mxu0  ;;  %v2884_v62 = vsel %vm2628_vm14, %v2178_v61, %v2756_v8  ;;  %v2816_v8 = vmul.f32 0.2, %v2478_v43 }
 0x208   : > { %v3226_v44 = vpop.xlane.xlu1 %3225  ;;  %3487 = vst.msk [vmem:[%s5485_s8 + $0x48] sm:$0xff] %vm314_vm6, %v3358_v34  ;;  %3183 = vmax.xlane.f32.xlu0 %v2882_v17  ;;  %v6327_v11 = vpop.f32.mrb[96].mxu1  ;;  %v6838_v34 = vld [vmem:[#allocation24_spill] sm:$0xff] }
 0x209   : > { %v3415_v21 = vmax.f32 %v3031_v42, %v3226_v44  ;;  %v3228_v23 = vpop.xlane.xlu0 %3227  ;;  %v2814_v42 = vmul.f32 0.2, %v2468_v6  ;;  %v2183_v9 = vadd.f32 %v2182_v52, %v6838_v34  ;;  %v3034_v44 = vld [vmem:[%s5485_s8 + $0x228] sm:$0xff]  ;;  %v3036_v34 = vld [vmem:[%s5485_s8 + $0x238] sm:$0xff] }
 0x20a   : > { %v3416_v58 = vmax.f32 %v3032_v29, %v3228_v23  ;;  %v2504_v29 = vpop.f32.mrb[97].mxu1 }
 0x20b   : > { %3297 = vmax.xlane.f32.xlu1 %v2939_v60  ;;  %3544 = vst.msk [vmem:[%s5485_s8 + $0x210] sm:$0xff] %vm314_vm6, %v3415_v21  ;;  %v2941_v21 = vsel %vm2685_vm15, %v2463_v18, %v2813_v47  ;;  %v2757_v2 = vmul.f32 0.2, %v2183_v9  ;;  %vm2629_vm1 = vcmp.gt.f32.partialorder %v2183_v9, 0.0  ;;  %v6339_v1 = vpop.f32.mrb[98].mxu1  ;;  %v2942_v61 = vsel %vm2686_vm0, %v2468_v6, %v2814_v42  ;;  %v2979_v29 = vld [vmem:[%s5485_s8 + $0x70] sm:$0xff] }
 0x20c   : > { %v3114_v40 = vpop.xlane.xlu1 %3113  ;;  %3545 = vst.msk [vmem:[%s5485_s8 + $0x218] sm:$0xff] %vm314_vm6, %v3416_v58  ;;  %3299 = vmax.xlane.f32.xlu0 %v2940_v19  ;;  %v6839_v58 = vld [vmem:[#allocation23_spill] sm:$0xff]  ;;  %v2815_v19 = vmul.f32 0.2, %v2473_v27 }
 0x20d   : > { %v3359_v32 = vmax.f32 %v2975_v28, %v3114_v40  ;;  %v3116_v22 = vpop.xlane.xlu0 %3115  ;;  %v2187_v28 = vpop.f32.mrb[98].mxu0  ;;  %v2885_v40 = vsel %vm2629_vm1, %v2183_v9, %v2757_v2  ;;  %v2483_v9 = vadd.f32 %v6278_v24, %v6097_v56  ;;  %v2488_v24 = vadd.f32 %v6292_v0, %v6104_v46  ;;  %v3037_v46 = vld [vmem:[%s5485_s8 + $0x240] sm:$0xff] }
 0x20e   : > { %v3360_v59 = vmax.f32 %v2976_v41, %v3116_v22  ;;  %v2188_v18 = vadd.f32 %v2187_v28, %v6839_v58  ;;  %v2189_v53 = vpop.f32.mrb[99].mxu0  ;;  %v2509_v41 = vpop.f32.mrb[99].mxu1  ;;  %v6840_v22 = vld [vmem:[#allocation26_spill] sm:$0xff]  ;;  %v2944_v28 = vsel %vm2688_vm4, %v2478_v43, %v2816_v8  ;;  %v2493_v8 = vadd.f32 %v6304_v48, %v6111_v36 }
 0x20f   : > { %3185 = vmax.xlane.f32.xlu1 %v2883_v37  ;;  %3488 = vst.msk [vmem:[%s5485_s8 + $0x50] sm:$0xff] %vm314_vm6, %v3359_v32  ;;  %v2192_v6 = vpop.f32.mrb[100].mxu0  ;;  %v6350_v12 = vpop.f32.mrb[100].mxu1  ;;  %vm2689_vm8 = vcmp.gt.f32.partialorder %v2483_v9, 0.0  ;;  %v6842_v41 = vld [vmem:[#allocation28_spill] sm:$0xff]  ;;  %vm2690_vm9 = vcmp.gt.f32.partialorder %v2488_v24, 0.0  ;;  %v2498_v48 = vadd.f32 %v6316_v15, %v6118_v57 }
 0x210   : > { %v3230_v7 = vpop.xlane.xlu1 %3229  ;;  %3489 = vst.msk [vmem:[%s5485_s8 + $0x58] sm:$0xff] %vm314_vm6, %v3360_v59  ;;  %3187 = vmax.xlane.f32.xlu0 %v2884_v62  ;;  %v2758_v47 = vmul.f32 0.2, %v2188_v18  ;;  %vm2630_vm2 = vcmp.gt.f32.partialorder %v2188_v18, 0.0  ;;  %v2194_v52 = vpop.f32.mrb[101].mxu0  ;;  %v2943_v62 = vsel %vm2687_vm3, %v2473_v27, %v2815_v19  ;;  %v3039_v57 = vld [vmem:[%s5485_s8 + $0x250] sm:$0xff] }
 0x211   : > { %v3417_v17 = vmax.f32 %v3033_v63, %v3230_v7  ;;  %v3232_v60 = vpop.xlane.xlu0 %3231  ;;  %v2193_v63 = vadd.f32 %v2192_v6, %v6840_v22  ;;  %v2514_v33 = vpop.f32.mrb[101].mxu1  ;;  %v3038_v6 = vld [vmem:[%s5485_s8 + $0x248] sm:$0xff]  ;;  %vm2691_vm12 = vcmp.gt.f32.partialorder %v2493_v8, 0.0  ;;  %vm2692_vm13 = vcmp.gt.f32.partialorder %v2498_v48, 0.0 }
 0x212   : > { %v3418_v23 = vmax.f32 %v3034_v44, %v3232_v60  ;;  %v2886_v42 = vsel %vm2630_vm2, %v2188_v18, %v2758_v47  ;;  %v2197_v2 = vpop.f32.mrb[102].mxu0  ;;  %v6362_v56 = vpop.f32.mrb[102].mxu1  ;;  %v6841_v60 = vld [vmem:[#allocation25_spill] sm:$0xff] }
 0x213   : > { %3301 = vmax.xlane.f32.xlu1 %v2941_v21  ;;  %3546 = vst.msk [vmem:[%s5485_s8 + $0x220] sm:$0xff] %vm314_vm6, %v3417_v17  ;;  %v2759_v44 = vmul.f32 0.2, %v2193_v63  ;;  %vm2631_vm5 = vcmp.gt.f32.partialorder %v2193_v63, 0.0  ;;  %v2198_v27 = vadd.f32 %v2197_v2, %v6841_v60  ;;  %v2980_v18 = vld [vmem:[%s5485_s8 + $0x78] sm:$0xff]  ;;  %v2982_v2 = vld [vmem:[%s5485_s8 + $0x88] sm:$0xff] }
 0x214   : > { %v3118_v16 = vpop.xlane.xlu1 %3117  ;;  %3547 = vst.msk [vmem:[%s5485_s8 + $0x228] sm:$0xff] %vm314_vm6, %v3418_v23  ;;  %3303 = vmax.xlane.f32.xlu0 %v2942_v61  ;;  %v2199_v23 = vpop.f32.mrb[103].mxu0  ;;  %v2819_v60 = vmul.f32 0.2, %v2493_v8 }
 0x215   : > { %v3361_v37 = vmax.f32 %v2977_v30, %v3118_v16  ;;  %v3120_v32 = vpop.xlane.xlu0 %3119  ;;  %v2887_v58 = vsel %vm2631_vm5, %v2193_v63, %v2759_v44  ;;  %v2817_v16 = vmul.f32 0.2, %v2483_v9  ;;  %v2519_v61 = vpop.f32.mrb[103].mxu1  ;;  %vm2632_vm7 = vcmp.gt.f32.partialorder %v2198_v27, 0.0 }
 0x216   : > { %v3362_v49 = vmax.f32 %v2978_v5, %v3120_v32  ;;  %v2202_v43 = vpop.f32.mrb[104].mxu0  ;;  %v6373_v19 = vpop.f32.mrb[104].mxu1 }
 0x217   : > { %3189 = vmax.xlane.f32.xlu1 %v2885_v40  ;;  %3490 = vst.msk [vmem:[%s5485_s8 + $0x60] sm:$0xff] %vm314_vm6, %v3361_v37  ;;  %v2760_v40 = vmul.f32 0.2, %v2198_v27  ;;  %v2818_v37 = vmul.f32 0.2, %v2488_v24  ;;  %v2203_v47 = vadd.f32 %v2202_v43, %v6842_v41  ;;  %v2524_v63 = vpop.f32.mrb[105].mxu1  ;;  %v2947_v41 = vsel %vm2691_vm12, %v2493_v8, %v2819_v60 }
 0x218   : > { %v3234_v59 = vpop.xlane.xlu1 %3233  ;;  %3491 = vst.msk [vmem:[%s5485_s8 + $0x68] sm:$0xff] %vm314_vm6, %v3362_v49  ;;  %3191 = vmax.xlane.f32.xlu0 %v2886_v42  ;;  %v6385_v36 = vpop.f32.mrb[106].mxu1 }
 0x219   : > { %v3419_v7 = vmax.f32 %v3035_v38, %v3234_v59  ;;  %v3236_v17 = vpop.xlane.xlu0 %3235  ;;  %v2204_v38 = vpop.f32.mrb[105].mxu0  ;;  %v2888_v49 = vsel %vm2632_vm7, %v2198_v27, %v2760_v40  ;;  %v2945_v59 = vsel %vm2689_vm8, %v2483_v9, %v2817_v16  ;;  %v2761_v52 = vmul.f32 0.2, %v2203_v47  ;;  %v6844_v16 = vld [vmem:[#allocation30_spill] sm:$0xff] }
 0x21a   : > { %v3420_v21 = vmax.f32 %v3036_v34, %v3236_v17  ;;  %v2981_v34 = vld [vmem:[%s5485_s8 + $0x80] sm:$0xff]  ;;  %vm2633_vm10 = vcmp.gt.f32.partialorder %v2203_v47, 0.0  ;;  %v2207_v33 = vpop.f32.mrb[106].mxu0  ;;  %v2983_v38 = vld [vmem:[%s5485_s8 + $0x90] sm:$0xff] }
 0x21b   : > { %3305 = vmax.xlane.f32.xlu1 %v2943_v62  ;;  %3548 = vst.msk [vmem:[%s5485_s8 + $0x230] sm:$0xff] %vm314_vm6, %v3419_v7  ;;  %v6843_v62 = vld [vmem:[#allocation27_spill] sm:$0xff]  ;;  %v2209_v17 = vpop.f32.mrb[107].mxu0 }
 0x21c   : > { %v3122_v30 = vpop.xlane.xlu1 %3121  ;;  %3549 = vst.msk [vmem:[%s5485_s8 + $0x238] sm:$0xff] %vm314_vm6, %v3420_v21  ;;  %3307 = vmax.xlane.f32.xlu0 %v2944_v28  ;;  %v2208_v9 = vadd.f32 %v2207_v33, %v6843_v62  ;;  %v2889_v21 = vsel %vm2633_vm10, %v2203_v47, %v2761_v52 }
 0x21d   : > { %v3363_v53 = vmax.f32 %v2979_v29, %v3122_v30  ;;  %v3124_v5 = vpop.xlane.xlu0 %3123  ;;  %v2946_v29 = vsel %vm2690_vm9, %v2488_v24, %v2818_v37  ;;  %v2529_v30 = vpop.f32.mrb[107].mxu1 }
 0x21e   : > { %v3364_v0 = vmax.f32 %v2980_v18, %v3124_v5  ;;  %v2762_v23 = vmul.f32 0.2, %v2208_v9  ;;  %vm2634_vm11 = vcmp.gt.f32.partialorder %v2208_v9, 0.0  ;;  %v2212_v24 = vpop.f32.mrb[108].mxu0  ;;  %v2820_v18 = vmul.f32 0.2, %v2498_v48 }
 0x21f   : > { %3193 = vmax.xlane.f32.xlu1 %v2887_v58  ;;  %3492 = vst.msk [vmem:[%s5485_s8 + $0x70] sm:$0xff] %vm314_vm6, %v3363_v53  ;;  %v6396_v58 = vpop.f32.mrb[108].mxu1  ;;  %v2213_v53 = vadd.f32 %v2212_v24, %v6844_v16  ;;  %v2214_v40 = vpop.f32.mrb[109].mxu0 }
 0x220   : > { %v3238_v32 = vpop.xlane.xlu1 %3237  ;;  %3493 = vst.msk [vmem:[%s5485_s8 + $0x78] sm:$0xff] %vm314_vm6, %v3364_v0  ;;  %3195 = vmax.xlane.f32.xlu0 %v2888_v49  ;;  %v2890_v5 = vsel %vm2634_vm11, %v2208_v9, %v2762_v23  ;;  %v2503_v0 = vadd.f32 %v6327_v11, %v6125_v39  ;;  %v2534_v37 = vpop.f32.mrb[109].mxu1  ;;  %v2508_v11 = vadd.f32 %v6339_v1, %v6132_v3  ;;  %v3041_v3 = vld [vmem:[%s5485_s8 + $0x260] sm:$0xff]  ;;  %v3042_v23 = vld [vmem:[%s5485_s8 + $0x268] sm:$0xff] }
 0x221   : > { %v3421_v22 = vmax.f32 %v3037_v46, %v3238_v32  ;;  %v3240_v42 = vpop.xlane.xlu0 %3239  ;;  %v3040_v46 = vld [vmem:[%s5485_s8 + $0x258] sm:$0xff]  ;;  %v2763_v47 = vmul.f32 0.2, %v2213_v53  ;;  %vm2635_vm14 = vcmp.gt.f32.partialorder %v2213_v53, 0.0  ;;  %v6408_v39 = vpop.f32.mrb[110].mxu1  ;;  %v2948_v52 = vsel %vm2692_vm13, %v2498_v48, %v2820_v18 }
 0x222   : > { %v3422_v7 = vmax.f32 %v3038_v6, %v3240_v42  ;;  %v2217_v6 = vpop.f32.mrb[110].mxu0  ;;  %v2539_v62 = vpop.f32.mrb[111].mxu1  ;;  %vm2693_vm0 = vcmp.gt.f32.partialorder %v2503_v0, 0.0  ;;  %vm2694_vm1 = vcmp.gt.f32.partialorder %v2508_v11, 0.0 }
 0x223   : > { %3309 = vmax.xlane.f32.xlu1 %v2945_v59  ;;  %3550 = vst.msk [vmem:[%s5485_s8 + $0x240] sm:$0xff] %vm314_vm6, %v3421_v22  ;;  %v6845_v22 = vld [vmem:[#allocation29_spill] sm:$0xff]  ;;  %v2219_v59 = vpop.f32.mrb[111].mxu0  ;;  %v2891_v42 = vsel %vm2635_vm14, %v2213_v53, %v2763_v47  ;;  %v6419_v17 = vpop.f32.mrb[112].mxu1  ;;  %v2985_v53 = vld [vmem:[%s5485_s8 + $0xa0] sm:$0xff]  ;;  %v2986_v47 = vld [vmem:[%s5485_s8 + $0xa8] sm:$0xff]  ;;  %v2523_v62 = vadd.f32 %v6373_v19, %v6153_v55  ;;  %v2528_v19 = vadd.f32 %v6385_v36, %v6160_v25 }
 0x224   : > { %v3126_v44 = vpop.xlane.xlu1 %3125  ;;  %3551 = vst.msk [vmem:[%s5485_s8 + $0x248] sm:$0xff] %vm314_vm6, %v3422_v7  ;;  %3311 = vmax.xlane.f32.xlu0 %v2946_v29  ;;  %v2218_v8 = vadd.f32 %v2217_v6, %v6845_v22  ;;  %v2821_v7 = vmul.f32 0.2, %v2503_v0  ;;  %v2222_v48 = vpop.f32.mrb[112].mxu0  ;;  %v2822_v29 = vmul.f32 0.2, %v2508_v11 }
 0x225   : > { %v3365_v27 = vmax.f32 %v2981_v34, %v3126_v44  ;;  %v3128_v28 = vpop.xlane.xlu0 %3127  ;;  %v2984_v34 = vld [vmem:[%s5485_s8 + $0x98] sm:$0xff]  ;;  %v6848_v59 = vld [vmem:[#allocation34_spill] sm:$0xff]  ;;  %vm2697_vm9 = vcmp.gt.f32.partialorder %v2523_v62, 0.0  ;;  %vm2698_vm10 = vcmp.gt.f32.partialorder %v2528_v19, 0.0 }
 0x226   : > { %v3366_v15 = vmax.f32 %v2982_v2, %v3128_v28  ;;  %v2764_v9 = vmul.f32 0.2, %v2218_v8  ;;  %vm2636_vm15 = vcmp.gt.f32.partialorder %v2218_v8, 0.0  ;;  %v2513_v28 = vadd.f32 %v6350_v12, %v6139_v14  ;;  %v3045_v25 = vld [vmem:[%s5485_s8 + $0x280] sm:$0xff] }
 0x227   : > { %3197 = vmax.xlane.f32.xlu1 %v2889_v21  ;;  %3494 = vst.msk [vmem:[%s5485_s8 + $0x80] sm:$0xff] %vm314_vm6, %v3365_v27  ;;  %v6846_v21 = vld [vmem:[#allocation32_spill] sm:$0xff]  ;;  %v2224_v27 = vpop.f32.mrb[113].mxu0  ;;  %v2949_v24 = vsel %vm2693_vm0, %v2503_v0, %v2821_v7  ;;  %v2518_v12 = vadd.f32 %v6362_v56, %v6146_v13  ;;  %v2950_v37 = vsel %vm2694_vm1, %v2508_v11, %v2822_v29 }
 0x228   : > { %v3242_v61 = vpop.xlane.xlu1 %3241  ;;  %3495 = vst.msk [vmem:[%s5485_s8 + $0x88] sm:$0xff] %vm314_vm6, %v3366_v15  ;;  %3199 = vmax.xlane.f32.xlu0 %v2890_v5  ;;  %v2223_v2 = vadd.f32 %v2222_v48, %v6846_v21  ;;  %v2892_v30 = vsel %vm2636_vm15, %v2218_v8, %v2764_v9  ;;  %v2544_v15 = vpop.f32.mrb[113].mxu1  ;;  %v6847_v5 = vld [vmem:[#allocation31_spill] sm:$0xff]  ;;  %v3043_v13 = vld [vmem:[%s5485_s8 + $0x270] sm:$0xff]  ;;  %vm2695_vm4 = vcmp.gt.f32.partialorder %v2513_v28, 0.0 }
 0x229   : > { %v3423_v43 = vmax.f32 %v3039_v57, %v3242_v61  ;;  %v3244_v32 = vpop.xlane.xlu0 %3243  ;;  %v2227_v40 = vpop.f32.mrb[114].mxu0  ;;  %vm2696_vm5 = vcmp.gt.f32.partialorder %v2518_v12, 0.0  ;;  %v2987_v29 = vld [vmem:[%s5485_s8 + $0xb0] sm:$0xff]  ;;  %v2988_v15 = vld [vmem:[%s5485_s8 + $0xb8] sm:$0xff] }
 0x22a   : > { %v3424_v49 = vmax.f32 %v3040_v46, %v3244_v32  ;;  %v2765_v18 = vmul.f32 0.2, %v2223_v2  ;;  %vm2637_vm2 = vcmp.gt.f32.partialorder %v2223_v2, 0.0  ;;  %v6431_v14 = vpop.f32.mrb[114].mxu1  ;;  %v2228_v46 = vadd.f32 %v2227_v40, %v6847_v5 }
 0x22b   : > { %3313 = vmax.xlane.f32.xlu1 %v2947_v41  ;;  %3552 = vst.msk [vmem:[%s5485_s8 + $0x250] sm:$0xff] %vm314_vm6, %v3423_v43  ;;  %v2229_v43 = vpop.f32.mrb[115].mxu0  ;;  %v2823_v32 = vmul.f32 0.2, %v2513_v28  ;;  %v2826_v5 = vmul.f32 0.2, %v2528_v19 }
 0x22c   : > { %v3130_v63 = vpop.xlane.xlu1 %3129  ;;  %3553 = vst.msk [vmem:[%s5485_s8 + $0x258] sm:$0xff] %vm314_vm6, %v3424_v49  ;;  %3315 = vmax.xlane.f32.xlu0 %v2948_v52  ;;  %v2893_v41 = vsel %vm2637_vm2, %v2223_v2, %v2765_v18  ;;  %v2549_v49 = vpop.f32.mrb[115].mxu1  ;;  %v2766_v6 = vmul.f32 0.2, %v2228_v46  ;;  %vm2638_vm3 = vcmp.gt.f32.partialorder %v2228_v46, 0.0 }
 0x22d   : > { %v3367_v33 = vmax.f32 %v2983_v38, %v3130_v63  ;;  %v3132_v44 = vpop.xlane.xlu0 %3131  ;;  %v2232_v11 = vpop.f32.mrb[116].mxu0  ;;  %v2824_v63 = vmul.f32 0.2, %v2518_v12 }
 0x22e   : > { %v3368_v1 = vmax.f32 %v2984_v34, %v3132_v44  ;;  %v6442_v8 = vpop.f32.mrb[116].mxu1  ;;  %v2233_v52 = vadd.f32 %v2232_v11, %v6848_v59  ;;  %v2234_v34 = vpop.f32.mrb[117].mxu0  ;;  %v2894_v7 = vsel %vm2638_vm3, %v2228_v46, %v2766_v6  ;;  %v6850_v46 = vld [vmem:[#allocation36_spill] sm:$0xff]  ;;  %v2538_v11 = vadd.f32 %v6408_v39, %v6174_v35  ;;  %v6851_v59 = vld [vmem:[#allocation35_spill] sm:$0xff] }
 0x22f   : > { %3201 = vmax.xlane.f32.xlu1 %v2891_v42  ;;  %3496 = vst.msk [vmem:[%s5485_s8 + $0x90] sm:$0xff] %vm314_vm6, %v3367_v33  ;;  %v3044_v33 = vld [vmem:[%s5485_s8 + $0x278] sm:$0xff]  ;;  %v2554_v44 = vpop.f32.mrb[117].mxu1  ;;  %v2237_v2 = vpop.f32.mrb[118].mxu0 }
 0x230   : > { %v3246_v60 = vpop.xlane.xlu1 %3245  ;;  %3497 = vst.msk [vmem:[%s5485_s8 + $0x98] sm:$0xff] %vm314_vm6, %v3368_v1  ;;  %3203 = vmax.xlane.f32.xlu0 %v2892_v30  ;;  %v2767_v1 = vmul.f32 0.2, %v2233_v52  ;;  %vm2639_vm7 = vcmp.gt.f32.partialorder %v2233_v52, 0.0  ;;  %v6454_v55 = vpop.f32.mrb[118].mxu1  ;;  %vm2700_vm14 = vcmp.gt.f32.partialorder %v2538_v11, 0.0 }
 0x231   : > { %v3425_v57 = vmax.f32 %v3041_v3, %v3246_v60  ;;  %v3248_v16 = vpop.xlane.xlu0 %3247  ;;  %v2951_v3 = vsel %vm2695_vm4, %v2513_v28, %v2823_v32  ;;  %v6849_v60 = vld [vmem:[#allocation33_spill] sm:$0xff]  ;;  %v2952_v28 = vsel %vm2696_vm5, %v2518_v12, %v2824_v63  ;;  %v2533_v32 = vadd.f32 %v6396_v58, %v6167_v54 }
 0x232   : > { %v3426_v61 = vmax.f32 %v3042_v23, %v3248_v16  ;;  %v2238_v27 = vadd.f32 %v2237_v2, %v6849_v60  ;;  %v2239_v23 = vpop.f32.mrb[119].mxu0  ;;  %v2559_v16 = vpop.f32.mrb[119].mxu1  ;;  %v6852_v60 = vld [vmem:[#allocation38_spill] sm:$0xff] }
 0x233   : > { %3317 = vmax.xlane.f32.xlu1 %v2949_v24  ;;  %3554 = vst.msk [vmem:[%s5485_s8 + $0x260] sm:$0xff] %vm314_vm6, %v3425_v57  ;;  %v2895_v57 = vsel %vm2639_vm7, %v2233_v52, %v2767_v1  ;;  %v2825_v24 = vmul.f32 0.2, %v2523_v62  ;;  %v2242_v40 = vpop.f32.mrb[120].mxu0  ;;  %v6465_v12 = vpop.f32.mrb[120].mxu1  ;;  %v3047_v1 = vld [vmem:[%s5485_s8 + $0x290] sm:$0xff] }
 0x234   : > { %v3134_v0 = vpop.xlane.xlu1 %3133  ;;  %3555 = vst.msk [vmem:[%s5485_s8 + $0x268] sm:$0xff] %vm314_vm6, %v3426_v61  ;;  %3319 = vmax.xlane.f32.xlu0 %v2950_v37  ;;  %vm2640_vm8 = vcmp.gt.f32.partialorder %v2238_v27, 0.0  ;;  %v2244_v37 = vpop.f32.mrb[121].mxu0  ;;  %vm2699_vm13 = vcmp.gt.f32.partialorder %v2533_v32, 0.0  ;;  %v2991_v16 = vld [vmem:[%s5485_s8 + $0xd0] sm:$0xff] }
 0x235   : > { %v3369_v38 = vmax.f32 %v2985_v53, %v3134_v0  ;;  %v3136_v22 = vpop.xlane.xlu0 %3135  ;;  %v2768_v53 = vmul.f32 0.2, %v2238_v27  ;;  %v2243_v0 = vadd.f32 %v2242_v40, %v6850_v46  ;;  %v2564_v49 = vpop.f32.mrb[121].mxu1  ;;  %v2953_v6 = vsel %vm2697_vm9, %v2523_v62, %v2825_v24  ;;  %v2990_v62 = vld [vmem:[%s5485_s8 + $0xc8] sm:$0xff] }
 0x236   : > { %v3370_v56 = vmax.f32 %v2986_v47, %v3136_v22  ;;  %v3046_v47 = vld [vmem:[%s5485_s8 + $0x288] sm:$0xff]  ;;  %v2247_v58 = vpop.f32.mrb[122].mxu0  ;;  %v6479_v63 = vpop.f32.mrb[122].mxu1  ;;  %v2553_v46 = vadd.f32 %v6442_v8, %v6196_v51 }
 0x237   : > { %3205 = vmax.xlane.f32.xlu1 %v2893_v41  ;;  %3498 = vst.msk [vmem:[%s5485_s8 + $0xa0] sm:$0xff] %vm314_vm6, %v3369_v38  ;;  %v2896_v41 = vsel %vm2640_vm8, %v2238_v27, %v2768_v53  ;;  %v2769_v22 = vmul.f32 0.2, %v2243_v0  ;;  %vm2641_vm11 = vcmp.gt.f32.partialorder %v2243_v0, 0.0  ;;  %v2248_v52 = vadd.f32 %v2247_v58, %v6851_v59  ;;  %v2249_v34 = vpop.f32.mrb[123].mxu0  ;;  %v2569_v35 = vpop.f32.mrb[123].mxu1 }
 0x238   : > { %v3250_v42 = vpop.xlane.xlu1 %3249  ;;  %3499 = vst.msk [vmem:[%s5485_s8 + $0xa8] sm:$0xff] %vm314_vm6, %v3370_v56  ;;  %3207 = vmax.xlane.f32.xlu0 %v2894_v7  ;;  %v2989_v56 = vld [vmem:[%s5485_s8 + $0xc0] sm:$0xff]  ;;  %v2954_v7 = vsel %vm2698_vm10, %v2528_v19, %v2826_v5  ;;  %v2252_v2 = vpop.f32.mrb[124].mxu0  ;;  %v2548_v5 = vadd.f32 %v6431_v14, %v6188_v45  ;;  %v3050_v58 = vld [vmem:[%s5485_s8 + $0x2a8] sm:$0xff]  ;;  %v2563_v59 = vadd.f32 %v6465_v12, %v6210_v20  ;;  %vm2703_vm3 = vcmp.gt.f32.partialorder %v2553_v46, 0.0 }
 0x239   : > { %v3427_v9 = vmax.f32 %v3043_v13, %v3250_v42  ;;  %v3252_v48 = vpop.xlane.xlu0 %3251  ;;  %v2770_v39 = vmul.f32 0.2, %v2248_v52  ;;  %vm2642_vm12 = vcmp.gt.f32.partialorder %v2248_v52, 0.0  ;;  %v6490_v19 = vpop.f32.mrb[124].mxu1  ;;  %v2253_v27 = vadd.f32 %v2252_v2, %v6852_v60  ;;  %v3049_v14 = vld [vmem:[%s5485_s8 + $0x2a0] sm:$0xff] }
 0x23a   : > { %v3428_v21 = vmax.f32 %v3044_v33, %v3252_v48  ;;  %v2897_v33 = vsel %vm2641_vm11, %v2243_v0, %v2769_v22  ;;  %v2828_v48 = vmul.f32 0.2, %v2538_v11  ;;  %v2254_v23 = vpop.f32.mrb[125].mxu0  ;;  %v6853_v0 = vld [vmem:[#allocation37_spill] sm:$0xff]  ;;  %v2830_v22 = vmul.f32 0.2, %v2548_v5 }
 0x23b   : > { %3321 = vmax.xlane.f32.xlu1 %v2951_v3  ;;  %3556 = vst.msk [vmem:[%s5485_s8 + $0x270] sm:$0xff] %vm314_vm6, %v3427_v9  ;;  %v2827_v9 = vmul.f32 0.2, %v2533_v32  ;;  %v2771_v24 = vmul.f32 0.2, %v2253_v27  ;;  %vm2643_vm15 = vcmp.gt.f32.partialorder %v2253_v27, 0.0  ;;  %v2568_v20 = vadd.f32 %v6479_v63, %v6218_v26 }
 0x23c   : > { %v3138_v30 = vpop.xlane.xlu1 %3137  ;;  %3557 = vst.msk [vmem:[%s5485_s8 + $0x278] sm:$0xff] %vm314_vm6, %v3428_v21  ;;  %3323 = vmax.xlane.f32.xlu0 %v2952_v28  ;;  %v2898_v28 = vsel %vm2642_vm12, %v2248_v52, %v2770_v39  ;;  %v2956_v40 = vsel %vm2700_vm14, %v2538_v11, %v2828_v48  ;;  %vm2702_vm2 = vcmp.gt.f32.partialorder %v2548_v5, 0.0  ;;  %v2993_v34 = vld [vmem:[%s5485_s8 + $0xe0] sm:$0xff]  ;;  %vm2705_vm5 = vcmp.gt.f32.partialorder %v2563_v59, 0.0 }
 0x23d   : > { %v3371_v18 = vmax.f32 %v2987_v29, %v3138_v30  ;;  %v3140_v61 = vpop.xlane.xlu0 %3139  ;;  %v2543_v29 = vadd.f32 %v6419_v17, %v6181_v31  ;;  %v2574_v31 = vpop.f32.mrb[125].mxu1  ;;  %v2955_v17 = vsel %vm2699_vm13, %v2533_v32, %v2827_v9  ;;  %v2992_v32 = vld [vmem:[%s5485_s8 + $0xd8] sm:$0xff]  ;;  %v2833_v9 = vmul.f32 0.2, %v2563_v59 }
 0x23e   : > { %v3372_v36 = vmax.f32 %v2988_v15, %v3140_v61  ;;  %v2834_v63 = vmul.f32 0.2, %v2568_v20  ;;  %vm2706_vm7 = vcmp.gt.f32.partialorder %v2568_v20, 0.0 }
 0x23f   : > { %3209 = vmax.xlane.f32.xlu1 %v2895_v57  ;;  %3500 = vst.msk [vmem:[%s5485_s8 + $0xb0] sm:$0xff] %vm314_vm6, %v3371_v18  ;;  %v3048_v57 = vld [vmem:[%s5485_s8 + $0x298] sm:$0xff]  ;;  %v2829_v53 = vmul.f32 0.2, %v2543_v29  ;;  %vm2701_vm0 = vcmp.gt.f32.partialorder %v2543_v29, 0.0 }
 0x240   : > { %v3254_v43 = vpop.xlane.xlu1 %3253  ;;  %3501 = vst.msk [vmem:[%s5485_s8 + $0xb8] sm:$0xff] %vm314_vm6, %v3372_v36  ;;  %3211 = vmax.xlane.f32.xlu0 %v2896_v41 }
 0x241   : > { %v3429_v38 = vmax.f32 %v3045_v25, %v3254_v43  ;;  %v3256_v13 = vpop.xlane.xlu0 %3255  ;;  %v2957_v8 = vsel %vm2701_vm0, %v2543_v29, %v2829_v53  ;;  %v3052_v29 = vld [vmem:[%s5485_s8 + $0x2b8] sm:$0xff] }
 0x242   : > { %v3430_v54 = vmax.f32 %v3046_v47, %v3256_v13  ;;  %v2899_v47 = vsel %vm2643_vm15, %v2253_v27, %v2771_v24  ;;  %v2831_v13 = vmul.f32 0.2, %v2553_v46  ;;  %v2995_v27 = vld [vmem:[%s5485_s8 + $0xf0] sm:$0xff]  ;;  %v3053_v24 = vld [vmem:[%s5485_s8 + $0x2c0] sm:$0xff] }
 0x243   : > { %3325 = vmax.xlane.f32.xlu1 %v2953_v6  ;;  %3558 = vst.msk [vmem:[%s5485_s8 + $0x280] sm:$0xff] %vm314_vm6, %v3429_v38 }
 0x244   : > { %v3142_v42 = vpop.xlane.xlu1 %3141  ;;  %3559 = vst.msk [vmem:[%s5485_s8 + $0x288] sm:$0xff] %vm314_vm6, %v3430_v54  ;;  %3327 = vmax.xlane.f32.xlu0 %v2954_v7  ;;  %v2257_v25 = vpop.f32.mrb[126].mxu0  ;;  %v2958_v7 = vsel %vm2702_vm2, %v2548_v5, %v2830_v22 }
 0x245   : > { %v3373_v44 = vmax.f32 %v2989_v56, %v3142_v42  ;;  %v3144_v3 = vpop.xlane.xlu0 %3143  ;;  %v2258_v43 = vadd.f32 %v2257_v25, %v6853_v0  ;;  %v2259_v41 = vpop.f32.mrb[127].mxu0  ;;  %v2558_v56 = vadd.f32 %v6454_v55, %v6203_v10  ;;  %v2998_v0 = vld [vmem:[%s5485_s8 + $0x108] sm:$0xff] }
 0x246   : > { %v3374_v21 = vmax.f32 %v2990_v62, %v3144_v3  ;;  %v2994_v62 = vld [vmem:[%s5485_s8 + $0xe8] sm:$0xff]  ;;  %v3051_v3 = vld [vmem:[%s5485_s8 + $0x2b0] sm:$0xff] }
 0x247   : > { %3213 = vmax.xlane.f32.xlu1 %v2897_v33  ;;  %3502 = vst.msk [vmem:[%s5485_s8 + $0xc0] sm:$0xff] %vm314_vm6, %v3373_v44  ;;  %v2577_v36 = vpop.f32.mrb[126].mxu1  ;;  %v2772_v6 = vmul.f32 0.2, %v2258_v43  ;;  %vm2644_vm1 = vcmp.gt.f32.partialorder %v2258_v43, 0.0  ;;  %v2959_v33 = vsel %vm2703_vm3, %v2553_v46, %v2831_v13  ;;  %v2573_v44 = vadd.f32 %v6490_v19, %v6225_v4  ;;  %v3055_v41 = vld [vmem:[%s5485_s8 + $0x2d0] sm:$0xff] }
 0x248   : > { %v3258_v30 = vpop.xlane.xlu1 %3257  ;;  %3503 = vst.msk [vmem:[%s5485_s8 + $0xc8] sm:$0xff] %vm314_vm6, %v3374_v21  ;;  %3215 = vmax.xlane.f32.xlu0 %v2898_v28  ;;  %v2579_v49 = vpop.f32.mrb[127].mxu1  ;;  %v2832_v55 = vmul.f32 0.2, %v2558_v56  ;;  %vm2704_vm4 = vcmp.gt.f32.partialorder %v2558_v56, 0.0  ;;  %v2961_v19 = vsel %vm2705_vm5, %v2563_v59, %v2833_v9  ;;  %v2962_v28 = vsel %vm2706_vm7, %v2568_v20, %v2834_v63  ;;  %v3060_v9 = vld [vmem:[%s5485_s8 + $0x2f8] sm:$0xff] }
 0x249   : > { %v3431_v15 = vmax.f32 %v3047_v1, %v3258_v30  ;;  %v3260_v18 = vpop.xlane.xlu0 %3259  ;;  %v2900_v54 = vsel %vm2644_vm1, %v2258_v43, %v2772_v6  ;;  %v2578_v1 = vadd.f32 %v2577_v36, %v6233_v50  ;;  %v2835_v21 = vmul.f32 0.2, %v2573_v44  ;;  %v3004_v63 = vld [vmem:[%s5485_s8 + $0x138] sm:$0xff] }
 0x24a   : > { %v3432_v61 = vmax.f32 %v3048_v57, %v3260_v18  ;;  %v2960_v4 = vsel %vm2704_vm4, %v2558_v56, %v2832_v55  ;;  %vm2707_vm8 = vcmp.gt.f32.partialorder %v2573_v44, 0.0  ;;  %v2996_v57 = vld [vmem:[%s5485_s8 + $0xf8] sm:$0xff]  ;;  %v3057_v56 = vld [vmem:[%s5485_s8 + $0x2e0] sm:$0xff]  ;;  %v3002_v55 = vld [vmem:[%s5485_s8 + $0x128] sm:$0xff] }
 0x24b   : > { %3329 = vmax.xlane.f32.xlu1 %v2955_v17  ;;  %3560 = vst.msk [vmem:[%s5485_s8 + $0x290] sm:$0xff] %vm314_vm6, %v3431_v15  ;;  %v2836_v30 = vmul.f32 0.2, %v2578_v1  ;;  %v2963_v31 = vsel %vm2707_vm8, %v2573_v44, %v2835_v21  ;;  %vm2708_vm9 = vcmp.gt.f32.partialorder %v2578_v1, 0.0 }
 0x24c   : > { %v3146_v37 = vpop.xlane.xlu1 %3145  ;;  %3561 = vst.msk [vmem:[%s5485_s8 + $0x298] sm:$0xff] %vm314_vm6, %v3432_v61  ;;  %3331 = vmax.xlane.f32.xlu0 %v2956_v40  ;;  %v3054_v61 = vld [vmem:[%s5485_s8 + $0x2c8] sm:$0xff]  ;;  %v2997_v40 = vld [vmem:[%s5485_s8 + $0x100] sm:$0xff] }
 0x24d   : > { %v3375_v38 = vmax.f32 %v2991_v16, %v3146_v37  ;;  %v3148_v45 = vpop.xlane.xlu0 %3147  ;;  %v2964_v53 = vsel %vm2708_vm9, %v2578_v1, %v2836_v30 }
 0x24e   : > { %v3376_v51 = vmax.f32 %v2992_v32, %v3148_v45  ;;  %v2999_v45 = vld [vmem:[%s5485_s8 + $0x110] sm:$0xff] }
 0x24f   : > { %3217 = vmax.xlane.f32.xlu1 %v2899_v47  ;;  %3504 = vst.msk [vmem:[%s5485_s8 + $0xd0] sm:$0xff] %vm314_vm6, %v3375_v38  ;;  %v3056_v38 = vld [vmem:[%s5485_s8 + $0x2d8] sm:$0xff] }
 0x250   : > { %v3262_v11 = vpop.xlane.xlu1 %3261  ;;  %3505 = vst.msk [vmem:[%s5485_s8 + $0xd8] sm:$0xff] %vm314_vm6, %v3376_v51  ;;  %3219 = vmax.xlane.f32.xlu0 %v2900_v54 }
 0x251   : > { %v3433_v52 = vmax.f32 %v3049_v14, %v3262_v11  ;;  %v3264_v42 = vpop.xlane.xlu0 %3263 }
 0x252   : > { %v3434_v10 = vmax.f32 %v3050_v58, %v3264_v42  ;;  %v3058_v58 = vld [vmem:[%s5485_s8 + $0x2e8] sm:$0xff]  ;;  %v3001_v42 = vld [vmem:[%s5485_s8 + $0x120] sm:$0xff] }
 0x253   : > { %3333 = vmax.xlane.f32.xlu1 %v2957_v8  ;;  %3562 = vst.msk [vmem:[%s5485_s8 + $0x2a0] sm:$0xff] %vm314_vm6, %v3433_v52  ;;  %v3000_v8 = vld [vmem:[%s5485_s8 + $0x118] sm:$0xff] }
 0x254   : > { %v3150_v12 = vpop.xlane.xlu1 %3149  ;;  %3563 = vst.msk [vmem:[%s5485_s8 + $0x2a8] sm:$0xff] %vm314_vm6, %v3434_v10  ;;  %3335 = vmax.xlane.f32.xlu0 %v2958_v7  ;;  %v3059_v7 = vld [vmem:[%s5485_s8 + $0x2f0] sm:$0xff] }
 0x255   : > { %v3377_v35 = vmax.f32 %v2993_v34, %v3150_v12  ;;  %v3152_v39 = vpop.xlane.xlu0 %3151 }
 0x256   : > { %v3378_v26 = vmax.f32 %v2994_v62, %v3152_v39  ;;  %v3003_v39 = vld [vmem:[%s5485_s8 + $0x130] sm:$0xff] }
 0x257   : > { %3337 = vmax.xlane.f32.xlu1 %v2959_v33  ;;  %3506 = vst.msk [vmem:[%s5485_s8 + $0xe0] sm:$0xff] %vm314_vm6, %v3377_v35 }
 0x258   : > { %v3266_v48 = vpop.xlane.xlu1 %3265  ;;  %3507 = vst.msk [vmem:[%s5485_s8 + $0xe8] sm:$0xff] %vm314_vm6, %v3378_v26  ;;  %3339 = vmax.xlane.f32.xlu0 %v2960_v4  ;;  %v3061_v4 = vld [vmem:[%s5485_s8 + $0x300] sm:$0xff] }
 0x259   : > { %v3435_v2 = vmax.f32 %v3051_v3, %v3266_v48  ;;  %v3268_v60 = vpop.xlane.xlu0 %3267 }
 0x25a   : > { %v3436_v50 = vmax.f32 %v3052_v29, %v3268_v60 }
 0x25b   : > { %3341 = vmax.xlane.f32.xlu1 %v2961_v19  ;;  %3564 = vst.msk [vmem:[%s5485_s8 + $0x2b0] sm:$0xff] %vm314_vm6, %v3435_v2  ;;  %v3062_v2 = vld [vmem:[%s5485_s8 + $0x308] sm:$0xff] }
 0x25c   : > { %v3154_v23 = vpop.xlane.xlu1 %3153  ;;  %3565 = vst.msk [vmem:[%s5485_s8 + $0x2b8] sm:$0xff] %vm314_vm6, %v3436_v50  ;;  %3343 = vmax.xlane.f32.xlu0 %v2962_v28 }
 0x25d   : > { %v3379_v15 = vmax.f32 %v2995_v27, %v3154_v23  ;;  %v3156_v17 = vpop.xlane.xlu0 %3155  ;;  %v3005_v27 = vld [vmem:[%s5485_s8 + $0x140] sm:$0xff]  ;;  %v3006_v23 = vld [vmem:[%s5485_s8 + $0x148] sm:$0xff] }
 0x25e   : > { %v3380_v18 = vmax.f32 %v2996_v57, %v3156_v17 }
 0x25f   : > { %3345 = vmax.xlane.f32.xlu1 %v2963_v31  ;;  %3508 = vst.msk [vmem:[%s5485_s8 + $0xf0] sm:$0xff] %vm314_vm6, %v3379_v15  ;;  %v3063_v15 = vld [vmem:[%s5485_s8 + $0x310] sm:$0xff] }
 0x260   : > { %v3270_v16 = vpop.xlane.xlu1 %3269  ;;  %3509 = vst.msk [vmem:[%s5485_s8 + $0xf8] sm:$0xff] %vm314_vm6, %v3380_v18  ;;  %3347 = vmax.xlane.f32.xlu0 %v2964_v53  ;;  %v3007_v53 = vld [vmem:[%s5485_s8 + $0x150] sm:$0xff] }
 0x261   : > { %v3437_v25 = vmax.f32 %v3053_v24, %v3270_v16  ;;  %v3272_v36 = vpop.xlane.xlu0 %3271  ;;  %v3064_v24 = vld [vmem:[%s5485_s8 + $0x318] sm:$0xff] }
 0x262   : > { %v3438_v5 = vmax.f32 %v3054_v61, %v3272_v36  ;;  %v3008_v36 = vld [vmem:[%s5485_s8 + $0x158] sm:$0xff] }
 0x263   : > { %3566 = vst.msk [vmem:[%s5485_s8 + $0x2c0] sm:$0xff] %vm314_vm6, %v3437_v25 }
 0x264   : > { %v3158_v46 = vpop.xlane.xlu1 %3157  ;;  %3567 = vst.msk [vmem:[%s5485_s8 + $0x2c8] sm:$0xff] %vm314_vm6, %v3438_v5 }
 0x265   : > { %v3381_v43 = vmax.f32 %v2997_v40, %v3158_v46  ;;  %v3160_v37 = vpop.xlane.xlu0 %3159  ;;  %v3065_v46 = vld [vmem:[%s5485_s8 + $0x320] sm:$0xff] }
 0x266   : > { %v3382_v47 = vmax.f32 %v2998_v0, %v3160_v37  ;;  %v3066_v37 = vld [vmem:[%s5485_s8 + $0x328] sm:$0xff] }
 0x267   : > { %3510 = vst.msk [vmem:[%s5485_s8 + $0x100] sm:$0xff] %vm314_vm6, %v3381_v43 }
 0x268   : > { %v3274_v32 = vpop.xlane.xlu1 %3273  ;;  %3511 = vst.msk [vmem:[%s5485_s8 + $0x108] sm:$0xff] %vm314_vm6, %v3382_v47 }
 0x269   : > { %v3439_v49 = vmax.f32 %v3055_v41, %v3274_v32  ;;  %v3276_v6 = vpop.xlane.xlu0 %3275  ;;  %v3009_v32 = vld [vmem:[%s5485_s8 + $0x160] sm:$0xff] }
 0x26a   : > { %v3440_v14 = vmax.f32 %v3056_v38, %v3276_v6  ;;  %v3010_v6 = vld [vmem:[%s5485_s8 + $0x168] sm:$0xff] }
 0x26b   : > { %3568 = vst.msk [vmem:[%s5485_s8 + $0x2d0] sm:$0xff] %vm314_vm6, %v3439_v49 }
 0x26c   : > { %v3162_v51 = vpop.xlane.xlu1 %3161  ;;  %3569 = vst.msk [vmem:[%s5485_s8 + $0x2d8] sm:$0xff] %vm314_vm6, %v3440_v14 }
 0x26d   : > { %v3383_v22 = vmax.f32 %v2999_v45, %v3162_v51  ;;  %v3164_v13 = vpop.xlane.xlu0 %3163  ;;  %v3067_v51 = vld [vmem:[%s5485_s8 + $0x330] sm:$0xff] }
 0x26e   : > { %v3384_v11 = vmax.f32 %v3000_v8, %v3164_v13  ;;  %v3068_v13 = vld [vmem:[%s5485_s8 + $0x338] sm:$0xff] }
 0x26f   : > { %3512 = vst.msk [vmem:[%s5485_s8 + $0x110] sm:$0xff] %vm314_vm6, %v3383_v22 }
 0x270   : > { %v3278_v54 = vpop.xlane.xlu1 %3277  ;;  %3513 = vst.msk [vmem:[%s5485_s8 + $0x118] sm:$0xff] %vm314_vm6, %v3384_v11 }
 0x271   : > { %v3441_v59 = vmax.f32 %v3057_v56, %v3278_v54  ;;  %v3280_v52 = vpop.xlane.xlu0 %3279  ;;  %v3011_v54 = vld [vmem:[%s5485_s8 + $0x170] sm:$0xff] }
 0x272   : > { %v3442_v34 = vmax.f32 %v3058_v58, %v3280_v52  ;;  %v3012_v52 = vld [vmem:[%s5485_s8 + $0x178] sm:$0xff] }
 0x273   : > { %3570 = vst.msk [vmem:[%s5485_s8 + $0x2e0] sm:$0xff] %vm314_vm6, %v3441_v59 }
 0x274   : > { %v3166_v10 = vpop.xlane.xlu1 %3165  ;;  %3571 = vst.msk [vmem:[%s5485_s8 + $0x2e8] sm:$0xff] %vm314_vm6, %v3442_v34 }
 0x275   : > { %v3385_v20 = vmax.f32 %v3001_v42, %v3166_v10  ;;  %v3168_v12 = vpop.xlane.xlu0 %3167  ;;  %v3069_v10 = vld [vmem:[%s5485_s8 + $0x340] sm:$0xff] }
 0x276   : > { %v3386_v33 = vmax.f32 %v3002_v55, %v3168_v12  ;;  %v3070_v12 = vld [vmem:[%s5485_s8 + $0x348] sm:$0xff] }
 0x277   : > { %3514 = vst.msk [vmem:[%s5485_s8 + $0x120] sm:$0xff] %vm314_vm6, %v3385_v20 }
 0x278   : > { %v3282_v62 = vpop.xlane.xlu1 %3281  ;;  %3515 = vst.msk [vmem:[%s5485_s8 + $0x128] sm:$0xff] %vm314_vm6, %v3386_v33 }
 0x279   : > { %v3443_v44 = vmax.f32 %v3059_v7, %v3282_v62  ;;  %v3284_v35 = vpop.xlane.xlu0 %3283  ;;  %v3013_v62 = vld [vmem:[%s5485_s8 + $0x180] sm:$0xff] }
 0x27a   : > { %v3444_v3 = vmax.f32 %v3060_v9, %v3284_v35  ;;  %v3014_v35 = vld [vmem:[%s5485_s8 + $0x188] sm:$0xff] }
 0x27b   : > { %3572 = vst.msk [vmem:[%s5485_s8 + $0x2f0] sm:$0xff] %vm314_vm6, %v3443_v44 }
 0x27c   : > { %v3170_v26 = vpop.xlane.xlu1 %3169  ;;  %3573 = vst.msk [vmem:[%s5485_s8 + $0x2f8] sm:$0xff] %vm314_vm6, %v3444_v3 }
 0x27d   : > { %v3387_v1 = vmax.f32 %v3003_v39, %v3170_v26  ;;  %v3172_v48 = vpop.xlane.xlu0 %3171  ;;  %v3071_v26 = vld [vmem:[%s5485_s8 + $0x350] sm:$0xff] }
 0x27e   : > { %v3388_v29 = vmax.f32 %v3004_v63, %v3172_v48  ;;  %v3072_v48 = vld [vmem:[%s5485_s8 + $0x358] sm:$0xff] }
 0x27f   : > { %3516 = vst.msk [vmem:[%s5485_s8 + $0x130] sm:$0xff] %vm314_vm6, %v3387_v1 }
 0x280   : > { %v3286_v21 = vpop.xlane.xlu1 %3285  ;;  %3517 = vst.msk [vmem:[%s5485_s8 + $0x138] sm:$0xff] %vm314_vm6, %v3388_v29 }
 0x281   : > { %v3445_v19 = vmax.f32 %v3061_v4, %v3286_v21  ;;  %v3288_v60 = vpop.xlane.xlu0 %3287  ;;  %v3015_v21 = vld [vmem:[%s5485_s8 + $0x190] sm:$0xff] }
 0x282   : > { %v3446_v50 = vmax.f32 %v3062_v2, %v3288_v60  ;;  %v3016_v60 = vld [vmem:[%s5485_s8 + $0x198] sm:$0xff] }
 0x283   : > { %3574 = vst.msk [vmem:[%s5485_s8 + $0x300] sm:$0xff] %vm314_vm6, %v3445_v19 }
 0x284   : > { %v3174_v30 = vpop.xlane.xlu1 %3173  ;;  %3575 = vst.msk [vmem:[%s5485_s8 + $0x308] sm:$0xff] %vm314_vm6, %v3446_v50 }
 0x285   : > { %v3389_v28 = vmax.f32 %v3005_v27, %v3174_v30  ;;  %v3176_v57 = vpop.xlane.xlu0 %3175  ;;  %v3073_v30 = vld [vmem:[%s5485_s8 + $0x360] sm:$0xff] }
 0x286   : > { %v3390_v31 = vmax.f32 %v3006_v23, %v3176_v57  ;;  %v3074_v57 = vld [vmem:[%s5485_s8 + $0x368] sm:$0xff] }
 0x287   : > { %3518 = vst.msk [vmem:[%s5485_s8 + $0x140] sm:$0xff] %vm314_vm6, %v3389_v28 }
 0x288   : > { %v3290_v17 = vpop.xlane.xlu1 %3289  ;;  %3519 = vst.msk [vmem:[%s5485_s8 + $0x148] sm:$0xff] %vm314_vm6, %v3390_v31 }
 0x289   : > { %v3447_v18 = vmax.f32 %v3063_v15, %v3290_v17  ;;  %v3292_v16 = vpop.xlane.xlu0 %3291  ;;  %v3017_v17 = vld [vmem:[%s5485_s8 + $0x1a0] sm:$0xff] }
 0x28a   : > { %v3448_v61 = vmax.f32 %v3064_v24, %v3292_v16  ;;  %v3018_v16 = vld [vmem:[%s5485_s8 + $0x1a8] sm:$0xff] }
 0x28b   : > { %3576 = vst.msk [vmem:[%s5485_s8 + $0x310] sm:$0xff] %vm314_vm6, %v3447_v18 }
 0x28c   : > { %v3178_v25 = vpop.xlane.xlu1 %3177  ;;  %3577 = vst.msk [vmem:[%s5485_s8 + $0x318] sm:$0xff] %vm314_vm6, %v3448_v61 }
 0x28d   : > { %v3391_v40 = vmax.f32 %v3007_v53, %v3178_v25  ;;  %v3180_v5 = vpop.xlane.xlu0 %3179  ;;  %v3075_v25 = vld [vmem:[%s5485_s8 + $0x370] sm:$0xff] }
 0x28e   : > { %v3392_v0 = vmax.f32 %v3008_v36, %v3180_v5  ;;  %v3076_v5 = vld [vmem:[%s5485_s8 + $0x378] sm:$0xff] }
 0x28f   : > { %3520 = vst.msk [vmem:[%s5485_s8 + $0x150] sm:$0xff] %vm314_vm6, %v3391_v40 }
 0x290   : > { %v3294_v43 = vpop.xlane.xlu1 %3293  ;;  %3521 = vst.msk [vmem:[%s5485_s8 + $0x158] sm:$0xff] %vm314_vm6, %v3392_v0 }
 0x291   : > { %v3449_v41 = vmax.f32 %v3065_v46, %v3294_v43  ;;  %v3296_v47 = vpop.xlane.xlu0 %3295  ;;  %v3019_v43 = vld [vmem:[%s5485_s8 + $0x1b0] sm:$0xff] }
 0x292   : > { %v3450_v38 = vmax.f32 %v3066_v37, %v3296_v47  ;;  %v3020_v47 = vld [vmem:[%s5485_s8 + $0x1b8] sm:$0xff] }
 0x293   : > { %3578 = vst.msk [vmem:[%s5485_s8 + $0x320] sm:$0xff] %vm314_vm6, %v3449_v41 }
 0x294   : > { %v3182_v49 = vpop.xlane.xlu1 %3181  ;;  %3579 = vst.msk [vmem:[%s5485_s8 + $0x328] sm:$0xff] %vm314_vm6, %v3450_v38 }
 0x295   : > { %v3393_v45 = vmax.f32 %v3009_v32, %v3182_v49  ;;  %v3184_v14 = vpop.xlane.xlu0 %3183  ;;  %v3077_v49 = vld [vmem:[%s5485_s8 + $0x380] sm:$0xff] }
 0x296   : > { %v3394_v8 = vmax.f32 %v3010_v6, %v3184_v14  ;;  %v3078_v14 = vld [vmem:[%s5485_s8 + $0x388] sm:$0xff] }
 0x297   : > { %3522 = vst.msk [vmem:[%s5485_s8 + $0x160] sm:$0xff] %vm314_vm6, %v3393_v45 }
 0x298   : > { %v3298_v22 = vpop.xlane.xlu1 %3297  ;;  %3523 = vst.msk [vmem:[%s5485_s8 + $0x168] sm:$0xff] %vm314_vm6, %v3394_v8 }
 0x299   : > { %v3451_v56 = vmax.f32 %v3067_v51, %v3298_v22  ;;  %v3300_v11 = vpop.xlane.xlu0 %3299  ;;  %v3021_v22 = vld [vmem:[%s5485_s8 + $0x1c0] sm:$0xff] }
 0x29a   : > { %v3452_v58 = vmax.f32 %v3068_v13, %v3300_v11  ;;  %v3022_v11 = vld [vmem:[%s5485_s8 + $0x1c8] sm:$0xff] }
 0x29b   : > { %3580 = vst.msk [vmem:[%s5485_s8 + $0x330] sm:$0xff] %vm314_vm6, %v3451_v56 }
 0x29c   : > { %v3186_v59 = vpop.xlane.xlu1 %3185  ;;  %3581 = vst.msk [vmem:[%s5485_s8 + $0x338] sm:$0xff] %vm314_vm6, %v3452_v58 }
 0x29d   : > { %v3395_v42 = vmax.f32 %v3011_v54, %v3186_v59  ;;  %v3188_v34 = vpop.xlane.xlu0 %3187  ;;  %v3079_v59 = vld [vmem:[%s5485_s8 + $0x390] sm:$0xff] }
 0x29e   : > { %v3396_v55 = vmax.f32 %v3012_v52, %v3188_v34  ;;  %v3080_v34 = vld [vmem:[%s5485_s8 + $0x398] sm:$0xff] }
 0x29f   : > { %3524 = vst.msk [vmem:[%s5485_s8 + $0x170] sm:$0xff] %vm314_vm6, %v3395_v42 }
 0x2a0   : > { %v3302_v20 = vpop.xlane.xlu1 %3301  ;;  %3525 = vst.msk [vmem:[%s5485_s8 + $0x178] sm:$0xff] %vm314_vm6, %v3396_v55 }
 0x2a1   : > { %v3453_v7 = vmax.f32 %v3069_v10, %v3302_v20  ;;  %v3304_v33 = vpop.xlane.xlu0 %3303  ;;  %v3023_v20 = vld [vmem:[%s5485_s8 + $0x1d0] sm:$0xff] }
 0x2a2   : > { %v3454_v9 = vmax.f32 %v3070_v12, %v3304_v33  ;;  %v3024_v33 = vld [vmem:[%s5485_s8 + $0x1d8] sm:$0xff] }
 0x2a3   : > { %3582 = vst.msk [vmem:[%s5485_s8 + $0x340] sm:$0xff] %vm314_vm6, %v3453_v7 }
 0x2a4   : > { %v3190_v44 = vpop.xlane.xlu1 %3189  ;;  %3583 = vst.msk [vmem:[%s5485_s8 + $0x348] sm:$0xff] %vm314_vm6, %v3454_v9 }
 0x2a5   : > { %v3397_v39 = vmax.f32 %v3013_v62, %v3190_v44  ;;  %v3192_v3 = vpop.xlane.xlu0 %3191  ;;  %v3081_v44 = vld [vmem:[%s5485_s8 + $0x3a0] sm:$0xff] }
 0x2a6   : > { %v3398_v63 = vmax.f32 %v3014_v35, %v3192_v3  ;;  %v3082_v3 = vld [vmem:[%s5485_s8 + $0x3a8] sm:$0xff] }
 0x2a7   : > { %3526 = vst.msk [vmem:[%s5485_s8 + $0x180] sm:$0xff] %vm314_vm6, %v3397_v39 }
 0x2a8   : > { %v3306_v1 = vpop.xlane.xlu1 %3305  ;;  %3527 = vst.msk [vmem:[%s5485_s8 + $0x188] sm:$0xff] %vm314_vm6, %v3398_v63 }
 0x2a9   : > { %v3455_v4 = vmax.f32 %v3071_v26, %v3306_v1  ;;  %v3308_v29 = vpop.xlane.xlu0 %3307  ;;  %v3025_v1 = vld [vmem:[%s5485_s8 + $0x1e0] sm:$0xff] }
 0x2aa   : > { %v3456_v2 = vmax.f32 %v3072_v48, %v3308_v29  ;;  %v3026_v29 = vld [vmem:[%s5485_s8 + $0x1e8] sm:$0xff] }
 0x2ab   : > { %3584 = vst.msk [vmem:[%s5485_s8 + $0x350] sm:$0xff] %vm314_vm6, %v3455_v4 }
 0x2ac   : > { %v3194_v19 = vpop.xlane.xlu1 %3193  ;;  %3585 = vst.msk [vmem:[%s5485_s8 + $0x358] sm:$0xff] %vm314_vm6, %v3456_v2 }
 0x2ad   : > { %v3399_v27 = vmax.f32 %v3015_v21, %v3194_v19  ;;  %v3196_v50 = vpop.xlane.xlu0 %3195  ;;  %v3083_v19 = vld [vmem:[%s5485_s8 + $0x3b0] sm:$0xff] }
 0x2ae   : > { %v3400_v23 = vmax.f32 %v3016_v60, %v3196_v50  ;;  %v3084_v50 = vld [vmem:[%s5485_s8 + $0x3b8] sm:$0xff] }
 0x2af   : > { %3528 = vst.msk [vmem:[%s5485_s8 + $0x190] sm:$0xff] %vm314_vm6, %v3399_v27 }
 0x2b0   : > { %v3310_v28 = vpop.xlane.xlu1 %3309  ;;  %3529 = vst.msk [vmem:[%s5485_s8 + $0x198] sm:$0xff] %vm314_vm6, %v3400_v23 }
 0x2b1   : > { %v3457_v15 = vmax.f32 %v3073_v30, %v3310_v28  ;;  %v3312_v31 = vpop.xlane.xlu0 %3311  ;;  %v3027_v28 = vld [vmem:[%s5485_s8 + $0x1f0] sm:$0xff] }
 0x2b2   : > { %v3458_v24 = vmax.f32 %v3074_v57, %v3312_v31  ;;  %v3028_v31 = vld [vmem:[%s5485_s8 + $0x1f8] sm:$0xff] }
 0x2b3   : > { %3586 = vst.msk [vmem:[%s5485_s8 + $0x360] sm:$0xff] %vm314_vm6, %v3457_v15 }
 0x2b4   : > { %v3198_v18 = vpop.xlane.xlu1 %3197  ;;  %3587 = vst.msk [vmem:[%s5485_s8 + $0x368] sm:$0xff] %vm314_vm6, %v3458_v24 }
 0x2b5   : > { %v3401_v53 = vmax.f32 %v3017_v17, %v3198_v18  ;;  %v3200_v61 = vpop.xlane.xlu0 %3199  ;;  %v3085_v18 = vld [vmem:[%s5485_s8 + $0x3c0] sm:$0xff] }
 0x2b6   : > { %v3402_v36 = vmax.f32 %v3018_v16, %v3200_v61  ;;  %v3086_v61 = vld [vmem:[%s5485_s8 + $0x3c8] sm:$0xff] }
 0x2b7   : > { %3530 = vst.msk [vmem:[%s5485_s8 + $0x1a0] sm:$0xff] %vm314_vm6, %v3401_v53 }
 0x2b8   : > { %v3314_v40 = vpop.xlane.xlu1 %3313  ;;  %3531 = vst.msk [vmem:[%s5485_s8 + $0x1a8] sm:$0xff] %vm314_vm6, %v3402_v36 }
 0x2b9   : > { %v3459_v46 = vmax.f32 %v3075_v25, %v3314_v40  ;;  %v3316_v0 = vpop.xlane.xlu0 %3315  ;;  %v3087_v40 = vld [vmem:[%s5485_s8 + $0x3d0] sm:$0xff] }
 0x2ba   : > { %v3460_v37 = vmax.f32 %v3076_v5, %v3316_v0  ;;  %v3088_v0 = vld [vmem:[%s5485_s8 + $0x3d8] sm:$0xff] }
 0x2bb   : > { %3588 = vst.msk [vmem:[%s5485_s8 + $0x370] sm:$0xff] %vm314_vm6, %v3459_v46 }
 0x2bc   : > { %v3202_v41 = vpop.xlane.xlu1 %3201  ;;  %3589 = vst.msk [vmem:[%s5485_s8 + $0x378] sm:$0xff] %vm314_vm6, %v3460_v37 }
 0x2bd   : > { %v3403_v32 = vmax.f32 %v3019_v43, %v3202_v41  ;;  %v3204_v38 = vpop.xlane.xlu0 %3203  ;;  %v3089_v41 = vld [vmem:[%s5485_s8 + $0x3e0] sm:$0xff] }
 0x2be   : > { %v3404_v6 = vmax.f32 %v3020_v47, %v3204_v38  ;;  %v3090_v38 = vld [vmem:[%s5485_s8 + $0x3e8] sm:$0xff] }
 0x2bf   : > { %3532 = vst.msk [vmem:[%s5485_s8 + $0x1b0] sm:$0xff] %vm314_vm6, %v3403_v32 }
 0x2c0   : > { %v3318_v45 = vpop.xlane.xlu1 %3317  ;;  %3533 = vst.msk [vmem:[%s5485_s8 + $0x1b8] sm:$0xff] %vm314_vm6, %v3404_v6 }
 0x2c1   : > { %v3461_v51 = vmax.f32 %v3077_v49, %v3318_v45  ;;  %v3320_v8 = vpop.xlane.xlu0 %3319  ;;  %v3091_v45 = vld [vmem:[%s5485_s8 + $0x3f0] sm:$0xff] }
 0x2c2   : > { %v3462_v13 = vmax.f32 %v3078_v14, %v3320_v8  ;;  %v3092_v8 = vld [vmem:[%s5485_s8 + $0x3f8] sm:$0xff] }
 0x2c3   : > { %3590 = vst.msk [vmem:[%s5485_s8 + $0x380] sm:$0xff] %vm314_vm6, %v3461_v51 }
 0x2c4   : > { %v3206_v56 = vpop.xlane.xlu1 %3205  ;;  %3591 = vst.msk [vmem:[%s5485_s8 + $0x388] sm:$0xff] %vm314_vm6, %v3462_v13 }
 0x2c5   : > { %v3405_v54 = vmax.f32 %v3021_v22, %v3206_v56  ;;  %v3208_v58 = vpop.xlane.xlu0 %3207 }
 0x2c6   : > { %v3406_v52 = vmax.f32 %v3022_v11, %v3208_v58 }
 0x2c7   : > { %3534 = vst.msk [vmem:[%s5485_s8 + $0x1c0] sm:$0xff] %vm314_vm6, %v3405_v54 }
 0x2c8   : > { %v3322_v42 = vpop.xlane.xlu1 %3321  ;;  %3535 = vst.msk [vmem:[%s5485_s8 + $0x1c8] sm:$0xff] %vm314_vm6, %v3406_v52 }
 0x2c9   : > { %v3463_v10 = vmax.f32 %v3079_v59, %v3322_v42  ;;  %v3324_v55 = vpop.xlane.xlu0 %3323 }
 0x2ca   : > { %v3464_v12 = vmax.f32 %v3080_v34, %v3324_v55 }
 0x2cb   : > { %3592 = vst.msk [vmem:[%s5485_s8 + $0x390] sm:$0xff] %vm314_vm6, %v3463_v10 }
 0x2cc   : > { %v3210_v7 = vpop.xlane.xlu1 %3209  ;;  %3593 = vst.msk [vmem:[%s5485_s8 + $0x398] sm:$0xff] %vm314_vm6, %v3464_v12 }
 0x2cd   : > { %v3407_v62 = vmax.f32 %v3023_v20, %v3210_v7  ;;  %v3212_v9 = vpop.xlane.xlu0 %3211 }
 0x2ce   : > { %v3408_v35 = vmax.f32 %v3024_v33, %v3212_v9 }
 0x2cf   : > { %3536 = vst.msk [vmem:[%s5485_s8 + $0x1d0] sm:$0xff] %vm314_vm6, %v3407_v62 }
 0x2d0   : > { %v3326_v39 = vpop.xlane.xlu1 %3325  ;;  %3537 = vst.msk [vmem:[%s5485_s8 + $0x1d8] sm:$0xff] %vm314_vm6, %v3408_v35 }
 0x2d1   : > { %v3465_v26 = vmax.f32 %v3081_v44, %v3326_v39  ;;  %v3328_v63 = vpop.xlane.xlu0 %3327 }
 0x2d2   : > { %v3466_v48 = vmax.f32 %v3082_v3, %v3328_v63 }
 0x2d3   : > { %3594 = vst.msk [vmem:[%s5485_s8 + $0x3a0] sm:$0xff] %vm314_vm6, %v3465_v26 }
 0x2d4   : > { %v3214_v4 = vpop.xlane.xlu1 %3213  ;;  %3595 = vst.msk [vmem:[%s5485_s8 + $0x3a8] sm:$0xff] %vm314_vm6, %v3466_v48 }
 0x2d5   : > { %v3409_v21 = vmax.f32 %v3025_v1, %v3214_v4  ;;  %v3216_v2 = vpop.xlane.xlu0 %3215 }
 0x2d6   : > { %v3410_v60 = vmax.f32 %v3026_v29, %v3216_v2 }
 0x2d7   : > { %3538 = vst.msk [vmem:[%s5485_s8 + $0x1e0] sm:$0xff] %vm314_vm6, %v3409_v21 }
 0x2d8   : > { %v3330_v27 = vpop.xlane.xlu1 %3329  ;;  %3539 = vst.msk [vmem:[%s5485_s8 + $0x1e8] sm:$0xff] %vm314_vm6, %v3410_v60 }
 0x2d9   : > { %v3467_v30 = vmax.f32 %v3083_v19, %v3330_v27  ;;  %v3332_v23 = vpop.xlane.xlu0 %3331 }
 0x2da   : > { %v3468_v57 = vmax.f32 %v3084_v50, %v3332_v23 }
 0x2db   : > { %3596 = vst.msk [vmem:[%s5485_s8 + $0x3b0] sm:$0xff] %vm314_vm6, %v3467_v30 }
 0x2dc   : > { %v3218_v15 = vpop.xlane.xlu1 %3217  ;;  %3597 = vst.msk [vmem:[%s5485_s8 + $0x3b8] sm:$0xff] %vm314_vm6, %v3468_v57 }
 0x2dd   : > { %v3411_v17 = vmax.f32 %v3027_v28, %v3218_v15  ;;  %v3220_v24 = vpop.xlane.xlu0 %3219 }
 0x2de   : > { %v3412_v16 = vmax.f32 %v3028_v31, %v3220_v24 }
 0x2df   : > { %3540 = vst.msk [vmem:[%s5485_s8 + $0x1f0] sm:$0xff] %vm314_vm6, %v3411_v17 }
 0x2e0   : > { %v3334_v53 = vpop.xlane.xlu1 %3333  ;;  %3541 = vst.msk [vmem:[%s5485_s8 + $0x1f8] sm:$0xff] %vm314_vm6, %v3412_v16 }
 0x2e1   : > { %v3469_v25 = vmax.f32 %v3085_v18, %v3334_v53  ;;  %v3336_v36 = vpop.xlane.xlu0 %3335 }
 0x2e2   : > { %v3470_v5 = vmax.f32 %v3086_v61, %v3336_v36 }
 0x2e3   : > { %3598 = vst.msk [vmem:[%s5485_s8 + $0x3c0] sm:$0xff] %vm314_vm6, %v3469_v25 }
 0x2e4   : > { %v3338_v46 = vpop.xlane.xlu1 %3337  ;;  %3599 = vst.msk [vmem:[%s5485_s8 + $0x3c8] sm:$0xff] %vm314_vm6, %v3470_v5 }
 0x2e5   : > { %v3471_v43 = vmax.f32 %v3087_v40, %v3338_v46  ;;  %v3340_v37 = vpop.xlane.xlu0 %3339 }
 0x2e6   : > { %v3472_v47 = vmax.f32 %v3088_v0, %v3340_v37 }
 0x2e7   : > { %3600 = vst.msk [vmem:[%s5485_s8 + $0x3d0] sm:$0xff] %vm314_vm6, %v3471_v43 }
 0x2e8   : > { %v3342_v32 = vpop.xlane.xlu1 %3341  ;;  %3601 = vst.msk [vmem:[%s5485_s8 + $0x3d8] sm:$0xff] %vm314_vm6, %v3472_v47 }
 0x2e9   : > { %v3473_v49 = vmax.f32 %v3089_v41, %v3342_v32  ;;  %v3344_v6 = vpop.xlane.xlu0 %3343 }
 0x2ea   : > { %v3474_v14 = vmax.f32 %v3090_v38, %v3344_v6 }
 0x2eb   : > { %3602 = vst.msk [vmem:[%s5485_s8 + $0x3e0] sm:$0xff] %vm314_vm6, %v3473_v49 }
 0x2ec   : > { %v3346_v51 = vpop.xlane.xlu1 %3345  ;;  %3603 = vst.msk [vmem:[%s5485_s8 + $0x3e8] sm:$0xff] %vm314_vm6, %v3474_v14 }
 0x2ed   : > { %v3475_v22 = vmax.f32 %v3091_v45, %v3346_v51  ;;  %v3348_v13 = vpop.xlane.xlu0 %3347 }
 0x2ee   : > { %v3476_v56 = vmax.f32 %v3092_v8, %v3348_v13 }
 0x2ef   : > { %3604 = vst.msk [vmem:[%s5485_s8 + $0x3f0] sm:$0xff] %vm314_vm6, %v3475_v22 }
 0x2f0   : > { %3605 = vst.msk [vmem:[%s5485_s8 + $0x3f8] sm:$0xff] %vm314_vm6, %v3476_v56 }
 0x2f1 PF: > { %s15_s20 = sadd.s32 1, %s3969_s20   ;;  %s6854_s18 = smov %s3965_s19 }
 0x2f2   : > { %p12_p5 = scmp.ge.s32.totalorder %s15_s20, 4   ;;  %s6855_s19 = smov %s6857_s21 }
 0x2f4   :  { %14 = sbr.rel (!%p12_p5) target bundleno = 2 (0x2), region = 80 }

// kernel: _lambda_.22
= control target key start
LH: loop header
LB: loop body
LE: loop exit
PB: predicated region body
PF: predicated region fallthrough
CT: control target
= control target key end

     0   :  { %s3265_s27 = smov 0   ;;  %s3267_s28 = smov 0   ;;  %s4501_s0 = inlined_call_operand.vmem [shape: f32[2,64,128], index: 0, kind: input, shape index: {}]   ;;  %s4502_s1 = inlined_call_operand.vmem [shape: f32[2,64,128], index: 1, kind: input, shape index: {}]   ;;  %s4503_s2 = inlined_call_operand.vmem [shape: f32[2,64,128], index: 2, kind: input, shape index: {}]   ;;  %s4504_s3 = inlined_call_operand.vmem [shape: f32[2,512,1], index: 3, kind: input, shape index: {}]   ;;  %s4505_s4 = inlined_call_operand.vmem [shape: f32[512,192], index: 4, kind: input, shape index: {}]   ;;  %s4506_s5 = inlined_call_operand.vmem [shape: f32[256,512], index: 5, kind: input, shape index: {}]   ;;  %s4507_s6 = inlined_call_operand.vmem [shape: f32[256,1], index: 6, kind: input, shape index: {}]   ;;  %s4508_s7 = inlined_call_operand.vmem [shape: f32[8,256], index: 7, kind: input, shape index: {}]   ;;  %s4509_s8 = inlined_call_operand.vmem [shape: f32[2,8,128], index: 8, kind: output, shape index: {}]  }
   0x1   :  { %s3269_s29 = smov 0  }
   0x2 LB: > { %s30_s30 = sadd.s32 1, %s3212_s28  ;;  %p2791_p0 = scmp.ge.s32.totalorder %s3216_s29, 1  ;;  %s3216_s29 = sphi %s3269_s29, %s18_s29   ;;  %s3212_s28 = sphi %s3267_s28, %s4511_s28   ;;  %s3208_s27 = sphi %s3265_s27, %s4510_s27  }
   0x3   : > { %p32_p1 = scmp.ge.s32.totalorder %s30_s30, 2  ;;  %p321_p2 = scmp.lt.s32.totalorder %s3216_s29, 3 }
   0x5   : > { %s4513_s30 = smov (%p32_p1, %s30_s30), 0  ;;  %p322_p3 = pnand %p2791_p0, %p321_p2 }
   0x6   : > { %p381_p4 = scmp.lt.s32.totalorder (!%p322_p3), %s3208_s27, 1  ;;  %v442_v0 = vld [vmem:[%s4505_s4 + $0x8] sm:$0xff] (!%p322_p3)  ;;  %vm953_vm0 = vcmask (!%p322_p3), 523264   ;;  %v3218_v1 = vmov (!%p322_p3), 0.0|0.0   ;;  %v3219_v2 = vmov (!%p322_p3), 0  }
   0x7   : > { %325 = sbr.rel (%p322_p3) target bundleno = 1104 (0x450), region = 52  ;;  %2906 = vmatprep.subr.bf16.mxu0 (!%p322_p3), %v3218_v1  ;;  %3192 = vset.pattern.permute.xlu0 (!%p322_p3), %v3219_v2 }
   0x8   : > { %3193 = vset.pattern.permute.xlu1 (!%p322_p3), %v3219_v2  ;;  %2801 = vmatprep.mubr.msk.f32.mxu0 (!%p322_p3), %vm953_vm0, %v442_v0  ;;  %v441_v0 = vld [vmem:[%s4505_s4] sm:$0xff] (!%p322_p3) }
   0x9   : > { %2942 = vmatprep.subr.bf16.mxu1 (!%p322_p3), %v3218_v1 }
   0xe   : > { %s4515_s27 = smov (!%p381_p4, %s3208_s27), 1 }
   0xf   : > { %s3292_s11 = sshll.u32 %s4515_s27, 6  ;;  %s2870_s12 = sshll.u32 %s4515_s27, 9 }
  0x10   : > { %s388_s15 = scalar_lea.vmem %s4501_s0, %s3292_s11  ;;  %s3302_s18 = scalar_lea.vmem %s4504_s3, %s2870_s12 }
  0x11   : > { %v417_v3 = vld [vmem:[%s388_s15] sm:$0xff]  ;;  %v418_v4 = vld [vmem:[%s388_s15 + $0x8] sm:$0xff]  ;;  %v419_v7 = vld [vmem:[%s388_s15 + $0x10] sm:$0xff]  ;;  %s3316_s21 = scalar_lea.vmem %s4502_s1, %s3292_s11  ;;  %s3342_s24 = scalar_lea.vmem %s4503_s2, %s3292_s11 }
  0x12   : > { %v569_v5 = vld [vmem:[%s3302_s18] sm:$0xff]  ;;  %v2907_v6 = vpack.c.bf16 %v418_v4, %v417_v3  ;;  %v420_v8 = vld [vmem:[%s388_s15 + $0x18] sm:$0xff]  ;;  %v571_v9 = vld [vmem:[%s3302_s18 + $0x10] sm:$0xff]  ;;  %s2800_s13 = sshll.u32 %s4515_s27, 3 }
  0x13   : > { %635 = vperm.xlu0 %3192, %v569_v5   ;;  %645 = vperm.xlu1 %3193, %v571_v9   ;;  %v570_v10 = vld [vmem:[%s3302_s18 + $0x8] sm:$0xff]  ;;  %v2910_v11 = vpack.c.bf16 %v420_v8, %v419_v7  ;;  %v572_v12 = vld [vmem:[%s3302_s18 + $0x18] sm:$0xff]  ;;  %v421_v13 = vld [vmem:[%s388_s15 + $0x20] sm:$0xff]  ;;  %s416_s16 = scalar_lea.vmem %s4509_s8, %s2800_s13 }
  0x14   : > { %2908 = vmatpush1.bf16.msra.mxu0 %v2907_v6  ;;  %v422_v14 = vld [vmem:[%s388_s15 + $0x28] sm:$0xff]  ;;  %v573_v15 = vld [vmem:[%s3302_s18 + $0x20] sm:$0xff]  ;;  %v423_v18 = vld [vmem:[%s388_s15 + $0x30] sm:$0xff] }
  0x15   : > { %2909 = vmatprep.subr.bf16.mxu0 %v3218_v1  ;;  %v2913_v16 = vpack.c.bf16 %v422_v14, %v421_v13  ;;  %v574_v17 = vld [vmem:[%s3302_s18 + $0x28] sm:$0xff]  ;;  %v424_v19 = vld [vmem:[%s388_s15 + $0x38] sm:$0xff]  ;;  %v575_v20 = vld [vmem:[%s3302_s18 + $0x30] sm:$0xff] }
  0x16   : > { %v2916_v21 = vpack.c.bf16 %v424_v19, %v423_v18  ;;  %v576_v22 = vld [vmem:[%s3302_s18 + $0x38] sm:$0xff]  ;;  %v425_v23 = vld [vmem:[%s3316_s21] sm:$0xff]  ;;  %v426_v24 = vld [vmem:[%s3316_s21 + $0x8] sm:$0xff] }
  0x17   : > { %640 = vperm.xlu0 %3192, %v570_v10   ;;  %650 = vperm.xlu1 %3193, %v572_v12   ;;  %v577_v25 = vld [vmem:[%s3302_s18 + $0x40] sm:$0xff]  ;;  %v2919_v26 = vpack.c.bf16 %v426_v24, %v425_v23  ;;  %v578_v27 = vld [vmem:[%s3302_s18 + $0x48] sm:$0xff]  ;;  %v427_v28 = vld [vmem:[%s3316_s21 + $0x10] sm:$0xff] }
  0x18   : > { %2911 = vmatpush1.bf16.msra.mxu0 %v2910_v11  ;;  %v428_v29 = vld [vmem:[%s3316_s21 + $0x18] sm:$0xff]  ;;  %v579_v30 = vld [vmem:[%s3302_s18 + $0x50] sm:$0xff]  ;;  %v429_v33 = vld [vmem:[%s3316_s21 + $0x20] sm:$0xff] }
  0x19   : > { %2912 = vmatprep.subr.bf16.mxu0 %v3218_v1  ;;  %v2922_v31 = vpack.c.bf16 %v428_v29, %v427_v28  ;;  %v580_v32 = vld [vmem:[%s3302_s18 + $0x58] sm:$0xff]  ;;  %v430_v34 = vld [vmem:[%s3316_s21 + $0x28] sm:$0xff]  ;;  %v581_v35 = vld [vmem:[%s3302_s18 + $0x60] sm:$0xff] }
  0x1a   : > { %v2925_v36 = vpack.c.bf16 %v430_v34, %v429_v33  ;;  %v582_v37 = vld [vmem:[%s3302_s18 + $0x68] sm:$0xff]  ;;  %v431_v38 = vld [vmem:[%s3316_s21 + $0x30] sm:$0xff]  ;;  %v432_v39 = vld [vmem:[%s3316_s21 + $0x38] sm:$0xff] }
  0x1b   : > { %655 = vperm.xlu0 %3192, %v573_v15   ;;  %660 = vperm.xlu1 %3193, %v574_v17   ;;  %v583_v40 = vld [vmem:[%s3302_s18 + $0x70] sm:$0xff]  ;;  %v2928_v41 = vpack.c.bf16 %v432_v39, %v431_v38  ;;  %v584_v42 = vld [vmem:[%s3302_s18 + $0x78] sm:$0xff]  ;;  %v433_v43 = vld [vmem:[%s3342_s24] sm:$0xff] }
  0x1c   : > { %2914 = vmatpush1.bf16.msra.mxu0 %v2913_v16  ;;  %v434_v44 = vld [vmem:[%s3342_s24 + $0x8] sm:$0xff]  ;;  %v585_v45 = vld [vmem:[%s3302_s18 + $0x80] sm:$0xff]  ;;  %v435_v48 = vld [vmem:[%s3342_s24 + $0x10] sm:$0xff] }
  0x1d   : > { %2915 = vmatprep.subr.bf16.mxu0 %v3218_v1  ;;  %v2931_v46 = vpack.c.bf16 %v434_v44, %v433_v43  ;;  %v586_v47 = vld [vmem:[%s3302_s18 + $0x88] sm:$0xff]  ;;  %v436_v49 = vld [vmem:[%s3342_s24 + $0x18] sm:$0xff]  ;;  %v587_v50 = vld [vmem:[%s3302_s18 + $0x90] sm:$0xff] }
  0x1e   : > { %v2934_v51 = vpack.c.bf16 %v436_v49, %v435_v48  ;;  %v588_v52 = vld [vmem:[%s3302_s18 + $0x98] sm:$0xff]  ;;  %v437_v53 = vld [vmem:[%s3342_s24 + $0x20] sm:$0xff]  ;;  %v438_v54 = vld [vmem:[%s3342_s24 + $0x28] sm:$0xff] }
  0x1f   : > { %665 = vperm.xlu0 %3192, %v575_v20   ;;  %670 = vperm.xlu1 %3193, %v576_v22   ;;  %v589_v55 = vld [vmem:[%s3302_s18 + $0xa0] sm:$0xff]  ;;  %v2937_v56 = vpack.c.bf16 %v438_v54, %v437_v53  ;;  %v590_v57 = vld [vmem:[%s3302_s18 + $0xa8] sm:$0xff]  ;;  %v439_v58 = vld [vmem:[%s3342_s24 + $0x30] sm:$0xff] }
  0x20   : > { %2917 = vmatpush1.bf16.msra.mxu0 %v2916_v21  ;;  %v440_v59 = vld [vmem:[%s3342_s24 + $0x38] sm:$0xff]  ;;  %v591_v60 = vld [vmem:[%s3302_s18 + $0xb0] sm:$0xff]  ;;  %v593_v63 = vld [vmem:[%s3302_s18 + $0xc0] sm:$0xff] }
  0x21   : > { %2918 = vmatprep.subr.bf16.mxu0 %v3218_v1  ;;  %v2940_v61 = vpack.c.bf16 %v440_v59, %v439_v58  ;;  %v592_v62 = vld [vmem:[%s3302_s18 + $0xb8] sm:$0xff]  ;;  %v594_v2 = vld [vmem:[%s3302_s18 + $0xc8] sm:$0xff]  ;;  %v595_v4 = vld [vmem:[%s3302_s18 + $0xd0] sm:$0xff] }
  0x22   : > { %v444_v3 = vld [vmem:[%s4505_s4 + $0x18] sm:$0xff]  ;;  %v443_v5 = vld [vmem:[%s4505_s4 + $0x10] sm:$0xff]  ;;  %v446_v7 = vld [vmem:[%s4505_s4 + $0x28] sm:$0xff] }
  0x23   : > { %675 = vperm.xlu0 %3192, %v577_v25   ;;  %680 = vperm.xlu1 %3193, %v578_v27   ;;  %v596_v6 = vld [vmem:[%s3302_s18 + $0xd8] sm:$0xff]  ;;  %v597_v8 = vld [vmem:[%s3302_s18 + $0xe0] sm:$0xff]  ;;  %v598_v10 = vld [vmem:[%s3302_s18 + $0xe8] sm:$0xff] }
  0x24   : > { %2920 = vmatpush1.bf16.msra.mxu0 %v2919_v26  ;;  %v445_v9 = vld [vmem:[%s4505_s4 + $0x20] sm:$0xff]  ;;  %v448_v11 = vld [vmem:[%s4505_s4 + $0x38] sm:$0xff]  ;;  %v599_v12 = vld [vmem:[%s3302_s18 + $0xf0] sm:$0xff] }
  0x25   : > { %2921 = vmatprep.subr.bf16.mxu0 %v3218_v1  ;;  %v447_v13 = vld [vmem:[%s4505_s4 + $0x30] sm:$0xff]  ;;  %v600_v14 = vld [vmem:[%s3302_s18 + $0xf8] sm:$0xff]  ;;  %v450_v15 = vld [vmem:[%s4505_s4 + $0x48] sm:$0xff] }
  0x26   : > { %v601_v16 = vld [vmem:[%s3302_s18 + $0x100] sm:$0xff]  ;;  %v602_v18 = vld [vmem:[%s3302_s18 + $0x108] sm:$0xff]  ;;  %v452_v19 = vld [vmem:[%s4505_s4 + $0x58] sm:$0xff] }
  0x27   : > { %685 = vperm.xlu0 %3192, %v579_v30   ;;  %690 = vperm.xlu1 %3193, %v580_v32   ;;  %v449_v17 = vld [vmem:[%s4505_s4 + $0x40] sm:$0xff]  ;;  %v603_v20 = vld [vmem:[%s3302_s18 + $0x110] sm:$0xff]  ;;  %v604_v22 = vld [vmem:[%s3302_s18 + $0x118] sm:$0xff] }
  0x28   : > { %2923 = vmatpush1.bf16.msra.mxu0 %v2922_v31  ;;  %v451_v21 = vld [vmem:[%s4505_s4 + $0x50] sm:$0xff]  ;;  %v454_v23 = vld [vmem:[%s4505_s4 + $0x68] sm:$0xff]  ;;  %v605_v24 = vld [vmem:[%s3302_s18 + $0x120] sm:$0xff] }
  0x29   : > { %2924 = vmatprep.subr.bf16.mxu0 %v3218_v1  ;;  %v453_v25 = vld [vmem:[%s4505_s4 + $0x60] sm:$0xff]  ;;  %v606_v26 = vld [vmem:[%s3302_s18 + $0x128] sm:$0xff]  ;;  %v456_v27 = vld [vmem:[%s4505_s4 + $0x78] sm:$0xff] }
  0x2a   : > { %v607_v28 = vld [vmem:[%s3302_s18 + $0x130] sm:$0xff]  ;;  %v608_v30 = vld [vmem:[%s3302_s18 + $0x138] sm:$0xff]  ;;  %v458_v31 = vld [vmem:[%s4505_s4 + $0x88] sm:$0xff] }
  0x2b   : > { %695 = vperm.xlu0 %3192, %v581_v35   ;;  %700 = vperm.xlu1 %3193, %v582_v37   ;;  %v455_v29 = vld [vmem:[%s4505_s4 + $0x70] sm:$0xff]  ;;  %v609_v32 = vld [vmem:[%s3302_s18 + $0x140] sm:$0xff]  ;;  %v610_v34 = vld [vmem:[%s3302_s18 + $0x148] sm:$0xff] }
  0x2c   : > { %2926 = vmatpush1.bf16.msra.mxu0 %v2925_v36  ;;  %v457_v33 = vld [vmem:[%s4505_s4 + $0x80] sm:$0xff]  ;;  %v460_v35 = vld [vmem:[%s4505_s4 + $0x98] sm:$0xff]  ;;  %v611_v36 = vld [vmem:[%s3302_s18 + $0x150] sm:$0xff] }
  0x2d   : > { %2927 = vmatprep.subr.bf16.mxu0 %v3218_v1  ;;  %v459_v37 = vld [vmem:[%s4505_s4 + $0x90] sm:$0xff]  ;;  %v612_v38 = vld [vmem:[%s3302_s18 + $0x158] sm:$0xff]  ;;  %v462_v39 = vld [vmem:[%s4505_s4 + $0xa8] sm:$0xff] }
  0x2e   : > { %v464_v43 = vld [vmem:[%s4505_s4 + $0xb8] sm:$0xff]  ;;  %v615_v44 = vld [vmem:[%s3302_s18 + $0x170] sm:$0xff]  ;;  %v617_v48 = vld [vmem:[%s3302_s18 + $0x180] sm:$0xff] }
  0x2f   : > { %705 = vperm.xlu0 %3192, %v583_v40   ;;  %710 = vperm.xlu1 %3193, %v584_v42   ;;  %v613_v40 = vld [vmem:[%s3302_s18 + $0x160] sm:$0xff]  ;;  %v614_v42 = vld [vmem:[%s3302_s18 + $0x168] sm:$0xff]  ;;  %v467_v53 = vld [vmem:[%s4505_s4 + $0xd0] sm:$0xff] }
  0x30   : > { %2929 = vmatpush1.bf16.msra.mxu0 %v2928_v41  ;;  %v461_v41 = vld [vmem:[%s4505_s4 + $0xa0] sm:$0xff]  ;;  %v620_v54 = vld [vmem:[%s3302_s18 + $0x198] sm:$0xff]  ;;  %v622_v58 = vld [vmem:[%s3302_s18 + $0x1a8] sm:$0xff] }
  0x31   : > { %2930 = vmatprep.subr.bf16.mxu0 %v3218_v1  ;;  %v465_v49 = vld [vmem:[%s4505_s4 + $0xc0] sm:$0xff]  ;;  %v472_v59 = vld [vmem:[%s4505_s4 + $0xf8] sm:$0xff] }
  0x33   : > { %715 = vperm.xlu0 %3192, %v585_v45   ;;  %720 = vperm.xlu1 %3193, %v586_v47   ;;  %v463_v45 = vld [vmem:[%s4505_s4 + $0xb0] sm:$0xff]  ;;  %v466_v47 = vld [vmem:[%s4505_s4 + $0xc8] sm:$0xff] }
  0x34   : > { %2932 = vmatpush1.bf16.msra.mxu0 %v2931_v46  ;;  %v616_v46 = vld [vmem:[%s3302_s18 + $0x178] sm:$0xff] }
  0x35   : > { %2933 = vmatprep.subr.bf16.mxu0 %v3218_v1 }
  0x37   : > { %725 = vperm.xlu0 %3192, %v587_v50   ;;  %730 = vperm.xlu1 %3193, %v588_v52   ;;  %v618_v50 = vld [vmem:[%s3302_s18 + $0x188] sm:$0xff]  ;;  %v619_v52 = vld [vmem:[%s3302_s18 + $0x190] sm:$0xff] }
  0x38   : > { %2935 = vmatpush1.bf16.msra.mxu0 %v2934_v51  ;;  %v468_v51 = vld [vmem:[%s4505_s4 + $0xd8] sm:$0xff] }
  0x39   : > { %2936 = vmatprep.subr.bf16.mxu0 %v3218_v1 }
  0x3b   : > { %735 = vperm.xlu0 %3192, %v589_v55   ;;  %740 = vperm.xlu1 %3193, %v590_v57   ;;  %v470_v55 = vld [vmem:[%s4505_s4 + $0xe8] sm:$0xff]  ;;  %v469_v57 = vld [vmem:[%s4505_s4 + $0xe0] sm:$0xff] }
  0x3c   : > { %2938 = vmatpush1.bf16.msra.mxu0 %v2937_v56  ;;  %v621_v56 = vld [vmem:[%s3302_s18 + $0x1a0] sm:$0xff] }
  0x3d   : > { %2939 = vmatprep.subr.bf16.mxu0 %v3218_v1 }
  0x3f   : > { %745 = vperm.xlu0 %3192, %v591_v60   ;;  %750 = vperm.xlu1 %3193, %v592_v62   ;;  %v623_v60 = vld [vmem:[%s3302_s18 + $0x1b0] sm:$0xff]  ;;  %v624_v62 = vld [vmem:[%s3302_s18 + $0x1b8] sm:$0xff] }
  0x40   : > { %2941 = vmatpush1.bf16.msra.mxu0 %v2940_v61  ;;  %v471_v61 = vld [vmem:[%s4505_s4 + $0xf0] sm:$0xff] }
  0x43   : > { %755 = vperm.xlu0 %3192, %v593_v63   ;;  %1211 = vmatmul.mubr.f32.vlgmr.msra.gmra.mrb[0].mxu0 %v441_v0  ;;  %v474_v63 = vld [vmem:[%s4505_s4 + $0x108] sm:$0xff]  ;;  %v625_v0 = vld [vmem:[%s3302_s18 + $0x1c0] sm:$0xff] }
  0x44   : > { %760 = vperm.xlu1 %3193, %v594_v2   ;;  %2802 = vmatprep.mubr.msk.f32.mxu0 %vm953_vm0, %v444_v3  ;;  %v473_v2 = vld [vmem:[%s4505_s4 + $0x100] sm:$0xff]  ;;  %v626_v3 = vld [vmem:[%s3302_s18 + $0x1c8] sm:$0xff] }
  0x47   : > { %765 = vperm.xlu0 %3192, %v595_v4   ;;  %1216 = vmatmul.mubr.f32.gmra.mrb[2].mxu0 %v443_v5  ;;  %v476_v4 = vld [vmem:[%s4505_s4 + $0x118] sm:$0xff]  ;;  %v627_v5 = vld [vmem:[%s3302_s18 + $0x1d0] sm:$0xff] }
  0x48   : > { %770 = vperm.xlu1 %3193, %v596_v6   ;;  %2803 = vmatprep.mubr.msk.f32.mxu0 %vm953_vm0, %v446_v7  ;;  %v475_v6 = vld [vmem:[%s4505_s4 + $0x110] sm:$0xff]  ;;  %v628_v7 = vld [vmem:[%s3302_s18 + $0x1d8] sm:$0xff] }
  0x4b   : > { %775 = vperm.xlu0 %3192, %v597_v8   ;;  %1221 = vmatmul.mubr.f32.gmra.mrb[4].mxu0 %v445_v9  ;;  %v478_v8 = vld [vmem:[%s4505_s4 + $0x128] sm:$0xff]  ;;  %v629_v9 = vld [vmem:[%s3302_s18 + $0x1e0] sm:$0xff] }
  0x4c   : > { %780 = vperm.xlu1 %3193, %v598_v10   ;;  %2804 = vmatprep.mubr.msk.f32.mxu0 %vm953_vm0, %v448_v11  ;;  %v477_v10 = vld [vmem:[%s4505_s4 + $0x120] sm:$0xff]  ;;  %v630_v11 = vld [vmem:[%s3302_s18 + $0x1e8] sm:$0xff] }
  0x4f   : > { %785 = vperm.xlu0 %3192, %v599_v12   ;;  %1226 = vmatmul.mubr.f32.gmra.mrb[6].mxu0 %v447_v13  ;;  %v480_v12 = vld [vmem:[%s4505_s4 + $0x138] sm:$0xff]  ;;  %v631_v13 = vld [vmem:[%s3302_s18 + $0x1f0] sm:$0xff] }
  0x50   : > { %790 = vperm.xlu1 %3193, %v600_v14   ;;  %2805 = vmatprep.mubr.msk.f32.mxu0 %vm953_vm0, %v450_v15  ;;  %v479_v14 = vld [vmem:[%s4505_s4 + $0x130] sm:$0xff]  ;;  %v632_v15 = vld [vmem:[%s3302_s18 + $0x1f8] sm:$0xff] }
  0x53   : > { %795 = vperm.xlu0 %3192, %v601_v16   ;;  %1231 = vmatmul.mubr.f32.gmra.mrb[8].mxu0 %v449_v17  ;;  %v482_v16 = vld [vmem:[%s4505_s4 + $0x148] sm:$0xff]  ;;  %v1867_v17 = vld [vmem:[%s4507_s6 + $0x80] sm:$0xff] }
  0x54   : > { %800 = vperm.xlu1 %3193, %v602_v18   ;;  %2806 = vmatprep.mubr.msk.f32.mxu0 %vm953_vm0, %v452_v19  ;;  %v481_v18 = vld [vmem:[%s4505_s4 + $0x140] sm:$0xff]  ;;  %v1868_v19 = vld [vmem:[%s4507_s6 + $0x88] sm:$0xff] }
  0x57   : > { %805 = vperm.xlu0 %3192, %v603_v20   ;;  %1236 = vmatmul.mubr.f32.gmra.mrb[10].mxu0 %v451_v21  ;;  %v484_v20 = vld [vmem:[%s4505_s4 + $0x158] sm:$0xff]  ;;  %v1851_v21 = vld [vmem:[%s4507_s6] sm:$0xff] }
  0x58   : > { %810 = vperm.xlu1 %3193, %v604_v22   ;;  %2807 = vmatprep.mubr.msk.f32.mxu0 %vm953_vm0, %v454_v23  ;;  %v483_v22 = vld [vmem:[%s4505_s4 + $0x150] sm:$0xff]  ;;  %v1852_v23 = vld [vmem:[%s4507_s6 + $0x8] sm:$0xff] }
  0x5b   : > { %815 = vperm.xlu0 %3192, %v605_v24   ;;  %1241 = vmatmul.mubr.f32.gmra.mrb[12].mxu0 %v453_v25  ;;  %v486_v24 = vld [vmem:[%s4505_s4 + $0x168] sm:$0xff]  ;;  %v1869_v25 = vld [vmem:[%s4507_s6 + $0x90] sm:$0xff] }
  0x5c   : > { %820 = vperm.xlu1 %3193, %v606_v26   ;;  %2808 = vmatprep.mubr.msk.f32.mxu0 %vm953_vm0, %v456_v27  ;;  %v485_v26 = vld [vmem:[%s4505_s4 + $0x160] sm:$0xff]  ;;  %v1870_v27 = vld [vmem:[%s4507_s6 + $0x98] sm:$0xff] }
  0x5f   : > { %825 = vperm.xlu0 %3192, %v607_v28   ;;  %1246 = vmatmul.mubr.f32.gmra.mrb[14].mxu0 %v455_v29  ;;  %v488_v28 = vld [vmem:[%s4505_s4 + $0x178] sm:$0xff]  ;;  %v1853_v29 = vld [vmem:[%s4507_s6 + $0x10] sm:$0xff] }
  0x60   : > { %830 = vperm.xlu1 %3193, %v608_v30   ;;  %2809 = vmatprep.mubr.msk.f32.mxu0 %vm953_vm0, %v458_v31  ;;  %v487_v30 = vld [vmem:[%s4505_s4 + $0x170] sm:$0xff]  ;;  %v1854_v31 = vld [vmem:[%s4507_s6 + $0x18] sm:$0xff] }
  0x63   : > { %835 = vperm.xlu0 %3192, %v609_v32   ;;  %1251 = vmatmul.mubr.f32.gmra.mrb[16].mxu0 %v457_v33  ;;  %v490_v32 = vld [vmem:[%s4505_s4 + $0x188] sm:$0xff]  ;;  %v1871_v33 = vld [vmem:[%s4507_s6 + $0xa0] sm:$0xff] }
  0x64   : > { %840 = vperm.xlu1 %3193, %v610_v34   ;;  %2810 = vmatprep.mubr.msk.f32.mxu0 %vm953_vm0, %v460_v35  ;;  %v489_v34 = vld [vmem:[%s4505_s4 + $0x180] sm:$0xff]  ;;  %v1872_v35 = vld [vmem:[%s4507_s6 + $0xa8] sm:$0xff] }
  0x67   : > { %845 = vperm.xlu0 %3192, %v611_v36   ;;  %1256 = vmatmul.mubr.f32.gmra.mrb[18].mxu0 %v459_v37  ;;  %v492_v36 = vld [vmem:[%s4505_s4 + $0x198] sm:$0xff]  ;;  %v1855_v37 = vld [vmem:[%s4507_s6 + $0x20] sm:$0xff] }
  0x68   : > { %850 = vperm.xlu1 %3193, %v612_v38   ;;  %2811 = vmatprep.mubr.msk.f32.mxu0 %vm953_vm0, %v462_v39  ;;  %v491_v38 = vld [vmem:[%s4505_s4 + $0x190] sm:$0xff]  ;;  %v1856_v39 = vld [vmem:[%s4507_s6 + $0x28] sm:$0xff] }
  0x6b   : > { %855 = vperm.xlu0 %3192, %v613_v40   ;;  %1261 = vmatmul.mubr.f32.gmra.mrb[20].mxu0 %v461_v41  ;;  %v494_v40 = vld [vmem:[%s4505_s4 + $0x1a8] sm:$0xff]  ;;  %v1873_v41 = vld [vmem:[%s4507_s6 + $0xb0] sm:$0xff] }
  0x6c   : > { %860 = vperm.xlu1 %3193, %v614_v42   ;;  %2812 = vmatprep.mubr.msk.f32.mxu0 %vm953_vm0, %v464_v43  ;;  %v493_v42 = vld [vmem:[%s4505_s4 + $0x1a0] sm:$0xff]  ;;  %v1874_v43 = vld [vmem:[%s4507_s6 + $0xb8] sm:$0xff] }
  0x6f   : > { %865 = vperm.xlu0 %3192, %v615_v44   ;;  %1266 = vmatmul.mubr.f32.gmra.mrb[22].mxu0 %v463_v45  ;;  %v496_v44 = vld [vmem:[%s4505_s4 + $0x1b8] sm:$0xff]  ;;  %v1857_v45 = vld [vmem:[%s4507_s6 + $0x30] sm:$0xff] }
  0x70   : > { %870 = vperm.xlu1 %3193, %v616_v46   ;;  %2813 = vmatprep.mubr.msk.f32.mxu0 %vm953_vm0, %v466_v47  ;;  %v495_v46 = vld [vmem:[%s4505_s4 + $0x1b0] sm:$0xff]  ;;  %v1858_v47 = vld [vmem:[%s4507_s6 + $0x38] sm:$0xff] }
  0x73   : > { %875 = vperm.xlu0 %3192, %v617_v48   ;;  %1271 = vmatmul.mubr.f32.gmra.mrb[24].mxu0 %v465_v49  ;;  %v498_v48 = vld [vmem:[%s4505_s4 + $0x1c8] sm:$0xff]  ;;  %v1875_v49 = vld [vmem:[%s4507_s6 + $0xc0] sm:$0xff] }
  0x74   : > { %880 = vperm.xlu1 %3193, %v618_v50   ;;  %2814 = vmatprep.mubr.msk.f32.mxu0 %vm953_vm0, %v468_v51  ;;  %v497_v50 = vld [vmem:[%s4505_s4 + $0x1c0] sm:$0xff]  ;;  %v1876_v51 = vld [vmem:[%s4507_s6 + $0xc8] sm:$0xff] }
  0x77   : > { %885 = vperm.xlu0 %3192, %v619_v52   ;;  %1276 = vmatmul.mubr.f32.gmra.mrb[26].mxu0 %v467_v53  ;;  %v500_v52 = vld [vmem:[%s4505_s4 + $0x1d8] sm:$0xff]  ;;  %v1859_v53 = vld [vmem:[%s4507_s6 + $0x40] sm:$0xff] }
  0x78   : > { %890 = vperm.xlu1 %3193, %v620_v54   ;;  %2815 = vmatprep.mubr.msk.f32.mxu0 %vm953_vm0, %v470_v55  ;;  %v499_v54 = vld [vmem:[%s4505_s4 + $0x1d0] sm:$0xff]  ;;  %v1860_v55 = vld [vmem:[%s4507_s6 + $0x48] sm:$0xff] }
  0x7b   : > { %895 = vperm.xlu0 %3192, %v621_v56   ;;  %1281 = vmatmul.mubr.f32.gmra.mrb[28].mxu0 %v469_v57  ;;  %v502_v56 = vld [vmem:[%s4505_s4 + $0x1e8] sm:$0xff]  ;;  %v1877_v57 = vld [vmem:[%s4507_s6 + $0xd0] sm:$0xff] }
  0x7c   : > { %900 = vperm.xlu1 %3193, %v622_v58   ;;  %2816 = vmatprep.mubr.msk.f32.mxu0 %vm953_vm0, %v472_v59  ;;  %v501_v58 = vld [vmem:[%s4505_s4 + $0x1e0] sm:$0xff]  ;;  %v1878_v59 = vld [vmem:[%s4507_s6 + $0xd8] sm:$0xff] }
  0x7f   : > { %905 = vperm.xlu0 %3192, %v623_v60   ;;  %1286 = vmatmul.mubr.f32.gmra.mrb[30].mxu0 %v471_v61  ;;  %v504_v60 = vld [vmem:[%s4505_s4 + $0x1f8] sm:$0xff]  ;;  %v1861_v61 = vld [vmem:[%s4507_s6 + $0x50] sm:$0xff] }
  0x80   : > { %910 = vperm.xlu1 %3193, %v624_v62   ;;  %2817 = vmatprep.mubr.msk.f32.mxu0 %vm953_vm0, %v474_v63  ;;  %v503_v62 = vld [vmem:[%s4505_s4 + $0x1f0] sm:$0xff]  ;;  %v1862_v63 = vld [vmem:[%s4507_s6 + $0x58] sm:$0xff] }
  0x83   : > { %915 = vperm.xlu0 %3192, %v625_v0   ;;  %1291 = vmatmul.mubr.f32.gmra.mrb[32].mxu0 %v473_v2  ;;  %v506_v0 = vld [vmem:[%s4505_s4 + $0x208] sm:$0xff]  ;;  %v1879_v2 = vld [vmem:[%s4507_s6 + $0xe0] sm:$0xff] }
  0x84   : > { %920 = vperm.xlu1 %3193, %v626_v3   ;;  %2818 = vmatprep.mubr.msk.f32.mxu0 %vm953_vm0, %v476_v4  ;;  %v505_v3 = vld [vmem:[%s4505_s4 + $0x200] sm:$0xff]  ;;  %v1880_v4 = vld [vmem:[%s4507_s6 + $0xe8] sm:$0xff] }
  0x87   : > { %925 = vperm.xlu0 %3192, %v627_v5   ;;  %1296 = vmatmul.mubr.f32.gmra.mrb[34].mxu0 %v475_v6  ;;  %v508_v5 = vld [vmem:[%s4505_s4 + $0x218] sm:$0xff]  ;;  %v1863_v6 = vld [vmem:[%s4507_s6 + $0x60] sm:$0xff] }
  0x88   : > { %930 = vperm.xlu1 %3193, %v628_v7   ;;  %2819 = vmatprep.mubr.msk.f32.mxu0 %vm953_vm0, %v478_v8  ;;  %v507_v7 = vld [vmem:[%s4505_s4 + $0x210] sm:$0xff]  ;;  %v1864_v8 = vld [vmem:[%s4507_s6 + $0x68] sm:$0xff] }
  0x8b   : > { %935 = vperm.xlu0 %3192, %v629_v9   ;;  %1301 = vmatmul.mubr.f32.gmra.mrb[36].mxu0 %v477_v10  ;;  %v510_v9 = vld [vmem:[%s4505_s4 + $0x228] sm:$0xff]  ;;  %v1881_v10 = vld [vmem:[%s4507_s6 + $0xf0] sm:$0xff] }
  0x8c   : > { %940 = vperm.xlu1 %3193, %v630_v11   ;;  %2820 = vmatprep.mubr.msk.f32.mxu0 %vm953_vm0, %v480_v12  ;;  %v509_v11 = vld [vmem:[%s4505_s4 + $0x220] sm:$0xff]  ;;  %v1882_v12 = vld [vmem:[%s4507_s6 + $0xf8] sm:$0xff] }
  0x8f   : > { %945 = vperm.xlu0 %3192, %v631_v13   ;;  %1306 = vmatmul.mubr.f32.gmra.mrb[38].mxu0 %v479_v14  ;;  %v512_v13 = vld [vmem:[%s4505_s4 + $0x238] sm:$0xff]  ;;  %v1865_v14 = vld [vmem:[%s4507_s6 + $0x70] sm:$0xff] }
  0x90   : > { %950 = vperm.xlu1 %3193, %v632_v15   ;;  %2821 = vmatprep.mubr.msk.f32.mxu0 %vm953_vm0, %v482_v16  ;;  %v511_v15 = vld [vmem:[%s4505_s4 + $0x230] sm:$0xff]  ;;  %v1866_v16 = vld [vmem:[%s4507_s6 + $0x78] sm:$0xff] }
  0x93   : > { %1965 = vperm.xlu0 %3192, %v1867_v17   ;;  %1311 = vmatmul.mubr.f32.gmra.mrb[40].mxu0 %v481_v18  ;;  %v514_v17 = vld [vmem:[%s4505_s4 + $0x248] sm:$0xff]  ;;  %v513_v18 = vld [vmem:[%s4505_s4 + $0x240] sm:$0xff] }
  0x94   : > { %1970 = vperm.xlu1 %3193, %v1868_v19   ;;  %2822 = vmatprep.mubr.msk.f32.mxu0 %vm953_vm0, %v484_v20  ;;  %v516_v19 = vld [vmem:[%s4505_s4 + $0x258] sm:$0xff]  ;;  %v515_v20 = vld [vmem:[%s4505_s4 + $0x250] sm:$0xff] }
  0x97   : > { %1885 = vperm.xlu0 %3192, %v1851_v21   ;;  %1316 = vmatmul.mubr.f32.gmra.mrb[42].mxu0 %v483_v22  ;;  %v518_v21 = vld [vmem:[%s4505_s4 + $0x268] sm:$0xff]  ;;  %v517_v22 = vld [vmem:[%s4505_s4 + $0x260] sm:$0xff] }
  0x98   : > { %1890 = vperm.xlu1 %3193, %v1852_v23   ;;  %2823 = vmatprep.mubr.msk.f32.mxu0 %vm953_vm0, %v486_v24  ;;  %v520_v23 = vld [vmem:[%s4505_s4 + $0x278] sm:$0xff]  ;;  %v519_v24 = vld [vmem:[%s4505_s4 + $0x270] sm:$0xff] }
  0x9b   : > { %1975 = vperm.xlu0 %3192, %v1869_v25   ;;  %1321 = vmatmul.mubr.f32.gmra.mrb[44].mxu0 %v485_v26  ;;  %v522_v25 = vld [vmem:[%s4505_s4 + $0x288] sm:$0xff]  ;;  %v521_v26 = vld [vmem:[%s4505_s4 + $0x280] sm:$0xff] }
  0x9c   : > { %1980 = vperm.xlu1 %3193, %v1870_v27   ;;  %2824 = vmatprep.mubr.msk.f32.mxu0 %vm953_vm0, %v488_v28  ;;  %v524_v27 = vld [vmem:[%s4505_s4 + $0x298] sm:$0xff]  ;;  %v523_v28 = vld [vmem:[%s4505_s4 + $0x290] sm:$0xff] }
  0x9f   : > { %1895 = vperm.xlu0 %3192, %v1853_v29   ;;  %1326 = vmatmul.mubr.f32.gmra.mrb[46].mxu0 %v487_v30  ;;  %v526_v29 = vld [vmem:[%s4505_s4 + $0x2a8] sm:$0xff]  ;;  %v525_v30 = vld [vmem:[%s4505_s4 + $0x2a0] sm:$0xff] }
  0xa0   : > { %1900 = vperm.xlu1 %3193, %v1854_v31   ;;  %2825 = vmatprep.mubr.msk.f32.mxu0 %vm953_vm0, %v490_v32  ;;  %v528_v31 = vld [vmem:[%s4505_s4 + $0x2b8] sm:$0xff]  ;;  %v527_v32 = vld [vmem:[%s4505_s4 + $0x2b0] sm:$0xff] }
  0xa3   : > { %1985 = vperm.xlu0 %3192, %v1871_v33   ;;  %1331 = vmatmul.mubr.f32.gmra.mrb[48].mxu0 %v489_v34  ;;  %v530_v33 = vld [vmem:[%s4505_s4 + $0x2c8] sm:$0xff]  ;;  %v529_v34 = vld [vmem:[%s4505_s4 + $0x2c0] sm:$0xff] }
  0xa4   : > { %1990 = vperm.xlu1 %3193, %v1872_v35   ;;  %2826 = vmatprep.mubr.msk.f32.mxu0 %vm953_vm0, %v492_v36  ;;  %v532_v35 = vld [vmem:[%s4505_s4 + $0x2d8] sm:$0xff]  ;;  %v531_v36 = vld [vmem:[%s4505_s4 + $0x2d0] sm:$0xff] }
  0xa7   : > { %1905 = vperm.xlu0 %3192, %v1855_v37   ;;  %1336 = vmatmul.mubr.f32.gmra.mrb[50].mxu0 %v491_v38  ;;  %v534_v37 = vld [vmem:[%s4505_s4 + $0x2e8] sm:$0xff]  ;;  %v533_v38 = vld [vmem:[%s4505_s4 + $0x2e0] sm:$0xff] }
  0xa8   : > { %1910 = vperm.xlu1 %3193, %v1856_v39   ;;  %2827 = vmatprep.mubr.msk.f32.mxu0 %vm953_vm0, %v494_v40  ;;  %v536_v39 = vld [vmem:[%s4505_s4 + $0x2f8] sm:$0xff]  ;;  %v535_v40 = vld [vmem:[%s4505_s4 + $0x2f0] sm:$0xff] }
  0xab   : > { %1995 = vperm.xlu0 %3192, %v1873_v41   ;;  %1341 = vmatmul.mubr.f32.gmra.mrb[52].mxu0 %v493_v42  ;;  %v538_v41 = vld [vmem:[%s4505_s4 + $0x308] sm:$0xff]  ;;  %v537_v42 = vld [vmem:[%s4505_s4 + $0x300] sm:$0xff] }
  0xac   : > { %2000 = vperm.xlu1 %3193, %v1874_v43   ;;  %2828 = vmatprep.mubr.msk.f32.mxu0 %vm953_vm0, %v496_v44  ;;  %v540_v43 = vld [vmem:[%s4505_s4 + $0x318] sm:$0xff]  ;;  %v539_v44 = vld [vmem:[%s4505_s4 + $0x310] sm:$0xff] }
  0xaf   : > { %1915 = vperm.xlu0 %3192, %v1857_v45   ;;  %1346 = vmatmul.mubr.f32.gmra.mrb[54].mxu0 %v495_v46  ;;  %v542_v45 = vld [vmem:[%s4505_s4 + $0x328] sm:$0xff]  ;;  %v541_v46 = vld [vmem:[%s4505_s4 + $0x320] sm:$0xff] }
  0xb0   : > { %1920 = vperm.xlu1 %3193, %v1858_v47   ;;  %2829 = vmatprep.mubr.msk.f32.mxu0 %vm953_vm0, %v498_v48  ;;  %v544_v47 = vld [vmem:[%s4505_s4 + $0x338] sm:$0xff]  ;;  %v543_v48 = vld [vmem:[%s4505_s4 + $0x330] sm:$0xff] }
  0xb3   : > { %2005 = vperm.xlu0 %3192, %v1875_v49   ;;  %1351 = vmatmul.mubr.f32.gmra.mrb[56].mxu0 %v497_v50  ;;  %v546_v49 = vld [vmem:[%s4505_s4 + $0x348] sm:$0xff]  ;;  %v545_v50 = vld [vmem:[%s4505_s4 + $0x340] sm:$0xff] }
  0xb4   : > { %2010 = vperm.xlu1 %3193, %v1876_v51   ;;  %2830 = vmatprep.mubr.msk.f32.mxu0 %vm953_vm0, %v500_v52  ;;  %v548_v51 = vld [vmem:[%s4505_s4 + $0x358] sm:$0xff]  ;;  %v636_v52 = vpop.permute.xlu0 %635 }
  0xb7   : > { %1925 = vperm.xlu0 %3192, %v1859_v53   ;;  %1356 = vmatmul.mubr.f32.gmra.mrb[58].mxu0 %v499_v54  ;;  %v547_v53 = vld [vmem:[%s4505_s4 + $0x350] sm:$0xff]  ;;  %v550_v54 = vld [vmem:[%s4505_s4 + $0x368] sm:$0xff] }
  0xb8   : > { %1930 = vperm.xlu1 %3193, %v1860_v55   ;;  %2831 = vmatprep.mubr.msk.f32.mxu0 %vm953_vm0, %v502_v56 }
  0xbb   : > { %2015 = vperm.xlu0 %3192, %v1877_v57   ;;  %1361 = vmatmul.mubr.f32.gmra.mrb[60].mxu0 %v501_v58  ;;  %v549_v58 = vld [vmem:[%s4505_s4 + $0x360] sm:$0xff] }
  0xbc   : > { %2020 = vperm.xlu1 %3193, %v1878_v59   ;;  %2832 = vmatprep.mubr.msk.f32.mxu0 %vm953_vm0, %v504_v60  ;;  %v552_v59 = vld [vmem:[%s4505_s4 + $0x378] sm:$0xff]  ;;  %v641_v60 = vpop.permute.xlu0 %640 }
  0xbf   : > { %1935 = vperm.xlu0 %3192, %v1861_v61   ;;  %1366 = vmatmul.mubr.f32.gmra.mrb[62].mxu0 %v503_v62 }
  0xc0   : > { %1940 = vperm.xlu1 %3193, %v1862_v63   ;;  %2833 = vmatprep.mubr.msk.f32.mxu0 %vm953_vm0, %v506_v0 }
  0xc3   : > { %2025 = vperm.xlu0 %3192, %v1879_v2   ;;  %1371 = vmatmul.mubr.f32.gmra.mrb[64].mxu0 %v505_v3  ;;  %v1724_v2 = vld [vmem:[%s4506_s5 + $0x8] sm:$0xff]  ;;  %v646_v3 = vpop.permute.xlu1 %645 }
  0xc4   : > { %2030 = vperm.xlu1 %3193, %v1880_v4   ;;  %2834 = vmatprep.mubr.msk.f32.mxu0 %vm953_vm0, %v508_v5  ;;  %v551_v4 = vld [vmem:[%s4505_s4 + $0x370] sm:$0xff] }
  0xc5   : > { %2107 = vmatprep.mubr.f32.mxu1 %v1724_v2  ;;  %v568_v2 = vld [vmem:[%s4505_s4 + $0x3f8] sm:$0xff] }
  0xc7   : > { %1945 = vperm.xlu0 %3192, %v1863_v6   ;;  %1376 = vmatmul.mubr.f32.gmra.mrb[66].mxu0 %v507_v7  ;;  %v554_v6 = vld [vmem:[%s4505_s4 + $0x388] sm:$0xff] }
  0xc8   : > { %1950 = vperm.xlu1 %3193, %v1864_v8   ;;  %2835 = vmatprep.mubr.msk.f32.mxu0 %vm953_vm0, %v510_v9 }
  0xcb   : > { %2035 = vperm.xlu0 %3192, %v1881_v10   ;;  %1381 = vmatmul.mubr.f32.gmra.mrb[68].mxu0 %v509_v11 }
  0xcc   : > { %2040 = vperm.xlu1 %3193, %v1882_v12   ;;  %2836 = vmatprep.mubr.msk.f32.mxu0 %vm953_vm0, %v512_v13  ;;  %v553_v13 = vld [vmem:[%s4505_s4 + $0x380] sm:$0xff] }
  0xcf   : > { %1955 = vperm.xlu0 %3192, %v1865_v14   ;;  %1386 = vmatmul.mubr.f32.gmra.mrb[70].mxu0 %v511_v15  ;;  %v556_v14 = vld [vmem:[%s4505_s4 + $0x398] sm:$0xff]  ;;  %v651_v15 = vpop.permute.xlu1 %650 }
  0xd0   : > { %1960 = vperm.xlu1 %3193, %v1866_v16   ;;  %2837 = vmatprep.mubr.msk.f32.mxu0 %vm953_vm0, %v514_v17 }
  0xd3   : > { %1391 = vmatmul.mubr.f32.gmra.mrb[72].mxu0 %v513_v18 }
  0xd4   : > { %2838 = vmatprep.mubr.msk.f32.mxu0 %vm953_vm0, %v516_v19 }
  0xd7   : > { %1396 = vmatmul.mubr.f32.gmra.mrb[74].mxu0 %v515_v20  ;;  %v555_v20 = vld [vmem:[%s4505_s4 + $0x390] sm:$0xff] }
  0xd8   : > { %2839 = vmatprep.mubr.msk.f32.mxu0 %vm953_vm0, %v518_v21 }
  0xdb   : > { %1401 = vmatmul.mubr.f32.gmra.mrb[76].mxu0 %v517_v22  ;;  %v558_v22 = vld [vmem:[%s4505_s4 + $0x3a8] sm:$0xff] }
  0xdc   : > { %2840 = vmatprep.mubr.msk.f32.mxu0 %vm953_vm0, %v520_v23  ;;  %v656_v23 = vpop.permute.xlu0 %655 }
  0xdf   : > { %1406 = vmatmul.mubr.f32.gmra.mrb[78].mxu0 %v519_v24 }
  0xe0   : > { %2841 = vmatprep.mubr.msk.f32.mxu0 %vm953_vm0, %v522_v25 }
  0xe3   : > { %1411 = vmatmul.mubr.f32.gmra.mrb[80].mxu0 %v521_v26 }
  0xe4   : > { %2842 = vmatprep.mubr.msk.f32.mxu0 %vm953_vm0, %v524_v27 }
  0xe7   : > { %1416 = vmatmul.mubr.f32.gmra.mrb[82].mxu0 %v523_v28 }
  0xe8   : > { %2843 = vmatprep.mubr.msk.f32.mxu0 %vm953_vm0, %v526_v29 }
  0xeb   : > { %1421 = vmatmul.mubr.f32.gmra.mrb[84].mxu0 %v525_v30  ;;  %v557_v30 = vld [vmem:[%s4505_s4 + $0x3a0] sm:$0xff] }
  0xec   : > { %2844 = vmatprep.mubr.msk.f32.mxu0 %vm953_vm0, %v528_v31  ;;  %v560_v31 = vld [vmem:[%s4505_s4 + $0x3b8] sm:$0xff] }
  0xef   : > { %1426 = vmatmul.mubr.f32.gmra.mrb[86].mxu0 %v527_v32  ;;  %v661_v32 = vpop.permute.xlu1 %660 }
  0xf0   : > { %2845 = vmatprep.mubr.msk.f32.mxu0 %vm953_vm0, %v530_v33 }
  0xf3   : > { %1431 = vmatmul.mubr.f32.gmra.mrb[88].mxu0 %v529_v34 }
  0xf4   : > { %2846 = vmatprep.mubr.msk.f32.mxu0 %vm953_vm0, %v532_v35 }
  0xf7   : > { %1436 = vmatmul.mubr.f32.gmra.mrb[90].mxu0 %v531_v36 }
  0xf8   : > { %2847 = vmatprep.mubr.msk.f32.mxu0 %vm953_vm0, %v534_v37  ;;  %v559_v37 = vld [vmem:[%s4505_s4 + $0x3b0] sm:$0xff] }
  0xfb   : > { %1441 = vmatmul.mubr.f32.gmra.mrb[92].mxu0 %v533_v38 }
  0xfc   : > { %2848 = vmatprep.mubr.msk.f32.mxu0 %vm953_vm0, %v536_v39  ;;  %v562_v39 = vld [vmem:[%s4505_s4 + $0x3c8] sm:$0xff] }
  0xff   : > { %1446 = vmatmul.mubr.f32.gmra.mrb[94].mxu0 %v535_v40  ;;  %v666_v40 = vpop.permute.xlu0 %665 }
 0x100   : > { %2849 = vmatprep.mubr.msk.f32.mxu0 %vm953_vm0, %v538_v41 }
 0x103   : > { %1451 = vmatmul.mubr.f32.gmra.mrb[96].mxu0 %v537_v42 }
 0x104   : > { %2850 = vmatprep.mubr.msk.f32.mxu0 %vm953_vm0, %v540_v43 }
 0x107   : > { %1456 = vmatmul.mubr.f32.gmra.mrb[98].mxu0 %v539_v44 }
 0x108   : > { %2851 = vmatprep.mubr.msk.f32.mxu0 %vm953_vm0, %v542_v45 }
 0x10b   : > { %1461 = vmatmul.mubr.f32.gmra.mrb[100].mxu0 %v541_v46 }
 0x10c   : > { %2852 = vmatprep.mubr.msk.f32.mxu0 %vm953_vm0, %v544_v47  ;;  %v561_v47 = vld [vmem:[%s4505_s4 + $0x3c0] sm:$0xff] }
 0x10f   : > { %1466 = vmatmul.mubr.f32.gmra.mrb[102].mxu0 %v543_v48  ;;  %v564_v48 = vld [vmem:[%s4505_s4 + $0x3d8] sm:$0xff] }
 0x110   : > { %2853 = vmatprep.mubr.msk.f32.mxu0 %vm953_vm0, %v546_v49  ;;  %v671_v49 = vpop.permute.xlu1 %670 }
 0x113   : > { %1471 = vmatmul.mubr.f32.gmra.mrb[104].mxu0 %v545_v50 }
 0x114   : > { %2854 = vmatprep.mubr.msk.f32.mxu0 %vm953_vm0, %v548_v51 }
 0x116   : > { %v1212_v55 = vpop.f32.mrb[0].mxu0 }
 0x117   : > { %v1213_v56 = vadd.f32 %v1212_v55, %v636_v52  ;;  %v1214_v57 = vpop.f32.mrb[1].mxu0  ;;  %1476 = vmatmul.mubr.f32.gmra.mrb[106].mxu0 %v547_v53 }
 0x118   : > { %2855 = vmatprep.mubr.msk.f32.mxu0 %vm953_vm0, %v550_v54  ;;  %v563_v54 = vld [vmem:[%s4505_s4 + $0x3d0] sm:$0xff]  ;;  %v676_v57 = vpop.permute.xlu0 %675 }
 0x119   : > { %v1595_v62 = vmul.f32 0.2, %v1213_v56  ;;  %vm1531_vm1 = vcmp.gt.f32.partialorder %v1213_v56, 0.0 }
 0x11a   : > { %v1217_v61 = vpop.f32.mrb[2].mxu0 }
 0x11b   : > { %v1218_v63 = vadd.f32 %v1217_v61, %v641_v60  ;;  %v1219_v0 = vpop.f32.mrb[3].mxu0  ;;  %1481 = vmatmul.mubr.f32.gmra.mrb[108].mxu0 %v549_v58  ;;  %v1659_v10 = vsel %vm1531_vm1, %v1213_v56, %v1595_v62  ;;  %v566_v56 = vld [vmem:[%s4505_s4 + $0x3e8] sm:$0xff] }
 0x11c   : > { %2856 = vmatprep.mubr.msk.f32.mxu0 %vm953_vm0, %v552_v59  ;;  %v565_v0 = vld [vmem:[%s4505_s4 + $0x3e0] sm:$0xff] }
 0x11d   : > { %v1596_v5 = vmul.f32 0.2, %v1218_v63  ;;  %vm1532_vm2 = vcmp.gt.f32.partialorder %v1218_v63, 0.0 }
 0x11e   : > { %v1222_v7 = vpop.f32.mrb[4].mxu0 }
 0x11f   : > { %v1223_v8 = vadd.f32 %v1222_v7, %v646_v3  ;;  %v1224_v9 = vpop.f32.mrb[5].mxu0  ;;  %1486 = vmatmul.mubr.f32.gmra.mrb[110].mxu0 %v551_v4  ;;  %v1660_v11 = vsel %vm1532_vm2, %v1218_v63, %v1596_v5  ;;  %v681_v3 = vpop.permute.xlu1 %680 }
 0x120   : > { %2857 = vmatprep.mubr.msk.f32.mxu0 %vm953_vm0, %v554_v6  ;;  %v2943_v12 = vpack.c.bf16 %v1660_v11, %v1659_v10  ;;  %v686_v10 = vpop.permute.xlu0 %685 }
 0x121   : > { %v1597_v17 = vmul.f32 0.2, %v1223_v8  ;;  %vm1533_vm3 = vcmp.gt.f32.partialorder %v1223_v8, 0.0 }
 0x122   : > { %v1227_v16 = vpop.f32.mrb[6].mxu0  ;;  %2944 = vmatpush1.bf16.msra.mxu1 %v2943_v12 }
 0x123   : > { %v1228_v18 = vadd.f32 %v1227_v16, %v651_v15  ;;  %v1229_v19 = vpop.f32.mrb[7].mxu0  ;;  %1491 = vmatmul.mubr.f32.gmra.mrb[112].mxu0 %v553_v13  ;;  %2945 = vmatprep.subr.bf16.mxu1 %v3218_v1  ;;  %v1661_v27 = vsel %vm1533_vm3, %v1223_v8, %v1597_v17  ;;  %v567_v8 = vld [vmem:[%s4505_s4 + $0x3f0] sm:$0xff]  ;;  %v691_v17 = vpop.permute.xlu1 %690 }
 0x124   : > { %2858 = vmatprep.mubr.msk.f32.mxu0 %vm953_vm0, %v556_v14 }
 0x125   : > { %vm1534_vm4 = vcmp.gt.f32.partialorder %v1228_v18, 0.0  ;;  %v1598_v21 = vmul.f32 0.2, %v1228_v18 }
 0x126   : > { %v1232_v24 = vpop.f32.mrb[8].mxu0 }
 0x127   : > { %v1233_v25 = vadd.f32 %v1232_v24, %v656_v23  ;;  %v1234_v26 = vpop.f32.mrb[9].mxu0  ;;  %1496 = vmatmul.mubr.f32.gmra.mrb[114].mxu0 %v555_v20  ;;  %v1662_v28 = vsel %vm1534_vm4, %v1228_v18, %v1598_v21  ;;  %v696_v23 = vpop.permute.xlu0 %695 }
 0x128   : > { %2859 = vmatprep.mubr.msk.f32.mxu0 %vm953_vm0, %v558_v22  ;;  %v2946_v29 = vpack.c.bf16 %v1662_v28, %v1661_v27 }
 0x129   : > { %v1599_v34 = vmul.f32 0.2, %v1233_v25  ;;  %vm1535_vm5 = vcmp.gt.f32.partialorder %v1233_v25, 0.0 }
 0x12a   : > { %v1237_v33 = vpop.f32.mrb[10].mxu0  ;;  %2947 = vmatpush1.bf16.msra.mxu1 %v2946_v29 }
 0x12b   : > { %v1238_v35 = vadd.f32 %v1237_v33, %v661_v32  ;;  %v1239_v36 = vpop.f32.mrb[11].mxu0  ;;  %1501 = vmatmul.mubr.f32.gmra.mrb[116].mxu0 %v557_v30  ;;  %2948 = vmatprep.subr.bf16.mxu1 %v3218_v1  ;;  %v1663_v44 = vsel %vm1535_vm5, %v1233_v25, %v1599_v34  ;;  %v701_v30 = vpop.permute.xlu1 %700 }
 0x12c   : > { %2860 = vmatprep.mubr.msk.f32.mxu0 %vm953_vm0, %v560_v31  ;;  %v706_v36 = vpop.permute.xlu0 %705 }
 0x12d   : > { %vm1536_vm6 = vcmp.gt.f32.partialorder %v1238_v35, 0.0  ;;  %v1600_v38 = vmul.f32 0.2, %v1238_v35 }
 0x12e   : > { %v1242_v41 = vpop.f32.mrb[12].mxu0 }
 0x12f   : > { %v1243_v42 = vadd.f32 %v1242_v41, %v666_v40  ;;  %v1244_v43 = vpop.f32.mrb[13].mxu0  ;;  %1506 = vmatmul.mubr.f32.gmra.mrb[118].mxu0 %v559_v37  ;;  %v1664_v45 = vsel %vm1536_vm6, %v1238_v35, %v1600_v38 }
 0x130   : > { %2861 = vmatprep.mubr.msk.f32.mxu0 %vm953_vm0, %v562_v39  ;;  %v2949_v46 = vpack.c.bf16 %v1664_v45, %v1663_v44  ;;  %v711_v43 = vpop.permute.xlu1 %710 }
 0x131   : > { %v1601_v51 = vmul.f32 0.2, %v1243_v42  ;;  %vm1537_vm7 = vcmp.gt.f32.partialorder %v1243_v42, 0.0 }
 0x132   : > { %v1247_v50 = vpop.f32.mrb[14].mxu0  ;;  %2950 = vmatpush1.bf16.msra.mxu1 %v2949_v46 }
 0x133   : > { %v1248_v52 = vadd.f32 %v1247_v50, %v671_v49  ;;  %v1249_v53 = vpop.f32.mrb[15].mxu0  ;;  %1511 = vmatmul.mubr.f32.gmra.mrb[120].mxu0 %v561_v47  ;;  %2951 = vmatprep.subr.bf16.mxu1 %v3218_v1  ;;  %v1665_v61 = vsel %vm1537_vm7, %v1243_v42, %v1601_v51  ;;  %v716_v49 = vpop.permute.xlu0 %715 }
 0x134   : > { %2862 = vmatprep.mubr.msk.f32.mxu0 %vm953_vm0, %v564_v48 }
 0x135   : > { %vm1538_vm8 = vcmp.gt.f32.partialorder %v1248_v52, 0.0  ;;  %v1602_v55 = vmul.f32 0.2, %v1248_v52 }
 0x136   : > { %v1252_v58 = vpop.f32.mrb[16].mxu0 }
 0x137   : > { %v1253_v59 = vadd.f32 %v1252_v58, %v676_v57  ;;  %v1254_v60 = vpop.f32.mrb[17].mxu0  ;;  %1516 = vmatmul.mubr.f32.gmra.mrb[122].mxu0 %v563_v54  ;;  %v1666_v62 = vsel %vm1538_vm8, %v1248_v52, %v1602_v55 }
 0x138   : > { %2863 = vmatprep.mubr.msk.f32.mxu0 %vm953_vm0, %v566_v56  ;;  %v2952_v63 = vpack.c.bf16 %v1666_v62, %v1665_v61  ;;  %v721_v56 = vpop.permute.xlu1 %720  ;;  %v726_v62 = vpop.permute.xlu0 %725 }
 0x139   : > { %v1603_v5 = vmul.f32 0.2, %v1253_v59  ;;  %vm1539_vm9 = vcmp.gt.f32.partialorder %v1253_v59, 0.0 }
 0x13a   : > { %v1257_v4 = vpop.f32.mrb[18].mxu0  ;;  %2953 = vmatpush1.bf16.msra.mxu1 %v2952_v63 }
 0x13b   : > { %v1258_v6 = vadd.f32 %v1257_v4, %v681_v3  ;;  %v1259_v7 = vpop.f32.mrb[19].mxu0  ;;  %1521 = vmatmul.mubr.f32.gmra.mrb[124].mxu0 %v565_v0  ;;  %2954 = vmatprep.subr.bf16.mxu1 %v3218_v1  ;;  %v1667_v14 = vsel %vm1539_vm9, %v1253_v59, %v1603_v5 }
 0x13c   : > { %2864 = vmatprep.mubr.msk.f32.mxu0 %vm953_vm0, %v568_v2 }
 0x13d   : > { %vm1540_vm10 = vcmp.gt.f32.partialorder %v1258_v6, 0.0  ;;  %v1604_v9 = vmul.f32 0.2, %v1258_v6 }
 0x13e   : > { %v1262_v11 = vpop.f32.mrb[20].mxu0 }
 0x13f   : > { %v1263_v12 = vadd.f32 %v1262_v11, %v686_v10  ;;  %v1264_v13 = vpop.f32.mrb[21].mxu0  ;;  %1526 = vmatmul.mubr.f32.gmra.mrb[126].mxu0 %v567_v8  ;;  %v1668_v15 = vsel %vm1540_vm10, %v1258_v6, %v1604_v9  ;;  %v731_v6 = vpop.permute.xlu1 %730 }
 0x140   : > { %v2955_v16 = vpack.c.bf16 %v1668_v15, %v1667_v14 }
 0x141   : > { %v1605_v19 = vmul.f32 0.2, %v1263_v12  ;;  %vm1541_vm11 = vcmp.gt.f32.partialorder %v1263_v12, 0.0 }
 0x142   : > { %v1267_v18 = vpop.f32.mrb[22].mxu0  ;;  %2956 = vmatpush1.bf16.msra.mxu1 %v2955_v16 }
 0x143   : > { %v1268_v20 = vadd.f32 %v1267_v18, %v691_v17  ;;  %v1269_v21 = vpop.f32.mrb[23].mxu0  ;;  %2957 = vmatprep.subr.bf16.mxu1 %v3218_v1  ;;  %v1669_v27 = vsel %vm1541_vm11, %v1263_v12, %v1605_v19  ;;  %v736_v12 = vpop.permute.xlu0 %735 }
 0x144   : > { %v741_v19 = vpop.permute.xlu1 %740 }
 0x145   : > { %vm1542_vm12 = vcmp.gt.f32.partialorder %v1268_v20, 0.0  ;;  %v1606_v22 = vmul.f32 0.2, %v1268_v20 }
 0x146   : > { %v1272_v24 = vpop.f32.mrb[24].mxu0 }
 0x147   : > { %v1273_v25 = vadd.f32 %v1272_v24, %v696_v23  ;;  %v1274_v26 = vpop.f32.mrb[25].mxu0  ;;  %v1670_v28 = vsel %vm1542_vm12, %v1268_v20, %v1606_v22 }
 0x148   : > { %v2958_v29 = vpack.c.bf16 %v1670_v28, %v1669_v27 }
 0x149   : > { %v1607_v32 = vmul.f32 0.2, %v1273_v25  ;;  %vm1543_vm13 = vcmp.gt.f32.partialorder %v1273_v25, 0.0 }
 0x14a   : > { %v1277_v31 = vpop.f32.mrb[26].mxu0  ;;  %2959 = vmatpush1.bf16.msra.mxu1 %v2958_v29 }
 0x14b   : > { %v1278_v33 = vadd.f32 %v1277_v31, %v701_v30  ;;  %v1279_v34 = vpop.f32.mrb[27].mxu0  ;;  %2960 = vmatprep.subr.bf16.mxu1 %v3218_v1  ;;  %v1671_v40 = vsel %vm1543_vm13, %v1273_v25, %v1607_v32  ;;  %v746_v25 = vpop.permute.xlu0 %745 }
 0x14c   : > { %v751_v32 = vpop.permute.xlu1 %750 }
 0x14d   : > { %vm1544_vm14 = vcmp.gt.f32.partialorder %v1278_v33, 0.0  ;;  %v1608_v35 = vmul.f32 0.2, %v1278_v33 }
 0x14e   : > { %v1282_v37 = vpop.f32.mrb[28].mxu0 }
 0x14f   : > { %v1283_v38 = vadd.f32 %v1282_v37, %v706_v36  ;;  %v1284_v39 = vpop.f32.mrb[29].mxu0  ;;  %v1672_v41 = vsel %vm1544_vm14, %v1278_v33, %v1608_v35 }
 0x150   : > { %v2961_v42 = vpack.c.bf16 %v1672_v41, %v1671_v40 }
 0x151   : > { %v1609_v45 = vmul.f32 0.2, %v1283_v38  ;;  %vm1545_vm15 = vcmp.gt.f32.partialorder %v1283_v38, 0.0 }
 0x152   : > { %v1287_v44 = vpop.f32.mrb[30].mxu0  ;;  %2962 = vmatpush1.bf16.msra.mxu1 %v2961_v42 }
 0x153   : > { %v1288_v46 = vadd.f32 %v1287_v44, %v711_v43  ;;  %v1289_v47 = vpop.f32.mrb[31].mxu0  ;;  %2963 = vmatprep.subr.bf16.mxu1 %v3218_v1  ;;  %v1673_v53 = vsel %vm1545_vm15, %v1283_v38, %v1609_v45  ;;  %v756_v38 = vpop.permute.xlu0 %755 }
 0x154   : > { %v761_v45 = vpop.permute.xlu1 %760 }
 0x155   : > { %vm1546_vm0 = vcmp.gt.f32.partialorder %v1288_v46, 0.0  ;;  %v1610_v48 = vmul.f32 0.2, %v1288_v46 }
 0x156   : > { %v1292_v50 = vpop.f32.mrb[32].mxu0 }
 0x157   : > { %v1293_v51 = vadd.f32 %v1292_v50, %v716_v49  ;;  %v1294_v52 = vpop.f32.mrb[33].mxu0  ;;  %v1674_v54 = vsel %vm1546_vm0, %v1288_v46, %v1610_v48 }
 0x158   : > { %v2964_v55 = vpack.c.bf16 %v1674_v54, %v1673_v53 }
 0x159   : > { %v1611_v58 = vmul.f32 0.2, %v1293_v51  ;;  %vm1547_vm1 = vcmp.gt.f32.partialorder %v1293_v51, 0.0 }
 0x15a   : > { %v1297_v57 = vpop.f32.mrb[34].mxu0  ;;  %2965 = vmatpush1.bf16.msra.mxu1 %v2964_v55 }
 0x15b   : > { %v1298_v59 = vadd.f32 %v1297_v57, %v721_v56  ;;  %v1299_v60 = vpop.f32.mrb[35].mxu0  ;;  %2966 = vmatprep.subr.bf16.mxu1 %v3218_v1  ;;  %v1675_v3 = vsel %vm1547_vm1, %v1293_v51, %v1611_v58  ;;  %v766_v51 = vpop.permute.xlu0 %765 }
 0x15c   : > { %v771_v58 = vpop.permute.xlu1 %770 }
 0x15d   : > { %vm1548_vm2 = vcmp.gt.f32.partialorder %v1298_v59, 0.0  ;;  %v1612_v61 = vmul.f32 0.2, %v1298_v59 }
 0x15e   : > { %v1302_v63 = vpop.f32.mrb[36].mxu0 }
 0x15f   : > { %v1303_v0 = vadd.f32 %v1302_v63, %v726_v62  ;;  %v1304_v2 = vpop.f32.mrb[37].mxu0  ;;  %v1676_v4 = vsel %vm1548_vm2, %v1298_v59, %v1612_v61 }
 0x160   : > { %v2967_v5 = vpack.c.bf16 %v1676_v4, %v1675_v3 }
 0x161   : > { %v1613_v8 = vmul.f32 0.2, %v1303_v0  ;;  %vm1549_vm3 = vcmp.gt.f32.partialorder %v1303_v0, 0.0 }
 0x162   : > { %v1307_v7 = vpop.f32.mrb[38].mxu0  ;;  %2968 = vmatpush1.bf16.msra.mxu1 %v2967_v5 }
 0x163   : > { %v1308_v9 = vadd.f32 %v1307_v7, %v731_v6  ;;  %v1309_v10 = vpop.f32.mrb[39].mxu0  ;;  %2969 = vmatprep.subr.bf16.mxu1 %v3218_v1  ;;  %v1677_v16 = vsel %vm1549_vm3, %v1303_v0, %v1613_v8  ;;  %v776_v0 = vpop.permute.xlu0 %775 }
 0x164   : > { %v781_v8 = vpop.permute.xlu1 %780 }
 0x165   : > { %vm1550_vm4 = vcmp.gt.f32.partialorder %v1308_v9, 0.0  ;;  %v1614_v11 = vmul.f32 0.2, %v1308_v9 }
 0x166   : > { %v1312_v13 = vpop.f32.mrb[40].mxu0 }
 0x167   : > { %v1313_v14 = vadd.f32 %v1312_v13, %v736_v12  ;;  %v1314_v15 = vpop.f32.mrb[41].mxu0  ;;  %v1678_v17 = vsel %vm1550_vm4, %v1308_v9, %v1614_v11 }
 0x168   : > { %v2970_v18 = vpack.c.bf16 %v1678_v17, %v1677_v16 }
 0x169   : > { %v1615_v21 = vmul.f32 0.2, %v1313_v14  ;;  %vm1551_vm5 = vcmp.gt.f32.partialorder %v1313_v14, 0.0 }
 0x16a   : > { %v1317_v20 = vpop.f32.mrb[42].mxu0  ;;  %2971 = vmatpush1.bf16.msra.mxu1 %v2970_v18 }
 0x16b   : > { %v1318_v22 = vadd.f32 %v1317_v20, %v741_v19  ;;  %v1319_v23 = vpop.f32.mrb[43].mxu0  ;;  %2972 = vmatprep.subr.bf16.mxu1 %v3218_v1  ;;  %v1679_v29 = vsel %vm1551_vm5, %v1313_v14, %v1615_v21  ;;  %v786_v14 = vpop.permute.xlu0 %785 }
 0x16c   : > { %v791_v21 = vpop.permute.xlu1 %790 }
 0x16d   : > { %vm1552_vm6 = vcmp.gt.f32.partialorder %v1318_v22, 0.0  ;;  %v1616_v24 = vmul.f32 0.2, %v1318_v22 }
 0x16e   : > { %v1322_v26 = vpop.f32.mrb[44].mxu0 }
 0x16f   : > { %v1323_v27 = vadd.f32 %v1322_v26, %v746_v25  ;;  %v1324_v28 = vpop.f32.mrb[45].mxu0  ;;  %v1680_v30 = vsel %vm1552_vm6, %v1318_v22, %v1616_v24 }
 0x170   : > { %v2973_v31 = vpack.c.bf16 %v1680_v30, %v1679_v29 }
 0x171   : > { %v1617_v34 = vmul.f32 0.2, %v1323_v27  ;;  %vm1553_vm7 = vcmp.gt.f32.partialorder %v1323_v27, 0.0 }
 0x172   : > { %v1327_v33 = vpop.f32.mrb[46].mxu0  ;;  %2974 = vmatpush1.bf16.msra.mxu1 %v2973_v31 }
 0x173   : > { %v1328_v35 = vadd.f32 %v1327_v33, %v751_v32  ;;  %v1329_v36 = vpop.f32.mrb[47].mxu0  ;;  %2975 = vmatprep.subr.bf16.mxu1 %v3218_v1  ;;  %v1681_v42 = vsel %vm1553_vm7, %v1323_v27, %v1617_v34  ;;  %v796_v27 = vpop.permute.xlu0 %795 }
 0x174   : > { %v801_v34 = vpop.permute.xlu1 %800  ;;  %v1723_v36 = vld [vmem:[%s4506_s5] sm:$0xff] }
 0x175   : > { %vm1554_vm8 = vcmp.gt.f32.partialorder %v1328_v35, 0.0  ;;  %v1618_v37 = vmul.f32 0.2, %v1328_v35 }
 0x176   : > { %v1332_v39 = vpop.f32.mrb[48].mxu0 }
 0x177   : > { %v1333_v40 = vadd.f32 %v1332_v39, %v756_v38  ;;  %v1334_v41 = vpop.f32.mrb[49].mxu0  ;;  %v1682_v43 = vsel %vm1554_vm8, %v1328_v35, %v1618_v37 }
 0x178   : > { %v2976_v44 = vpack.c.bf16 %v1682_v43, %v1681_v42  ;;  %v806_v42 = vpop.permute.xlu0 %805 }
 0x179   : > { %v1619_v47 = vmul.f32 0.2, %v1333_v40  ;;  %vm1555_vm9 = vcmp.gt.f32.partialorder %v1333_v40, 0.0 }
 0x17a   : > { %v1337_v46 = vpop.f32.mrb[50].mxu0  ;;  %2977 = vmatpush1.bf16.msra.mxu1 %v2976_v44  ;;  %v1727_v44 = vld [vmem:[%s4506_s5 + $0x20] sm:$0xff] }
 0x17b   : > { %v1338_v48 = vadd.f32 %v1337_v46, %v761_v45  ;;  %v1339_v49 = vpop.f32.mrb[51].mxu0  ;;  %2978 = vmatprep.subr.bf16.mxu1 %v3218_v1  ;;  %v1683_v55 = vsel %vm1555_vm9, %v1333_v40, %v1619_v47  ;;  %v1728_v40 = vld [vmem:[%s4506_s5 + $0x28] sm:$0xff] }
 0x17c   : > { %v1732_v49 = vld [vmem:[%s4506_s5 + $0x48] sm:$0xff] }
 0x17d   : > { %vm1556_vm10 = vcmp.gt.f32.partialorder %v1338_v48, 0.0  ;;  %v1620_v50 = vmul.f32 0.2, %v1338_v48 }
 0x17e   : > { %v1342_v52 = vpop.f32.mrb[52].mxu0 }
 0x17f   : > { %v1343_v53 = vadd.f32 %v1342_v52, %v766_v51  ;;  %v1344_v54 = vpop.f32.mrb[53].mxu0  ;;  %v1684_v56 = vsel %vm1556_vm10, %v1338_v48, %v1620_v50  ;;  %v811_v51 = vpop.permute.xlu1 %810 }
 0x180   : > { %v2979_v57 = vpack.c.bf16 %v1684_v56, %v1683_v55 }
 0x181   : > { %v1621_v60 = vmul.f32 0.2, %v1343_v53  ;;  %vm1557_vm11 = vcmp.gt.f32.partialorder %v1343_v53, 0.0 }
 0x182   : > { %v1347_v59 = vpop.f32.mrb[54].mxu0  ;;  %2980 = vmatpush1.bf16.msra.mxu1 %v2979_v57  ;;  %v1736_v57 = vld [vmem:[%s4506_s5 + $0x68] sm:$0xff] }
 0x183   : > { %v1348_v61 = vadd.f32 %v1347_v59, %v771_v58  ;;  %v1349_v62 = vpop.f32.mrb[55].mxu0  ;;  %2981 = vmatprep.subr.bf16.mxu1 %v3218_v1  ;;  %v1685_v5 = vsel %vm1557_vm11, %v1343_v53, %v1621_v60  ;;  %v1731_v53 = vld [vmem:[%s4506_s5 + $0x40] sm:$0xff]  ;;  %v816_v59 = vpop.permute.xlu0 %815 }
 0x185   : > { %vm1558_vm12 = vcmp.gt.f32.partialorder %v1348_v61, 0.0  ;;  %v1622_v63 = vmul.f32 0.2, %v1348_v61 }
 0x186   : > { %v1352_v2 = vpop.f32.mrb[56].mxu0 }
 0x187   : > { %v1353_v3 = vadd.f32 %v1352_v2, %v776_v0  ;;  %v1354_v4 = vpop.f32.mrb[57].mxu0  ;;  %v1686_v6 = vsel %vm1558_vm12, %v1348_v61, %v1622_v63  ;;  %v1735_v61 = vld [vmem:[%s4506_s5 + $0x60] sm:$0xff] }
 0x188   : > { %v2982_v7 = vpack.c.bf16 %v1686_v6, %v1685_v5  ;;  %v821_v5 = vpop.permute.xlu1 %820 }
 0x189   : > { %v1623_v10 = vmul.f32 0.2, %v1353_v3  ;;  %vm1559_vm13 = vcmp.gt.f32.partialorder %v1353_v3, 0.0 }
 0x18a   : > { %v1357_v9 = vpop.f32.mrb[58].mxu0  ;;  %2983 = vmatpush1.bf16.msra.mxu1 %v2982_v7  ;;  %v1739_v7 = vld [vmem:[%s4506_s5 + $0x80] sm:$0xff] }
 0x18b   : > { %v1358_v11 = vadd.f32 %v1357_v9, %v781_v8  ;;  %v1359_v12 = vpop.f32.mrb[59].mxu0  ;;  %2984 = vmatprep.subr.bf16.mxu1 %v3218_v1  ;;  %v1687_v18 = vsel %vm1559_vm13, %v1353_v3, %v1623_v10  ;;  %v1740_v3 = vld [vmem:[%s4506_s5 + $0x88] sm:$0xff] }
 0x18d   : > { %vm1560_vm14 = vcmp.gt.f32.partialorder %v1358_v11, 0.0  ;;  %v1624_v13 = vmul.f32 0.2, %v1358_v11 }
 0x18e   : > { %v1362_v15 = vpop.f32.mrb[60].mxu0 }
 0x18f   : > { %v1363_v16 = vadd.f32 %v1362_v15, %v786_v14  ;;  %v1364_v17 = vpop.f32.mrb[61].mxu0  ;;  %v1688_v19 = vsel %vm1560_vm14, %v1358_v11, %v1624_v13  ;;  %v1744_v11 = vld [vmem:[%s4506_s5 + $0xa8] sm:$0xff]  ;;  %v826_v13 = vpop.permute.xlu0 %825  ;;  %v1743_v15 = vld [vmem:[%s4506_s5 + $0xa0] sm:$0xff] }
 0x190   : > { %v2985_v20 = vpack.c.bf16 %v1688_v19, %v1687_v18 }
 0x191   : > { %v1625_v23 = vmul.f32 0.2, %v1363_v16  ;;  %vm1561_vm15 = vcmp.gt.f32.partialorder %v1363_v16, 0.0 }
 0x192   : > { %v1367_v22 = vpop.f32.mrb[62].mxu0  ;;  %2986 = vmatpush1.bf16.msra.mxu1 %v2985_v20  ;;  %v1748_v20 = vld [vmem:[%s4506_s5 + $0xc8] sm:$0xff] }
 0x193   : > { %v1368_v24 = vadd.f32 %v1367_v22, %v791_v21  ;;  %v1369_v25 = vpop.f32.mrb[63].mxu0  ;;  %2987 = vmatprep.subr.bf16.mxu1 %v3218_v1  ;;  %v1689_v31 = vsel %vm1561_vm15, %v1363_v16, %v1625_v23  ;;  %v831_v22 = vpop.permute.xlu1 %830 }
 0x195   : > { %vm1562_vm0 = vcmp.gt.f32.partialorder %v1368_v24, 0.0  ;;  %v1626_v26 = vmul.f32 0.2, %v1368_v24 }
 0x196   : > { %v1372_v28 = vpop.f32.mrb[64].mxu0 }
 0x197   : > { %v1373_v29 = vadd.f32 %v1372_v28, %v796_v27  ;;  %v1374_v30 = vpop.f32.mrb[65].mxu0  ;;  %v1690_v32 = vsel %vm1562_vm0, %v1368_v24, %v1626_v26  ;;  %v1747_v24 = vld [vmem:[%s4506_s5 + $0xc0] sm:$0xff]  ;;  %v1752_v28 = vld [vmem:[%s4506_s5 + $0xe8] sm:$0xff] }
 0x198   : > { %v2988_v33 = vpack.c.bf16 %v1690_v32, %v1689_v31  ;;  %v836_v30 = vpop.permute.xlu0 %835  ;;  %v1751_v32 = vld [vmem:[%s4506_s5 + $0xe0] sm:$0xff] }
 0x199   : > { %v1627_v37 = vmul.f32 0.2, %v1373_v29  ;;  %vm1563_vm1 = vcmp.gt.f32.partialorder %v1373_v29, 0.0 }
 0x19a   : > { %v1377_v35 = vpop.f32.mrb[66].mxu0  ;;  %2989 = vmatpush1.bf16.msra.mxu1 %v2988_v33 }
 0x19b   : > { %v1378_v38 = vadd.f32 %v1377_v35, %v801_v34  ;;  %v1379_v39 = vpop.f32.mrb[67].mxu0  ;;  %2990 = vmatprep.subr.bf16.mxu1 %v3218_v1  ;;  %v1691_v45 = vsel %vm1563_vm1, %v1373_v29, %v1627_v37  ;;  %v1756_v37 = vld [vmem:[%s4506_s5 + $0x108] sm:$0xff] }
 0x19c   : > { %v841_v39 = vpop.permute.xlu1 %840 }
 0x19d   : > { %vm1564_vm2 = vcmp.gt.f32.partialorder %v1378_v38, 0.0  ;;  %v1628_v41 = vmul.f32 0.2, %v1378_v38  ;;  %2108 = vmatmul.mubr.f32.vlgmr.msra.gmra.mrb[0].mxu1 %v1723_v36 }
 0x19e   : > { %v1382_v43 = vpop.f32.mrb[68].mxu0  ;;  %2112 = vmatprep.mubr.f32.mxu1 %v1728_v40 }
 0x19f   : > { %v1692_v46 = vsel %vm1564_vm2, %v1378_v38, %v1628_v41  ;;  %v1383_v47 = vadd.f32 %v1382_v43, %v806_v42  ;;  %v1384_v48 = vpop.f32.mrb[69].mxu0  ;;  %v1755_v41 = vld [vmem:[%s4506_s5 + $0x100] sm:$0xff] }
 0x1a0   : > { %v2991_v50 = vpack.c.bf16 %v1692_v46, %v1691_v45  ;;  %v1760_v45 = vld [vmem:[%s4506_s5 + $0x128] sm:$0xff] }
 0x1a1   : > { %2113 = vmatmul.mubr.f32.gmra.mrb[2].mxu1 %v1727_v44  ;;  %v1629_v54 = vmul.f32 0.2, %v1383_v47  ;;  %vm1565_vm3 = vcmp.gt.f32.partialorder %v1383_v47, 0.0 }
 0x1a2   : > { %v1387_v52 = vpop.f32.mrb[70].mxu0  ;;  %2992 = vmatpush1.bf16.msra.mxu1 %v2991_v50  ;;  %2117 = vmatprep.mubr.f32.mxu1 %v1732_v49  ;;  %v1759_v49 = vld [vmem:[%s4506_s5 + $0x120] sm:$0xff] }
 0x1a3   : > { %v1388_v55 = vadd.f32 %v1387_v52, %v811_v51  ;;  %v1389_v56 = vpop.f32.mrb[71].mxu0  ;;  %2993 = vmatprep.subr.bf16.mxu1 %v3218_v1  ;;  %v1693_v62 = vsel %vm1565_vm3, %v1383_v47, %v1629_v54  ;;  %v846_v47 = vpop.permute.xlu0 %845  ;;  %v1764_v54 = vld [vmem:[%s4506_s5 + $0x148] sm:$0xff] }
 0x1a4   : > { %v851_v56 = vpop.permute.xlu1 %850 }
 0x1a5   : > { %vm1566_vm4 = vcmp.gt.f32.partialorder %v1388_v55, 0.0  ;;  %v1630_v58 = vmul.f32 0.2, %v1388_v55  ;;  %2118 = vmatmul.mubr.f32.gmra.mrb[4].mxu1 %v1731_v53 }
 0x1a6   : > { %v1392_v60 = vpop.f32.mrb[72].mxu0  ;;  %2122 = vmatprep.mubr.f32.mxu1 %v1736_v57 }
 0x1a7   : > { %v1694_v63 = vsel %vm1566_vm4, %v1388_v55, %v1630_v58  ;;  %v1393_v0 = vadd.f32 %v1392_v60, %v816_v59  ;;  %v1394_v2 = vpop.f32.mrb[73].mxu0  ;;  %v1763_v58 = vld [vmem:[%s4506_s5 + $0x140] sm:$0xff] }
 0x1a8   : > { %v2994_v4 = vpack.c.bf16 %v1694_v63, %v1693_v62  ;;  %v1768_v62 = vld [vmem:[%s4506_s5 + $0x168] sm:$0xff] }
 0x1a9   : > { %2123 = vmatmul.mubr.f32.gmra.mrb[6].mxu1 %v1735_v61  ;;  %v1631_v8 = vmul.f32 0.2, %v1393_v0  ;;  %vm1567_vm5 = vcmp.gt.f32.partialorder %v1393_v0, 0.0 }
 0x1aa   : > { %v1397_v6 = vpop.f32.mrb[74].mxu0  ;;  %2995 = vmatpush1.bf16.msra.mxu1 %v2994_v4  ;;  %2127 = vmatprep.mubr.f32.mxu1 %v1740_v3  ;;  %v1767_v3 = vld [vmem:[%s4506_s5 + $0x160] sm:$0xff] }
 0x1ab   : > { %v1398_v9 = vadd.f32 %v1397_v6, %v821_v5  ;;  %v1399_v10 = vpop.f32.mrb[75].mxu0  ;;  %2996 = vmatprep.subr.bf16.mxu1 %v3218_v1  ;;  %v1695_v16 = vsel %vm1567_vm5, %v1393_v0, %v1631_v8  ;;  %v856_v0 = vpop.permute.xlu0 %855  ;;  %v1772_v8 = vld [vmem:[%s4506_s5 + $0x188] sm:$0xff] }
 0x1ac   : > { %v861_v10 = vpop.permute.xlu1 %860 }
 0x1ad   : > { %vm1568_vm6 = vcmp.gt.f32.partialorder %v1398_v9, 0.0  ;;  %v1632_v12 = vmul.f32 0.2, %v1398_v9  ;;  %2128 = vmatmul.mubr.f32.gmra.mrb[8].mxu1 %v1739_v7 }
 0x1ae   : > { %v1402_v14 = vpop.f32.mrb[76].mxu0  ;;  %2132 = vmatprep.mubr.f32.mxu1 %v1744_v11 }
 0x1af   : > { %v1696_v17 = vsel %vm1568_vm6, %v1398_v9, %v1632_v12  ;;  %v1403_v18 = vadd.f32 %v1402_v14, %v826_v13  ;;  %v1404_v19 = vpop.f32.mrb[77].mxu0  ;;  %v1771_v12 = vld [vmem:[%s4506_s5 + $0x180] sm:$0xff] }
 0x1b0   : > { %v2997_v21 = vpack.c.bf16 %v1696_v17, %v1695_v16  ;;  %v1776_v16 = vld [vmem:[%s4506_s5 + $0x1a8] sm:$0xff] }
 0x1b1   : > { %2133 = vmatmul.mubr.f32.gmra.mrb[10].mxu1 %v1743_v15  ;;  %v1633_v25 = vmul.f32 0.2, %v1403_v18  ;;  %vm1569_vm7 = vcmp.gt.f32.partialorder %v1403_v18, 0.0 }
 0x1b2   : > { %v1407_v23 = vpop.f32.mrb[78].mxu0  ;;  %2998 = vmatpush1.bf16.msra.mxu1 %v2997_v21  ;;  %2137 = vmatprep.mubr.f32.mxu1 %v1748_v20  ;;  %v1775_v20 = vld [vmem:[%s4506_s5 + $0x1a0] sm:$0xff] }
 0x1b3   : > { %v1408_v26 = vadd.f32 %v1407_v23, %v831_v22  ;;  %v1409_v27 = vpop.f32.mrb[79].mxu0  ;;  %2999 = vmatprep.subr.bf16.mxu1 %v3218_v1  ;;  %v1697_v33 = vsel %vm1569_vm7, %v1403_v18, %v1633_v25  ;;  %v866_v18 = vpop.permute.xlu0 %865  ;;  %v1780_v25 = vld [vmem:[%s4506_s5 + $0x1c8] sm:$0xff] }
 0x1b4   : > { %v871_v27 = vpop.permute.xlu1 %870 }
 0x1b5   : > { %vm1570_vm8 = vcmp.gt.f32.partialorder %v1408_v26, 0.0  ;;  %v1634_v29 = vmul.f32 0.2, %v1408_v26  ;;  %2138 = vmatmul.mubr.f32.gmra.mrb[12].mxu1 %v1747_v24 }
 0x1b6   : > { %v1412_v31 = vpop.f32.mrb[80].mxu0  ;;  %2142 = vmatprep.mubr.f32.mxu1 %v1752_v28 }
 0x1b7   : > { %v1698_v34 = vsel %vm1570_vm8, %v1408_v26, %v1634_v29  ;;  %v1413_v35 = vadd.f32 %v1412_v31, %v836_v30  ;;  %v1414_v36 = vpop.f32.mrb[81].mxu0  ;;  %v1779_v29 = vld [vmem:[%s4506_s5 + $0x1c0] sm:$0xff] }
 0x1b8   : > { %v3000_v38 = vpack.c.bf16 %v1698_v34, %v1697_v33  ;;  %v1784_v33 = vld [vmem:[%s4506_s5 + $0x1e8] sm:$0xff] }
 0x1b9   : > { %2143 = vmatmul.mubr.f32.gmra.mrb[14].mxu1 %v1751_v32  ;;  %v1635_v42 = vmul.f32 0.2, %v1413_v35  ;;  %vm1571_vm9 = vcmp.gt.f32.partialorder %v1413_v35, 0.0 }
 0x1ba   : > { %v1417_v40 = vpop.f32.mrb[82].mxu0  ;;  %3001 = vmatpush1.bf16.msra.mxu1 %v3000_v38  ;;  %2147 = vmatprep.mubr.f32.mxu1 %v1756_v37  ;;  %v1783_v37 = vld [vmem:[%s4506_s5 + $0x1e0] sm:$0xff] }
 0x1bb   : > { %v1418_v43 = vadd.f32 %v1417_v40, %v841_v39  ;;  %v1419_v44 = vpop.f32.mrb[83].mxu0  ;;  %3002 = vmatprep.subr.bf16.mxu1 %v3218_v1  ;;  %v1699_v50 = vsel %vm1571_vm9, %v1413_v35, %v1635_v42  ;;  %v876_v35 = vpop.permute.xlu0 %875  ;;  %v1788_v42 = vld [vmem:[%s4506_s5 + $0x208] sm:$0xff] }
 0x1bc   : > { %v881_v44 = vpop.permute.xlu1 %880 }
 0x1bd   : > { %vm1572_vm10 = vcmp.gt.f32.partialorder %v1418_v43, 0.0  ;;  %v1636_v46 = vmul.f32 0.2, %v1418_v43  ;;  %2148 = vmatmul.mubr.f32.gmra.mrb[16].mxu1 %v1755_v41 }
 0x1be   : > { %v1422_v48 = vpop.f32.mrb[84].mxu0  ;;  %2152 = vmatprep.mubr.f32.mxu1 %v1760_v45 }
 0x1bf   : > { %v1700_v51 = vsel %vm1572_vm10, %v1418_v43, %v1636_v46  ;;  %v1423_v52 = vadd.f32 %v1422_v48, %v846_v47  ;;  %v1424_v53 = vpop.f32.mrb[85].mxu0  ;;  %v1787_v46 = vld [vmem:[%s4506_s5 + $0x200] sm:$0xff] }
 0x1c0   : > { %v3003_v55 = vpack.c.bf16 %v1700_v51, %v1699_v50  ;;  %v1792_v50 = vld [vmem:[%s4506_s5 + $0x228] sm:$0xff] }
 0x1c1   : > { %2153 = vmatmul.mubr.f32.gmra.mrb[18].mxu1 %v1759_v49  ;;  %v1637_v59 = vmul.f32 0.2, %v1423_v52  ;;  %vm1573_vm11 = vcmp.gt.f32.partialorder %v1423_v52, 0.0 }
 0x1c2   : > { %v1427_v57 = vpop.f32.mrb[86].mxu0  ;;  %3004 = vmatpush1.bf16.msra.mxu1 %v3003_v55  ;;  %2157 = vmatprep.mubr.f32.mxu1 %v1764_v54  ;;  %v1791_v54 = vld [vmem:[%s4506_s5 + $0x220] sm:$0xff] }
 0x1c3   : > { %v1428_v60 = vadd.f32 %v1427_v57, %v851_v56  ;;  %v1429_v61 = vpop.f32.mrb[87].mxu0  ;;  %3005 = vmatprep.subr.bf16.mxu1 %v3218_v1  ;;  %v1701_v4 = vsel %vm1573_vm11, %v1423_v52, %v1637_v59  ;;  %v886_v52 = vpop.permute.xlu0 %885  ;;  %v1796_v59 = vld [vmem:[%s4506_s5 + $0x248] sm:$0xff] }
 0x1c4   : > { %v891_v61 = vpop.permute.xlu1 %890 }
 0x1c5   : > { %vm1574_vm12 = vcmp.gt.f32.partialorder %v1428_v60, 0.0  ;;  %v1638_v63 = vmul.f32 0.2, %v1428_v60  ;;  %2158 = vmatmul.mubr.f32.gmra.mrb[20].mxu1 %v1763_v58 }
 0x1c6   : > { %v1432_v2 = vpop.f32.mrb[88].mxu0  ;;  %2162 = vmatprep.mubr.f32.mxu1 %v1768_v62 }
 0x1c7   : > { %v1702_v5 = vsel %vm1574_vm12, %v1428_v60, %v1638_v63  ;;  %v1433_v6 = vadd.f32 %v1432_v2, %v856_v0  ;;  %v1434_v7 = vpop.f32.mrb[89].mxu0  ;;  %v1795_v63 = vld [vmem:[%s4506_s5 + $0x240] sm:$0xff] }
 0x1c8   : > { %v3006_v9 = vpack.c.bf16 %v1702_v5, %v1701_v4  ;;  %v1800_v4 = vld [vmem:[%s4506_s5 + $0x268] sm:$0xff] }
 0x1c9   : > { %2163 = vmatmul.mubr.f32.gmra.mrb[22].mxu1 %v1767_v3  ;;  %v1639_v13 = vmul.f32 0.2, %v1433_v6  ;;  %vm1575_vm13 = vcmp.gt.f32.partialorder %v1433_v6, 0.0 }
 0x1ca   : > { %v1437_v11 = vpop.f32.mrb[90].mxu0  ;;  %3007 = vmatpush1.bf16.msra.mxu1 %v3006_v9  ;;  %2167 = vmatprep.mubr.f32.mxu1 %v1772_v8  ;;  %v1799_v8 = vld [vmem:[%s4506_s5 + $0x260] sm:$0xff] }
 0x1cb   : > { %v1438_v14 = vadd.f32 %v1437_v11, %v861_v10  ;;  %v1439_v15 = vpop.f32.mrb[91].mxu0  ;;  %3008 = vmatprep.subr.bf16.mxu1 %v3218_v1  ;;  %v1703_v21 = vsel %vm1575_vm13, %v1433_v6, %v1639_v13  ;;  %v896_v6 = vpop.permute.xlu0 %895  ;;  %v1804_v13 = vld [vmem:[%s4506_s5 + $0x288] sm:$0xff] }
 0x1cc   : > { %v901_v15 = vpop.permute.xlu1 %900 }
 0x1cd   : > { %vm1576_vm14 = vcmp.gt.f32.partialorder %v1438_v14, 0.0  ;;  %v1640_v17 = vmul.f32 0.2, %v1438_v14  ;;  %2168 = vmatmul.mubr.f32.gmra.mrb[24].mxu1 %v1771_v12 }
 0x1ce   : > { %v1442_v19 = vpop.f32.mrb[92].mxu0  ;;  %2172 = vmatprep.mubr.f32.mxu1 %v1776_v16 }
 0x1cf   : > { %v1704_v22 = vsel %vm1576_vm14, %v1438_v14, %v1640_v17  ;;  %v1443_v23 = vadd.f32 %v1442_v19, %v866_v18  ;;  %v1444_v24 = vpop.f32.mrb[93].mxu0  ;;  %v1803_v17 = vld [vmem:[%s4506_s5 + $0x280] sm:$0xff] }
 0x1d0   : > { %v3009_v26 = vpack.c.bf16 %v1704_v22, %v1703_v21  ;;  %v1808_v21 = vld [vmem:[%s4506_s5 + $0x2a8] sm:$0xff] }
 0x1d1   : > { %2173 = vmatmul.mubr.f32.gmra.mrb[26].mxu1 %v1775_v20  ;;  %v1641_v30 = vmul.f32 0.2, %v1443_v23  ;;  %vm1577_vm15 = vcmp.gt.f32.partialorder %v1443_v23, 0.0 }
 0x1d2   : > { %v1447_v28 = vpop.f32.mrb[94].mxu0  ;;  %3010 = vmatpush1.bf16.msra.mxu1 %v3009_v26  ;;  %2177 = vmatprep.mubr.f32.mxu1 %v1780_v25  ;;  %v1807_v25 = vld [vmem:[%s4506_s5 + $0x2a0] sm:$0xff] }
 0x1d3   : > { %v1448_v31 = vadd.f32 %v1447_v28, %v871_v27  ;;  %v1449_v32 = vpop.f32.mrb[95].mxu0  ;;  %3011 = vmatprep.subr.bf16.mxu1 %v3218_v1  ;;  %v1705_v38 = vsel %vm1577_vm15, %v1443_v23, %v1641_v30  ;;  %v906_v23 = vpop.permute.xlu0 %905  ;;  %v1812_v30 = vld [vmem:[%s4506_s5 + $0x2c8] sm:$0xff] }
 0x1d4   : > { %v911_v32 = vpop.permute.xlu1 %910 }
 0x1d5   : > { %vm1578_vm0 = vcmp.gt.f32.partialorder %v1448_v31, 0.0  ;;  %v1642_v34 = vmul.f32 0.2, %v1448_v31  ;;  %2178 = vmatmul.mubr.f32.gmra.mrb[28].mxu1 %v1779_v29 }
 0x1d6   : > { %v1452_v36 = vpop.f32.mrb[96].mxu0  ;;  %2182 = vmatprep.mubr.f32.mxu1 %v1784_v33 }
 0x1d7   : > { %v1706_v39 = vsel %vm1578_vm0, %v1448_v31, %v1642_v34  ;;  %v1453_v40 = vadd.f32 %v1452_v36, %v876_v35  ;;  %v1454_v41 = vpop.f32.mrb[97].mxu0  ;;  %v1811_v34 = vld [vmem:[%s4506_s5 + $0x2c0] sm:$0xff] }
 0x1d8   : > { %v3012_v43 = vpack.c.bf16 %v1706_v39, %v1705_v38  ;;  %v1816_v38 = vld [vmem:[%s4506_s5 + $0x2e8] sm:$0xff] }
 0x1d9   : > { %2183 = vmatmul.mubr.f32.gmra.mrb[30].mxu1 %v1783_v37  ;;  %v1643_v47 = vmul.f32 0.2, %v1453_v40  ;;  %vm1579_vm1 = vcmp.gt.f32.partialorder %v1453_v40, 0.0 }
 0x1da   : > { %v1457_v45 = vpop.f32.mrb[98].mxu0  ;;  %3013 = vmatpush1.bf16.msra.mxu1 %v3012_v43  ;;  %2187 = vmatprep.mubr.f32.mxu1 %v1788_v42  ;;  %v1815_v42 = vld [vmem:[%s4506_s5 + $0x2e0] sm:$0xff] }
 0x1db   : > { %v1458_v48 = vadd.f32 %v1457_v45, %v881_v44  ;;  %v1459_v49 = vpop.f32.mrb[99].mxu0  ;;  %3014 = vmatprep.subr.bf16.mxu1 %v3218_v1  ;;  %v1707_v55 = vsel %vm1579_vm1, %v1453_v40, %v1643_v47  ;;  %v916_v40 = vpop.permute.xlu0 %915  ;;  %v1820_v47 = vld [vmem:[%s4506_s5 + $0x308] sm:$0xff] }
 0x1dc   : > { %v921_v49 = vpop.permute.xlu1 %920 }
 0x1dd   : > { %vm1580_vm2 = vcmp.gt.f32.partialorder %v1458_v48, 0.0  ;;  %v1644_v51 = vmul.f32 0.2, %v1458_v48  ;;  %2188 = vmatmul.mubr.f32.gmra.mrb[32].mxu1 %v1787_v46 }
 0x1de   : > { %v1462_v53 = vpop.f32.mrb[100].mxu0  ;;  %2192 = vmatprep.mubr.f32.mxu1 %v1792_v50 }
 0x1df   : > { %v1708_v56 = vsel %vm1580_vm2, %v1458_v48, %v1644_v51  ;;  %v1463_v57 = vadd.f32 %v1462_v53, %v886_v52  ;;  %v1464_v58 = vpop.f32.mrb[101].mxu0  ;;  %v1819_v51 = vld [vmem:[%s4506_s5 + $0x300] sm:$0xff] }
 0x1e0   : > { %v3015_v60 = vpack.c.bf16 %v1708_v56, %v1707_v55  ;;  %v1824_v55 = vld [vmem:[%s4506_s5 + $0x328] sm:$0xff] }
 0x1e1   : > { %2193 = vmatmul.mubr.f32.gmra.mrb[34].mxu1 %v1791_v54  ;;  %v1645_v0 = vmul.f32 0.2, %v1463_v57  ;;  %vm1581_vm3 = vcmp.gt.f32.partialorder %v1463_v57, 0.0 }
 0x1e2   : > { %v1467_v62 = vpop.f32.mrb[102].mxu0  ;;  %3016 = vmatpush1.bf16.msra.mxu1 %v3015_v60  ;;  %2197 = vmatprep.mubr.f32.mxu1 %v1796_v59  ;;  %v1823_v59 = vld [vmem:[%s4506_s5 + $0x320] sm:$0xff] }
 0x1e3   : > { %v1468_v2 = vadd.f32 %v1467_v62, %v891_v61  ;;  %v1469_v3 = vpop.f32.mrb[103].mxu0  ;;  %3017 = vmatprep.subr.bf16.mxu1 %v3218_v1  ;;  %v1709_v9 = vsel %vm1581_vm3, %v1463_v57, %v1645_v0  ;;  %v926_v57 = vpop.permute.xlu0 %925  ;;  %v1828_v0 = vld [vmem:[%s4506_s5 + $0x348] sm:$0xff] }
 0x1e4   : > { %v931_v3 = vpop.permute.xlu1 %930 }
 0x1e5   : > { %vm1582_vm4 = vcmp.gt.f32.partialorder %v1468_v2, 0.0  ;;  %v1646_v5 = vmul.f32 0.2, %v1468_v2  ;;  %2198 = vmatmul.mubr.f32.gmra.mrb[36].mxu1 %v1795_v63 }
 0x1e6   : > { %v1472_v7 = vpop.f32.mrb[104].mxu0  ;;  %2202 = vmatprep.mubr.f32.mxu1 %v1800_v4 }
 0x1e7   : > { %v1710_v10 = vsel %vm1582_vm4, %v1468_v2, %v1646_v5  ;;  %v1473_v11 = vadd.f32 %v1472_v7, %v896_v6  ;;  %v1474_v12 = vpop.f32.mrb[105].mxu0  ;;  %v1827_v5 = vld [vmem:[%s4506_s5 + $0x340] sm:$0xff] }
 0x1e8   : > { %v3018_v14 = vpack.c.bf16 %v1710_v10, %v1709_v9  ;;  %v1832_v9 = vld [vmem:[%s4506_s5 + $0x368] sm:$0xff] }
 0x1e9   : > { %2203 = vmatmul.mubr.f32.gmra.mrb[38].mxu1 %v1799_v8  ;;  %v1647_v18 = vmul.f32 0.2, %v1473_v11  ;;  %vm1583_vm5 = vcmp.gt.f32.partialorder %v1473_v11, 0.0 }
 0x1ea   : > { %v1477_v16 = vpop.f32.mrb[106].mxu0  ;;  %3019 = vmatpush1.bf16.msra.mxu1 %v3018_v14  ;;  %2207 = vmatprep.mubr.f32.mxu1 %v1804_v13  ;;  %v1831_v13 = vld [vmem:[%s4506_s5 + $0x360] sm:$0xff] }
 0x1eb   : > { %v1478_v19 = vadd.f32 %v1477_v16, %v901_v15  ;;  %v1479_v20 = vpop.f32.mrb[107].mxu0  ;;  %3020 = vmatprep.subr.bf16.mxu1 %v3218_v1  ;;  %v1711_v26 = vsel %vm1583_vm5, %v1473_v11, %v1647_v18  ;;  %v936_v11 = vpop.permute.xlu0 %935  ;;  %v1836_v18 = vld [vmem:[%s4506_s5 + $0x388] sm:$0xff] }
 0x1ec   : > { %v941_v20 = vpop.permute.xlu1 %940 }
 0x1ed   : > { %vm1584_vm6 = vcmp.gt.f32.partialorder %v1478_v19, 0.0  ;;  %v1648_v22 = vmul.f32 0.2, %v1478_v19  ;;  %2208 = vmatmul.mubr.f32.gmra.mrb[40].mxu1 %v1803_v17 }
 0x1ee   : > { %v1482_v24 = vpop.f32.mrb[108].mxu0  ;;  %2212 = vmatprep.mubr.f32.mxu1 %v1808_v21 }
 0x1ef   : > { %v1712_v27 = vsel %vm1584_vm6, %v1478_v19, %v1648_v22  ;;  %v1483_v28 = vadd.f32 %v1482_v24, %v906_v23  ;;  %v1484_v29 = vpop.f32.mrb[109].mxu0  ;;  %v1835_v22 = vld [vmem:[%s4506_s5 + $0x380] sm:$0xff] }
 0x1f0   : > { %v3021_v31 = vpack.c.bf16 %v1712_v27, %v1711_v26  ;;  %v1840_v26 = vld [vmem:[%s4506_s5 + $0x3a8] sm:$0xff] }
 0x1f1   : > { %2213 = vmatmul.mubr.f32.gmra.mrb[42].mxu1 %v1807_v25  ;;  %v1649_v35 = vmul.f32 0.2, %v1483_v28  ;;  %vm1585_vm7 = vcmp.gt.f32.partialorder %v1483_v28, 0.0 }
 0x1f2   : > { %v1487_v33 = vpop.f32.mrb[110].mxu0  ;;  %3022 = vmatpush1.bf16.msra.mxu1 %v3021_v31  ;;  %2217 = vmatprep.mubr.f32.mxu1 %v1812_v30  ;;  %v1839_v30 = vld [vmem:[%s4506_s5 + $0x3a0] sm:$0xff] }
 0x1f3   : > { %v1488_v36 = vadd.f32 %v1487_v33, %v911_v32  ;;  %v1489_v37 = vpop.f32.mrb[111].mxu0  ;;  %3023 = vmatprep.subr.bf16.mxu1 %v3218_v1  ;;  %v1713_v43 = vsel %vm1585_vm7, %v1483_v28, %v1649_v35  ;;  %v946_v28 = vpop.permute.xlu0 %945  ;;  %v1844_v35 = vld [vmem:[%s4506_s5 + $0x3c8] sm:$0xff] }
 0x1f4   : > { %v951_v37 = vpop.permute.xlu1 %950 }
 0x1f5   : > { %vm1586_vm8 = vcmp.gt.f32.partialorder %v1488_v36, 0.0  ;;  %v1650_v39 = vmul.f32 0.2, %v1488_v36  ;;  %2218 = vmatmul.mubr.f32.gmra.mrb[44].mxu1 %v1811_v34 }
 0x1f6   : > { %v1492_v41 = vpop.f32.mrb[112].mxu0  ;;  %2222 = vmatprep.mubr.f32.mxu1 %v1816_v38 }
 0x1f7   : > { %v1714_v44 = vsel %vm1586_vm8, %v1488_v36, %v1650_v39  ;;  %v1493_v45 = vadd.f32 %v1492_v41, %v916_v40  ;;  %v1494_v46 = vpop.f32.mrb[113].mxu0  ;;  %v1843_v39 = vld [vmem:[%s4506_s5 + $0x3c0] sm:$0xff] }
 0x1f8   : > { %v3024_v48 = vpack.c.bf16 %v1714_v44, %v1713_v43  ;;  %v1848_v43 = vld [vmem:[%s4506_s5 + $0x3e8] sm:$0xff] }
 0x1f9   : > { %2223 = vmatmul.mubr.f32.gmra.mrb[46].mxu1 %v1815_v42  ;;  %v1651_v52 = vmul.f32 0.2, %v1493_v45  ;;  %vm1587_vm9 = vcmp.gt.f32.partialorder %v1493_v45, 0.0 }
 0x1fa   : > { %v1497_v50 = vpop.f32.mrb[114].mxu0  ;;  %3025 = vmatpush1.bf16.msra.mxu1 %v3024_v48  ;;  %2227 = vmatprep.mubr.f32.mxu1 %v1820_v47  ;;  %v1726_v48 = vld [vmem:[%s4506_s5 + $0x18] sm:$0xff] }
 0x1fb   : > { %v1498_v53 = vadd.f32 %v1497_v50, %v921_v49  ;;  %v1499_v54 = vpop.f32.mrb[115].mxu0  ;;  %3026 = vmatprep.subr.bf16.mxu1 %v3218_v1  ;;  %v1715_v60 = vsel %vm1587_vm9, %v1493_v45, %v1651_v52  ;;  %v1847_v45 = vld [vmem:[%s4506_s5 + $0x3e0] sm:$0xff]  ;;  %v1730_v50 = vld [vmem:[%s4506_s5 + $0x38] sm:$0xff] }
 0x1fc   : > { %v1734_v52 = vld [vmem:[%s4506_s5 + $0x58] sm:$0xff] }
 0x1fd   : > { %vm1588_vm10 = vcmp.gt.f32.partialorder %v1498_v53, 0.0  ;;  %v1652_v56 = vmul.f32 0.2, %v1498_v53  ;;  %2228 = vmatmul.mubr.f32.gmra.mrb[48].mxu1 %v1819_v51  ;;  %v1729_v51 = vld [vmem:[%s4506_s5 + $0x30] sm:$0xff]  ;;  %v1738_v54 = vld [vmem:[%s4506_s5 + $0x78] sm:$0xff] }
 0x1fe   : > { %v1502_v58 = vpop.f32.mrb[116].mxu0  ;;  %2232 = vmatprep.mubr.f32.mxu1 %v1824_v55  ;;  %v1737_v55 = vld [vmem:[%s4506_s5 + $0x70] sm:$0xff] }
 0x1ff   : > { %v1716_v61 = vsel %vm1588_vm10, %v1498_v53, %v1652_v56  ;;  %v1503_v62 = vadd.f32 %v1502_v58, %v926_v57  ;;  %v1504_v63 = vpop.f32.mrb[117].mxu0  ;;  %v1733_v53 = vld [vmem:[%s4506_s5 + $0x50] sm:$0xff]  ;;  %v1742_v56 = vld [vmem:[%s4506_s5 + $0x98] sm:$0xff] }
 0x200   : > { %v3027_v2 = vpack.c.bf16 %v1716_v61, %v1715_v60  ;;  %v1741_v57 = vld [vmem:[%s4506_s5 + $0x90] sm:$0xff]  ;;  %v1746_v58 = vld [vmem:[%s4506_s5 + $0xb8] sm:$0xff] }
 0x201   : > { %2233 = vmatmul.mubr.f32.gmra.mrb[50].mxu1 %v1823_v59  ;;  %v1653_v6 = vmul.f32 0.2, %v1503_v62  ;;  %vm1589_vm11 = vcmp.gt.f32.partialorder %v1503_v62, 0.0  ;;  %v1745_v59 = vld [vmem:[%s4506_s5 + $0xb0] sm:$0xff]  ;;  %v1750_v60 = vld [vmem:[%s4506_s5 + $0xd8] sm:$0xff] }
 0x202   : > { %v1507_v4 = vpop.f32.mrb[118].mxu0  ;;  %3028 = vmatpush1.bf16.msra.mxu1 %v3027_v2  ;;  %2237 = vmatprep.mubr.f32.mxu1 %v1828_v0  ;;  %v1749_v61 = vld [vmem:[%s4506_s5 + $0xd0] sm:$0xff]  ;;  %v1758_v0 = vld [vmem:[%s4506_s5 + $0x118] sm:$0xff] }
 0x203   : > { %v1508_v7 = vadd.f32 %v1507_v4, %v931_v3  ;;  %v1509_v8 = vpop.f32.mrb[119].mxu0  ;;  %3029 = vmatprep.subr.bf16.mxu1 %v3218_v1  ;;  %v1717_v14 = vsel %vm1589_vm11, %v1503_v62, %v1653_v6  ;;  %v1754_v62 = vld [vmem:[%s4506_s5 + $0xf8] sm:$0xff]  ;;  %v1753_v63 = vld [vmem:[%s4506_s5 + $0xf0] sm:$0xff] }
 0x204   : > { %v1757_v2 = vld [vmem:[%s4506_s5 + $0x110] sm:$0xff]  ;;  %v1762_v3 = vld [vmem:[%s4506_s5 + $0x138] sm:$0xff] }
 0x205   : > { %vm1590_vm12 = vcmp.gt.f32.partialorder %v1508_v7, 0.0  ;;  %v1654_v10 = vmul.f32 0.2, %v1508_v7  ;;  %2238 = vmatmul.mubr.f32.gmra.mrb[52].mxu1 %v1827_v5  ;;  %v1761_v4 = vld [vmem:[%s4506_s5 + $0x130] sm:$0xff]  ;;  %v1766_v5 = vld [vmem:[%s4506_s5 + $0x158] sm:$0xff] }
 0x206   : > { %v1512_v12 = vpop.f32.mrb[120].mxu0  ;;  %2242 = vmatprep.mubr.f32.mxu1 %v1832_v9  ;;  %v1765_v6 = vld [vmem:[%s4506_s5 + $0x150] sm:$0xff]  ;;  %v1774_v9 = vld [vmem:[%s4506_s5 + $0x198] sm:$0xff] }
 0x207   : > { %v1718_v15 = vsel %vm1590_vm12, %v1508_v7, %v1654_v10  ;;  %v1513_v16 = vadd.f32 %v1512_v12, %v936_v11  ;;  %v1514_v17 = vpop.f32.mrb[121].mxu0  ;;  %v1770_v7 = vld [vmem:[%s4506_s5 + $0x178] sm:$0xff]  ;;  %v1769_v8 = vld [vmem:[%s4506_s5 + $0x170] sm:$0xff] }
 0x208   : > { %v3030_v19 = vpack.c.bf16 %v1718_v15, %v1717_v14  ;;  %v1773_v10 = vld [vmem:[%s4506_s5 + $0x190] sm:$0xff]  ;;  %v1778_v11 = vld [vmem:[%s4506_s5 + $0x1b8] sm:$0xff] }
 0x209   : > { %2243 = vmatmul.mubr.f32.gmra.mrb[54].mxu1 %v1831_v13  ;;  %v1655_v23 = vmul.f32 0.2, %v1513_v16  ;;  %vm1591_vm13 = vcmp.gt.f32.partialorder %v1513_v16, 0.0  ;;  %v1777_v12 = vld [vmem:[%s4506_s5 + $0x1b0] sm:$0xff]  ;;  %v1782_v13 = vld [vmem:[%s4506_s5 + $0x1d8] sm:$0xff] }
 0x20a   : > { %v1517_v21 = vpop.f32.mrb[122].mxu0  ;;  %3031 = vmatpush1.bf16.msra.mxu1 %v3030_v19  ;;  %2247 = vmatprep.mubr.f32.mxu1 %v1836_v18  ;;  %v1781_v14 = vld [vmem:[%s4506_s5 + $0x1d0] sm:$0xff]  ;;  %v1786_v15 = vld [vmem:[%s4506_s5 + $0x1f8] sm:$0xff] }
 0x20b   : > { %v1518_v24 = vadd.f32 %v1517_v21, %v941_v20  ;;  %v1519_v25 = vpop.f32.mrb[123].mxu0  ;;  %3032 = vmatprep.subr.bf16.mxu1 %v3218_v1  ;;  %v1719_v31 = vsel %vm1591_vm13, %v1513_v16, %v1655_v23  ;;  %v1785_v16 = vld [vmem:[%s4506_s5 + $0x1f0] sm:$0xff]  ;;  %v1790_v17 = vld [vmem:[%s4506_s5 + $0x218] sm:$0xff] }
 0x20c   : > { %v1789_v18 = vld [vmem:[%s4506_s5 + $0x210] sm:$0xff]  ;;  %v1794_v19 = vld [vmem:[%s4506_s5 + $0x238] sm:$0xff] }
 0x20d   : > { %vm1592_vm14 = vcmp.gt.f32.partialorder %v1518_v24, 0.0  ;;  %v1656_v27 = vmul.f32 0.2, %v1518_v24  ;;  %2248 = vmatmul.mubr.f32.gmra.mrb[56].mxu1 %v1835_v22  ;;  %v1793_v20 = vld [vmem:[%s4506_s5 + $0x230] sm:$0xff]  ;;  %v1798_v21 = vld [vmem:[%s4506_s5 + $0x258] sm:$0xff] }
 0x20e   : > { %v1522_v29 = vpop.f32.mrb[124].mxu0  ;;  %2252 = vmatprep.mubr.f32.mxu1 %v1840_v26  ;;  %v1797_v22 = vld [vmem:[%s4506_s5 + $0x250] sm:$0xff]  ;;  %v1802_v23 = vld [vmem:[%s4506_s5 + $0x278] sm:$0xff] }
 0x20f   : > { %v1720_v32 = vsel %vm1592_vm14, %v1518_v24, %v1656_v27  ;;  %v1523_v33 = vadd.f32 %v1522_v29, %v946_v28  ;;  %v1524_v34 = vpop.f32.mrb[125].mxu0  ;;  %v1801_v24 = vld [vmem:[%s4506_s5 + $0x270] sm:$0xff]  ;;  %v1806_v25 = vld [vmem:[%s4506_s5 + $0x298] sm:$0xff] }
 0x210   : > { %v3033_v36 = vpack.c.bf16 %v1720_v32, %v1719_v31  ;;  %v1805_v26 = vld [vmem:[%s4506_s5 + $0x290] sm:$0xff]  ;;  %v1810_v27 = vld [vmem:[%s4506_s5 + $0x2b8] sm:$0xff] }
 0x211   : > { %2253 = vmatmul.mubr.f32.gmra.mrb[58].mxu1 %v1839_v30  ;;  %v1657_v40 = vmul.f32 0.2, %v1523_v33  ;;  %vm1593_vm15 = vcmp.gt.f32.partialorder %v1523_v33, 0.0  ;;  %v1809_v28 = vld [vmem:[%s4506_s5 + $0x2b0] sm:$0xff]  ;;  %v1814_v29 = vld [vmem:[%s4506_s5 + $0x2d8] sm:$0xff] }
 0x212   : > { %v1527_v38 = vpop.f32.mrb[126].mxu0  ;;  %3034 = vmatpush1.bf16.msra.mxu1 %v3033_v36  ;;  %2257 = vmatprep.mubr.f32.mxu1 %v1844_v35  ;;  %v1813_v30 = vld [vmem:[%s4506_s5 + $0x2d0] sm:$0xff]  ;;  %v1818_v31 = vld [vmem:[%s4506_s5 + $0x2f8] sm:$0xff] }
 0x213   : > { %v1528_v41 = vadd.f32 %v1527_v38, %v951_v37  ;;  %v1529_v42 = vpop.f32.mrb[127].mxu0  ;;  %3035 = vmatprep.subr.bf16.mxu1 %v3218_v1  ;;  %v1721_v46 = vsel %vm1593_vm15, %v1523_v33, %v1657_v40  ;;  %v1725_v1 = vld [vmem:[%s4506_s5 + $0x10] sm:$0xff]  ;;  %v1822_v33 = vld [vmem:[%s4506_s5 + $0x318] sm:$0xff] }
 0x214   : > { %v1817_v32 = vld [vmem:[%s4506_s5 + $0x2f0] sm:$0xff]  ;;  %v1826_v35 = vld [vmem:[%s4506_s5 + $0x338] sm:$0xff] }
 0x215   : > { %vm1594_vm0 = vcmp.gt.f32.partialorder %v1528_v41, 0.0  ;;  %v1658_v44 = vmul.f32 0.2, %v1528_v41  ;;  %2258 = vmatmul.mubr.f32.gmra.mrb[60].mxu1 %v1843_v39  ;;  %v1821_v34 = vld [vmem:[%s4506_s5 + $0x310] sm:$0xff]  ;;  %v1830_v37 = vld [vmem:[%s4506_s5 + $0x358] sm:$0xff] }
 0x216   : > { %2262 = vmatprep.mubr.f32.mxu1 %v1848_v43  ;;  %v1825_v36 = vld [vmem:[%s4506_s5 + $0x330] sm:$0xff]  ;;  %v1834_v39 = vld [vmem:[%s4506_s5 + $0x378] sm:$0xff] }
 0x217   : > { %v1722_v47 = vsel %vm1594_vm0, %v1528_v41, %v1658_v44  ;;  %v1829_v38 = vld [vmem:[%s4506_s5 + $0x350] sm:$0xff]  ;;  %v1838_v41 = vld [vmem:[%s4506_s5 + $0x398] sm:$0xff] }
 0x218   : > { %v3036_v49 = vpack.c.bf16 %v1722_v47, %v1721_v46  ;;  %v1833_v40 = vld [vmem:[%s4506_s5 + $0x370] sm:$0xff]  ;;  %v1842_v43 = vld [vmem:[%s4506_s5 + $0x3b8] sm:$0xff] }
 0x219   : > { %2263 = vmatmul.mubr.f32.gmra.mrb[62].mxu1 %v1847_v45  ;;  %v1837_v42 = vld [vmem:[%s4506_s5 + $0x390] sm:$0xff]  ;;  %v1846_v45 = vld [vmem:[%s4506_s5 + $0x3d8] sm:$0xff] }
 0x21a   : > { %3037 = vmatpush1.bf16.msra.mxu1 %v3036_v49  ;;  %2332 = vmatprep.mubr.f32.mxu1 %v1726_v48  ;;  %v1841_v44 = vld [vmem:[%s4506_s5 + $0x3b0] sm:$0xff]  ;;  %v1850_v47 = vld [vmem:[%s4506_s5 + $0x3f8] sm:$0xff]  ;;  %v4362_v49 = vpop.permute.xlu0 %1965 }
 0x21b   : > { %v1845_v46 = vld [vmem:[%s4506_s5 + $0x3d0] sm:$0xff] }
 0x21c   : > { %v1849_v48 = vld [vmem:[%s4506_s5 + $0x3f0] sm:$0xff] }
 0x21d   : > { %2333 = vmatmul.mubr.f32.vlgmr.msra.gmra.mrb[0].mxu1 %v1725_v1  ;;  %v4364_v1 = vpop.permute.xlu1 %1970 }
 0x21e   : > { %2337 = vmatprep.mubr.f32.mxu1 %v1730_v50  ;;  %v1886_v50 = vpop.permute.xlu0 %1885 }
 0x221   : > { %2338 = vmatmul.mubr.f32.gmra.mrb[2].mxu1 %v1729_v51  ;;  %v1891_v51 = vpop.permute.xlu1 %1890 }
 0x222   : > { %2342 = vmatprep.mubr.f32.mxu1 %v1734_v52  ;;  %v4366_v52 = vpop.permute.xlu0 %1975 }
 0x225   : > { %2343 = vmatmul.mubr.f32.gmra.mrb[4].mxu1 %v1733_v53  ;;  %v4368_v53 = vpop.permute.xlu1 %1980 }
 0x226   : > { %2347 = vmatprep.mubr.f32.mxu1 %v1738_v54  ;;  %v1896_v54 = vpop.permute.xlu0 %1895 }
 0x229   : > { %2348 = vmatmul.mubr.f32.gmra.mrb[6].mxu1 %v1737_v55  ;;  %v1901_v55 = vpop.permute.xlu1 %1900 }
 0x22a   : > { %2352 = vmatprep.mubr.f32.mxu1 %v1742_v56  ;;  %v4370_v56 = vpop.permute.xlu0 %1985 }
 0x22d   : > { %2353 = vmatmul.mubr.f32.gmra.mrb[8].mxu1 %v1741_v57  ;;  %v4372_v57 = vpop.permute.xlu1 %1990 }
 0x22e   : > { %2357 = vmatprep.mubr.f32.mxu1 %v1746_v58  ;;  %v1906_v58 = vpop.permute.xlu0 %1905 }
 0x231   : > { %2358 = vmatmul.mubr.f32.gmra.mrb[10].mxu1 %v1745_v59  ;;  %v1911_v59 = vpop.permute.xlu1 %1910 }
 0x232   : > { %2362 = vmatprep.mubr.f32.mxu1 %v1750_v60 }
 0x235   : > { %2363 = vmatmul.mubr.f32.gmra.mrb[12].mxu1 %v1749_v61 }
 0x236   : > { %2367 = vmatprep.mubr.f32.mxu1 %v1754_v62 }
 0x239   : > { %2368 = vmatmul.mubr.f32.gmra.mrb[14].mxu1 %v1753_v63  ;;  %v4374_v63 = vpop.permute.xlu0 %1995 }
 0x23a   : > { %2372 = vmatprep.mubr.f32.mxu1 %v1758_v0 }
 0x23d   : > { %2373 = vmatmul.mubr.f32.gmra.mrb[16].mxu1 %v1757_v2 }
 0x23e   : > { %2377 = vmatprep.mubr.f32.mxu1 %v1762_v3 }
 0x241   : > { %2378 = vmatmul.mubr.f32.gmra.mrb[18].mxu1 %v1761_v4 }
 0x242   : > { %2382 = vmatprep.mubr.f32.mxu1 %v1766_v5  ;;  %v2590_v5 = vld [vmem:[%s4508_s7 + $0x8] sm:$0xff] }
 0x243   : > { %2655 = vmatprep.mubr.f32.mxu0 %v2590_v5 }
 0x245   : > { %2383 = vmatmul.mubr.f32.gmra.mrb[20].mxu1 %v1765_v6  ;;  %v4379_v6 = vpop.permute.xlu1 %2000 }
 0x246   : > { %2387 = vmatprep.mubr.f32.mxu1 %v1770_v7 }
 0x249   : > { %2388 = vmatmul.mubr.f32.gmra.mrb[22].mxu1 %v1769_v8  ;;  %v1916_v8 = vpop.permute.xlu0 %1915 }
 0x24a   : > { %2392 = vmatprep.mubr.f32.mxu1 %v1774_v9 }
 0x24d   : > { %2393 = vmatmul.mubr.f32.gmra.mrb[24].mxu1 %v1773_v10 }
 0x24e   : > { %2397 = vmatprep.mubr.f32.mxu1 %v1778_v11 }
 0x251   : > { %2398 = vmatmul.mubr.f32.gmra.mrb[26].mxu1 %v1777_v12 }
 0x252   : > { %2402 = vmatprep.mubr.f32.mxu1 %v1782_v13 }
 0x255   : > { %2403 = vmatmul.mubr.f32.gmra.mrb[28].mxu1 %v1781_v14 }
 0x256   : > { %2407 = vmatprep.mubr.f32.mxu1 %v1786_v15  ;;  %v1921_v15 = vpop.permute.xlu1 %1920 }
 0x259   : > { %2408 = vmatmul.mubr.f32.gmra.mrb[30].mxu1 %v1785_v16 }
 0x25a   : > { %2412 = vmatprep.mubr.f32.mxu1 %v1790_v17 }
 0x25d   : > { %2413 = vmatmul.mubr.f32.gmra.mrb[32].mxu1 %v1789_v18 }
 0x25e   : > { %2417 = vmatprep.mubr.f32.mxu1 %v1794_v19 }
 0x261   : > { %2418 = vmatmul.mubr.f32.gmra.mrb[34].mxu1 %v1793_v20  ;;  %v4387_v20 = vpop.permute.xlu0 %2005 }
 0x262   : > { %2422 = vmatprep.mubr.f32.mxu1 %v1798_v21 }
 0x265   : > { %2423 = vmatmul.mubr.f32.gmra.mrb[36].mxu1 %v1797_v22 }
 0x266   : > { %2427 = vmatprep.mubr.f32.mxu1 %v1802_v23 }
 0x269   : > { %2428 = vmatmul.mubr.f32.gmra.mrb[38].mxu1 %v1801_v24 }
 0x26a   : > { %2432 = vmatprep.mubr.f32.mxu1 %v1806_v25 }
 0x26d   : > { %2433 = vmatmul.mubr.f32.gmra.mrb[40].mxu1 %v1805_v26 }
 0x26e   : > { %2437 = vmatprep.mubr.f32.mxu1 %v1810_v27  ;;  %v4393_v27 = vpop.permute.xlu1 %2010 }
 0x271   : > { %2438 = vmatmul.mubr.f32.gmra.mrb[42].mxu1 %v1809_v28 }
 0x272   : > { %2442 = vmatprep.mubr.f32.mxu1 %v1814_v29  ;;  %v1926_v29 = vpop.permute.xlu0 %1925 }
 0x275   : > { %2443 = vmatmul.mubr.f32.gmra.mrb[44].mxu1 %v1813_v30 }
 0x276   : > { %2447 = vmatprep.mubr.f32.mxu1 %v1818_v31 }
 0x279   : > { %2448 = vmatmul.mubr.f32.gmra.mrb[46].mxu1 %v1817_v32 }
 0x27a   : > { %2452 = vmatprep.mubr.f32.mxu1 %v1822_v33 }
 0x27d   : > { %2453 = vmatmul.mubr.f32.gmra.mrb[48].mxu1 %v1821_v34 }
 0x27e   : > { %2457 = vmatprep.mubr.f32.mxu1 %v1826_v35  ;;  %v1931_v35 = vpop.permute.xlu1 %1930 }
 0x281   : > { %2458 = vmatmul.mubr.f32.gmra.mrb[50].mxu1 %v1825_v36 }
 0x282   : > { %2462 = vmatprep.mubr.f32.mxu1 %v1830_v37 }
 0x285   : > { %2463 = vmatmul.mubr.f32.gmra.mrb[52].mxu1 %v1829_v38 }
 0x286   : > { %2467 = vmatprep.mubr.f32.mxu1 %v1834_v39 }
 0x289   : > { %2468 = vmatmul.mubr.f32.gmra.mrb[54].mxu1 %v1833_v40 }
 0x28a   : > { %2472 = vmatprep.mubr.f32.mxu1 %v1838_v41  ;;  %v4401_v41 = vpop.permute.xlu0 %2015 }
 0x28d   : > { %2473 = vmatmul.mubr.f32.gmra.mrb[56].mxu1 %v1837_v42 }
 0x28e   : > { %2477 = vmatprep.mubr.f32.mxu1 %v1842_v43 }
 0x291   : > { %2478 = vmatmul.mubr.f32.gmra.mrb[58].mxu1 %v1841_v44 }
 0x292   : > { %2482 = vmatprep.mubr.f32.mxu1 %v1846_v45 }
 0x295   : > { %2483 = vmatmul.mubr.f32.gmra.mrb[60].mxu1 %v1845_v46 }
 0x296   : > { %2487 = vmatprep.mubr.f32.mxu1 %v1850_v47  ;;  %v4405_v47 = vpop.permute.xlu1 %2020 }
 0x299   : > { %2488 = vmatmul.mubr.f32.gmra.mrb[62].mxu1 %v1849_v48 }
 0x2f0   : > { %v2334_v60 = vpop.f32.mrb[0].mxu1 }
 0x2f1   : > { %v3070_v61 = vadd.f32 %v2334_v60, %v1886_v50  ;;  %v2336_v62 = vpop.f32.mrb[1].mxu1  ;;  %v1936_v50 = vpop.permute.xlu0 %1935 }
 0x2f3   : > { %v2525_v2 = vmul.f32 0.2, %v3070_v61  ;;  %vm2493_vm1 = vcmp.gt.f32.partialorder %v3070_v61, 0.0 }
 0x2f4   : > { %v2339_v0 = vpop.f32.mrb[2].mxu1 }
 0x2f5   : > { %v3071_v3 = vadd.f32 %v2339_v0, %v1891_v51  ;;  %v2341_v4 = vpop.f32.mrb[3].mxu1  ;;  %v4381_v10 = vsel %vm2493_vm1, %v3070_v61, %v2525_v2  ;;  %v1941_v61 = vpop.permute.xlu1 %1940 }
 0x2f6   : > { %v4413_v4 = vpop.permute.xlu0 %2025 }
 0x2f7   : > { %vm2494_vm2 = vcmp.gt.f32.partialorder %v3071_v3, 0.0  ;;  %v2526_v7 = vmul.f32 0.2, %v3071_v3 }
 0x2f8   : > { %v2344_v9 = vpop.f32.mrb[4].mxu1 }
 0x2f9   : > { %v4383_v11 = vsel %vm2494_vm2, %v3071_v3, %v2526_v7  ;;  %v3072_v12 = vadd.f32 %v2344_v9, %v1896_v54  ;;  %v2346_v13 = vpop.f32.mrb[5].mxu1 }
 0x2fa   : > { %v3040_v14 = vpack.c.bf16 %v4383_v11, %v4381_v10 }
 0x2fb   : > { %v2527_v17 = vmul.f32 0.2, %v3072_v12  ;;  %vm2495_vm3 = vcmp.gt.f32.partialorder %v3072_v12, 0.0 }
 0x2fc   : > { %v2349_v16 = vpop.f32.mrb[6].mxu1 }
 0x2fd   : > { %v3073_v18 = vadd.f32 %v2349_v16, %v1901_v55  ;;  %v2351_v19 = vpop.f32.mrb[7].mxu1  ;;  %v4389_v23 = vsel %vm2495_vm3, %v3072_v12, %v2527_v17  ;;  %v1946_v17 = vpop.permute.xlu0 %1945 }
 0x2ff   : > { %vm2496_vm4 = vcmp.gt.f32.partialorder %v3073_v18, 0.0  ;;  %v2528_v21 = vmul.f32 0.2, %v3073_v18 }
 0x300   : > { %v2354_v22 = vpop.f32.mrb[8].mxu1 }
 0x301   : > { %v4391_v24 = vsel %vm2496_vm4, %v3073_v18, %v2528_v21  ;;  %v3074_v25 = vadd.f32 %v2354_v22, %v1906_v58  ;;  %v2356_v26 = vpop.f32.mrb[9].mxu1 }
 0x302   : > { %v3044_v28 = vpack.c.bf16 %v4391_v24, %v4389_v23 }
 0x303   : > { %v2529_v31 = vmul.f32 0.2, %v3074_v25  ;;  %vm2497_vm5 = vcmp.gt.f32.partialorder %v3074_v25, 0.0 }
 0x304   : > { %v2359_v30 = vpop.f32.mrb[10].mxu1 }
 0x305   : > { %v3075_v32 = vadd.f32 %v2359_v30, %v1911_v59  ;;  %v2361_v33 = vpop.f32.mrb[11].mxu1  ;;  %v4397_v37 = vsel %vm2497_vm5, %v3074_v25, %v2529_v31 }
 0x307   : > { %vm2498_vm6 = vcmp.gt.f32.partialorder %v3075_v32, 0.0  ;;  %v2530_v34 = vmul.f32 0.2, %v3075_v32 }
 0x308   : > { %v2364_v36 = vpop.f32.mrb[12].mxu1 }
 0x309   : > { %v4399_v38 = vsel %vm2498_vm6, %v3075_v32, %v2530_v34  ;;  %v3076_v39 = vadd.f32 %v2364_v36, %v1916_v8  ;;  %v2366_v40 = vpop.f32.mrb[13].mxu1  ;;  %v4427_v34 = vpop.permute.xlu0 %2035 }
 0x30a   : > { %v3048_v42 = vpack.c.bf16 %v4399_v38, %v4397_v37 }
 0x30b   : > { %v2531_v44 = vmul.f32 0.2, %v3076_v39  ;;  %vm2499_vm7 = vcmp.gt.f32.partialorder %v3076_v39, 0.0 }
 0x30c   : > { %v2369_v43 = vpop.f32.mrb[14].mxu1 }
 0x30d   : > { %v3077_v45 = vadd.f32 %v2369_v43, %v1921_v15  ;;  %v2371_v46 = vpop.f32.mrb[15].mxu1  ;;  %v4407_v54 = vsel %vm2499_vm7, %v3076_v39, %v2531_v44  ;;  %v4419_v15 = vpop.permute.xlu1 %2030 }
 0x30e   : > { %v1956_v46 = vpop.permute.xlu0 %1955 }
 0x30f   : > { %vm2500_vm8 = vcmp.gt.f32.partialorder %v3077_v45, 0.0  ;;  %v2532_v48 = vmul.f32 0.2, %v3077_v45 }
 0x310   : > { %v2374_v51 = vpop.f32.mrb[16].mxu1 }
 0x311   : > { %v4409_v55 = vsel %vm2500_vm8, %v3077_v45, %v2532_v48  ;;  %v3078_v58 = vadd.f32 %v2374_v51, %v1926_v29  ;;  %v2376_v59 = vpop.f32.mrb[17].mxu1  ;;  %v1951_v26 = vpop.permute.xlu1 %1950 }
 0x312   : > { %v3052_v60 = vpack.c.bf16 %v4409_v55, %v4407_v54 }
 0x313   : > { %v2533_v0 = vmul.f32 0.2, %v3078_v58  ;;  %vm2501_vm9 = vcmp.gt.f32.partialorder %v3078_v58, 0.0 }
 0x314   : > { %v2379_v62 = vpop.f32.mrb[18].mxu1 }
 0x315   : > { %v3079_v2 = vadd.f32 %v2379_v62, %v1931_v35  ;;  %v2381_v3 = vpop.f32.mrb[19].mxu1  ;;  %v4415_v8 = vsel %vm2501_vm9, %v3078_v58, %v2533_v0  ;;  %v4431_v44 = vpop.permute.xlu1 %2040 }
 0x317   : > { %vm2502_vm10 = vcmp.gt.f32.partialorder %v3079_v2, 0.0  ;;  %v2534_v5 = vmul.f32 0.2, %v3079_v2 }
 0x318   : > { %v2384_v7 = vpop.f32.mrb[20].mxu1 }
 0x319   : > { %v4417_v9 = vsel %vm2502_vm10, %v3079_v2, %v2534_v5  ;;  %v3080_v12 = vadd.f32 %v2384_v7, %v1936_v50  ;;  %v2386_v13 = vpop.f32.mrb[21].mxu1  ;;  %v1961_v62 = vpop.permute.xlu1 %1960 }
 0x31a   : > { %v3056_v16 = vpack.c.bf16 %v4417_v9, %v4415_v8 }
 0x31b   : > { %v2535_v19 = vmul.f32 0.2, %v3080_v12  ;;  %vm2503_vm11 = vcmp.gt.f32.partialorder %v3080_v12, 0.0 }
 0x31c   : > { %v2389_v18 = vpop.f32.mrb[22].mxu1 }
 0x31d   : > { %v3081_v21 = vadd.f32 %v2389_v18, %v1941_v61  ;;  %v2391_v22 = vpop.f32.mrb[23].mxu1  ;;  %v4423_v30 = vsel %vm2503_vm11, %v3080_v12, %v2535_v19 }
 0x31f   : > { %vm2504_vm12 = vcmp.gt.f32.partialorder %v3081_v21, 0.0  ;;  %v2536_v25 = vmul.f32 0.2, %v3081_v21 }
 0x320   : > { %v2394_v29 = vpop.f32.mrb[24].mxu1 }
 0x321   : > { %v4425_v31 = vsel %vm2504_vm12, %v3081_v21, %v2536_v25  ;;  %v3082_v32 = vadd.f32 %v2394_v29, %v1946_v17  ;;  %v2396_v33 = vpop.f32.mrb[25].mxu1 }
 0x322   : > { %v3060_v35 = vpack.c.bf16 %v4425_v31, %v4423_v30 }
 0x323   : > { %v2537_v39 = vmul.f32 0.2, %v3082_v32  ;;  %vm2505_vm13 = vcmp.gt.f32.partialorder %v3082_v32, 0.0 }
 0x324   : > { %v2399_v36 = vpop.f32.mrb[26].mxu1 }
 0x325   : > { %v3083_v40 = vadd.f32 %v2399_v36, %v1951_v26  ;;  %v2401_v43 = vpop.f32.mrb[27].mxu1  ;;  %v4433_v50 = vsel %vm2505_vm13, %v3082_v32, %v2537_v39 }
 0x327   : > { %vm2506_vm14 = vcmp.gt.f32.partialorder %v3083_v40, 0.0  ;;  %v2538_v45 = vmul.f32 0.2, %v3083_v40 }
 0x328   : > { %v2404_v48 = vpop.f32.mrb[28].mxu1 }
 0x329   : > { %v4435_v51 = vsel %vm2506_vm14, %v3083_v40, %v2538_v45  ;;  %v3084_v58 = vadd.f32 %v2404_v48, %v1956_v46  ;;  %v2406_v59 = vpop.f32.mrb[29].mxu1 }
 0x32a   : > { %v3064_v61 = vpack.c.bf16 %v4435_v51, %v4433_v50 }
 0x32b   : > { %v2539_v2 = vmul.f32 0.2, %v3084_v58  ;;  %vm2507_vm15 = vcmp.gt.f32.partialorder %v3084_v58, 0.0 }
 0x32c   : > { %v2409_v0 = vpop.f32.mrb[30].mxu1 }
 0x32d   : > { %v3085_v3 = vadd.f32 %v2409_v0, %v1961_v62  ;;  %v2411_v5 = vpop.f32.mrb[31].mxu1  ;;  %v4439_v13 = vsel %vm2507_vm15, %v3084_v58, %v2539_v2 }
 0x32f   : > { %vm2508_vm0 = vcmp.gt.f32.partialorder %v3085_v3, 0.0  ;;  %v2540_v7 = vmul.f32 0.2, %v3085_v3 }
 0x330   : > { %v2414_v12 = vpop.f32.mrb[32].mxu1 }
 0x331   : > { %v4441_v17 = vsel %vm2508_vm0, %v3085_v3, %v2540_v7  ;;  %v3086_v18 = vadd.f32 %v2414_v12, %v4362_v49  ;;  %v2416_v19 = vpop.f32.mrb[33].mxu1 }
 0x332   : > { %v3068_v21 = vpack.c.bf16 %v4441_v17, %v4439_v13 }
 0x333   : > { %v2541_v25 = vmul.f32 0.2, %v3086_v18  ;;  %vm2509_vm1 = vcmp.gt.f32.partialorder %v3086_v18, 0.0 }
 0x334   : > { %v2419_v22 = vpop.f32.mrb[34].mxu1 }
 0x335   : > { %v3087_v26 = vadd.f32 %v2419_v22, %v4364_v1  ;;  %v2421_v29 = vpop.f32.mrb[35].mxu1  ;;  %v2573_v40 = vsel %vm2509_vm1, %v3086_v18, %v2541_v25 }
 0x337   : > { %vm2510_vm2 = vcmp.gt.f32.partialorder %v3087_v26, 0.0  ;;  %v2542_v32 = vmul.f32 0.2, %v3087_v26 }
 0x338   : > { %v2424_v33 = vpop.f32.mrb[36].mxu1 }
 0x339   : > { %v3088_v36 = vadd.f32 %v2424_v33, %v4366_v52  ;;  %v2426_v39 = vpop.f32.mrb[37].mxu1  ;;  %v2574_v43 = vsel %vm2510_vm2, %v3087_v26, %v2542_v32 }
 0x33a   : > { %v3038_v45 = vpack.c.bf16 %v2574_v43, %v2573_v40 }
 0x33b   : > { %v2543_v46 = vmul.f32 0.2, %v3088_v36  ;;  %vm2511_vm3 = vcmp.gt.f32.partialorder %v3088_v36, 0.0 }
 0x33c   : > { %v2429_v49 = vpop.f32.mrb[38].mxu1  ;;  %3039 = vmatprep.subr.bf16.mxu0 %v3038_v45 }
 0x33d   : > { %v3089_v48 = vadd.f32 %v2429_v49, %v4368_v53  ;;  %v2431_v58 = vpop.f32.mrb[39].mxu1  ;;  %3041 = vmatpush3.bf16.msra.mxu0 %v3040_v14  ;;  %v2575_v0 = vsel %vm2511_vm3, %v3088_v36, %v2543_v46 }
 0x33f   : > { %vm2512_vm4 = vcmp.gt.f32.partialorder %v3089_v48, 0.0  ;;  %v2544_v1 = vmul.f32 0.2, %v3089_v48 }
 0x340   : > { %v2434_v59 = vpop.f32.mrb[40].mxu1 }
 0x341   : > { %v3090_v52 = vadd.f32 %v2434_v59, %v4370_v56  ;;  %v2436_v62 = vpop.f32.mrb[41].mxu1  ;;  %v2576_v2 = vsel %vm2512_vm4, %v3089_v48, %v2544_v1 }
 0x342   : > { %v3042_v3 = vpack.c.bf16 %v2576_v2, %v2575_v0 }
 0x343   : > { %v2545_v7 = vmul.f32 0.2, %v3090_v52  ;;  %vm2513_vm5 = vcmp.gt.f32.partialorder %v3090_v52, 0.0 }
 0x344   : > { %v2439_v5 = vpop.f32.mrb[42].mxu1  ;;  %3043 = vmatprep.subr.bf16.mxu0 %v3042_v3 }
 0x345   : > { %v3091_v53 = vadd.f32 %v2439_v5, %v4372_v57  ;;  %v2441_v12 = vpop.f32.mrb[43].mxu1  ;;  %3045 = vmatpush3.bf16.msra.mxu0 %v3044_v28  ;;  %v2577_v18 = vsel %vm2513_vm5, %v3090_v52, %v2545_v7 }
 0x347   : > { %vm2514_vm6 = vcmp.gt.f32.partialorder %v3091_v53, 0.0  ;;  %v2546_v10 = vmul.f32 0.2, %v3091_v53 }
 0x348   : > { %v2444_v11 = vpop.f32.mrb[44].mxu1 }
 0x349   : > { %v3092_v56 = vadd.f32 %v2444_v11, %v4374_v63  ;;  %v2446_v14 = vpop.f32.mrb[45].mxu1  ;;  %v2578_v19 = vsel %vm2514_vm6, %v3091_v53, %v2546_v10 }
 0x34a   : > { %v3046_v22 = vpack.c.bf16 %v2578_v19, %v2577_v18 }
 0x34b   : > { %v2547_v26 = vmul.f32 0.2, %v3092_v56  ;;  %vm2515_vm7 = vcmp.gt.f32.partialorder %v3092_v56, 0.0 }
 0x34c   : > { %v2449_v25 = vpop.f32.mrb[46].mxu1  ;;  %3047 = vmatprep.subr.bf16.mxu0 %v3046_v22 }
 0x34d   : > { %v3093_v57 = vadd.f32 %v2449_v25, %v4379_v6  ;;  %v2451_v29 = vpop.f32.mrb[47].mxu1  ;;  %3049 = vmatpush3.bf16.msra.mxu0 %v3048_v42  ;;  %v2579_v32 = vsel %vm2515_vm7, %v3092_v56, %v2547_v26 }
 0x34f   : > { %vm2516_vm8 = vcmp.gt.f32.partialorder %v3093_v57, 0.0  ;;  %v2548_v23 = vmul.f32 0.2, %v3093_v57 }
 0x350   : > { %v2454_v24 = vpop.f32.mrb[48].mxu1 }
 0x351   : > { %v3094_v63 = vadd.f32 %v2454_v24, %v4387_v20  ;;  %v2456_v28 = vpop.f32.mrb[49].mxu1  ;;  %v2580_v33 = vsel %vm2516_vm8, %v3093_v57, %v2548_v23 }
 0x352   : > { %v3050_v36 = vpack.c.bf16 %v2580_v33, %v2579_v32 }
 0x353   : > { %v2549_v40 = vmul.f32 0.2, %v3094_v63  ;;  %vm2517_vm9 = vcmp.gt.f32.partialorder %v3094_v63, 0.0 }
 0x354   : > { %v2459_v39 = vpop.f32.mrb[50].mxu1  ;;  %3051 = vmatprep.subr.bf16.mxu0 %v3050_v36 }
 0x355   : > { %v3095_v6 = vadd.f32 %v2459_v39, %v4393_v27  ;;  %v2461_v43 = vpop.f32.mrb[51].mxu1  ;;  %3053 = vmatpush3.bf16.msra.mxu0 %v3052_v60  ;;  %v2581_v45 = vsel %vm2517_vm9, %v3094_v63, %v2549_v40 }
 0x357   : > { %vm2518_vm10 = vcmp.gt.f32.partialorder %v3095_v6, 0.0  ;;  %v2550_v37 = vmul.f32 0.2, %v3095_v6 }
 0x358   : > { %v2464_v38 = vpop.f32.mrb[52].mxu1 }
 0x359   : > { %v3096_v20 = vadd.f32 %v2464_v38, %v4401_v41  ;;  %v2466_v42 = vpop.f32.mrb[53].mxu1  ;;  %v2582_v49 = vsel %vm2518_vm10, %v3095_v6, %v2550_v37 }
 0x35a   : > { %v3054_v46 = vpack.c.bf16 %v2582_v49, %v2581_v45 }
 0x35b   : > { %v2551_v58 = vmul.f32 0.2, %v3096_v20  ;;  %vm2519_vm11 = vcmp.gt.f32.partialorder %v3096_v20, 0.0 }
 0x35c   : > { %v2469_v48 = vpop.f32.mrb[54].mxu1  ;;  %3055 = vmatprep.subr.bf16.mxu0 %v3054_v46 }
 0x35d   : > { %v3097_v27 = vadd.f32 %v2469_v48, %v4405_v47  ;;  %v2471_v1 = vpop.f32.mrb[55].mxu1  ;;  %3057 = vmatpush3.bf16.msra.mxu0 %v3056_v16  ;;  %v2583_v59 = vsel %vm2519_vm11, %v3096_v20, %v2551_v58 }
 0x35f   : > { %vm2520_vm12 = vcmp.gt.f32.partialorder %v3097_v27, 0.0  ;;  %v2552_v54 = vmul.f32 0.2, %v3097_v27 }
 0x360   : > { %v2474_v55 = vpop.f32.mrb[56].mxu1 }
 0x361   : > { %v3098_v41 = vadd.f32 %v2474_v55, %v4413_v4  ;;  %v2476_v60 = vpop.f32.mrb[57].mxu1  ;;  %v2584_v52 = vsel %vm2520_vm12, %v3097_v27, %v2552_v54 }
 0x362   : > { %v3058_v62 = vpack.c.bf16 %v2584_v52, %v2583_v59 }
 0x363   : > { %v2553_v2 = vmul.f32 0.2, %v3098_v41  ;;  %vm2521_vm13 = vcmp.gt.f32.partialorder %v3098_v41, 0.0 }
 0x364   : > { %v2479_v0 = vpop.f32.mrb[58].mxu1  ;;  %3059 = vmatprep.subr.bf16.mxu0 %v3058_v62 }
 0x365   : > { %v3099_v47 = vadd.f32 %v2479_v0, %v4419_v15  ;;  %v2481_v3 = vpop.f32.mrb[59].mxu1  ;;  %3061 = vmatpush3.bf16.msra.mxu0 %v3060_v35  ;;  %v2585_v5 = vsel %vm2521_vm13, %v3098_v41, %v2553_v2 }
 0x367   : > { %vm2522_vm14 = vcmp.gt.f32.partialorder %v3099_v47, 0.0  ;;  %v2554_v8 = vmul.f32 0.2, %v3099_v47 }
 0x368   : > { %v2484_v9 = vpop.f32.mrb[60].mxu1 }
 0x369   : > { %v3100_v4 = vadd.f32 %v2484_v9, %v4427_v34  ;;  %v2486_v16 = vpop.f32.mrb[61].mxu1  ;;  %v2586_v7 = vsel %vm2522_vm14, %v3099_v47, %v2554_v8 }
 0x36a   : > { %v3062_v53 = vpack.c.bf16 %v2586_v7, %v2585_v5 }
 0x36b   : > { %v2555_v10 = vmul.f32 0.2, %v3100_v4  ;;  %vm2523_vm15 = vcmp.gt.f32.partialorder %v3100_v4, 0.0 }
 0x36c   : > { %v2489_v12 = vpop.f32.mrb[62].mxu1  ;;  %3063 = vmatprep.subr.bf16.mxu0 %v3062_v53 }
 0x36d   : > { %v3101_v15 = vadd.f32 %v2489_v12, %v4431_v44  ;;  %v2491_v11 = vpop.f32.mrb[63].mxu1  ;;  %3065 = vmatpush3.bf16.msra.mxu0 %v3064_v61  ;;  %v2587_v31 = vsel %vm2523_vm15, %v3100_v4, %v2555_v10  ;;  %v2589_v44 = vld [vmem:[%s4508_s7] sm:$0xff] }
 0x36f   : > { %vm2524_vm0 = vcmp.gt.f32.partialorder %v3101_v15, 0.0  ;;  %v2556_v30 = vmul.f32 0.2, %v3101_v15 }
 0x371   : > { %v2588_v34 = vsel %vm2524_vm0, %v3101_v15, %v2556_v30 }
 0x372   : > { %v3066_v35 = vpack.c.bf16 %v2588_v34, %v2587_v31 }
 0x374   : > { %3067 = vmatprep.subr.bf16.mxu0 %v3066_v35 }
 0x375   : > { %3069 = vmatpush3.bf16.msra.mxu0 %v3068_v21 }
 0x378   : > { %2656 = vmatmul.mubr.f32.vlgmr.msra.gmra.mrb[128].mxu0 %v2589_v44 }
 0x44b   : > { %v2903_v56 = vpop.f32.mrb[128].mxu0 }
 0x44c   : > { %v2904_v50 = vpop.f32.mrb[129].mxu0 }
 0x44d   : > { %v2905_v51 = vadd.f32 %v2904_v50, %v2903_v56 }
 0x44f   : > { %2661 = vst [vmem:[%s416_s16] sm:$0xff] %v2905_v51 }
 0x450 PF: > { %s18_s29 = sadd.s32 1, %s3216_s29   ;;  %s4510_s27 = smov %s3212_s28 }
 0x451   : > { %p15_p5 = scmp.ge.s32.totalorder %s18_s29, 4   ;;  %s4511_s28 = smov %s4513_s30 }
 0x453   :  { %17 = sbr.rel (!%p15_p5) target bundleno = 2 (0x2), region = 91 }

// kernel: _lambda_.23
= control target key start
LH: loop header
LB: loop body
LE: loop exit
PB: predicated region body
PF: predicated region fallthrough
CT: control target
= control target key end

     0   :  { %vm40_vm0 = vcmask 64512   ;;  %s1111_s0 = inlined_call_operand.vmem [shape: f32[256,8], index: 0, kind: input, shape index: {}]   ;;  %s1112_s1 = inlined_call_operand.vmem [shape: f32[256,8], index: 1, kind: output, shape index: {}]  }
   0x1   :  { %v570_v0 = vld [vmem:[%s1111_s0] sm:$0xff]  ;;  %v575_v1 = vld [vmem:[%s1111_s0 + $0x10] sm:$0xff]  ;;  %v580_v2 = vld [vmem:[%s1111_s0 + $0x8] sm:$0xff] }
   0x2   :  { %v41_v3 = vsel %vm40_vm0, %v570_v0, -inf  ;;  %v47_v4 = vsel %vm40_vm0, %v575_v1, -inf  ;;  %v589_v5 = vld [vmem:[%s1111_s0 + $0x18] sm:$0xff]  ;;  %v44_v6 = vsel %vm40_vm0, %v580_v2, -inf  ;;  %v598_v8 = vld [vmem:[%s1111_s0 + $0x20] sm:$0xff]  ;;  %v603_v9 = vld [vmem:[%s1111_s0 + $0x28] sm:$0xff] }
   0x3   :  { %42 = vmax.xlane.f32.xlu0 %v41_v3  ;;  %48 = vmax.xlane.f32.xlu1 %v47_v4  ;;  %v50_v7 = vsel %vm40_vm0, %v589_v5, -inf  ;;  %v53_v10 = vsel %vm40_vm0, %v598_v8, -inf  ;;  %v56_v11 = vsel %vm40_vm0, %v603_v9, -inf  ;;  %v612_v12 = vld [vmem:[%s1111_s0 + $0x30] sm:$0xff]  ;;  %v617_v13 = vld [vmem:[%s1111_s0 + $0x38] sm:$0xff]  ;;  %v626_v16 = vld [vmem:[%s1111_s0 + $0x40] sm:$0xff] }
   0x4   :  { %v59_v14 = vsel %vm40_vm0, %v612_v12, -inf  ;;  %v62_v15 = vsel %vm40_vm0, %v617_v13, -inf  ;;  %v631_v17 = vld [vmem:[%s1111_s0 + $0x48] sm:$0xff]  ;;  %v65_v18 = vsel %vm40_vm0, %v626_v16, -inf  ;;  %v640_v20 = vld [vmem:[%s1111_s0 + $0x50] sm:$0xff]  ;;  %v645_v21 = vld [vmem:[%s1111_s0 + $0x58] sm:$0xff] }
   0x5   :  { %v68_v19 = vsel %vm40_vm0, %v631_v17, -inf  ;;  %v71_v22 = vsel %vm40_vm0, %v640_v20, -inf  ;;  %v74_v23 = vsel %vm40_vm0, %v645_v21, -inf  ;;  %v654_v24 = vld [vmem:[%s1111_s0 + $0x60] sm:$0xff]  ;;  %v659_v25 = vld [vmem:[%s1111_s0 + $0x68] sm:$0xff]  ;;  %v668_v28 = vld [vmem:[%s1111_s0 + $0x70] sm:$0xff] }
   0x6   :  { %v77_v26 = vsel %vm40_vm0, %v654_v24, -inf  ;;  %v80_v27 = vsel %vm40_vm0, %v659_v25, -inf  ;;  %v673_v29 = vld [vmem:[%s1111_s0 + $0x78] sm:$0xff]  ;;  %v83_v30 = vsel %vm40_vm0, %v668_v28, -inf  ;;  %v682_v32 = vld [vmem:[%s1111_s0 + $0x80] sm:$0xff]  ;;  %v687_v33 = vld [vmem:[%s1111_s0 + $0x88] sm:$0xff] }
   0x7   :  { %45 = vmax.xlane.f32.xlu0 %v44_v6  ;;  %51 = vmax.xlane.f32.xlu1 %v50_v7  ;;  %v86_v31 = vsel %vm40_vm0, %v673_v29, -inf  ;;  %v89_v34 = vsel %vm40_vm0, %v682_v32, -inf  ;;  %v92_v35 = vsel %vm40_vm0, %v687_v33, -inf  ;;  %v696_v36 = vld [vmem:[%s1111_s0 + $0x90] sm:$0xff]  ;;  %v701_v37 = vld [vmem:[%s1111_s0 + $0x98] sm:$0xff]  ;;  %v710_v40 = vld [vmem:[%s1111_s0 + $0xa0] sm:$0xff] }
   0x8   :  { %v95_v38 = vsel %vm40_vm0, %v696_v36, -inf  ;;  %v98_v39 = vsel %vm40_vm0, %v701_v37, -inf  ;;  %v715_v41 = vld [vmem:[%s1111_s0 + $0xa8] sm:$0xff]  ;;  %v101_v42 = vsel %vm40_vm0, %v710_v40, -inf  ;;  %v724_v44 = vld [vmem:[%s1111_s0 + $0xb0] sm:$0xff]  ;;  %v729_v45 = vld [vmem:[%s1111_s0 + $0xb8] sm:$0xff] }
   0x9   :  { %v104_v43 = vsel %vm40_vm0, %v715_v41, -inf  ;;  %v107_v46 = vsel %vm40_vm0, %v724_v44, -inf  ;;  %v110_v47 = vsel %vm40_vm0, %v729_v45, -inf  ;;  %v738_v48 = vld [vmem:[%s1111_s0 + $0xc0] sm:$0xff]  ;;  %v743_v49 = vld [vmem:[%s1111_s0 + $0xc8] sm:$0xff]  ;;  %v752_v52 = vld [vmem:[%s1111_s0 + $0xd0] sm:$0xff] }
   0xa   :  { %v113_v50 = vsel %vm40_vm0, %v738_v48, -inf  ;;  %v116_v51 = vsel %vm40_vm0, %v743_v49, -inf  ;;  %v757_v53 = vld [vmem:[%s1111_s0 + $0xd8] sm:$0xff]  ;;  %v119_v54 = vsel %vm40_vm0, %v752_v52, -inf  ;;  %v766_v56 = vld [vmem:[%s1111_s0 + $0xe0] sm:$0xff]  ;;  %v771_v57 = vld [vmem:[%s1111_s0 + $0xe8] sm:$0xff] }
   0xb   :  { %54 = vmax.xlane.f32.xlu0 %v53_v10  ;;  %57 = vmax.xlane.f32.xlu1 %v56_v11  ;;  %v122_v55 = vsel %vm40_vm0, %v757_v53, -inf  ;;  %v125_v58 = vsel %vm40_vm0, %v766_v56, -inf  ;;  %v128_v59 = vsel %vm40_vm0, %v771_v57, -inf  ;;  %v780_v60 = vld [vmem:[%s1111_s0 + $0xf0] sm:$0xff]  ;;  %v785_v61 = vld [vmem:[%s1111_s0 + $0xf8] sm:$0xff] }
   0xc   :  { %v131_v62 = vsel %vm40_vm0, %v780_v60, -inf  ;;  %v134_v63 = vsel %vm40_vm0, %v785_v61, -inf }
   0xf   :  { %60 = vmax.xlane.f32.xlu0 %v59_v14  ;;  %63 = vmax.xlane.f32.xlu1 %v62_v15 }
  0x13   :  { %66 = vmax.xlane.f32.xlu0 %v65_v18  ;;  %69 = vmax.xlane.f32.xlu1 %v68_v19 }
  0x17   :  { %72 = vmax.xlane.f32.xlu0 %v71_v22  ;;  %75 = vmax.xlane.f32.xlu1 %v74_v23 }
  0x1b   :  { %78 = vmax.xlane.f32.xlu0 %v77_v26  ;;  %81 = vmax.xlane.f32.xlu1 %v80_v27 }
  0x1f   :  { %84 = vmax.xlane.f32.xlu0 %v83_v30  ;;  %87 = vmax.xlane.f32.xlu1 %v86_v31 }
  0x23   :  { %90 = vmax.xlane.f32.xlu0 %v89_v34  ;;  %93 = vmax.xlane.f32.xlu1 %v92_v35 }
  0x27   :  { %96 = vmax.xlane.f32.xlu0 %v95_v38  ;;  %99 = vmax.xlane.f32.xlu1 %v98_v39 }
  0x2b   :  { %102 = vmax.xlane.f32.xlu0 %v101_v42  ;;  %105 = vmax.xlane.f32.xlu1 %v104_v43 }
  0x2f   :  { %108 = vmax.xlane.f32.xlu0 %v107_v46  ;;  %111 = vmax.xlane.f32.xlu1 %v110_v47 }
  0x33   :  { %114 = vmax.xlane.f32.xlu0 %v113_v50  ;;  %117 = vmax.xlane.f32.xlu1 %v116_v51 }
  0x37   :  { %120 = vmax.xlane.f32.xlu0 %v119_v54  ;;  %123 = vmax.xlane.f32.xlu1 %v122_v55 }
  0x3b   :  { %126 = vmax.xlane.f32.xlu0 %v125_v58  ;;  %129 = vmax.xlane.f32.xlu1 %v128_v59 }
  0x3f   :  { %132 = vmax.xlane.f32.xlu0 %v131_v62  ;;  %135 = vmax.xlane.f32.xlu1 %v134_v63 }
  0x90   :  { %v43_v3 = vpop.xlane.xlu0 %42  ;;  %v49_v4 = vpop.xlane.xlu1 %48 }
  0x91   :  { %v137_v6 = vsub.f32 %v570_v0, %v43_v3  ;;  %v139_v7 = vsub.f32 %v575_v1, %v49_v4 }
  0x93   :  { %v169_v10 = vmul.f32 1.442695, %v137_v6  ;;  %v173_v11 = vmul.f32 1.442695, %v139_v7 }
  0x94   :  { %v46_v14 = vpop.xlane.xlu0 %45  ;;  %v52_v15 = vpop.xlane.xlu1 %51 }
  0x95   :  { %429 = vpow2.f32 %v169_v10  ;;  %v138_v18 = vsub.f32 %v580_v2, %v46_v14  ;;  %v140_v19 = vsub.f32 %v589_v5, %v52_v15 }
  0x96   :  { %431 = vpow2.f32 %v173_v11 }
  0x97   :  { %v171_v22 = vmul.f32 1.442695, %v138_v18  ;;  %v175_v23 = vmul.f32 1.442695, %v140_v19 }
  0x98   :  { %v55_v26 = vpop.xlane.xlu0 %54  ;;  %v58_v27 = vpop.xlane.xlu1 %57 }
  0x99   :  { %433 = vpow2.f32 %v171_v22  ;;  %v141_v30 = vsub.f32 %v598_v8, %v55_v26  ;;  %v142_v0 = vsub.f32 %v603_v9, %v58_v27 }
  0x9a   :  { %435 = vpow2.f32 %v175_v23 }
  0x9b   :  { %v177_v1 = vmul.f32 1.442695, %v141_v30  ;;  %v179_v31 = vmul.f32 1.442695, %v142_v0 }
  0x9c   :  { %v61_v34 = vpop.xlane.xlu0 %60  ;;  %v64_v35 = vpop.xlane.xlu1 %63 }
  0x9d   :  { %437 = vpow2.f32 %v177_v1  ;;  %v143_v2 = vsub.f32 %v612_v12, %v61_v34  ;;  %v144_v5 = vsub.f32 %v617_v13, %v64_v35 }
  0x9e   :  { %439 = vpow2.f32 %v179_v31 }
  0x9f   :  { %v799_v38 = vpop.eup %429  ;;  %v181_v39 = vmul.f32 1.442695, %v143_v2  ;;  %v183_v42 = vmul.f32 1.442695, %v144_v5 }
  0xa0   :  { %v801_v43 = vpop.eup %431  ;;  %v67_v8 = vpop.xlane.xlu0 %66  ;;  %v233_v9 = vsel %vm40_vm0, %v799_v38, 0.0 }
  0xa1   :  { %v70_v46 = vpop.xlane.xlu1 %69  ;;  %441 = vpow2.f32 %v181_v39  ;;  %v145_v47 = vsub.f32 %v626_v16, %v67_v8  ;;  %234 = vadd.xlane.f32.xlu0 %v233_v9  ;;  %v239_v13 = vsel %vm40_vm0, %v801_v43, 0.0 }
  0xa2   :  { %v146_v12 = vsub.f32 %v631_v17, %v70_v46  ;;  %443 = vpow2.f32 %v183_v42 }
  0xa3   :  { %v809_v50 = vpop.eup %433  ;;  %v185_v51 = vmul.f32 1.442695, %v145_v47 }
  0xa4   :  { %v187_v54 = vmul.f32 1.442695, %v146_v12  ;;  %v811_v55 = vpop.eup %435  ;;  %v73_v58 = vpop.xlane.xlu0 %72  ;;  %v236_v59 = vsel %vm40_vm0, %v809_v50, 0.0 }
  0xa5   :  { %v76_v62 = vpop.xlane.xlu1 %75  ;;  %445 = vpow2.f32 %v185_v51  ;;  %v147_v16 = vsub.f32 %v640_v20, %v73_v58  ;;  %240 = vadd.xlane.f32.xlu0 %v239_v13  ;;  %237 = vadd.xlane.f32.xlu1 %v236_v59  ;;  %v242_v63 = vsel %vm40_vm0, %v811_v55, 0.0 }
  0xa6   :  { %v148_v17 = vsub.f32 %v645_v21, %v76_v62  ;;  %447 = vpow2.f32 %v187_v54 }
  0xa7   :  { %v819_v3 = vpop.eup %437  ;;  %v189_v4 = vmul.f32 1.442695, %v147_v16 }
  0xa8   :  { %v191_v6 = vmul.f32 1.442695, %v148_v17  ;;  %v821_v7 = vpop.eup %439  ;;  %v79_v10 = vpop.xlane.xlu0 %78  ;;  %v245_v11 = vsel %vm40_vm0, %v819_v3, 0.0 }
  0xa9   :  { %v82_v14 = vpop.xlane.xlu1 %81  ;;  %449 = vpow2.f32 %v189_v4  ;;  %v149_v20 = vsub.f32 %v654_v24, %v79_v10  ;;  %243 = vadd.xlane.f32.xlu1 %v242_v63  ;;  %246 = vadd.xlane.f32.xlu0 %v245_v11  ;;  %v248_v15 = vsel %vm40_vm0, %v821_v7, 0.0 }
  0xaa   :  { %v150_v21 = vsub.f32 %v659_v25, %v82_v14  ;;  %451 = vpow2.f32 %v191_v6 }
  0xab   :  { %v829_v18 = vpop.eup %441  ;;  %v193_v19 = vmul.f32 1.442695, %v149_v20 }
  0xac   :  { %v195_v22 = vmul.f32 1.442695, %v150_v21  ;;  %v831_v23 = vpop.eup %443  ;;  %v85_v26 = vpop.xlane.xlu0 %84  ;;  %v251_v27 = vsel %vm40_vm0, %v829_v18, 0.0 }
  0xad   :  { %v88_v30 = vpop.xlane.xlu1 %87  ;;  %453 = vpow2.f32 %v193_v19  ;;  %v151_v24 = vsub.f32 %v668_v28, %v85_v26  ;;  %249 = vadd.xlane.f32.xlu1 %v248_v15  ;;  %252 = vadd.xlane.f32.xlu0 %v251_v27  ;;  %v254_v0 = vsel %vm40_vm0, %v831_v23, 0.0 }
  0xae   :  { %v152_v25 = vsub.f32 %v673_v29, %v88_v30  ;;  %455 = vpow2.f32 %v195_v22 }
  0xaf   :  { %v839_v1 = vpop.eup %445  ;;  %v197_v31 = vmul.f32 1.442695, %v151_v24 }
  0xb0   :  { %v199_v34 = vmul.f32 1.442695, %v152_v25  ;;  %v841_v35 = vpop.eup %447  ;;  %v91_v2 = vpop.xlane.xlu0 %90  ;;  %v257_v5 = vsel %vm40_vm0, %v839_v1, 0.0 }
  0xb1   :  { %v94_v39 = vpop.xlane.xlu1 %93  ;;  %457 = vpow2.f32 %v197_v31  ;;  %v153_v28 = vsub.f32 %v682_v32, %v91_v2  ;;  %255 = vadd.xlane.f32.xlu1 %v254_v0  ;;  %258 = vadd.xlane.f32.xlu0 %v257_v5  ;;  %v260_v42 = vsel %vm40_vm0, %v841_v35, 0.0 }
  0xb2   :  { %v154_v29 = vsub.f32 %v687_v33, %v94_v39  ;;  %459 = vpow2.f32 %v199_v34 }
  0xb3   :  { %v849_v8 = vpop.eup %449  ;;  %v201_v9 = vmul.f32 1.442695, %v153_v28 }
  0xb4   :  { %v203_v46 = vmul.f32 1.442695, %v154_v29  ;;  %v851_v47 = vpop.eup %451  ;;  %v97_v12 = vpop.xlane.xlu0 %96  ;;  %v263_v13 = vsel %vm40_vm0, %v849_v8, 0.0 }
  0xb5   :  { %v100_v51 = vpop.xlane.xlu1 %99  ;;  %461 = vpow2.f32 %v201_v9  ;;  %v155_v32 = vsub.f32 %v696_v36, %v97_v12  ;;  %261 = vadd.xlane.f32.xlu1 %v260_v42  ;;  %264 = vadd.xlane.f32.xlu0 %v263_v13  ;;  %v266_v54 = vsel %vm40_vm0, %v851_v47, 0.0 }
  0xb6   :  { %v156_v33 = vsub.f32 %v701_v37, %v100_v51  ;;  %463 = vpow2.f32 %v203_v46 }
  0xb7   :  { %v859_v58 = vpop.eup %453  ;;  %v205_v59 = vmul.f32 1.442695, %v155_v32 }
  0xb8   :  { %v207_v62 = vmul.f32 1.442695, %v156_v33  ;;  %v861_v16 = vpop.eup %455  ;;  %v103_v17 = vpop.xlane.xlu0 %102  ;;  %v269_v63 = vsel %vm40_vm0, %v859_v58, 0.0 }
  0xb9   :  { %v106_v4 = vpop.xlane.xlu1 %105  ;;  %465 = vpow2.f32 %v205_v59  ;;  %v157_v36 = vsub.f32 %v710_v40, %v103_v17  ;;  %267 = vadd.xlane.f32.xlu1 %v266_v54  ;;  %270 = vadd.xlane.f32.xlu0 %v269_v63  ;;  %v272_v6 = vsel %vm40_vm0, %v861_v16, 0.0 }
  0xba   :  { %v158_v37 = vsub.f32 %v715_v41, %v106_v4  ;;  %467 = vpow2.f32 %v207_v62 }
  0xbb   :  { %v869_v10 = vpop.eup %457  ;;  %v209_v11 = vmul.f32 1.442695, %v157_v36 }
  0xbc   :  { %v211_v14 = vmul.f32 1.442695, %v158_v37  ;;  %v871_v20 = vpop.eup %459  ;;  %v109_v21 = vpop.xlane.xlu0 %108  ;;  %v275_v15 = vsel %vm40_vm0, %v869_v10, 0.0 }
  0xbd   :  { %v112_v19 = vpop.xlane.xlu1 %111  ;;  %469 = vpow2.f32 %v209_v11  ;;  %v159_v40 = vsub.f32 %v724_v44, %v109_v21  ;;  %273 = vadd.xlane.f32.xlu1 %v272_v6  ;;  %276 = vadd.xlane.f32.xlu0 %v275_v15  ;;  %v278_v22 = vsel %vm40_vm0, %v871_v20, 0.0 }
  0xbe   :  { %v160_v41 = vsub.f32 %v729_v45, %v112_v19  ;;  %471 = vpow2.f32 %v211_v14 }
  0xbf   :  { %v879_v26 = vpop.eup %461  ;;  %v213_v27 = vmul.f32 1.442695, %v159_v40 }
  0xc0   :  { %v215_v30 = vmul.f32 1.442695, %v160_v41  ;;  %v881_v24 = vpop.eup %463  ;;  %v115_v25 = vpop.xlane.xlu0 %114  ;;  %v281_v0 = vsel %vm40_vm0, %v879_v26, 0.0 }
  0xc1   :  { %v118_v31 = vpop.xlane.xlu1 %117  ;;  %473 = vpow2.f32 %v213_v27  ;;  %v161_v44 = vsub.f32 %v738_v48, %v115_v25  ;;  %279 = vadd.xlane.f32.xlu1 %v278_v22  ;;  %282 = vadd.xlane.f32.xlu0 %v281_v0  ;;  %v284_v34 = vsel %vm40_vm0, %v881_v24, 0.0 }
  0xc2   :  { %v162_v45 = vsub.f32 %v743_v49, %v118_v31  ;;  %475 = vpow2.f32 %v215_v30 }
  0xc3   :  { %v889_v2 = vpop.eup %465  ;;  %v217_v5 = vmul.f32 1.442695, %v161_v44 }
  0xc4   :  { %v219_v39 = vmul.f32 1.442695, %v162_v45  ;;  %v891_v28 = vpop.eup %467  ;;  %v121_v29 = vpop.xlane.xlu0 %120  ;;  %v287_v42 = vsel %vm40_vm0, %v889_v2, 0.0 }
  0xc5   :  { %v124_v9 = vpop.xlane.xlu1 %123  ;;  %477 = vpow2.f32 %v217_v5  ;;  %v163_v48 = vsub.f32 %v752_v52, %v121_v29  ;;  %285 = vadd.xlane.f32.xlu1 %v284_v34  ;;  %288 = vadd.xlane.f32.xlu0 %v287_v42  ;;  %v290_v46 = vsel %vm40_vm0, %v891_v28, 0.0 }
  0xc6   :  { %v164_v49 = vsub.f32 %v757_v53, %v124_v9  ;;  %479 = vpow2.f32 %v219_v39 }
  0xc7   :  { %v899_v12 = vpop.eup %469  ;;  %v221_v13 = vmul.f32 1.442695, %v163_v48 }
  0xc8   :  { %v223_v51 = vmul.f32 1.442695, %v164_v49  ;;  %v901_v32 = vpop.eup %471  ;;  %v127_v33 = vpop.xlane.xlu0 %126  ;;  %v293_v54 = vsel %vm40_vm0, %v899_v12, 0.0 }
  0xc9   :  { %v130_v59 = vpop.xlane.xlu1 %129  ;;  %481 = vpow2.f32 %v221_v13  ;;  %v165_v52 = vsub.f32 %v766_v56, %v127_v33  ;;  %291 = vadd.xlane.f32.xlu1 %v290_v46  ;;  %294 = vadd.xlane.f32.xlu0 %v293_v54  ;;  %v296_v62 = vsel %vm40_vm0, %v901_v32, 0.0 }
  0xca   :  { %v166_v53 = vsub.f32 %v771_v57, %v130_v59  ;;  %483 = vpow2.f32 %v223_v51 }
  0xcb   :  { %v909_v17 = vpop.eup %473  ;;  %v225_v63 = vmul.f32 1.442695, %v165_v52 }
  0xcc   :  { %v227_v4 = vmul.f32 1.442695, %v166_v53  ;;  %v911_v36 = vpop.eup %475  ;;  %v133_v37 = vpop.xlane.xlu0 %132  ;;  %v299_v6 = vsel %vm40_vm0, %v909_v17, 0.0 }
  0xcd   :  { %v136_v11 = vpop.xlane.xlu1 %135  ;;  %485 = vpow2.f32 %v225_v63  ;;  %v167_v56 = vsub.f32 %v780_v60, %v133_v37  ;;  %297 = vadd.xlane.f32.xlu1 %v296_v62  ;;  %300 = vadd.xlane.f32.xlu0 %v299_v6  ;;  %v302_v14 = vsel %vm40_vm0, %v911_v36, 0.0 }
  0xce   :  { %v168_v57 = vsub.f32 %v785_v61, %v136_v11  ;;  %487 = vpow2.f32 %v227_v4 }
  0xcf   :  { %v919_v21 = vpop.eup %477  ;;  %v229_v15 = vmul.f32 1.442695, %v167_v56 }
  0xd0   :  { %v231_v19 = vmul.f32 1.442695, %v168_v57  ;;  %v921_v40 = vpop.eup %479  ;;  %v305_v41 = vsel %vm40_vm0, %v919_v21, 0.0 }
  0xd1   :  { %489 = vpow2.f32 %v229_v15  ;;  %303 = vadd.xlane.f32.xlu1 %v302_v14  ;;  %306 = vadd.xlane.f32.xlu0 %v305_v41  ;;  %v308_v60 = vsel %vm40_vm0, %v921_v40, 0.0 }
  0xd2   :  { %491 = vpow2.f32 %v231_v19 }
  0xd3   :  { %v927_v61 = vpop.eup %481 }
  0xd4   :  { %v929_v22 = vpop.eup %483  ;;  %v311_v27 = vsel %vm40_vm0, %v927_v61, 0.0 }
  0xd5   :  { %309 = vadd.xlane.f32.xlu1 %v308_v60  ;;  %312 = vadd.xlane.f32.xlu0 %v311_v27  ;;  %v314_v30 = vsel %vm40_vm0, %v929_v22, 0.0 }
  0xd7   :  { %v935_v25 = vpop.eup %485 }
  0xd8   :  { %v937_v0 = vpop.eup %487  ;;  %v317_v31 = vsel %vm40_vm0, %v935_v25, 0.0 }
  0xd9   :  { %315 = vadd.xlane.f32.xlu1 %v314_v30  ;;  %318 = vadd.xlane.f32.xlu0 %v317_v31  ;;  %v320_v44 = vsel %vm40_vm0, %v937_v0, 0.0 }
  0xdb   :  { %v943_v45 = vpop.eup %489 }
  0xdc   :  { %v945_v34 = vpop.eup %491  ;;  %v323_v5 = vsel %vm40_vm0, %v943_v45, 0.0 }
  0xdd   :  { %321 = vadd.xlane.f32.xlu1 %v320_v44  ;;  %324 = vadd.xlane.f32.xlu0 %v323_v5  ;;  %v326_v39 = vsel %vm40_vm0, %v945_v34, 0.0 }
  0xe1   :  { %327 = vadd.xlane.f32.xlu1 %v326_v39 }
 0x12e   :  { %v235_v29 = vpop.xlane.xlu0 %234 }
 0x12f   :  { %493 = vrcp.f32 %v235_v29 }
 0x132   :  { %v238_v42 = vpop.xlane.xlu1 %237  ;;  %v241_v9 = vpop.xlane.xlu0 %240 }
 0x133   :  { %495 = vrcp.f32 %v238_v42 }
 0x134   :  { %497 = vrcp.f32 %v241_v9 }
 0x136   :  { %v244_v48 = vpop.xlane.xlu1 %243  ;;  %v247_v49 = vpop.xlane.xlu0 %246 }
 0x137   :  { %499 = vrcp.f32 %v244_v48 }
 0x138   :  { %501 = vrcp.f32 %v247_v49 }
 0x139   :  { %v494_v46 = vpop.eup %493 }
 0x13a   :  { %v361_v13 = vmul.f32 %v494_v46, %v799_v38  ;;  %v250_v51 = vpop.xlane.xlu1 %249  ;;  %v253_v33 = vpop.xlane.xlu0 %252 }
 0x13b   :  { %503 = vrcp.f32 %v250_v51 }
 0x13c   :  { %393 = vst.msk [vmem:[%s1112_s1] sm:$0xff] %vm40_vm0, %v361_v13  ;;  %505 = vrcp.f32 %v253_v33 }
 0x13d   :  { %v496_v54 = vpop.eup %495 }
 0x13e   :  { %v498_v59 = vpop.eup %497  ;;  %v362_v52 = vmul.f32 %v496_v54, %v809_v50  ;;  %v256_v53 = vpop.xlane.xlu1 %255 }
 0x13f   :  { %v259_v62 = vpop.xlane.xlu0 %258  ;;  %v363_v63 = vmul.f32 %v498_v59, %v801_v43  ;;  %507 = vrcp.f32 %v256_v53 }
 0x140   :  { %394 = vst.msk [vmem:[%s1112_s1 + $0x8] sm:$0xff] %vm40_vm0, %v362_v52  ;;  %509 = vrcp.f32 %v259_v62 }
 0x141   :  { %v500_v38 = vpop.eup %499  ;;  %395 = vst.msk [vmem:[%s1112_s1 + $0x10] sm:$0xff] %vm40_vm0, %v363_v63 }
 0x142   :  { %v502_v4 = vpop.eup %501  ;;  %v364_v50 = vmul.f32 %v500_v38, %v811_v55  ;;  %v262_v37 = vpop.xlane.xlu1 %261 }
 0x143   :  { %v265_v6 = vpop.xlane.xlu0 %264  ;;  %v365_v43 = vmul.f32 %v502_v4, %v819_v3  ;;  %511 = vrcp.f32 %v262_v37 }
 0x144   :  { %396 = vst.msk [vmem:[%s1112_s1 + $0x18] sm:$0xff] %vm40_vm0, %v364_v50  ;;  %513 = vrcp.f32 %v265_v6 }
 0x145   :  { %v504_v11 = vpop.eup %503  ;;  %397 = vst.msk [vmem:[%s1112_s1 + $0x20] sm:$0xff] %vm40_vm0, %v365_v43 }
 0x146   :  { %v506_v56 = vpop.eup %505  ;;  %v366_v55 = vmul.f32 %v504_v11, %v821_v7  ;;  %v268_v57 = vpop.xlane.xlu1 %267 }
 0x147   :  { %v271_v14 = vpop.xlane.xlu0 %270  ;;  %v367_v3 = vmul.f32 %v506_v56, %v829_v18  ;;  %515 = vrcp.f32 %v268_v57 }
 0x148   :  { %398 = vst.msk [vmem:[%s1112_s1 + $0x28] sm:$0xff] %vm40_vm0, %v366_v55  ;;  %517 = vrcp.f32 %v271_v14 }
 0x149   :  { %v508_v15 = vpop.eup %507  ;;  %399 = vst.msk [vmem:[%s1112_s1 + $0x30] sm:$0xff] %vm40_vm0, %v367_v3 }
 0x14a   :  { %v510_v19 = vpop.eup %509  ;;  %v368_v7 = vmul.f32 %v508_v15, %v831_v23  ;;  %v274_v41 = vpop.xlane.xlu1 %273 }
 0x14b   :  { %v277_v60 = vpop.xlane.xlu0 %276  ;;  %v369_v18 = vmul.f32 %v510_v19, %v839_v1  ;;  %519 = vrcp.f32 %v274_v41 }
 0x14c   :  { %400 = vst.msk [vmem:[%s1112_s1 + $0x38] sm:$0xff] %vm40_vm0, %v368_v7  ;;  %521 = vrcp.f32 %v277_v60 }
 0x14d   :  { %v512_v27 = vpop.eup %511  ;;  %401 = vst.msk [vmem:[%s1112_s1 + $0x40] sm:$0xff] %vm40_vm0, %v369_v18 }
 0x14e   :  { %v514_v30 = vpop.eup %513  ;;  %v370_v23 = vmul.f32 %v512_v27, %v841_v35  ;;  %v280_v31 = vpop.xlane.xlu1 %279 }
 0x14f   :  { %v283_v44 = vpop.xlane.xlu0 %282  ;;  %v371_v1 = vmul.f32 %v514_v30, %v849_v8  ;;  %523 = vrcp.f32 %v280_v31 }
 0x150   :  { %402 = vst.msk [vmem:[%s1112_s1 + $0x48] sm:$0xff] %vm40_vm0, %v370_v23  ;;  %525 = vrcp.f32 %v283_v44 }
 0x151   :  { %v516_v5 = vpop.eup %515  ;;  %403 = vst.msk [vmem:[%s1112_s1 + $0x50] sm:$0xff] %vm40_vm0, %v371_v1 }
 0x152   :  { %v518_v39 = vpop.eup %517  ;;  %v372_v35 = vmul.f32 %v516_v5, %v851_v47  ;;  %v286_v29 = vpop.xlane.xlu1 %285 }
 0x153   :  { %v289_v42 = vpop.xlane.xlu0 %288  ;;  %v373_v8 = vmul.f32 %v518_v39, %v859_v58  ;;  %527 = vrcp.f32 %v286_v29 }
 0x154   :  { %404 = vst.msk [vmem:[%s1112_s1 + $0x58] sm:$0xff] %vm40_vm0, %v372_v35  ;;  %529 = vrcp.f32 %v289_v42 }
 0x155   :  { %v520_v9 = vpop.eup %519  ;;  %405 = vst.msk [vmem:[%s1112_s1 + $0x60] sm:$0xff] %vm40_vm0, %v373_v8 }
 0x156   :  { %v522_v48 = vpop.eup %521  ;;  %v374_v47 = vmul.f32 %v520_v9, %v861_v16  ;;  %v292_v49 = vpop.xlane.xlu1 %291 }
 0x157   :  { %v295_v46 = vpop.xlane.xlu0 %294  ;;  %v375_v58 = vmul.f32 %v522_v48, %v869_v10  ;;  %531 = vrcp.f32 %v292_v49 }
 0x158   :  { %406 = vst.msk [vmem:[%s1112_s1 + $0x68] sm:$0xff] %vm40_vm0, %v374_v47  ;;  %533 = vrcp.f32 %v295_v46 }
 0x159   :  { %v524_v13 = vpop.eup %523  ;;  %407 = vst.msk [vmem:[%s1112_s1 + $0x70] sm:$0xff] %vm40_vm0, %v375_v58 }
 0x15a   :  { %v526_v51 = vpop.eup %525  ;;  %v376_v16 = vmul.f32 %v524_v13, %v871_v20  ;;  %v298_v33 = vpop.xlane.xlu1 %297 }
 0x15b   :  { %v301_v54 = vpop.xlane.xlu0 %300  ;;  %v377_v10 = vmul.f32 %v526_v51, %v879_v26  ;;  %535 = vrcp.f32 %v298_v33 }
 0x15c   :  { %408 = vst.msk [vmem:[%s1112_s1 + $0x78] sm:$0xff] %vm40_vm0, %v376_v16  ;;  %537 = vrcp.f32 %v301_v54 }
 0x15d   :  { %v528_v59 = vpop.eup %527  ;;  %409 = vst.msk [vmem:[%s1112_s1 + $0x80] sm:$0xff] %vm40_vm0, %v377_v10 }
 0x15e   :  { %v530_v52 = vpop.eup %529  ;;  %v378_v20 = vmul.f32 %v528_v59, %v881_v24  ;;  %v304_v53 = vpop.xlane.xlu1 %303 }
 0x15f   :  { %v307_v62 = vpop.xlane.xlu0 %306  ;;  %v379_v26 = vmul.f32 %v530_v52, %v889_v2  ;;  %539 = vrcp.f32 %v304_v53 }
 0x160   :  { %410 = vst.msk [vmem:[%s1112_s1 + $0x88] sm:$0xff] %vm40_vm0, %v378_v20  ;;  %541 = vrcp.f32 %v307_v62 }
 0x161   :  { %v532_v63 = vpop.eup %531  ;;  %411 = vst.msk [vmem:[%s1112_s1 + $0x90] sm:$0xff] %vm40_vm0, %v379_v26 }
 0x162   :  { %v534_v38 = vpop.eup %533  ;;  %v380_v24 = vmul.f32 %v532_v63, %v891_v28  ;;  %v310_v4 = vpop.xlane.xlu1 %309 }
 0x163   :  { %v313_v50 = vpop.xlane.xlu0 %312  ;;  %v381_v2 = vmul.f32 %v534_v38, %v899_v12  ;;  %543 = vrcp.f32 %v310_v4 }
 0x164   :  { %412 = vst.msk [vmem:[%s1112_s1 + $0x98] sm:$0xff] %vm40_vm0, %v380_v24  ;;  %545 = vrcp.f32 %v313_v50 }
 0x165   :  { %v536_v37 = vpop.eup %535  ;;  %413 = vst.msk [vmem:[%s1112_s1 + $0xa0] sm:$0xff] %vm40_vm0, %v381_v2 }
 0x166   :  { %v538_v6 = vpop.eup %537  ;;  %v382_v28 = vmul.f32 %v536_v37, %v901_v32  ;;  %v316_v43 = vpop.xlane.xlu1 %315 }
 0x167   :  { %v319_v11 = vpop.xlane.xlu0 %318  ;;  %v383_v12 = vmul.f32 %v538_v6, %v909_v17  ;;  %547 = vrcp.f32 %v316_v43 }
 0x168   :  { %414 = vst.msk [vmem:[%s1112_s1 + $0xa8] sm:$0xff] %vm40_vm0, %v382_v28  ;;  %549 = vrcp.f32 %v319_v11 }
 0x169   :  { %v540_v56 = vpop.eup %539  ;;  %415 = vst.msk [vmem:[%s1112_s1 + $0xb0] sm:$0xff] %vm40_vm0, %v383_v12 }
 0x16a   :  { %v542_v55 = vpop.eup %541  ;;  %v384_v32 = vmul.f32 %v540_v56, %v911_v36  ;;  %v322_v57 = vpop.xlane.xlu1 %321 }
 0x16b   :  { %v325_v14 = vpop.xlane.xlu0 %324  ;;  %v385_v17 = vmul.f32 %v542_v55, %v919_v21  ;;  %551 = vrcp.f32 %v322_v57 }
 0x16c   :  { %416 = vst.msk [vmem:[%s1112_s1 + $0xb8] sm:$0xff] %vm40_vm0, %v384_v32  ;;  %553 = vrcp.f32 %v325_v14 }
 0x16d   :  { %v544_v3 = vpop.eup %543  ;;  %417 = vst.msk [vmem:[%s1112_s1 + $0xc0] sm:$0xff] %vm40_vm0, %v385_v17 }
 0x16e   :  { %v546_v15 = vpop.eup %545  ;;  %v386_v36 = vmul.f32 %v544_v3, %v921_v40  ;;  %v328_v19 = vpop.xlane.xlu1 %327 }
 0x16f   :  { %v387_v7 = vmul.f32 %v546_v15, %v927_v61  ;;  %555 = vrcp.f32 %v328_v19 }
 0x170   :  { %418 = vst.msk [vmem:[%s1112_s1 + $0xc8] sm:$0xff] %vm40_vm0, %v386_v36 }
 0x171   :  { %v548_v21 = vpop.eup %547  ;;  %419 = vst.msk [vmem:[%s1112_s1 + $0xd0] sm:$0xff] %vm40_vm0, %v387_v7 }
 0x172   :  { %v550_v41 = vpop.eup %549  ;;  %v388_v60 = vmul.f32 %v548_v21, %v929_v22 }
 0x173   :  { %v389_v40 = vmul.f32 %v550_v41, %v935_v25 }
 0x174   :  { %420 = vst.msk [vmem:[%s1112_s1 + $0xd8] sm:$0xff] %vm40_vm0, %v388_v60 }
 0x175   :  { %v552_v61 = vpop.eup %551  ;;  %421 = vst.msk [vmem:[%s1112_s1 + $0xe0] sm:$0xff] %vm40_vm0, %v389_v40 }
 0x176   :  { %v554_v18 = vpop.eup %553  ;;  %v390_v27 = vmul.f32 %v552_v61, %v937_v0 }
 0x177   :  { %v391_v30 = vmul.f32 %v554_v18, %v943_v45 }
 0x178   :  { %422 = vst.msk [vmem:[%s1112_s1 + $0xe8] sm:$0xff] %vm40_vm0, %v390_v27 }
 0x179   :  { %v556_v22 = vpop.eup %555  ;;  %423 = vst.msk [vmem:[%s1112_s1 + $0xf0] sm:$0xff] %vm40_vm0, %v391_v30 }
 0x17a   :  { %v392_v25 = vmul.f32 %v556_v22, %v945_v34 }
 0x17c   :  { %424 = vst.msk [vmem:[%s1112_s1 + $0xf8] sm:$0xff] %vm40_vm0, %v392_v25 }

</bundles_post_ra>
